<compile_context>
chip_gen: v6e
topology: v6e:2x2x1
jax: 0.10.0
libtpu: 0.0.40
codegen_flags: <defaults>
</compile_context>

<pallas_src>
import jax
import jax.numpy as jnp
from jax import lax
from jax.experimental import pallas as pl
from jax.experimental.pallas import tpu as pltpu

KH, KW = 2, 31                 # kernel size fixed by the module spec
PAD_W = (KW - 1) // 2          # 15
KER = (KH, KW)
PAD = (0, PAD_W)
BN_EPS = 1e-5


def _vmem_limit(nbytes):
    """Scoped-VMEM request derived from actual buffer footprint (+ headroom)."""
    return int(min(max(2 * nbytes + (4 << 20), 16 << 20), 100 << 20))


def _sliding_max(v, win):
    """Max over every length-`win` window along the last axis (log depth,
    contiguous lane shifts only)."""
    size = 1
    while size < win:
        step = min(size, win - size)
        v = jnp.maximum(v[..., : v.shape[-1] - step], v[..., step:])
        size += step
    return v


# ---------------------------------------------------------------------------
# MaxPool2d((2,31), stride=2, padding=(0,15)) on (N,H,C,W) input, with an
# optional fused per-channel (folded BN) affine + ReLU applied before pooling.
# ---------------------------------------------------------------------------

def maxpool2d_nhcw(x, scale=None, shift=None):
    n, h, c, w = x.shape
    ho = (h - KH) // 2 + 1
    wo = (w + 2 * PAD_W - KW) // 2 + 1
    fuse_bn = scale is not None

    # -inf pad + even/odd de-interleave of the raw input.  XLA fuses the
    # pad + strided slice (and the preceding transpose) into one producer pass;
    # no other full-tensor glue is materialized before the kernel.
    xpad = jnp.pad(x, ((0, 0), (0, 0), (0, 0), (PAD_W, PAD_W)),
                   constant_values=-jnp.inf)
    xe = xpad[..., 0::2]          # even padded columns -> 16-tap window
    xo = xpad[..., 1::2]          # odd  padded columns -> 15-tap window
    we, wos = xe.shape[-1], xo.shape[-1]

    # Whole-batch block when it comfortably fits VMEM, else per-image blocks.
    per_img = (h * c * (we + wos) + ho * c * wo) * 4
    nb = n if 2 * n * per_img <= (8 << 20) else 1
    grid = (pl.cdiv(n, nb),)
    k_even, k_odd = (KW + 1) // 2, KW // 2

    def kernel(*refs):
        if fuse_bn:
            xe_ref, xo_ref, sc_ref, sh_ref, out_ref = refs
        else:
            xe_ref, xo_ref, out_ref = refs
        e = xe_ref[...]                                   # (nb, h, c, we)
        o = xo_ref[...]                                   # (nb, h, c, wos)
        if fuse_bn:
            sc = sc_ref[...][None, None]                  # (1,1,c,1)
            sh = sh_ref[...][None, None]

            def bn_relu(v):
                valid = v > -jnp.inf                      # keep -inf pads
                return jnp.where(valid,
                                 jnp.maximum(v * sc + sh, 0.0),
                                 -jnp.inf)
            e = bn_relu(e)
            o = bn_relu(o)
        # kh=2 / stride-2 height pair-max via leading-dim reshape (no strided
        # slices, no >4-D intermediates).
        e = e[:, :2 * ho].reshape(nb * ho, 2, c, we)
        e = jnp.maximum(e[:, 0], e[:, 1])                 # (nb*ho, c, we)
        o = o[:, :2 * ho].reshape(nb * ho, 2, c, wos)
        o = jnp.maximum(o[:, 0], o[:, 1])
        se = _sliding_max(e, k_even)[..., :wo]
        so = _sliding_max(o, k_odd)[..., :wo]
        out_ref[...] = jnp.maximum(se, so)                # (nb*ho, c, wo)

    in_specs = [pl.BlockSpec((nb, h, c, we), lambda i: (i, 0, 0, 0)),
                pl.BlockSpec((nb, h, c, wos), lambda i: (i, 0, 0, 0))]
    args = [xe, xo]
    if fuse_bn:
        in_specs += [pl.BlockSpec((c, 1), lambda i: (0, 0)),
                     pl.BlockSpec((c, 1), lambda i: (0, 0))]
        args += [scale, shift]

    out = pl.pallas_call(
        kernel,
        grid=grid,
        in_specs=in_specs,
        out_specs=pl.BlockSpec((nb * ho, c, wo), lambda i: (i, 0, 0)),
        out_shape=jax.ShapeDtypeStruct((n * ho, c, wo), jnp.float32),
        compiler_params=pltpu.CompilerParams(
            dimension_semantics=("parallel",),
            vmem_limit_bytes=_vmem_limit(nb * per_img)),
    )(*args)
    return out.reshape(n, ho, c, wo)


# ---------------------------------------------------------------------------
# Conv2d((2,31), stride=1, padding=(0,15)) + bias on (N,H,C,W) input.
# Returns y in NCHW layout (N,Co,Ho,Wo) plus per-image channel sum /
# sum-of-squares (N,Co,1) for the (two-pass, training-mode) BatchNorm.
# ---------------------------------------------------------------------------

def conv2d_bias_stats(x, w, b):
    n, hin, ci, win = x.shape
    co = w.shape[0]
    ho = hin - KH + 1
    wo = win                              # "same" width padding
    wp = win + 2 * PAD_W
    cp = ((ci + 7) // 8) * 8              # channel pad lives ONLY in VMEM scratch
    k = KW * KH * cp

    # (N,H,C,W) -> (N, H*C, W): pure view, no HBM pad / expansion pass.
    x2 = x.reshape(n, hin * ci, win)
    # (Co,Ci,KH,KW) -> (Co,K), K ordered (kw, kh, c_pad) to match in-kernel cols.
    wz = jnp.pad(jnp.asarray(w, jnp.float32), ((0, 0), (0, cp - ci), (0, 0), (0, 0)))
    wmat = wz.transpose(0, 3, 2, 1).reshape(co, k)
    bcol = jnp.asarray(b, jnp.float32).reshape(co, 1)

    def kernel(x_ref, w_ref, b_ref, y_ref, s_ref, q_ref, slab, cols):
        # Zero-padded per-image slab built in VMEM scratch (never in HBM).
        # Re-zeroed every step (scratch persists per-core across iterations).
        slab[...] = jnp.zeros_like(slab)
        xv = x_ref[0, :, :]                               # (hin*ci, win)
        for hi in range(hin):
            slab[hi * cp:hi * cp + ci, PAD_W:PAD_W + win] = \
                xv[hi * ci:(hi + 1) * ci, :]
        # im2col for ALL ho output rows of this image, written once into a VMEM
        # scratch, then a single MXU matmul with a lane-dense (ho*wo) free dim.
        for h in range(ho):
            rows = slab[h * cp:(h + KH) * cp, :]          # (KH*cp, wp), aligned
            colh = jnp.concatenate(
                [rows[:, j:j + wo] for j in range(KW)], axis=0)   # (K, wo)
            cols[:, h * wo:(h + 1) * wo] = colh
        acc = jnp.dot(w_ref[...], cols[...],
                      preferred_element_type=jnp.float32)          # (Co, Ho*Wo)
        acc = acc + b_ref[...]
        y_ref[0, :, :] = acc
        # Per-image BN statistics; reduced over images in cheap XLA glue so the
        # image axis stays "parallel" (megacore-shardable, no accumulator race).
        s_ref[0, :, :] = jnp.sum(acc, axis=1, keepdims=True)
        q_ref[0, :, :] = jnp.sum(acc * acc, axis=1, keepdims=True)

    scratch_bytes = (hin * cp * wp + k * ho * wo) * 4
    blk_bytes = (hin * ci * win + co * k + co + co * ho * wo + 2 * co) * 4

    y, s, q = pl.pallas_call(
        kernel,
        grid=(n,),
        in_specs=[pl.BlockSpec((1, hin * ci, win), lambda i: (i, 0, 0)),
                  pl.BlockSpec((co, k), lambda i: (0, 0)),
                  pl.BlockSpec((co, 1), lambda i: (0, 0))],
        out_specs=[pl.BlockSpec((1, co, ho * wo), lambda i: (i, 0, 0)),
                   pl.BlockSpec((1, co, 1), lambda i: (i, 0, 0)),
                   pl.BlockSpec((1, co, 1), lambda i: (i, 0, 0))],
        out_shape=(jax.ShapeDtypeStruct((n, co, ho * wo), jnp.float32),
                   jax.ShapeDtypeStruct((n, co, 1), jnp.float32),
                   jax.ShapeDtypeStruct((n, co, 1), jnp.float32)),
        scratch_shapes=[pltpu.VMEM((hin * cp, wp), jnp.float32),
                        pltpu.VMEM((k, ho * wo), jnp.float32)],
        compiler_params=pltpu.CompilerParams(
            dimension_semantics=("parallel",),
            vmem_limit_bytes=_vmem_limit(blk_bytes + scratch_bytes)),
    )(x2, wmat, bcol)
    return y.reshape(n, co, ho, wo), s, q


# ---------------------------------------------------------------------------
# BatchNorm2d (training-mode batch stats) folding + final ReLU apply.
# ---------------------------------------------------------------------------

def bn_fold(s_img, q_img, gamma, beta, count):
    """Fold per-image conv stats into a per-channel (scale, shift)."""
    s = jnp.sum(s_img, axis=0)                       # (Co, 1)
    q = jnp.sum(q_img, axis=0)
    mean = s / count
    # TODO(synk): E[x^2]-E[x]^2 can cancel for large-magnitude activations; a
    # mean-shifted / Welford accumulation would be more robust numerically.
    var = jnp.maximum(q / count - mean * mean, 0.0)
    scale = gamma.reshape(-1, 1) * lax.rsqrt(var + BN_EPS)
    shift = beta.reshape(-1, 1) - scale * mean
    return scale, shift


def bn_relu_apply_nchw(y, scale, shift):
    """Folded BN affine + ReLU on (N,Co,Ho,Wo); used only for the final stage
    (the stage-1 apply is fused into the stage-2 maxpool kernel)."""
    n, co, ho, wo = y.shape
    hw = ho * wo
    y3 = y.reshape(n, co, hw)

    def kernel(y_ref, sc_ref, sh_ref, o_ref):
        o_ref[...] = jnp.maximum(
            y_ref[...] * sc_ref[...][None] + sh_ref[...][None], 0.0)

    out = pl.pallas_call(
        kernel,
        grid=(n,),
        in_specs=[pl.BlockSpec((1, co, hw), lambda i: (i, 0, 0)),
                  pl.BlockSpec((co, 1), lambda i: (0, 0)),
                  pl.BlockSpec((co, 1), lambda i: (0, 0))],
        out_specs=pl.BlockSpec((1, co, hw), lambda i: (i, 0, 0)),
        out_shape=jax.ShapeDtypeStruct((n, co, hw), jnp.float32),
        compiler_params=pltpu.CompilerParams(
            dimension_semantics=("parallel",),
            vmem_limit_bytes=_vmem_limit((2 * co * hw + 2 * co) * 4)),
    )(y3, scale, shift)
    return out.reshape(n, co, ho, wo)


# ---------------------------------------------------------------------------
# Encoder2d forward
# ---------------------------------------------------------------------------

def encoder2d_forward(x, p):
    n = x.shape[0]
    # NCHW -> (N,H,C,W); this transpose fuses with the pool-1 pad/split glue.
    xn = x.transpose(0, 2, 1, 3).astype(jnp.float32)

    # stage 1: pool -> conv(+bias, per-image stats)
    xp1 = maxpool2d_nhcw(xn)
    y1, s1, q1 = conv2d_bias_stats(xp1, p["w1"], p["b1"])
    _, c1, h1, w1 = y1.shape
    sc1, sh1 = bn_fold(s1, q1, p["g1"], p["bt1"], float(n * h1 * w1))

    # stage 2: (stage-1 BN+ReLU fused into) pool -> conv -> BN+ReLU
    y1_nhcw = y1.transpose(0, 2, 1, 3)          # fuses with pool-2 pad/split glue
    xp2 = maxpool2d_nhcw(y1_nhcw, scale=sc1, shift=sh1)
    y2, s2, q2 = conv2d_bias_stats(xp2, p["w2"], p["b2"])
    _, c2, h2, w2 = y2.shape
    sc2, sh2 = bn_fold(s2, q2, p["g2"], p["bt2"], float(n * h2 * w2))
    return bn_relu_apply_nchw(y2, sc2, sh2)     # already NCHW; no exit transpose


# ------------------------------ params / reference --------------------------

def init_params(key, in_ch, out_ch):
    kh, kw = KER
    ks = jax.random.split(key, 8)
    mid = 2 * in_ch
    return dict(
        w1=jax.random.normal(ks[0], (mid, in_ch, kh, kw), jnp.float32) * 0.05,
        b1=jax.random.normal(ks[1], (mid,), jnp.float32) * 0.05,
        g1=1.0 + 0.1 * jax.random.normal(ks[2], (mid,), jnp.float32),
        bt1=0.1 * jax.random.normal(ks[3], (mid,), jnp.float32),
        w2=jax.random.normal(ks[4], (out_ch, mid, kh, kw), jnp.float32) * 0.05,
        b2=jax.random.normal(ks[5], (out_ch,), jnp.float32) * 0.05,
        g2=1.0 + 0.1 * jax.random.normal(ks[6], (out_ch,), jnp.float32),
        bt2=0.1 * jax.random.normal(ks[7], (out_ch,), jnp.float32),
    )


def _ref_forward(x, p):
    """Pure-JAX reference with identical semantics (sanity check)."""
    def pool(x):
        return lax.reduce_window(
            x, -jnp.inf, lax.max,
            window_dimensions=(1, 1, KER[0], KER[1]),
            window_strides=(1, 1, 2, 2),
            padding=((0, 0), (0, 0), (PAD[0], PAD[0]), (PAD[1], PAD[1])))

    def conv(x, w, b):
        y = lax.conv_general_dilated(
            x, w, (1, 1), ((PAD[0], PAD[0]), (PAD[1], PAD[1])),
            dimension_numbers=("NCHW", "OIHW", "NCHW"),
            precision=lax.Precision.HIGHEST)
        return y + b[None, :, None, None]

    def bn_relu(x, g, bt):
        mean = x.mean(axis=(0, 2, 3), keepdims=True)
        var = ((x - mean) ** 2).mean(axis=(0, 2, 3), keepdims=True)
        y = (g[None, :, None, None] * (x - mean) / jnp.sqrt(var + BN_EPS)
             + bt[None, :, None, None])
        return jnp.maximum(y, 0.0)

    x = pool(x)
    x = bn_relu(conv(x, p["w1"], p["b1"]), p["g1"], p["bt1"])
    x = pool(x)
    x = bn_relu(conv(x, p["w2"], p["b2"]), p["g2"], p["bt2"])
    return x


if __name__ == "__main__":
    in_ch, out_ch = 4, 8
    key = jax.random.PRNGKey(0)
    kx, kp = jax.random.split(key)
    x = jax.random.normal(kx, (2, in_ch, 16, 64), jnp.float32)   # NCHW
    params = init_params(kp, in_ch, out_ch)

    fwd = jax.jit(encoder2d_forward)
    out = jax.block_until_ready(fwd(x, params))
    assert out.shape == (2, out_ch, 2, 16), out.shape

    ref = jax.block_until_ready(_ref_forward(x, params))
    err = float(jnp.max(jnp.abs(out - ref)))
    assert jnp.allclose(out, ref, atol=2e-2, rtol=2e-2), err

    print("KERNEL_OK")
</pallas_src>

<mosaic_0001>
module attributes {stable_mosaic.version = 11 : i64} {
  func.func @kernel(%arg0: i32, %arg1: memref<2x16x4x47xf32, #tpu.memory_space<vmem>>, %arg2: memref<2x16x4x47xf32, #tpu.memory_space<vmem>>, %arg3: memref<16x4x32xf32, #tpu.memory_space<vmem>>) attributes {dimension_semantics = [#tpu.dimension_semantics<parallel>], iteration_bounds = array<i64: 1>, scalar_prefetch = 0 : i64, scratch_operands = 0 : i64, tpu.core_type = #tpu.core_type<tc>, window_params = [{transform_indices = @transform_0, window_bounds = array<i64: 2, 16, 4, 47>}, {transform_indices = @transform_1, window_bounds = array<i64: 2, 16, 4, 47>}, {transform_indices = @transform_2, window_bounds = array<i64: 16, 4, 32>}]} {
    %c0 = arith.constant 0 : index
    %c0_0 = arith.constant 0 : index
    %c0_1 = arith.constant 0 : index
    %c0_2 = arith.constant 0 : index
    %0 = vector.load %arg1[%c0, %c0_0, %c0_1, %c0_2] : memref<2x16x4x47xf32, #tpu.memory_space<vmem>>, vector<2x16x4x47xf32>
    %c0_3 = arith.constant 0 : index
    %c0_4 = arith.constant 0 : index
    %c0_5 = arith.constant 0 : index
    %c0_6 = arith.constant 0 : index
    %1 = vector.load %arg2[%c0_3, %c0_4, %c0_5, %c0_6] : memref<2x16x4x47xf32, #tpu.memory_space<vmem>>, vector<2x16x4x47xf32>
    %2 = vector.shape_cast %0 : vector<2x16x4x47xf32> to vector<16x2x4x47xf32>
    %3 = vector.extract_strided_slice %2 {offsets = [0, 0, 0, 0], sizes = [16, 1, 4, 47], strides = [1, 1, 1, 1]} : vector<16x2x4x47xf32> to vector<16x1x4x47xf32>
    %4 = vector.shape_cast %3 : vector<16x1x4x47xf32> to vector<16x4x47xf32>
    %5 = vector.extract_strided_slice %2 {offsets = [0, 1, 0, 0], sizes = [16, 1, 4, 47], strides = [1, 1, 1, 1]} : vector<16x2x4x47xf32> to vector<16x1x4x47xf32>
    %6 = vector.shape_cast %5 : vector<16x1x4x47xf32> to vector<16x4x47xf32>
    %7 = arith.maximumf %4, %6 : vector<16x4x47xf32>
    %8 = vector.shape_cast %1 : vector<2x16x4x47xf32> to vector<16x2x4x47xf32>
    %9 = vector.extract_strided_slice %8 {offsets = [0, 0, 0, 0], sizes = [16, 1, 4, 47], strides = [1, 1, 1, 1]} : vector<16x2x4x47xf32> to vector<16x1x4x47xf32>
    %10 = vector.shape_cast %9 : vector<16x1x4x47xf32> to vector<16x4x47xf32>
    %11 = vector.extract_strided_slice %8 {offsets = [0, 1, 0, 0], sizes = [16, 1, 4, 47], strides = [1, 1, 1, 1]} : vector<16x2x4x47xf32> to vector<16x1x4x47xf32>
    %12 = vector.shape_cast %11 : vector<16x1x4x47xf32> to vector<16x4x47xf32>
    %13 = arith.maximumf %10, %12 : vector<16x4x47xf32>
    %14 = vector.extract_strided_slice %7 {offsets = [0, 0, 0], sizes = [16, 4, 46], strides = [1, 1, 1]} : vector<16x4x47xf32> to vector<16x4x46xf32>
    %15 = vector.extract_strided_slice %7 {offsets = [0, 0, 1], sizes = [16, 4, 46], strides = [1, 1, 1]} : vector<16x4x47xf32> to vector<16x4x46xf32>
    %16 = arith.maximumf %14, %15 : vector<16x4x46xf32>
    %17 = vector.extract_strided_slice %16 {offsets = [0, 0, 0], sizes = [16, 4, 44], strides = [1, 1, 1]} : vector<16x4x46xf32> to vector<16x4x44xf32>
    %18 = vector.extract_strided_slice %16 {offsets = [0, 0, 2], sizes = [16, 4, 44], strides = [1, 1, 1]} : vector<16x4x46xf32> to vector<16x4x44xf32>
    %19 = arith.maximumf %17, %18 : vector<16x4x44xf32>
    %20 = vector.extract_strided_slice %19 {offsets = [0, 0, 0], sizes = [16, 4, 40], strides = [1, 1, 1]} : vector<16x4x44xf32> to vector<16x4x40xf32>
    %21 = vector.extract_strided_slice %19 {offsets = [0, 0, 4], sizes = [16, 4, 40], strides = [1, 1, 1]} : vector<16x4x44xf32> to vector<16x4x40xf32>
    %22 = arith.maximumf %20, %21 : vector<16x4x40xf32>
    %23 = vector.extract_strided_slice %22 {offsets = [0, 0, 0], sizes = [16, 4, 32], strides = [1, 1, 1]} : vector<16x4x40xf32> to vector<16x4x32xf32>
    %24 = vector.extract_strided_slice %22 {offsets = [0, 0, 8], sizes = [16, 4, 32], strides = [1, 1, 1]} : vector<16x4x40xf32> to vector<16x4x32xf32>
    %25 = arith.maximumf %23, %24 : vector<16x4x32xf32>
    %26 = vector.extract_strided_slice %13 {offsets = [0, 0, 0], sizes = [16, 4, 46], strides = [1, 1, 1]} : vector<16x4x47xf32> to vector<16x4x46xf32>
    %27 = vector.extract_strided_slice %13 {offsets = [0, 0, 1], sizes = [16, 4, 46], strides = [1, 1, 1]} : vector<16x4x47xf32> to vector<16x4x46xf32>
    %28 = arith.maximumf %26, %27 : vector<16x4x46xf32>
    %29 = vector.extract_strided_slice %28 {offsets = [0, 0, 0], sizes = [16, 4, 44], strides = [1, 1, 1]} : vector<16x4x46xf32> to vector<16x4x44xf32>
    %30 = vector.extract_strided_slice %28 {offsets = [0, 0, 2], sizes = [16, 4, 44], strides = [1, 1, 1]} : vector<16x4x46xf32> to vector<16x4x44xf32>
    %31 = arith.maximumf %29, %30 : vector<16x4x44xf32>
    %32 = vector.extract_strided_slice %31 {offsets = [0, 0, 0], sizes = [16, 4, 40], strides = [1, 1, 1]} : vector<16x4x44xf32> to vector<16x4x40xf32>
    %33 = vector.extract_strided_slice %31 {offsets = [0, 0, 4], sizes = [16, 4, 40], strides = [1, 1, 1]} : vector<16x4x44xf32> to vector<16x4x40xf32>
    %34 = arith.maximumf %32, %33 : vector<16x4x40xf32>
    %35 = vector.extract_strided_slice %34 {offsets = [0, 0, 0], sizes = [16, 4, 33], strides = [1, 1, 1]} : vector<16x4x40xf32> to vector<16x4x33xf32>
    %36 = vector.extract_strided_slice %34 {offsets = [0, 0, 7], sizes = [16, 4, 33], strides = [1, 1, 1]} : vector<16x4x40xf32> to vector<16x4x33xf32>
    %37 = arith.maximumf %35, %36 : vector<16x4x33xf32>
    %38 = vector.extract_strided_slice %37 {offsets = [0, 0, 0], sizes = [16, 4, 32], strides = [1, 1, 1]} : vector<16x4x33xf32> to vector<16x4x32xf32>
    %39 = arith.maximumf %25, %38 : vector<16x4x32xf32>
    %c0_7 = arith.constant 0 : index
    %c0_8 = arith.constant 0 : index
    %c0_9 = arith.constant 0 : index
    %40 = vector.load %arg3[%c0_7, %c0_8, %c0_9] : memref<16x4x32xf32, #tpu.memory_space<vmem>>, vector<16x4x32xf32>
    tpu.vector_store %arg3[%c0_7, %c0_8, %c0_9], %39 {strides = array<i32>} : memref<16x4x32xf32, #tpu.memory_space<vmem>>, vector<16x4x32xf32>,
    return
  }
  func.func @transform_0(%arg0: i32) -> (i32, i32, i32, i32) {
    %c0_i32 = arith.constant 0 : i32
    %c0_i32_0 = arith.constant 0 : i32
    %c0_i32_1 = arith.constant 0 : i32
    %c0_i32_2 = arith.constant 0 : i32
    return %arg0, %c0_i32, %c0_i32_0, %c0_i32_1 : i32, i32, i32, i32
  }
  func.func @transform_1(%arg0: i32) -> (i32, i32, i32, i32) {
    %c0_i32 = arith.constant 0 : i32
    %c0_i32_0 = arith.constant 0 : i32
    %c0_i32_1 = arith.constant 0 : i32
    %c0_i32_2 = arith.constant 0 : i32
    return %arg0, %c0_i32, %c0_i32_0, %c0_i32_1 : i32, i32, i32, i32
  }
  func.func @transform_2(%arg0: i32) -> (i32, i32, i32) {
    %c0_i32 = arith.constant 0 : i32
    %c0_i32_0 = arith.constant 0 : i32
    %c0_i32_1 = arith.constant 0 : i32
    return %arg0, %c0_i32, %c0_i32_0 : i32, i32, i32
  }
}

module attributes {stable_mosaic.version = 11 : i64} {
  func.func @kernel(%arg0: i32, %arg1: memref<1x32x32xf32, #tpu.memory_space<vmem>>, %arg2: memref<8x496xf32, #tpu.memory_space<vmem>>, %arg3: memref<8x1xf32, #tpu.memory_space<vmem>>, %arg4: memref<1x8x224xf32, #tpu.memory_space<vmem>>, %arg5: memref<1x8x1xf32, #tpu.memory_space<vmem>>, %arg6: memref<1x8x1xf32, #tpu.memory_space<vmem>>, %arg7: memref<64x62xf32, #tpu.memory_space<vmem>>, %arg8: memref<496x224xf32, #tpu.memory_space<vmem>>) attributes {dimension_semantics = [#tpu.dimension_semantics<parallel>], iteration_bounds = array<i64: 2>, scalar_prefetch = 0 : i64, scratch_operands = 2 : i64, tpu.core_type = #tpu.core_type<tc>, window_params = [{transform_indices = @transform_0, window_bounds = array<i64: 1, 32, 32>}, {pipeline_mode = #tpu.pipeline_mode<synchronous>, transform_indices = @transform_1, window_bounds = array<i64: 8, 496>}, {pipeline_mode = #tpu.pipeline_mode<synchronous>, transform_indices = @transform_2, window_bounds = array<i64: 8, 1>}, {transform_indices = @transform_3, window_bounds = array<i64: 1, 8, 224>}, {transform_indices = @transform_4, window_bounds = array<i64: 1, 8, 1>}, {transform_indices = @transform_5, window_bounds = array<i64: 1, 8, 1>}]} {
    %cst = arith.constant 0.000000e+00 : f32
    %0 = vector.broadcast %cst : f32 to vector<64x62xf32>
    %c0 = arith.constant 0 : index
    %c0_0 = arith.constant 0 : index
    %1 = vector.load %arg7[%c0, %c0_0] : memref<64x62xf32, #tpu.memory_space<vmem>>, vector<64x62xf32>
    tpu.vector_store %arg7[%c0, %c0_0], %0 {strides = array<i32>} : memref<64x62xf32, #tpu.memory_space<vmem>>, vector<64x62xf32>,
    %c0_1 = arith.constant 0 : index
    %c0_2 = arith.constant 0 : index
    %c0_3 = arith.constant 0 : index
    %2 = vector.load %arg1[%c0_1, %c0_2, %c0_3] : memref<1x32x32xf32, #tpu.memory_space<vmem>>, vector<1x32x32xf32>
    %3 = vector.shape_cast %2 : vector<1x32x32xf32> to vector<32x32xf32>
    %4 = vector.extract_strided_slice %3 {offsets = [0, 0], sizes = [4, 32], strides = [1, 1]} : vector<32x32xf32> to vector<4x32xf32>
    %c0_4 = arith.constant 0 : index
    %c15 = arith.constant 15 : index
    %5 = vector.load %arg7[%c0_4, %c15] : memref<64x62xf32, #tpu.memory_space<vmem>>, vector<4x32xf32>
    tpu.vector_store %arg7[%c0_4, %c15], %4 {strides = array<i32>} : memref<64x62xf32, #tpu.memory_space<vmem>>, vector<4x32xf32>,
    %6 = vector.extract_strided_slice %3 {offsets = [4, 0], sizes = [4, 32], strides = [1, 1]} : vector<32x32xf32> to vector<4x32xf32>
    %c8 = arith.constant 8 : index
    %c15_5 = arith.constant 15 : index
    %7 = vector.load %arg7[%c8, %c15_5] : memref<64x62xf32, #tpu.memory_space<vmem>>, vector<4x32xf32>
    tpu.vector_store %arg7[%c8, %c15_5], %6 {strides = array<i32>} : memref<64x62xf32, #tpu.memory_space<vmem>>, vector<4x32xf32>,
    %8 = vector.extract_strided_slice %3 {offsets = [8, 0], sizes = [4, 32], strides = [1, 1]} : vector<32x32xf32> to vector<4x32xf32>
    %c16 = arith.constant 16 : index
    %c15_6 = arith.constant 15 : index
    %9 = vector.load %arg7[%c16, %c15_6] : memref<64x62xf32, #tpu.memory_space<vmem>>, vector<4x32xf32>
    tpu.vector_store %arg7[%c16, %c15_6], %8 {strides = array<i32>} : memref<64x62xf32, #tpu.memory_space<vmem>>, vector<4x32xf32>,
    %10 = vector.extract_strided_slice %3 {offsets = [12, 0], sizes = [4, 32], strides = [1, 1]} : vector<32x32xf32> to vector<4x32xf32>
    %c24 = arith.constant 24 : index
    %c15_7 = arith.constant 15 : index
    %11 = vector.load %arg7[%c24, %c15_7] : memref<64x62xf32, #tpu.memory_space<vmem>>, vector<4x32xf32>
    tpu.vector_store %arg7[%c24, %c15_7], %10 {strides = array<i32>} : memref<64x62xf32, #tpu.memory_space<vmem>>, vector<4x32xf32>,
    %12 = vector.extract_strided_slice %3 {offsets = [16, 0], sizes = [4, 32], strides = [1, 1]} : vector<32x32xf32> to vector<4x32xf32>
    %c32 = arith.constant 32 : index
    %c15_8 = arith.constant 15 : index
    %13 = vector.load %arg7[%c32, %c15_8] : memref<64x62xf32, #tpu.memory_space<vmem>>, vector<4x32xf32>
    tpu.vector_store %arg7[%c32, %c15_8], %12 {strides = array<i32>} : memref<64x62xf32, #tpu.memory_space<vmem>>, vector<4x32xf32>,
    %14 = vector.extract_strided_slice %3 {offsets = [20, 0], sizes = [4, 32], strides = [1, 1]} : vector<32x32xf32> to vector<4x32xf32>
    %c40 = arith.constant 40 : index
    %c15_9 = arith.constant 15 : index
    %15 = vector.load %arg7[%c40, %c15_9] : memref<64x62xf32, #tpu.memory_space<vmem>>, vector<4x32xf32>
    tpu.vector_store %arg7[%c40, %c15_9], %14 {strides = array<i32>} : memref<64x62xf32, #tpu.memory_space<vmem>>, vector<4x32xf32>,
    %16 = vector.extract_strided_slice %3 {offsets = [24, 0], sizes = [4, 32], strides = [1, 1]} : vector<32x32xf32> to vector<4x32xf32>
    %c48 = arith.constant 48 : index
    %c15_10 = arith.constant 15 : index
    %17 = vector.load %arg7[%c48, %c15_10] : memref<64x62xf32, #tpu.memory_space<vmem>>, vector<4x32xf32>
    tpu.vector_store %arg7[%c48, %c15_10], %16 {strides = array<i32>} : memref<64x62xf32, #tpu.memory_space<vmem>>, vector<4x32xf32>,
    %18 = vector.extract_strided_slice %3 {offsets = [28, 0], sizes = [4, 32], strides = [1, 1]} : vector<32x32xf32> to vector<4x32xf32>
    %c56 = arith.constant 56 : index
    %c15_11 = arith.constant 15 : index
    %19 = vector.load %arg7[%c56, %c15_11] : memref<64x62xf32, #tpu.memory_space<vmem>>, vector<4x32xf32>
    tpu.vector_store %arg7[%c56, %c15_11], %18 {strides = array<i32>} : memref<64x62xf32, #tpu.memory_space<vmem>>, vector<4x32xf32>,
    %c0_12 = arith.constant 0 : index
    %c0_13 = arith.constant 0 : index
    %20 = vector.load %arg7[%c0_12, %c0_13] : memref<64x62xf32, #tpu.memory_space<vmem>>, vector<16x62xf32>
    %21 = vector.extract_strided_slice %20 {offsets = [0, 0], sizes = [16, 32], strides = [1, 1]} : vector<16x62xf32> to vector<16x32xf32>
    %22 = vector.extract_strided_slice %20 {offsets = [0, 1], sizes = [16, 32], strides = [1, 1]} : vector<16x62xf32> to vector<16x32xf32>
    %23 = vector.extract_strided_slice %20 {offsets = [0, 2], sizes = [16, 32], strides = [1, 1]} : vector<16x62xf32> to vector<16x32xf32>
    %24 = vector.extract_strided_slice %20 {offsets = [0, 3], sizes = [16, 32], strides = [1, 1]} : vector<16x62xf32> to vector<16x32xf32>
    %25 = vector.extract_strided_slice %20 {offsets = [0, 4], sizes = [16, 32], strides = [1, 1]} : vector<16x62xf32> to vector<16x32xf32>
    %26 = vector.extract_strided_slice %20 {offsets = [0, 5], sizes = [16, 32], strides = [1, 1]} : vector<16x62xf32> to vector<16x32xf32>
    %27 = vector.extract_strided_slice %20 {offsets = [0, 6], sizes = [16, 32], strides = [1, 1]} : vector<16x62xf32> to vector<16x32xf32>
    %28 = vector.extract_strided_slice %20 {offsets = [0, 7], sizes = [16, 32], strides = [1, 1]} : vector<16x62xf32> to vector<16x32xf32>
    %29 = vector.extract_strided_slice %20 {offsets = [0, 8], sizes = [16, 32], strides = [1, 1]} : vector<16x62xf32> to vector<16x32xf32>
    %30 = vector.extract_strided_slice %20 {offsets = [0, 9], sizes = [16, 32], strides = [1, 1]} : vector<16x62xf32> to vector<16x32xf32>
    %31 = vector.extract_strided_slice %20 {offsets = [0, 10], sizes = [16, 32], strides = [1, 1]} : vector<16x62xf32> to vector<16x32xf32>
    %32 = vector.extract_strided_slice %20 {offsets = [0, 11], sizes = [16, 32], strides = [1, 1]} : vector<16x62xf32> to vector<16x32xf32>
    %33 = vector.extract_strided_slice %20 {offsets = [0, 12], sizes = [16, 32], strides = [1, 1]} : vector<16x62xf32> to vector<16x32xf32>
    %34 = vector.extract_strided_slice %20 {offsets = [0, 13], sizes = [16, 32], strides = [1, 1]} : vector<16x62xf32> to vector<16x32xf32>
    %35 = vector.extract_strided_slice %20 {offsets = [0, 14], sizes = [16, 32], strides = [1, 1]} : vector<16x62xf32> to vector<16x32xf32>
    %36 = vector.extract_strided_slice %20 {offsets = [0, 15], sizes = [16, 32], strides = [1, 1]} : vector<16x62xf32> to vector<16x32xf32>
    %37 = vector.extract_strided_slice %20 {offsets = [0, 16], sizes = [16, 32], strides = [1, 1]} : vector<16x62xf32> to vector<16x32xf32>
    %38 = vector.extract_strided_slice %20 {offsets = [0, 17], sizes = [16, 32], strides = [1, 1]} : vector<16x62xf32> to vector<16x32xf32>
    %39 = vector.extract_strided_slice %20 {offsets = [0, 18], sizes = [16, 32], strides = [1, 1]} : vector<16x62xf32> to vector<16x32xf32>
    %40 = vector.extract_strided_slice %20 {offsets = [0, 19], sizes = [16, 32], strides = [1, 1]} : vector<16x62xf32> to vector<16x32xf32>
    %41 = vector.extract_strided_slice %20 {offsets = [0, 20], sizes = [16, 32], strides = [1, 1]} : vector<16x62xf32> to vector<16x32xf32>
    %42 = vector.extract_strided_slice %20 {offsets = [0, 21], sizes = [16, 32], strides = [1, 1]} : vector<16x62xf32> to vector<16x32xf32>
    %43 = vector.extract_strided_slice %20 {offsets = [0, 22], sizes = [16, 32], strides = [1, 1]} : vector<16x62xf32> to vector<16x32xf32>
    %44 = vector.extract_strided_slice %20 {offsets = [0, 23], sizes = [16, 32], strides = [1, 1]} : vector<16x62xf32> to vector<16x32xf32>
    %45 = vector.extract_strided_slice %20 {offsets = [0, 24], sizes = [16, 32], strides = [1, 1]} : vector<16x62xf32> to vector<16x32xf32>
    %46 = vector.extract_strided_slice %20 {offsets = [0, 25], sizes = [16, 32], strides = [1, 1]} : vector<16x62xf32> to vector<16x32xf32>
    %47 = vector.extract_strided_slice %20 {offsets = [0, 26], sizes = [16, 32], strides = [1, 1]} : vector<16x62xf32> to vector<16x32xf32>
    %48 = vector.extract_strided_slice %20 {offsets = [0, 27], sizes = [16, 32], strides = [1, 1]} : vector<16x62xf32> to vector<16x32xf32>
    %49 = vector.extract_strided_slice %20 {offsets = [0, 28], sizes = [16, 32], strides = [1, 1]} : vector<16x62xf32> to vector<16x32xf32>
    %50 = vector.extract_strided_slice %20 {offsets = [0, 29], sizes = [16, 32], strides = [1, 1]} : vector<16x62xf32> to vector<16x32xf32>
    %51 = vector.extract_strided_slice %20 {offsets = [0, 30], sizes = [16, 32], strides = [1, 1]} : vector<16x62xf32> to vector<16x32xf32>
    %52 = tpu.concatenate %21, %22, %23, %24, %25, %26, %27, %28, %29, %30, %31, %32, %33, %34, %35, %36 in 0 : vector<16x32xf32>, vector<16x32xf32>, vector<16x32xf32>, vector<16x32xf32>, vector<16x32xf32>, vector<16x32xf32>, vector<16x32xf32>, vector<16x32xf32>, vector<16x32xf32>, vector<16x32xf32>, vector<16x32xf32>, vector<16x32xf32>, vector<16x32xf32>, vector<16x32xf32>, vector<16x32xf32>, vector<16x32xf32> -> vector<256x32xf32>
    %53 = tpu.concatenate %37, %38, %39, %40, %41, %42, %43, %44, %45, %46, %47, %48, %49, %50, %51 in 0 : vector<16x32xf32>, vector<16x32xf32>, vector<16x32xf32>, vector<16x32xf32>, vector<16x32xf32>, vector<16x32xf32>, vector<16x32xf32>, vector<16x32xf32>, vector<16x32xf32>, vector<16x32xf32>, vector<16x32xf32>, vector<16x32xf32>, vector<16x32xf32>, vector<16x32xf32>, vector<16x32xf32> -> vector<240x32xf32>
    %54 = tpu.concatenate %52, %53 in 0 : vector<256x32xf32>, vector<240x32xf32> -> vector<496x32xf32>
    %c0_14 = arith.constant 0 : index
    %c0_15 = arith.constant 0 : index
    %55 = vector.load %arg8[%c0_14, %c0_15] : memref<496x224xf32, #tpu.memory_space<vmem>>, vector<496x32xf32>
    tpu.vector_store %arg8[%c0_14, %c0_15], %54 {strides = array<i32>} : memref<496x224xf32, #tpu.memory_space<vmem>>, vector<496x32xf32>,
    %c8_16 = arith.constant 8 : index
    %c0_17 = arith.constant 0 : index
    %56 = vector.load %arg7[%c8_16, %c0_17] : memref<64x62xf32, #tpu.memory_space<vmem>>, vector<16x62xf32>
    %57 = vector.extract_strided_slice %56 {offsets = [0, 0], sizes = [16, 32], strides = [1, 1]} : vector<16x62xf32> to vector<16x32xf32>
    %58 = vector.extract_strided_slice %56 {offsets = [0, 1], sizes = [16, 32], strides = [1, 1]} : vector<16x62xf32> to vector<16x32xf32>
    %59 = vector.extract_strided_slice %56 {offsets = [0, 2], sizes = [16, 32], strides = [1, 1]} : vector<16x62xf32> to vector<16x32xf32>
    %60 = vector.extract_strided_slice %56 {offsets = [0, 3], sizes = [16, 32], strides = [1, 1]} : vector<16x62xf32> to vector<16x32xf32>
    %61 = vector.extract_strided_slice %56 {offsets = [0, 4], sizes = [16, 32], strides = [1, 1]} : vector<16x62xf32> to vector<16x32xf32>
    %62 = vector.extract_strided_slice %56 {offsets = [0, 5], sizes = [16, 32], strides = [1, 1]} : vector<16x62xf32> to vector<16x32xf32>
    %63 = vector.extract_strided_slice %56 {offsets = [0, 6], sizes = [16, 32], strides = [1, 1]} : vector<16x62xf32> to vector<16x32xf32>
    %64 = vector.extract_strided_slice %56 {offsets = [0, 7], sizes = [16, 32], strides = [1, 1]} : vector<16x62xf32> to vector<16x32xf32>
    %65 = vector.extract_strided_slice %56 {offsets = [0, 8], sizes = [16, 32], strides = [1, 1]} : vector<16x62xf32> to vector<16x32xf32>
    %66 = vector.extract_strided_slice %56 {offsets = [0, 9], sizes = [16, 32], strides = [1, 1]} : vector<16x62xf32> to vector<16x32xf32>
    %67 = vector.extract_strided_slice %56 {offsets = [0, 10], sizes = [16, 32], strides = [1, 1]} : vector<16x62xf32> to vector<16x32xf32>
    %68 = vector.extract_strided_slice %56 {offsets = [0, 11], sizes = [16, 32], strides = [1, 1]} : vector<16x62xf32> to vector<16x32xf32>
    %69 = vector.extract_strided_slice %56 {offsets = [0, 12], sizes = [16, 32], strides = [1, 1]} : vector<16x62xf32> to vector<16x32xf32>
    %70 = vector.extract_strided_slice %56 {offsets = [0, 13], sizes = [16, 32], strides = [1, 1]} : vector<16x62xf32> to vector<16x32xf32>
    %71 = vector.extract_strided_slice %56 {offsets = [0, 14], sizes = [16, 32], strides = [1, 1]} : vector<16x62xf32> to vector<16x32xf32>
    %72 = vector.extract_strided_slice %56 {offsets = [0, 15], sizes = [16, 32], strides = [1, 1]} : vector<16x62xf32> to vector<16x32xf32>
    %73 = vector.extract_strided_slice %56 {offsets = [0, 16], sizes = [16, 32], strides = [1, 1]} : vector<16x62xf32> to vector<16x32xf32>
    %74 = vector.extract_strided_slice %56 {offsets = [0, 17], sizes = [16, 32], strides = [1, 1]} : vector<16x62xf32> to vector<16x32xf32>
    %75 = vector.extract_strided_slice %56 {offsets = [0, 18], sizes = [16, 32], strides = [1, 1]} : vector<16x62xf32> to vector<16x32xf32>
    %76 = vector.extract_strided_slice %56 {offsets = [0, 19], sizes = [16, 32], strides = [1, 1]} : vector<16x62xf32> to vector<16x32xf32>
    %77 = vector.extract_strided_slice %56 {offsets = [0, 20], sizes = [16, 32], strides = [1, 1]} : vector<16x62xf32> to vector<16x32xf32>
    %78 = vector.extract_strided_slice %56 {offsets = [0, 21], sizes = [16, 32], strides = [1, 1]} : vector<16x62xf32> to vector<16x32xf32>
    %79 = vector.extract_strided_slice %56 {offsets = [0, 22], sizes = [16, 32], strides = [1, 1]} : vector<16x62xf32> to vector<16x32xf32>
    %80 = vector.extract_strided_slice %56 {offsets = [0, 23], sizes = [16, 32], strides = [1, 1]} : vector<16x62xf32> to vector<16x32xf32>
    %81 = vector.extract_strided_slice %56 {offsets = [0, 24], sizes = [16, 32], strides = [1, 1]} : vector<16x62xf32> to vector<16x32xf32>
    %82 = vector.extract_strided_slice %56 {offsets = [0, 25], sizes = [16, 32], strides = [1, 1]} : vector<16x62xf32> to vector<16x32xf32>
    %83 = vector.extract_strided_slice %56 {offsets = [0, 26], sizes = [16, 32], strides = [1, 1]} : vector<16x62xf32> to vector<16x32xf32>
    %84 = vector.extract_strided_slice %56 {offsets = [0, 27], sizes = [16, 32], strides = [1, 1]} : vector<16x62xf32> to vector<16x32xf32>
    %85 = vector.extract_strided_slice %56 {offsets = [0, 28], sizes = [16, 32], strides = [1, 1]} : vector<16x62xf32> to vector<16x32xf32>
    %86 = vector.extract_strided_slice %56 {offsets = [0, 29], sizes = [16, 32], strides = [1, 1]} : vector<16x62xf32> to vector<16x32xf32>
    %87 = vector.extract_strided_slice %56 {offsets = [0, 30], sizes = [16, 32], strides = [1, 1]} : vector<16x62xf32> to vector<16x32xf32>
    %88 = tpu.concatenate %57, %58, %59, %60, %61, %62, %63, %64, %65, %66, %67, %68, %69, %70, %71, %72 in 0 : vector<16x32xf32>, vector<16x32xf32>, vector<16x32xf32>, vector<16x32xf32>, vector<16x32xf32>, vector<16x32xf32>, vector<16x32xf32>, vector<16x32xf32>, vector<16x32xf32>, vector<16x32xf32>, vector<16x32xf32>, vector<16x32xf32>, vector<16x32xf32>, vector<16x32xf32>, vector<16x32xf32>, vector<16x32xf32> -> vector<256x32xf32>
    %89 = tpu.concatenate %73, %74, %75, %76, %77, %78, %79, %80, %81, %82, %83, %84, %85, %86, %87 in 0 : vector<16x32xf32>, vector<16x32xf32>, vector<16x32xf32>, vector<16x32xf32>, vector<16x32xf32>, vector<16x32xf32>, vector<16x32xf32>, vector<16x32xf32>, vector<16x32xf32>, vector<16x32xf32>, vector<16x32xf32>, vector<16x32xf32>, vector<16x32xf32>, vector<16x32xf32>, vector<16x32xf32> -> vector<240x32xf32>
    %90 = tpu.concatenate %88, %89 in 0 : vector<256x32xf32>, vector<240x32xf32> -> vector<496x32xf32>
    %c0_18 = arith.constant 0 : index
    %c32_19 = arith.constant 32 : index
    %91 = vector.load %arg8[%c0_18, %c32_19] : memref<496x224xf32, #tpu.memory_space<vmem>>, vector<496x32xf32>
    tpu.vector_store %arg8[%c0_18, %c32_19], %90 {strides = array<i32>} : memref<496x224xf32, #tpu.memory_space<vmem>>, vector<496x32xf32>,
    %c16_20 = arith.constant 16 : index
    %c0_21 = arith.constant 0 : index
    %92 = vector.load %arg7[%c16_20, %c0_21] : memref<64x62xf32, #tpu.memory_space<vmem>>, vector<16x62xf32>
    %93 = vector.extract_strided_slice %92 {offsets = [0, 0], sizes = [16, 32], strides = [1, 1]} : vector<16x62xf32> to vector<16x32xf32>
    %94 = vector.extract_strided_slice %92 {offsets = [0, 1], sizes = [16, 32], strides = [1, 1]} : vector<16x62xf32> to vector<16x32xf32>
    %95 = vector.extract_strided_slice %92 {offsets = [0, 2], sizes = [16, 32], strides = [1, 1]} : vector<16x62xf32> to vector<16x32xf32>
    %96 = vector.extract_strided_slice %92 {offsets = [0, 3], sizes = [16, 32], strides = [1, 1]} : vector<16x62xf32> to vector<16x32xf32>
    %97 = vector.extract_strided_slice %92 {offsets = [0, 4], sizes = [16, 32], strides = [1, 1]} : vector<16x62xf32> to vector<16x32xf32>
    %98 = vector.extract_strided_slice %92 {offsets = [0, 5], sizes = [16, 32], strides = [1, 1]} : vector<16x62xf32> to vector<16x32xf32>
    %99 = vector.extract_strided_slice %92 {offsets = [0, 6], sizes = [16, 32], strides = [1, 1]} : vector<16x62xf32> to vector<16x32xf32>
    %100 = vector.extract_strided_slice %92 {offsets = [0, 7], sizes = [16, 32], strides = [1, 1]} : vector<16x62xf32> to vector<16x32xf32>
    %101 = vector.extract_strided_slice %92 {offsets = [0, 8], sizes = [16, 32], strides = [1, 1]} : vector<16x62xf32> to vector<16x32xf32>
    %102 = vector.extract_strided_slice %92 {offsets = [0, 9], sizes = [16, 32], strides = [1, 1]} : vector<16x62xf32> to vector<16x32xf32>
    %103 = vector.extract_strided_slice %92 {offsets = [0, 10], sizes = [16, 32], strides = [1, 1]} : vector<16x62xf32> to vector<16x32xf32>
    %104 = vector.extract_strided_slice %92 {offsets = [0, 11], sizes = [16, 32], strides = [1, 1]} : vector<16x62xf32> to vector<16x32xf32>
    %105 = vector.extract_strided_slice %92 {offsets = [0, 12], sizes = [16, 32], strides = [1, 1]} : vector<16x62xf32> to vector<16x32xf32>
    %106 = vector.extract_strided_slice %92 {offsets = [0, 13], sizes = [16, 32], strides = [1, 1]} : vector<16x62xf32> to vector<16x32xf32>
    %107 = vector.extract_strided_slice %92 {offsets = [0, 14], sizes = [16, 32], strides = [1, 1]} : vector<16x62xf32> to vector<16x32xf32>
    %108 = vector.extract_strided_slice %92 {offsets = [0, 15], sizes = [16, 32], strides = [1, 1]} : vector<16x62xf32> to vector<16x32xf32>
    %109 = vector.extract_strided_slice %92 {offsets = [0, 16], sizes = [16, 32], strides = [1, 1]} : vector<16x62xf32> to vector<16x32xf32>
    %110 = vector.extract_strided_slice %92 {offsets = [0, 17], sizes = [16, 32], strides = [1, 1]} : vector<16x62xf32> to vector<16x32xf32>
    %111 = vector.extract_strided_slice %92 {offsets = [0, 18], sizes = [16, 32], strides = [1, 1]} : vector<16x62xf32> to vector<16x32xf32>
    %112 = vector.extract_strided_slice %92 {offsets = [0, 19], sizes = [16, 32], strides = [1, 1]} : vector<16x62xf32> to vector<16x32xf32>
    %113 = vector.extract_strided_slice %92 {offsets = [0, 20], sizes = [16, 32], strides = [1, 1]} : vector<16x62xf32> to vector<16x32xf32>
    %114 = vector.extract_strided_slice %92 {offsets = [0, 21], sizes = [16, 32], strides = [1, 1]} : vector<16x62xf32> to vector<16x32xf32>
    %115 = vector.extract_strided_slice %92 {offsets = [0, 22], sizes = [16, 32], strides = [1, 1]} : vector<16x62xf32> to vector<16x32xf32>
    %116 = vector.extract_strided_slice %92 {offsets = [0, 23], sizes = [16, 32], strides = [1, 1]} : vector<16x62xf32> to vector<16x32xf32>
    %117 = vector.extract_strided_slice %92 {offsets = [0, 24], sizes = [16, 32], strides = [1, 1]} : vector<16x62xf32> to vector<16x32xf32>
    %118 = vector.extract_strided_slice %92 {offsets = [0, 25], sizes = [16, 32], strides = [1, 1]} : vector<16x62xf32> to vector<16x32xf32>
    %119 = vector.extract_strided_slice %92 {offsets = [0, 26], sizes = [16, 32], strides = [1, 1]} : vector<16x62xf32> to vector<16x32xf32>
    %120 = vector.extract_strided_slice %92 {offsets = [0, 27], sizes = [16, 32], strides = [1, 1]} : vector<16x62xf32> to vector<16x32xf32>
    %121 = vector.extract_strided_slice %92 {offsets = [0, 28], sizes = [16, 32], strides = [1, 1]} : vector<16x62xf32> to vector<16x32xf32>
    %122 = vector.extract_strided_slice %92 {offsets = [0, 29], sizes = [16, 32], strides = [1, 1]} : vector<16x62xf32> to vector<16x32xf32>
    %123 = vector.extract_strided_slice %92 {offsets = [0, 30], sizes = [16, 32], strides = [1, 1]} : vector<16x62xf32> to vector<16x32xf32>
    %124 = tpu.concatenate %93, %94, %95, %96, %97, %98, %99, %100, %101, %102, %103, %104, %105, %106, %107, %108 in 0 : vector<16x32xf32>, vector<16x32xf32>, vector<16x32xf32>, vector<16x32xf32>, vector<16x32xf32>, vector<16x32xf32>, vector<16x32xf32>, vector<16x32xf32>, vector<16x32xf32>, vector<16x32xf32>, vector<16x32xf32>, vector<16x32xf32>, vector<16x32xf32>, vector<16x32xf32>, vector<16x32xf32>, vector<16x32xf32> -> vector<256x32xf32>
    %125 = tpu.concatenate %109, %110, %111, %112, %113, %114, %115, %116, %117, %118, %119, %120, %121, %122, %123 in 0 : vector<16x32xf32>, vector<16x32xf32>, vector<16x32xf32>, vector<16x32xf32>, vector<16x32xf32>, vector<16x32xf32>, vector<16x32xf32>, vector<16x32xf32>, vector<16x32xf32>, vector<16x32xf32>, vector<16x32xf32>, vector<16x32xf32>, vector<16x32xf32>, vector<16x32xf32>, vector<16x32xf32> -> vector<240x32xf32>
    %126 = tpu.concatenate %124, %125 in 0 : vector<256x32xf32>, vector<240x32xf32> -> vector<496x32xf32>
    %c0_22 = arith.constant 0 : index
    %c64 = arith.constant 64 : index
    %127 = vector.load %arg8[%c0_22, %c64] : memref<496x224xf32, #tpu.memory_space<vmem>>, vector<496x32xf32>
    tpu.vector_store %arg8[%c0_22, %c64], %126 {strides = array<i32>} : memref<496x224xf32, #tpu.memory_space<vmem>>, vector<496x32xf32>,
    %c24_23 = arith.constant 24 : index
    %c0_24 = arith.constant 0 : index
    %128 = vector.load %arg7[%c24_23, %c0_24] : memref<64x62xf32, #tpu.memory_space<vmem>>, vector<16x62xf32>
    %129 = vector.extract_strided_slice %128 {offsets = [0, 0], sizes = [16, 32], strides = [1, 1]} : vector<16x62xf32> to vector<16x32xf32>
    %130 = vector.extract_strided_slice %128 {offsets = [0, 1], sizes = [16, 32], strides = [1, 1]} : vector<16x62xf32> to vector<16x32xf32>
    %131 = vector.extract_strided_slice %128 {offsets = [0, 2], sizes = [16, 32], strides = [1, 1]} : vector<16x62xf32> to vector<16x32xf32>
    %132 = vector.extract_strided_slice %128 {offsets = [0, 3], sizes = [16, 32], strides = [1, 1]} : vector<16x62xf32> to vector<16x32xf32>
    %133 = vector.extract_strided_slice %128 {offsets = [0, 4], sizes = [16, 32], strides = [1, 1]} : vector<16x62xf32> to vector<16x32xf32>
    %134 = vector.extract_strided_slice %128 {offsets = [0, 5], sizes = [16, 32], strides = [1, 1]} : vector<16x62xf32> to vector<16x32xf32>
    %135 = vector.extract_strided_slice %128 {offsets = [0, 6], sizes = [16, 32], strides = [1, 1]} : vector<16x62xf32> to vector<16x32xf32>
    %136 = vector.extract_strided_slice %128 {offsets = [0, 7], sizes = [16, 32], strides = [1, 1]} : vector<16x62xf32> to vector<16x32xf32>
    %137 = vector.extract_strided_slice %128 {offsets = [0, 8], sizes = [16, 32], strides = [1, 1]} : vector<16x62xf32> to vector<16x32xf32>
    %138 = vector.extract_strided_slice %128 {offsets = [0, 9], sizes = [16, 32], strides = [1, 1]} : vector<16x62xf32> to vector<16x32xf32>
    %139 = vector.extract_strided_slice %128 {offsets = [0, 10], sizes = [16, 32], strides = [1, 1]} : vector<16x62xf32> to vector<16x32xf32>
    %140 = vector.extract_strided_slice %128 {offsets = [0, 11], sizes = [16, 32], strides = [1, 1]} : vector<16x62xf32> to vector<16x32xf32>
    %141 = vector.extract_strided_slice %128 {offsets = [0, 12], sizes = [16, 32], strides = [1, 1]} : vector<16x62xf32> to vector<16x32xf32>
    %142 = vector.extract_strided_slice %128 {offsets = [0, 13], sizes = [16, 32], strides = [1, 1]} : vector<16x62xf32> to vector<16x32xf32>
    %143 = vector.extract_strided_slice %128 {offsets = [0, 14], sizes = [16, 32], strides = [1, 1]} : vector<16x62xf32> to vector<16x32xf32>
    %144 = vector.extract_strided_slice %128 {offsets = [0, 15], sizes = [16, 32], strides = [1, 1]} : vector<16x62xf32> to vector<16x32xf32>
    %145 = vector.extract_strided_slice %128 {offsets = [0, 16], sizes = [16, 32], strides = [1, 1]} : vector<16x62xf32> to vector<16x32xf32>
    %146 = vector.extract_strided_slice %128 {offsets = [0, 17], sizes = [16, 32], strides = [1, 1]} : vector<16x62xf32> to vector<16x32xf32>
    %147 = vector.extract_strided_slice %128 {offsets = [0, 18], sizes = [16, 32], strides = [1, 1]} : vector<16x62xf32> to vector<16x32xf32>
    %148 = vector.extract_strided_slice %128 {offsets = [0, 19], sizes = [16, 32], strides = [1, 1]} : vector<16x62xf32> to vector<16x32xf32>
    %149 = vector.extract_strided_slice %128 {offsets = [0, 20], sizes = [16, 32], strides = [1, 1]} : vector<16x62xf32> to vector<16x32xf32>
    %150 = vector.extract_strided_slice %128 {offsets = [0, 21], sizes = [16, 32], strides = [1, 1]} : vector<16x62xf32> to vector<16x32xf32>
    %151 = vector.extract_strided_slice %128 {offsets = [0, 22], sizes = [16, 32], strides = [1, 1]} : vector<16x62xf32> to vector<16x32xf32>
    %152 = vector.extract_strided_slice %128 {offsets = [0, 23], sizes = [16, 32], strides = [1, 1]} : vector<16x62xf32> to vector<16x32xf32>
    %153 = vector.extract_strided_slice %128 {offsets = [0, 24], sizes = [16, 32], strides = [1, 1]} : vector<16x62xf32> to vector<16x32xf32>
    %154 = vector.extract_strided_slice %128 {offsets = [0, 25], sizes = [16, 32], strides = [1, 1]} : vector<16x62xf32> to vector<16x32xf32>
    %155 = vector.extract_strided_slice %128 {offsets = [0, 26], sizes = [16, 32], strides = [1, 1]} : vector<16x62xf32> to vector<16x32xf32>
    %156 = vector.extract_strided_slice %128 {offsets = [0, 27], sizes = [16, 32], strides = [1, 1]} : vector<16x62xf32> to vector<16x32xf32>
    %157 = vector.extract_strided_slice %128 {offsets = [0, 28], sizes = [16, 32], strides = [1, 1]} : vector<16x62xf32> to vector<16x32xf32>
    %158 = vector.extract_strided_slice %128 {offsets = [0, 29], sizes = [16, 32], strides = [1, 1]} : vector<16x62xf32> to vector<16x32xf32>
    %159 = vector.extract_strided_slice %128 {offsets = [0, 30], sizes = [16, 32], strides = [1, 1]} : vector<16x62xf32> to vector<16x32xf32>
    %160 = tpu.concatenate %129, %130, %131, %132, %133, %134, %135, %136, %137, %138, %139, %140, %141, %142, %143, %144 in 0 : vector<16x32xf32>, vector<16x32xf32>, vector<16x32xf32>, vector<16x32xf32>, vector<16x32xf32>, vector<16x32xf32>, vector<16x32xf32>, vector<16x32xf32>, vector<16x32xf32>, vector<16x32xf32>, vector<16x32xf32>, vector<16x32xf32>, vector<16x32xf32>, vector<16x32xf32>, vector<16x32xf32>, vector<16x32xf32> -> vector<256x32xf32>
    %161 = tpu.concatenate %145, %146, %147, %148, %149, %150, %151, %152, %153, %154, %155, %156, %157, %158, %159 in 0 : vector<16x32xf32>, vector<16x32xf32>, vector<16x32xf32>, vector<16x32xf32>, vector<16x32xf32>, vector<16x32xf32>, vector<16x32xf32>, vector<16x32xf32>, vector<16x32xf32>, vector<16x32xf32>, vector<16x32xf32>, vector<16x32xf32>, vector<16x32xf32>, vector<16x32xf32>, vector<16x32xf32> -> vector<240x32xf32>
    %162 = tpu.concatenate %160, %161 in 0 : vector<256x32xf32>, vector<240x32xf32> -> vector<496x32xf32>
    %c0_25 = arith.constant 0 : index
    %c96 = arith.constant 96 : index
    %163 = vector.load %arg8[%c0_25, %c96] : memref<496x224xf32, #tpu.memory_space<vmem>>, vector<496x32xf32>
    tpu.vector_store %arg8[%c0_25, %c96], %162 {strides = array<i32>} : memref<496x224xf32, #tpu.memory_space<vmem>>, vector<496x32xf32>,
    %c32_26 = arith.constant 32 : index
    %c0_27 = arith.constant 0 : index
    %164 = vector.load %arg7[%c32_26, %c0_27] : memref<64x62xf32, #tpu.memory_space<vmem>>, vector<16x62xf32>
    %165 = vector.extract_strided_slice %164 {offsets = [0, 0], sizes = [16, 32], strides = [1, 1]} : vector<16x62xf32> to vector<16x32xf32>
    %166 = vector.extract_strided_slice %164 {offsets = [0, 1], sizes = [16, 32], strides = [1, 1]} : vector<16x62xf32> to vector<16x32xf32>
    %167 = vector.extract_strided_slice %164 {offsets = [0, 2], sizes = [16, 32], strides = [1, 1]} : vector<16x62xf32> to vector<16x32xf32>
    %168 = vector.extract_strided_slice %164 {offsets = [0, 3], sizes = [16, 32], strides = [1, 1]} : vector<16x62xf32> to vector<16x32xf32>
    %169 = vector.extract_strided_slice %164 {offsets = [0, 4], sizes = [16, 32], strides = [1, 1]} : vector<16x62xf32> to vector<16x32xf32>
    %170 = vector.extract_strided_slice %164 {offsets = [0, 5], sizes = [16, 32], strides = [1, 1]} : vector<16x62xf32> to vector<16x32xf32>
    %171 = vector.extract_strided_slice %164 {offsets = [0, 6], sizes = [16, 32], strides = [1, 1]} : vector<16x62xf32> to vector<16x32xf32>
    %172 = vector.extract_strided_slice %164 {offsets = [0, 7], sizes = [16, 32], strides = [1, 1]} : vector<16x62xf32> to vector<16x32xf32>
    %173 = vector.extract_strided_slice %164 {offsets = [0, 8], sizes = [16, 32], strides = [1, 1]} : vector<16x62xf32> to vector<16x32xf32>
    %174 = vector.extract_strided_slice %164 {offsets = [0, 9], sizes = [16, 32], strides = [1, 1]} : vector<16x62xf32> to vector<16x32xf32>
    %175 = vector.extract_strided_slice %164 {offsets = [0, 10], sizes = [16, 32], strides = [1, 1]} : vector<16x62xf32> to vector<16x32xf32>
    %176 = vector.extract_strided_slice %164 {offsets = [0, 11], sizes = [16, 32], strides = [1, 1]} : vector<16x62xf32> to vector<16x32xf32>
    %177 = vector.extract_strided_slice %164 {offsets = [0, 12], sizes = [16, 32], strides = [1, 1]} : vector<16x62xf32> to vector<16x32xf32>
    %178 = vector.extract_strided_slice %164 {offsets = [0, 13], sizes = [16, 32], strides = [1, 1]} : vector<16x62xf32> to vector<16x32xf32>
    %179 = vector.extract_strided_slice %164 {offsets = [0, 14], sizes = [16, 32], strides = [1, 1]} : vector<16x62xf32> to vector<16x32xf32>
    %180 = vector.extract_strided_slice %164 {offsets = [0, 15], sizes = [16, 32], strides = [1, 1]} : vector<16x62xf32> to vector<16x32xf32>
    %181 = vector.extract_strided_slice %164 {offsets = [0, 16], sizes = [16, 32], strides = [1, 1]} : vector<16x62xf32> to vector<16x32xf32>
    %182 = vector.extract_strided_slice %164 {offsets = [0, 17], sizes = [16, 32], strides = [1, 1]} : vector<16x62xf32> to vector<16x32xf32>
    %183 = vector.extract_strided_slice %164 {offsets = [0, 18], sizes = [16, 32], strides = [1, 1]} : vector<16x62xf32> to vector<16x32xf32>
    %184 = vector.extract_strided_slice %164 {offsets = [0, 19], sizes = [16, 32], strides = [1, 1]} : vector<16x62xf32> to vector<16x32xf32>
    %185 = vector.extract_strided_slice %164 {offsets = [0, 20], sizes = [16, 32], strides = [1, 1]} : vector<16x62xf32> to vector<16x32xf32>
    %186 = vector.extract_strided_slice %164 {offsets = [0, 21], sizes = [16, 32], strides = [1, 1]} : vector<16x62xf32> to vector<16x32xf32>
    %187 = vector.extract_strided_slice %164 {offsets = [0, 22], sizes = [16, 32], strides = [1, 1]} : vector<16x62xf32> to vector<16x32xf32>
    %188 = vector.extract_strided_slice %164 {offsets = [0, 23], sizes = [16, 32], strides = [1, 1]} : vector<16x62xf32> to vector<16x32xf32>
    %189 = vector.extract_strided_slice %164 {offsets = [0, 24], sizes = [16, 32], strides = [1, 1]} : vector<16x62xf32> to vector<16x32xf32>
    %190 = vector.extract_strided_slice %164 {offsets = [0, 25], sizes = [16, 32], strides = [1, 1]} : vector<16x62xf32> to vector<16x32xf32>
    %191 = vector.extract_strided_slice %164 {offsets = [0, 26], sizes = [16, 32], strides = [1, 1]} : vector<16x62xf32> to vector<16x32xf32>
    %192 = vector.extract_strided_slice %164 {offsets = [0, 27], sizes = [16, 32], strides = [1, 1]} : vector<16x62xf32> to vector<16x32xf32>
    %193 = vector.extract_strided_slice %164 {offsets = [0, 28], sizes = [16, 32], strides = [1, 1]} : vector<16x62xf32> to vector<16x32xf32>
    %194 = vector.extract_strided_slice %164 {offsets = [0, 29], sizes = [16, 32], strides = [1, 1]} : vector<16x62xf32> to vector<16x32xf32>
    %195 = vector.extract_strided_slice %164 {offsets = [0, 30], sizes = [16, 32], strides = [1, 1]} : vector<16x62xf32> to vector<16x32xf32>
    %196 = tpu.concatenate %165, %166, %167, %168, %169, %170, %171, %172, %173, %174, %175, %176, %177, %178, %179, %180 in 0 : vector<16x32xf32>, vector<16x32xf32>, vector<16x32xf32>, vector<16x32xf32>, vector<16x32xf32>, vector<16x32xf32>, vector<16x32xf32>, vector<16x32xf32>, vector<16x32xf32>, vector<16x32xf32>, vector<16x32xf32>, vector<16x32xf32>, vector<16x32xf32>, vector<16x32xf32>, vector<16x32xf32>, vector<16x32xf32> -> vector<256x32xf32>
    %197 = tpu.concatenate %181, %182, %183, %184, %185, %186, %187, %188, %189, %190, %191, %192, %193, %194, %195 in 0 : vector<16x32xf32>, vector<16x32xf32>, vector<16x32xf32>, vector<16x32xf32>, vector<16x32xf32>, vector<16x32xf32>, vector<16x32xf32>, vector<16x32xf32>, vector<16x32xf32>, vector<16x32xf32>, vector<16x32xf32>, vector<16x32xf32>, vector<16x32xf32>, vector<16x32xf32>, vector<16x32xf32> -> vector<240x32xf32>
    %198 = tpu.concatenate %196, %197 in 0 : vector<256x32xf32>, vector<240x32xf32> -> vector<496x32xf32>
    %c0_28 = arith.constant 0 : index
    %c128 = arith.constant 128 : index
    %199 = vector.load %arg8[%c0_28, %c128] : memref<496x224xf32, #tpu.memory_space<vmem>>, vector<496x32xf32>
    tpu.vector_store %arg8[%c0_28, %c128], %198 {strides = array<i32>} : memref<496x224xf32, #tpu.memory_space<vmem>>, vector<496x32xf32>,
    %c40_29 = arith.constant 40 : index
    %c0_30 = arith.constant 0 : index
    %200 = vector.load %arg7[%c40_29, %c0_30] : memref<64x62xf32, #tpu.memory_space<vmem>>, vector<16x62xf32>
    %201 = vector.extract_strided_slice %200 {offsets = [0, 0], sizes = [16, 32], strides = [1, 1]} : vector<16x62xf32> to vector<16x32xf32>
    %202 = vector.extract_strided_slice %200 {offsets = [0, 1], sizes = [16, 32], strides = [1, 1]} : vector<16x62xf32> to vector<16x32xf32>
    %203 = vector.extract_strided_slice %200 {offsets = [0, 2], sizes = [16, 32], strides = [1, 1]} : vector<16x62xf32> to vector<16x32xf32>
    %204 = vector.extract_strided_slice %200 {offsets = [0, 3], sizes = [16, 32], strides = [1, 1]} : vector<16x62xf32> to vector<16x32xf32>
    %205 = vector.extract_strided_slice %200 {offsets = [0, 4], sizes = [16, 32], strides = [1, 1]} : vector<16x62xf32> to vector<16x32xf32>
    %206 = vector.extract_strided_slice %200 {offsets = [0, 5], sizes = [16, 32], strides = [1, 1]} : vector<16x62xf32> to vector<16x32xf32>
    %207 = vector.extract_strided_slice %200 {offsets = [0, 6], sizes = [16, 32], strides = [1, 1]} : vector<16x62xf32> to vector<16x32xf32>
    %208 = vector.extract_strided_slice %200 {offsets = [0, 7], sizes = [16, 32], strides = [1, 1]} : vector<16x62xf32> to vector<16x32xf32>
    %209 = vector.extract_strided_slice %200 {offsets = [0, 8], sizes = [16, 32], strides = [1, 1]} : vector<16x62xf32> to vector<16x32xf32>
    %210 = vector.extract_strided_slice %200 {offsets = [0, 9], sizes = [16, 32], strides = [1, 1]} : vector<16x62xf32> to vector<16x32xf32>
    %211 = vector.extract_strided_slice %200 {offsets = [0, 10], sizes = [16, 32], strides = [1, 1]} : vector<16x62xf32> to vector<16x32xf32>
    %212 = vector.extract_strided_slice %200 {offsets = [0, 11], sizes = [16, 32], strides = [1, 1]} : vector<16x62xf32> to vector<16x32xf32>
    %213 = vector.extract_strided_slice %200 {offsets = [0, 12], sizes = [16, 32], strides = [1, 1]} : vector<16x62xf32> to vector<16x32xf32>
    %214 = vector.extract_strided_slice %200 {offsets = [0, 13], sizes = [16, 32], strides = [1, 1]} : vector<16x62xf32> to vector<16x32xf32>
    %215 = vector.extract_strided_slice %200 {offsets = [0, 14], sizes = [16, 32], strides = [1, 1]} : vector<16x62xf32> to vector<16x32xf32>
    %216 = vector.extract_strided_slice %200 {offsets = [0, 15], sizes = [16, 32], strides = [1, 1]} : vector<16x62xf32> to vector<16x32xf32>
    %217 = vector.extract_strided_slice %200 {offsets = [0, 16], sizes = [16, 32], strides = [1, 1]} : vector<16x62xf32> to vector<16x32xf32>
    %218 = vector.extract_strided_slice %200 {offsets = [0, 17], sizes = [16, 32], strides = [1, 1]} : vector<16x62xf32> to vector<16x32xf32>
    %219 = vector.extract_strided_slice %200 {offsets = [0, 18], sizes = [16, 32], strides = [1, 1]} : vector<16x62xf32> to vector<16x32xf32>
    %220 = vector.extract_strided_slice %200 {offsets = [0, 19], sizes = [16, 32], strides = [1, 1]} : vector<16x62xf32> to vector<16x32xf32>
    %221 = vector.extract_strided_slice %200 {offsets = [0, 20], sizes = [16, 32], strides = [1, 1]} : vector<16x62xf32> to vector<16x32xf32>
    %222 = vector.extract_strided_slice %200 {offsets = [0, 21], sizes = [16, 32], strides = [1, 1]} : vector<16x62xf32> to vector<16x32xf32>
    %223 = vector.extract_strided_slice %200 {offsets = [0, 22], sizes = [16, 32], strides = [1, 1]} : vector<16x62xf32> to vector<16x32xf32>
    %224 = vector.extract_strided_slice %200 {offsets = [0, 23], sizes = [16, 32], strides = [1, 1]} : vector<16x62xf32> to vector<16x32xf32>
    %225 = vector.extract_strided_slice %200 {offsets = [0, 24], sizes = [16, 32], strides = [1, 1]} : vector<16x62xf32> to vector<16x32xf32>
    %226 = vector.extract_strided_slice %200 {offsets = [0, 25], sizes = [16, 32], strides = [1, 1]} : vector<16x62xf32> to vector<16x32xf32>
    %227 = vector.extract_strided_slice %200 {offsets = [0, 26], sizes = [16, 32], strides = [1, 1]} : vector<16x62xf32> to vector<16x32xf32>
    %228 = vector.extract_strided_slice %200 {offsets = [0, 27], sizes = [16, 32], strides = [1, 1]} : vector<16x62xf32> to vector<16x32xf32>
    %229 = vector.extract_strided_slice %200 {offsets = [0, 28], sizes = [16, 32], strides = [1, 1]} : vector<16x62xf32> to vector<16x32xf32>
    %230 = vector.extract_strided_slice %200 {offsets = [0, 29], sizes = [16, 32], strides = [1, 1]} : vector<16x62xf32> to vector<16x32xf32>
    %231 = vector.extract_strided_slice %200 {offsets = [0, 30], sizes = [16, 32], strides = [1, 1]} : vector<16x62xf32> to vector<16x32xf32>
    %232 = tpu.concatenate %201, %202, %203, %204, %205, %206, %207, %208, %209, %210, %211, %212, %213, %214, %215, %216 in 0 : vector<16x32xf32>, vector<16x32xf32>, vector<16x32xf32>, vector<16x32xf32>, vector<16x32xf32>, vector<16x32xf32>, vector<16x32xf32>, vector<16x32xf32>, vector<16x32xf32>, vector<16x32xf32>, vector<16x32xf32>, vector<16x32xf32>, vector<16x32xf32>, vector<16x32xf32>, vector<16x32xf32>, vector<16x32xf32> -> vector<256x32xf32>
    %233 = tpu.concatenate %217, %218, %219, %220, %221, %222, %223, %224, %225, %226, %227, %228, %229, %230, %231 in 0 : vector<16x32xf32>, vector<16x32xf32>, vector<16x32xf32>, vector<16x32xf32>, vector<16x32xf32>, vector<16x32xf32>, vector<16x32xf32>, vector<16x32xf32>, vector<16x32xf32>, vector<16x32xf32>, vector<16x32xf32>, vector<16x32xf32>, vector<16x32xf32>, vector<16x32xf32>, vector<16x32xf32> -> vector<240x32xf32>
    %234 = tpu.concatenate %232, %233 in 0 : vector<256x32xf32>, vector<240x32xf32> -> vector<496x32xf32>
    %c0_31 = arith.constant 0 : index
    %c160 = arith.constant 160 : index
    %235 = vector.load %arg8[%c0_31, %c160] : memref<496x224xf32, #tpu.memory_space<vmem>>, vector<496x32xf32>
    tpu.vector_store %arg8[%c0_31, %c160], %234 {strides = array<i32>} : memref<496x224xf32, #tpu.memory_space<vmem>>, vector<496x32xf32>,
    %c48_32 = arith.constant 48 : index
    %c0_33 = arith.constant 0 : index
    %236 = vector.load %arg7[%c48_32, %c0_33] : memref<64x62xf32, #tpu.memory_space<vmem>>, vector<16x62xf32>
    %237 = vector.extract_strided_slice %236 {offsets = [0, 0], sizes = [16, 32], strides = [1, 1]} : vector<16x62xf32> to vector<16x32xf32>
    %238 = vector.extract_strided_slice %236 {offsets = [0, 1], sizes = [16, 32], strides = [1, 1]} : vector<16x62xf32> to vector<16x32xf32>
    %239 = vector.extract_strided_slice %236 {offsets = [0, 2], sizes = [16, 32], strides = [1, 1]} : vector<16x62xf32> to vector<16x32xf32>
    %240 = vector.extract_strided_slice %236 {offsets = [0, 3], sizes = [16, 32], strides = [1, 1]} : vector<16x62xf32> to vector<16x32xf32>
    %241 = vector.extract_strided_slice %236 {offsets = [0, 4], sizes = [16, 32], strides = [1, 1]} : vector<16x62xf32> to vector<16x32xf32>
    %242 = vector.extract_strided_slice %236 {offsets = [0, 5], sizes = [16, 32], strides = [1, 1]} : vector<16x62xf32> to vector<16x32xf32>
    %243 = vector.extract_strided_slice %236 {offsets = [0, 6], sizes = [16, 32], strides = [1, 1]} : vector<16x62xf32> to vector<16x32xf32>
    %244 = vector.extract_strided_slice %236 {offsets = [0, 7], sizes = [16, 32], strides = [1, 1]} : vector<16x62xf32> to vector<16x32xf32>
    %245 = vector.extract_strided_slice %236 {offsets = [0, 8], sizes = [16, 32], strides = [1, 1]} : vector<16x62xf32> to vector<16x32xf32>
    %246 = vector.extract_strided_slice %236 {offsets = [0, 9], sizes = [16, 32], strides = [1, 1]} : vector<16x62xf32> to vector<16x32xf32>
    %247 = vector.extract_strided_slice %236 {offsets = [0, 10], sizes = [16, 32], strides = [1, 1]} : vector<16x62xf32> to vector<16x32xf32>
    %248 = vector.extract_strided_slice %236 {offsets = [0, 11], sizes = [16, 32], strides = [1, 1]} : vector<16x62xf32> to vector<16x32xf32>
    %249 = vector.extract_strided_slice %236 {offsets = [0, 12], sizes = [16, 32], strides = [1, 1]} : vector<16x62xf32> to vector<16x32xf32>
    %250 = vector.extract_strided_slice %236 {offsets = [0, 13], sizes = [16, 32], strides = [1, 1]} : vector<16x62xf32> to vector<16x32xf32>
    %251 = vector.extract_strided_slice %236 {offsets = [0, 14], sizes = [16, 32], strides = [1, 1]} : vector<16x62xf32> to vector<16x32xf32>
    %252 = vector.extract_strided_slice %236 {offsets = [0, 15], sizes = [16, 32], strides = [1, 1]} : vector<16x62xf32> to vector<16x32xf32>
    %253 = vector.extract_strided_slice %236 {offsets = [0, 16], sizes = [16, 32], strides = [1, 1]} : vector<16x62xf32> to vector<16x32xf32>
    %254 = vector.extract_strided_slice %236 {offsets = [0, 17], sizes = [16, 32], strides = [1, 1]} : vector<16x62xf32> to vector<16x32xf32>
    %255 = vector.extract_strided_slice %236 {offsets = [0, 18], sizes = [16, 32], strides = [1, 1]} : vector<16x62xf32> to vector<16x32xf32>
    %256 = vector.extract_strided_slice %236 {offsets = [0, 19], sizes = [16, 32], strides = [1, 1]} : vector<16x62xf32> to vector<16x32xf32>
    %257 = vector.extract_strided_slice %236 {offsets = [0, 20], sizes = [16, 32], strides = [1, 1]} : vector<16x62xf32> to vector<16x32xf32>
    %258 = vector.extract_strided_slice %236 {offsets = [0, 21], sizes = [16, 32], strides = [1, 1]} : vector<16x62xf32> to vector<16x32xf32>
    %259 = vector.extract_strided_slice %236 {offsets = [0, 22], sizes = [16, 32], strides = [1, 1]} : vector<16x62xf32> to vector<16x32xf32>
    %260 = vector.extract_strided_slice %236 {offsets = [0, 23], sizes = [16, 32], strides = [1, 1]} : vector<16x62xf32> to vector<16x32xf32>
    %261 = vector.extract_strided_slice %236 {offsets = [0, 24], sizes = [16, 32], strides = [1, 1]} : vector<16x62xf32> to vector<16x32xf32>
    %262 = vector.extract_strided_slice %236 {offsets = [0, 25], sizes = [16, 32], strides = [1, 1]} : vector<16x62xf32> to vector<16x32xf32>
    %263 = vector.extract_strided_slice %236 {offsets = [0, 26], sizes = [16, 32], strides = [1, 1]} : vector<16x62xf32> to vector<16x32xf32>
    %264 = vector.extract_strided_slice %236 {offsets = [0, 27], sizes = [16, 32], strides = [1, 1]} : vector<16x62xf32> to vector<16x32xf32>
    %265 = vector.extract_strided_slice %236 {offsets = [0, 28], sizes = [16, 32], strides = [1, 1]} : vector<16x62xf32> to vector<16x32xf32>
    %266 = vector.extract_strided_slice %236 {offsets = [0, 29], sizes = [16, 32], strides = [1, 1]} : vector<16x62xf32> to vector<16x32xf32>
    %267 = vector.extract_strided_slice %236 {offsets = [0, 30], sizes = [16, 32], strides = [1, 1]} : vector<16x62xf32> to vector<16x32xf32>
    %268 = tpu.concatenate %237, %238, %239, %240, %241, %242, %243, %244, %245, %246, %247, %248, %249, %250, %251, %252 in 0 : vector<16x32xf32>, vector<16x32xf32>, vector<16x32xf32>, vector<16x32xf32>, vector<16x32xf32>, vector<16x32xf32>, vector<16x32xf32>, vector<16x32xf32>, vector<16x32xf32>, vector<16x32xf32>, vector<16x32xf32>, vector<16x32xf32>, vector<16x32xf32>, vector<16x32xf32>, vector<16x32xf32>, vector<16x32xf32> -> vector<256x32xf32>
    %269 = tpu.concatenate %253, %254, %255, %256, %257, %258, %259, %260, %261, %262, %263, %264, %265, %266, %267 in 0 : vector<16x32xf32>, vector<16x32xf32>, vector<16x32xf32>, vector<16x32xf32>, vector<16x32xf32>, vector<16x32xf32>, vector<16x32xf32>, vector<16x32xf32>, vector<16x32xf32>, vector<16x32xf32>, vector<16x32xf32>, vector<16x32xf32>, vector<16x32xf32>, vector<16x32xf32>, vector<16x32xf32> -> vector<240x32xf32>
    %270 = tpu.concatenate %268, %269 in 0 : vector<256x32xf32>, vector<240x32xf32> -> vector<496x32xf32>
    %c0_34 = arith.constant 0 : index
    %c192 = arith.constant 192 : index
    %271 = vector.load %arg8[%c0_34, %c192] : memref<496x224xf32, #tpu.memory_space<vmem>>, vector<496x32xf32>
    tpu.vector_store %arg8[%c0_34, %c192], %270 {strides = array<i32>} : memref<496x224xf32, #tpu.memory_space<vmem>>, vector<496x32xf32>,
    %c0_35 = arith.constant 0 : index
    %c0_36 = arith.constant 0 : index
    %272 = vector.load %arg2[%c0_35, %c0_36] : memref<8x496xf32, #tpu.memory_space<vmem>>, vector<8x496xf32>
    %c0_37 = arith.constant 0 : index
    %c0_38 = arith.constant 0 : index
    %273 = vector.load %arg8[%c0_37, %c0_38] : memref<496x224xf32, #tpu.memory_space<vmem>>, vector<496x224xf32>
    %cst_39 = arith.constant dense<0.000000e+00> : vector<8x224xf32>
    %274 = tpu.matmul %272, %273, %cst_39 {dimension_numbers = #tpu.dot_dimension_numbers<[1], [0], [0], [1], [0, 0, 1, 1], [], []>} : vector<8x496xf32>, vector<496x224xf32>, vector<8x224xf32> -> vector<8x224xf32>
    %c0_40 = arith.constant 0 : index
    %c0_41 = arith.constant 0 : index
    %275 = vector.load %arg3[%c0_40, %c0_41] : memref<8x1xf32, #tpu.memory_space<vmem>>, vector<8x1xf32>
    %276 = vector.broadcast %275 : vector<8x1xf32> to vector<8x224xf32>
    %277 = arith.addf %274, %276 : vector<8x224xf32>
    %c0_42 = arith.constant 0 : index
    %c0_43 = arith.constant 0 : index
    %c0_44 = arith.constant 0 : index
    %278 = vector.load %arg4[%c0_42, %c0_43, %c0_44] : memref<1x8x224xf32, #tpu.memory_space<vmem>>, vector<1x8x224xf32>
    %279 = vector.shape_cast %278 : vector<1x8x224xf32> to vector<8x224xf32>
    %280 = vector.shape_cast %277 : vector<8x224xf32> to vector<1x8x224xf32>
    tpu.vector_store %arg4[%c0_42, %c0_43, %c0_44], %280 {strides = array<i32>} : memref<1x8x224xf32, #tpu.memory_space<vmem>>, vector<1x8x224xf32>,
    %cst_45 = arith.constant dense<0.000000e+00> : vector<8xf32>
    %281 = vector.multi_reduction <add>, %277, %cst_45 [1] : vector<8x224xf32> to vector<8xf32>
    %282 = vector.shape_cast %281 : vector<8xf32> to vector<8x1xf32>
    %c0_46 = arith.constant 0 : index
    %c0_47 = arith.constant 0 : index
    %c0_48 = arith.constant 0 : index
    %283 = vector.load %arg5[%c0_46, %c0_47, %c0_48] : memref<1x8x1xf32, #tpu.memory_space<vmem>>, vector<1x8x1xf32>
    %284 = vector.shape_cast %283 : vector<1x8x1xf32> to vector<8x1xf32>
    %285 = vector.shape_cast %282 : vector<8x1xf32> to vector<1x8x1xf32>
    tpu.vector_store %arg5[%c0_46, %c0_47, %c0_48], %285 {strides = array<i32>} : memref<1x8x1xf32, #tpu.memory_space<vmem>>, vector<1x8x1xf32>,
    %286 = arith.mulf %277, %277 : vector<8x224xf32>
    %cst_49 = arith.constant dense<0.000000e+00> : vector<8xf32>
    %287 = vector.multi_reduction <add>, %286, %cst_49 [1] : vector<8x224xf32> to vector<8xf32>
    %288 = vector.shape_cast %287 : vector<8xf32> to vector<8x1xf32>
    %c0_50 = arith.constant 0 : index
    %c0_51 = arith.constant 0 : index
    %c0_52 = arith.constant 0 : index
    %289 = vector.load %arg6[%c0_50, %c0_51, %c0_52] : memref<1x8x1xf32, #tpu.memory_space<vmem>>, vector<1x8x1xf32>
    %290 = vector.shape_cast %289 : vector<1x8x1xf32> to vector<8x1xf32>
    %291 = vector.shape_cast %288 : vector<8x1xf32> to vector<1x8x1xf32>
    tpu.vector_store %arg6[%c0_50, %c0_51, %c0_52], %291 {strides = array<i32>} : memref<1x8x1xf32, #tpu.memory_space<vmem>>, vector<1x8x1xf32>,
    return
  }
  func.func @transform_0(%arg0: i32) -> (i32, i32, i32) {
    %c0_i32 = arith.constant 0 : i32
    %c0_i32_0 = arith.constant 0 : i32
    %c0_i32_1 = arith.constant 0 : i32
    return %arg0, %c0_i32, %c0_i32_0 : i32, i32, i32
  }
  func.func @transform_1(%arg0: i32) -> (i32, i32) {
    %c0_i32 = arith.constant 0 : i32
    %c0_i32_0 = arith.constant 0 : i32
    %c0_i32_1 = arith.constant 0 : i32
    return %c0_i32, %c0_i32_0 : i32, i32
  }
  func.func @transform_2(%arg0: i32) -> (i32, i32) {
    %c0_i32 = arith.constant 0 : i32
    %c0_i32_0 = arith.constant 0 : i32
    %c0_i32_1 = arith.constant 0 : i32
    return %c0_i32, %c0_i32_0 : i32, i32
  }
  func.func @transform_3(%arg0: i32) -> (i32, i32, i32) {
    %c0_i32 = arith.constant 0 : i32
    %c0_i32_0 = arith.constant 0 : i32
    %c0_i32_1 = arith.constant 0 : i32
    return %arg0, %c0_i32, %c0_i32_0 : i32, i32, i32
  }
  func.func @transform_4(%arg0: i32) -> (i32, i32, i32) {
    %c0_i32 = arith.constant 0 : i32
    %c0_i32_0 = arith.constant 0 : i32
    %c0_i32_1 = arith.constant 0 : i32
    return %arg0, %c0_i32, %c0_i32_0 : i32, i32, i32
  }
  func.func @transform_5(%arg0: i32) -> (i32, i32, i32) {
    %c0_i32 = arith.constant 0 : i32
    %c0_i32_0 = arith.constant 0 : i32
    %c0_i32_1 = arith.constant 0 : i32
    return %arg0, %c0_i32, %c0_i32_0 : i32, i32, i32
  }
}

module attributes {stable_mosaic.version = 11 : i64} {
  func.func @kernel(%arg0: i32, %arg1: memref<1x24x16xf32, #tpu.memory_space<vmem>>, %arg2: memref<8x496xf32, #tpu.memory_space<vmem>>, %arg3: memref<8x1xf32, #tpu.memory_space<vmem>>, %arg4: memref<1x8x32xf32, #tpu.memory_space<vmem>>, %arg5: memref<1x8x1xf32, #tpu.memory_space<vmem>>, %arg6: memref<1x8x1xf32, #tpu.memory_space<vmem>>, %arg7: memref<24x46xf32, #tpu.memory_space<vmem>>, %arg8: memref<496x32xf32, #tpu.memory_space<vmem>>) attributes {dimension_semantics = [#tpu.dimension_semantics<parallel>], iteration_bounds = array<i64: 2>, scalar_prefetch = 0 : i64, scratch_operands = 2 : i64, tpu.core_type = #tpu.core_type<tc>, window_params = [{transform_indices = @transform_0, window_bounds = array<i64: 1, 24, 16>}, {pipeline_mode = #tpu.pipeline_mode<synchronous>, transform_indices = @transform_1, window_bounds = array<i64: 8, 496>}, {pipeline_mode = #tpu.pipeline_mode<synchronous>, transform_indices = @transform_2, window_bounds = array<i64: 8, 1>}, {transform_indices = @transform_3, window_bounds = array<i64: 1, 8, 32>}, {transform_indices = @transform_4, window_bounds = array<i64: 1, 8, 1>}, {transform_indices = @transform_5, window_bounds = array<i64: 1, 8, 1>}]} {
    %cst = arith.constant 0.000000e+00 : f32
    %0 = vector.broadcast %cst : f32 to vector<24x46xf32>
    %c0 = arith.constant 0 : index
    %c0_0 = arith.constant 0 : index
    %1 = vector.load %arg7[%c0, %c0_0] : memref<24x46xf32, #tpu.memory_space<vmem>>, vector<24x46xf32>
    tpu.vector_store %arg7[%c0, %c0_0], %0 {strides = array<i32>} : memref<24x46xf32, #tpu.memory_space<vmem>>, vector<24x46xf32>,
    %c0_1 = arith.constant 0 : index
    %c0_2 = arith.constant 0 : index
    %c0_3 = arith.constant 0 : index
    %2 = vector.load %arg1[%c0_1, %c0_2, %c0_3] : memref<1x24x16xf32, #tpu.memory_space<vmem>>, vector<1x24x16xf32>
    %3 = vector.shape_cast %2 : vector<1x24x16xf32> to vector<24x16xf32>
    %4 = vector.extract_strided_slice %3 {offsets = [0, 0], sizes = [8, 16], strides = [1, 1]} : vector<24x16xf32> to vector<8x16xf32>
    %c0_4 = arith.constant 0 : index
    %c15 = arith.constant 15 : index
    %5 = vector.load %arg7[%c0_4, %c15] : memref<24x46xf32, #tpu.memory_space<vmem>>, vector<8x16xf32>
    tpu.vector_store %arg7[%c0_4, %c15], %4 {strides = array<i32>} : memref<24x46xf32, #tpu.memory_space<vmem>>, vector<8x16xf32>,
    %6 = vector.extract_strided_slice %3 {offsets = [8, 0], sizes = [8, 16], strides = [1, 1]} : vector<24x16xf32> to vector<8x16xf32>
    %c8 = arith.constant 8 : index
    %c15_5 = arith.constant 15 : index
    %7 = vector.load %arg7[%c8, %c15_5] : memref<24x46xf32, #tpu.memory_space<vmem>>, vector<8x16xf32>
    tpu.vector_store %arg7[%c8, %c15_5], %6 {strides = array<i32>} : memref<24x46xf32, #tpu.memory_space<vmem>>, vector<8x16xf32>,
    %8 = vector.extract_strided_slice %3 {offsets = [16, 0], sizes = [8, 16], strides = [1, 1]} : vector<24x16xf32> to vector<8x16xf32>
    %c16 = arith.constant 16 : index
    %c15_6 = arith.constant 15 : index
    %9 = vector.load %arg7[%c16, %c15_6] : memref<24x46xf32, #tpu.memory_space<vmem>>, vector<8x16xf32>
    tpu.vector_store %arg7[%c16, %c15_6], %8 {strides = array<i32>} : memref<24x46xf32, #tpu.memory_space<vmem>>, vector<8x16xf32>,
    %c0_7 = arith.constant 0 : index
    %c0_8 = arith.constant 0 : index
    %10 = vector.load %arg7[%c0_7, %c0_8] : memref<24x46xf32, #tpu.memory_space<vmem>>, vector<16x46xf32>
    %11 = vector.extract_strided_slice %10 {offsets = [0, 0], sizes = [16, 16], strides = [1, 1]} : vector<16x46xf32> to vector<16x16xf32>
    %12 = vector.extract_strided_slice %10 {offsets = [0, 1], sizes = [16, 16], strides = [1, 1]} : vector<16x46xf32> to vector<16x16xf32>
    %13 = vector.extract_strided_slice %10 {offsets = [0, 2], sizes = [16, 16], strides = [1, 1]} : vector<16x46xf32> to vector<16x16xf32>
    %14 = vector.extract_strided_slice %10 {offsets = [0, 3], sizes = [16, 16], strides = [1, 1]} : vector<16x46xf32> to vector<16x16xf32>
    %15 = vector.extract_strided_slice %10 {offsets = [0, 4], sizes = [16, 16], strides = [1, 1]} : vector<16x46xf32> to vector<16x16xf32>
    %16 = vector.extract_strided_slice %10 {offsets = [0, 5], sizes = [16, 16], strides = [1, 1]} : vector<16x46xf32> to vector<16x16xf32>
    %17 = vector.extract_strided_slice %10 {offsets = [0, 6], sizes = [16, 16], strides = [1, 1]} : vector<16x46xf32> to vector<16x16xf32>
    %18 = vector.extract_strided_slice %10 {offsets = [0, 7], sizes = [16, 16], strides = [1, 1]} : vector<16x46xf32> to vector<16x16xf32>
    %19 = vector.extract_strided_slice %10 {offsets = [0, 8], sizes = [16, 16], strides = [1, 1]} : vector<16x46xf32> to vector<16x16xf32>
    %20 = vector.extract_strided_slice %10 {offsets = [0, 9], sizes = [16, 16], strides = [1, 1]} : vector<16x46xf32> to vector<16x16xf32>
    %21 = vector.extract_strided_slice %10 {offsets = [0, 10], sizes = [16, 16], strides = [1, 1]} : vector<16x46xf32> to vector<16x16xf32>
    %22 = vector.extract_strided_slice %10 {offsets = [0, 11], sizes = [16, 16], strides = [1, 1]} : vector<16x46xf32> to vector<16x16xf32>
    %23 = vector.extract_strided_slice %10 {offsets = [0, 12], sizes = [16, 16], strides = [1, 1]} : vector<16x46xf32> to vector<16x16xf32>
    %24 = vector.extract_strided_slice %10 {offsets = [0, 13], sizes = [16, 16], strides = [1, 1]} : vector<16x46xf32> to vector<16x16xf32>
    %25 = vector.extract_strided_slice %10 {offsets = [0, 14], sizes = [16, 16], strides = [1, 1]} : vector<16x46xf32> to vector<16x16xf32>
    %26 = vector.extract_strided_slice %10 {offsets = [0, 15], sizes = [16, 16], strides = [1, 1]} : vector<16x46xf32> to vector<16x16xf32>
    %27 = vector.extract_strided_slice %10 {offsets = [0, 16], sizes = [16, 16], strides = [1, 1]} : vector<16x46xf32> to vector<16x16xf32>
    %28 = vector.extract_strided_slice %10 {offsets = [0, 17], sizes = [16, 16], strides = [1, 1]} : vector<16x46xf32> to vector<16x16xf32>
    %29 = vector.extract_strided_slice %10 {offsets = [0, 18], sizes = [16, 16], strides = [1, 1]} : vector<16x46xf32> to vector<16x16xf32>
    %30 = vector.extract_strided_slice %10 {offsets = [0, 19], sizes = [16, 16], strides = [1, 1]} : vector<16x46xf32> to vector<16x16xf32>
    %31 = vector.extract_strided_slice %10 {offsets = [0, 20], sizes = [16, 16], strides = [1, 1]} : vector<16x46xf32> to vector<16x16xf32>
    %32 = vector.extract_strided_slice %10 {offsets = [0, 21], sizes = [16, 16], strides = [1, 1]} : vector<16x46xf32> to vector<16x16xf32>
    %33 = vector.extract_strided_slice %10 {offsets = [0, 22], sizes = [16, 16], strides = [1, 1]} : vector<16x46xf32> to vector<16x16xf32>
    %34 = vector.extract_strided_slice %10 {offsets = [0, 23], sizes = [16, 16], strides = [1, 1]} : vector<16x46xf32> to vector<16x16xf32>
    %35 = vector.extract_strided_slice %10 {offsets = [0, 24], sizes = [16, 16], strides = [1, 1]} : vector<16x46xf32> to vector<16x16xf32>
    %36 = vector.extract_strided_slice %10 {offsets = [0, 25], sizes = [16, 16], strides = [1, 1]} : vector<16x46xf32> to vector<16x16xf32>
    %37 = vector.extract_strided_slice %10 {offsets = [0, 26], sizes = [16, 16], strides = [1, 1]} : vector<16x46xf32> to vector<16x16xf32>
    %38 = vector.extract_strided_slice %10 {offsets = [0, 27], sizes = [16, 16], strides = [1, 1]} : vector<16x46xf32> to vector<16x16xf32>
    %39 = vector.extract_strided_slice %10 {offsets = [0, 28], sizes = [16, 16], strides = [1, 1]} : vector<16x46xf32> to vector<16x16xf32>
    %40 = vector.extract_strided_slice %10 {offsets = [0, 29], sizes = [16, 16], strides = [1, 1]} : vector<16x46xf32> to vector<16x16xf32>
    %41 = vector.extract_strided_slice %10 {offsets = [0, 30], sizes = [16, 16], strides = [1, 1]} : vector<16x46xf32> to vector<16x16xf32>
    %42 = tpu.concatenate %11, %12, %13, %14, %15, %16, %17, %18, %19, %20, %21, %22, %23, %24, %25, %26 in 0 : vector<16x16xf32>, vector<16x16xf32>, vector<16x16xf32>, vector<16x16xf32>, vector<16x16xf32>, vector<16x16xf32>, vector<16x16xf32>, vector<16x16xf32>, vector<16x16xf32>, vector<16x16xf32>, vector<16x16xf32>, vector<16x16xf32>, vector<16x16xf32>, vector<16x16xf32>, vector<16x16xf32>, vector<16x16xf32> -> vector<256x16xf32>
    %43 = tpu.concatenate %27, %28, %29, %30, %31, %32, %33, %34, %35, %36, %37, %38, %39, %40, %41 in 0 : vector<16x16xf32>, vector<16x16xf32>, vector<16x16xf32>, vector<16x16xf32>, vector<16x16xf32>, vector<16x16xf32>, vector<16x16xf32>, vector<16x16xf32>, vector<16x16xf32>, vector<16x16xf32>, vector<16x16xf32>, vector<16x16xf32>, vector<16x16xf32>, vector<16x16xf32>, vector<16x16xf32> -> vector<240x16xf32>
    %44 = tpu.concatenate %42, %43 in 0 : vector<256x16xf32>, vector<240x16xf32> -> vector<496x16xf32>
    %c0_9 = arith.constant 0 : index
    %c0_10 = arith.constant 0 : index
    %45 = vector.load %arg8[%c0_9, %c0_10] : memref<496x32xf32, #tpu.memory_space<vmem>>, vector<496x16xf32>
    tpu.vector_store %arg8[%c0_9, %c0_10], %44 {strides = array<i32>} : memref<496x32xf32, #tpu.memory_space<vmem>>, vector<496x16xf32>,
    %c8_11 = arith.constant 8 : index
    %c0_12 = arith.constant 0 : index
    %46 = vector.load %arg7[%c8_11, %c0_12] : memref<24x46xf32, #tpu.memory_space<vmem>>, vector<16x46xf32>
    %47 = vector.extract_strided_slice %46 {offsets = [0, 0], sizes = [16, 16], strides = [1, 1]} : vector<16x46xf32> to vector<16x16xf32>
    %48 = vector.extract_strided_slice %46 {offsets = [0, 1], sizes = [16, 16], strides = [1, 1]} : vector<16x46xf32> to vector<16x16xf32>
    %49 = vector.extract_strided_slice %46 {offsets = [0, 2], sizes = [16, 16], strides = [1, 1]} : vector<16x46xf32> to vector<16x16xf32>
    %50 = vector.extract_strided_slice %46 {offsets = [0, 3], sizes = [16, 16], strides = [1, 1]} : vector<16x46xf32> to vector<16x16xf32>
    %51 = vector.extract_strided_slice %46 {offsets = [0, 4], sizes = [16, 16], strides = [1, 1]} : vector<16x46xf32> to vector<16x16xf32>
    %52 = vector.extract_strided_slice %46 {offsets = [0, 5], sizes = [16, 16], strides = [1, 1]} : vector<16x46xf32> to vector<16x16xf32>
    %53 = vector.extract_strided_slice %46 {offsets = [0, 6], sizes = [16, 16], strides = [1, 1]} : vector<16x46xf32> to vector<16x16xf32>
    %54 = vector.extract_strided_slice %46 {offsets = [0, 7], sizes = [16, 16], strides = [1, 1]} : vector<16x46xf32> to vector<16x16xf32>
    %55 = vector.extract_strided_slice %46 {offsets = [0, 8], sizes = [16, 16], strides = [1, 1]} : vector<16x46xf32> to vector<16x16xf32>
    %56 = vector.extract_strided_slice %46 {offsets = [0, 9], sizes = [16, 16], strides = [1, 1]} : vector<16x46xf32> to vector<16x16xf32>
    %57 = vector.extract_strided_slice %46 {offsets = [0, 10], sizes = [16, 16], strides = [1, 1]} : vector<16x46xf32> to vector<16x16xf32>
    %58 = vector.extract_strided_slice %46 {offsets = [0, 11], sizes = [16, 16], strides = [1, 1]} : vector<16x46xf32> to vector<16x16xf32>
    %59 = vector.extract_strided_slice %46 {offsets = [0, 12], sizes = [16, 16], strides = [1, 1]} : vector<16x46xf32> to vector<16x16xf32>
    %60 = vector.extract_strided_slice %46 {offsets = [0, 13], sizes = [16, 16], strides = [1, 1]} : vector<16x46xf32> to vector<16x16xf32>
    %61 = vector.extract_strided_slice %46 {offsets = [0, 14], sizes = [16, 16], strides = [1, 1]} : vector<16x46xf32> to vector<16x16xf32>
    %62 = vector.extract_strided_slice %46 {offsets = [0, 15], sizes = [16, 16], strides = [1, 1]} : vector<16x46xf32> to vector<16x16xf32>
    %63 = vector.extract_strided_slice %46 {offsets = [0, 16], sizes = [16, 16], strides = [1, 1]} : vector<16x46xf32> to vector<16x16xf32>
    %64 = vector.extract_strided_slice %46 {offsets = [0, 17], sizes = [16, 16], strides = [1, 1]} : vector<16x46xf32> to vector<16x16xf32>
    %65 = vector.extract_strided_slice %46 {offsets = [0, 18], sizes = [16, 16], strides = [1, 1]} : vector<16x46xf32> to vector<16x16xf32>
    %66 = vector.extract_strided_slice %46 {offsets = [0, 19], sizes = [16, 16], strides = [1, 1]} : vector<16x46xf32> to vector<16x16xf32>
    %67 = vector.extract_strided_slice %46 {offsets = [0, 20], sizes = [16, 16], strides = [1, 1]} : vector<16x46xf32> to vector<16x16xf32>
    %68 = vector.extract_strided_slice %46 {offsets = [0, 21], sizes = [16, 16], strides = [1, 1]} : vector<16x46xf32> to vector<16x16xf32>
    %69 = vector.extract_strided_slice %46 {offsets = [0, 22], sizes = [16, 16], strides = [1, 1]} : vector<16x46xf32> to vector<16x16xf32>
    %70 = vector.extract_strided_slice %46 {offsets = [0, 23], sizes = [16, 16], strides = [1, 1]} : vector<16x46xf32> to vector<16x16xf32>
    %71 = vector.extract_strided_slice %46 {offsets = [0, 24], sizes = [16, 16], strides = [1, 1]} : vector<16x46xf32> to vector<16x16xf32>
    %72 = vector.extract_strided_slice %46 {offsets = [0, 25], sizes = [16, 16], strides = [1, 1]} : vector<16x46xf32> to vector<16x16xf32>
    %73 = vector.extract_strided_slice %46 {offsets = [0, 26], sizes = [16, 16], strides = [1, 1]} : vector<16x46xf32> to vector<16x16xf32>
    %74 = vector.extract_strided_slice %46 {offsets = [0, 27], sizes = [16, 16], strides = [1, 1]} : vector<16x46xf32> to vector<16x16xf32>
    %75 = vector.extract_strided_slice %46 {offsets = [0, 28], sizes = [16, 16], strides = [1, 1]} : vector<16x46xf32> to vector<16x16xf32>
    %76 = vector.extract_strided_slice %46 {offsets = [0, 29], sizes = [16, 16], strides = [1, 1]} : vector<16x46xf32> to vector<16x16xf32>
    %77 = vector.extract_strided_slice %46 {offsets = [0, 30], sizes = [16, 16], strides = [1, 1]} : vector<16x46xf32> to vector<16x16xf32>
    %78 = tpu.concatenate %47, %48, %49, %50, %51, %52, %53, %54, %55, %56, %57, %58, %59, %60, %61, %62 in 0 : vector<16x16xf32>, vector<16x16xf32>, vector<16x16xf32>, vector<16x16xf32>, vector<16x16xf32>, vector<16x16xf32>, vector<16x16xf32>, vector<16x16xf32>, vector<16x16xf32>, vector<16x16xf32>, vector<16x16xf32>, vector<16x16xf32>, vector<16x16xf32>, vector<16x16xf32>, vector<16x16xf32>, vector<16x16xf32> -> vector<256x16xf32>
    %79 = tpu.concatenate %63, %64, %65, %66, %67, %68, %69, %70, %71, %72, %73, %74, %75, %76, %77 in 0 : vector<16x16xf32>, vector<16x16xf32>, vector<16x16xf32>, vector<16x16xf32>, vector<16x16xf32>, vector<16x16xf32>, vector<16x16xf32>, vector<16x16xf32>, vector<16x16xf32>, vector<16x16xf32>, vector<16x16xf32>, vector<16x16xf32>, vector<16x16xf32>, vector<16x16xf32>, vector<16x16xf32> -> vector<240x16xf32>
    %80 = tpu.concatenate %78, %79 in 0 : vector<256x16xf32>, vector<240x16xf32> -> vector<496x16xf32>
    %c0_13 = arith.constant 0 : index
    %c16_14 = arith.constant 16 : index
    %81 = vector.load %arg8[%c0_13, %c16_14] : memref<496x32xf32, #tpu.memory_space<vmem>>, vector<496x16xf32>
    tpu.vector_store %arg8[%c0_13, %c16_14], %80 {strides = array<i32>} : memref<496x32xf32, #tpu.memory_space<vmem>>, vector<496x16xf32>,
    %c0_15 = arith.constant 0 : index
    %c0_16 = arith.constant 0 : index
    %82 = vector.load %arg2[%c0_15, %c0_16] : memref<8x496xf32, #tpu.memory_space<vmem>>, vector<8x496xf32>
    %c0_17 = arith.constant 0 : index
    %c0_18 = arith.constant 0 : index
    %83 = vector.load %arg8[%c0_17, %c0_18] : memref<496x32xf32, #tpu.memory_space<vmem>>, vector<496x32xf32>
    %cst_19 = arith.constant dense<0.000000e+00> : vector<8x32xf32>
    %84 = tpu.matmul %82, %83, %cst_19 {dimension_numbers = #tpu.dot_dimension_numbers<[1], [0], [0], [1], [0, 0, 1, 1], [], []>} : vector<8x496xf32>, vector<496x32xf32>, vector<8x32xf32> -> vector<8x32xf32>
    %c0_20 = arith.constant 0 : index
    %c0_21 = arith.constant 0 : index
    %85 = vector.load %arg3[%c0_20, %c0_21] : memref<8x1xf32, #tpu.memory_space<vmem>>, vector<8x1xf32>
    %86 = vector.broadcast %85 : vector<8x1xf32> to vector<8x32xf32>
    %87 = arith.addf %84, %86 : vector<8x32xf32>
    %c0_22 = arith.constant 0 : index
    %c0_23 = arith.constant 0 : index
    %c0_24 = arith.constant 0 : index
    %88 = vector.load %arg4[%c0_22, %c0_23, %c0_24] : memref<1x8x32xf32, #tpu.memory_space<vmem>>, vector<1x8x32xf32>
    %89 = vector.shape_cast %88 : vector<1x8x32xf32> to vector<8x32xf32>
    %90 = vector.shape_cast %87 : vector<8x32xf32> to vector<1x8x32xf32>
    tpu.vector_store %arg4[%c0_22, %c0_23, %c0_24], %90 {strides = array<i32>} : memref<1x8x32xf32, #tpu.memory_space<vmem>>, vector<1x8x32xf32>,
    %cst_25 = arith.constant dense<0.000000e+00> : vector<8xf32>
    %91 = vector.multi_reduction <add>, %87, %cst_25 [1] : vector<8x32xf32> to vector<8xf32>
    %92 = vector.shape_cast %91 : vector<8xf32> to vector<8x1xf32>
    %c0_26 = arith.constant 0 : index
    %c0_27 = arith.constant 0 : index
    %c0_28 = arith.constant 0 : index
    %93 = vector.load %arg5[%c0_26, %c0_27, %c0_28] : memref<1x8x1xf32, #tpu.memory_space<vmem>>, vector<1x8x1xf32>
    %94 = vector.shape_cast %93 : vector<1x8x1xf32> to vector<8x1xf32>
    %95 = vector.shape_cast %92 : vector<8x1xf32> to vector<1x8x1xf32>
    tpu.vector_store %arg5[%c0_26, %c0_27, %c0_28], %95 {strides = array<i32>} : memref<1x8x1xf32, #tpu.memory_space<vmem>>, vector<1x8x1xf32>,
    %96 = arith.mulf %87, %87 : vector<8x32xf32>
    %cst_29 = arith.constant dense<0.000000e+00> : vector<8xf32>
    %97 = vector.multi_reduction <add>, %96, %cst_29 [1] : vector<8x32xf32> to vector<8xf32>
    %98 = vector.shape_cast %97 : vector<8xf32> to vector<8x1xf32>
    %c0_30 = arith.constant 0 : index
    %c0_31 = arith.constant 0 : index
    %c0_32 = arith.constant 0 : index
    %99 = vector.load %arg6[%c0_30, %c0_31, %c0_32] : memref<1x8x1xf32, #tpu.memory_space<vmem>>, vector<1x8x1xf32>
    %100 = vector.shape_cast %99 : vector<1x8x1xf32> to vector<8x1xf32>
    %101 = vector.shape_cast %98 : vector<8x1xf32> to vector<1x8x1xf32>
    tpu.vector_store %arg6[%c0_30, %c0_31, %c0_32], %101 {strides = array<i32>} : memref<1x8x1xf32, #tpu.memory_space<vmem>>, vector<1x8x1xf32>,
    return
  }
  func.func @transform_0(%arg0: i32) -> (i32, i32, i32) {
    %c0_i32 = arith.constant 0 : i32
    %c0_i32_0 = arith.constant 0 : i32
    %c0_i32_1 = arith.constant 0 : i32
    return %arg0, %c0_i32, %c0_i32_0 : i32, i32, i32
  }
  func.func @transform_1(%arg0: i32) -> (i32, i32) {
    %c0_i32 = arith.constant 0 : i32
    %c0_i32_0 = arith.constant 0 : i32
    %c0_i32_1 = arith.constant 0 : i32
    return %c0_i32, %c0_i32_0 : i32, i32
  }
  func.func @transform_2(%arg0: i32) -> (i32, i32) {
    %c0_i32 = arith.constant 0 : i32
    %c0_i32_0 = arith.constant 0 : i32
    %c0_i32_1 = arith.constant 0 : i32
    return %c0_i32, %c0_i32_0 : i32, i32
  }
  func.func @transform_3(%arg0: i32) -> (i32, i32, i32) {
    %c0_i32 = arith.constant 0 : i32
    %c0_i32_0 = arith.constant 0 : i32
    %c0_i32_1 = arith.constant 0 : i32
    return %arg0, %c0_i32, %c0_i32_0 : i32, i32, i32
  }
  func.func @transform_4(%arg0: i32) -> (i32, i32, i32) {
    %c0_i32 = arith.constant 0 : i32
    %c0_i32_0 = arith.constant 0 : i32
    %c0_i32_1 = arith.constant 0 : i32
    return %arg0, %c0_i32, %c0_i32_0 : i32, i32, i32
  }
  func.func @transform_5(%arg0: i32) -> (i32, i32, i32) {
    %c0_i32 = arith.constant 0 : i32
    %c0_i32_0 = arith.constant 0 : i32
    %c0_i32_1 = arith.constant 0 : i32
    return %arg0, %c0_i32, %c0_i32_0 : i32, i32, i32
  }
}

module attributes {stable_mosaic.version = 11 : i64} {
  func.func @kernel(%arg0: i32, %arg1: memref<2x7x8x31xf32, #tpu.memory_space<vmem>>, %arg2: memref<2x7x8x31xf32, #tpu.memory_space<vmem>>, %arg3: memref<8x1xf32, #tpu.memory_space<vmem>>, %arg4: memref<8x1xf32, #tpu.memory_space<vmem>>, %arg5: memref<6x8x16xf32, #tpu.memory_space<vmem>>) attributes {dimension_semantics = [#tpu.dimension_semantics<parallel>], iteration_bounds = array<i64: 1>, scalar_prefetch = 0 : i64, scratch_operands = 0 : i64, tpu.core_type = #tpu.core_type<tc>, window_params = [{transform_indices = @transform_0, window_bounds = array<i64: 2, 7, 8, 31>}, {transform_indices = @transform_1, window_bounds = array<i64: 2, 7, 8, 31>}, {pipeline_mode = #tpu.pipeline_mode<synchronous>, transform_indices = @transform_2, window_bounds = array<i64: 8, 1>}, {pipeline_mode = #tpu.pipeline_mode<synchronous>, transform_indices = @transform_3, window_bounds = array<i64: 8, 1>}, {transform_indices = @transform_4, window_bounds = array<i64: 6, 8, 16>}]} {
    %c0 = arith.constant 0 : index
    %c0_0 = arith.constant 0 : index
    %c0_1 = arith.constant 0 : index
    %c0_2 = arith.constant 0 : index
    %0 = vector.load %arg1[%c0, %c0_0, %c0_1, %c0_2] : memref<2x7x8x31xf32, #tpu.memory_space<vmem>>, vector<2x7x8x31xf32>
    %c0_3 = arith.constant 0 : index
    %c0_4 = arith.constant 0 : index
    %c0_5 = arith.constant 0 : index
    %c0_6 = arith.constant 0 : index
    %1 = vector.load %arg2[%c0_3, %c0_4, %c0_5, %c0_6] : memref<2x7x8x31xf32, #tpu.memory_space<vmem>>, vector<2x7x8x31xf32>
    %c0_7 = arith.constant 0 : index
    %c0_8 = arith.constant 0 : index
    %2 = vector.load %arg3[%c0_7, %c0_8] : memref<8x1xf32, #tpu.memory_space<vmem>>, vector<8x1xf32>
    %3 = vector.shape_cast %2 : vector<8x1xf32> to vector<1x1x8x1xf32>
    %c0_9 = arith.constant 0 : index
    %c0_10 = arith.constant 0 : index
    %4 = vector.load %arg4[%c0_9, %c0_10] : memref<8x1xf32, #tpu.memory_space<vmem>>, vector<8x1xf32>
    %5 = vector.shape_cast %4 : vector<8x1xf32> to vector<1x1x8x1xf32>
    %cst = arith.constant 0xFF800000 : f32
    %6 = vector.broadcast %cst : f32 to vector<2x7x8x31xf32>
    %7 = arith.cmpf ogt, %0, %6 : vector<2x7x8x31xf32>
    %8 = vector.broadcast %3 : vector<1x1x8x1xf32> to vector<2x7x8x31xf32>
    %9 = arith.mulf %0, %8 : vector<2x7x8x31xf32>
    %10 = vector.broadcast %5 : vector<1x1x8x1xf32> to vector<2x7x8x31xf32>
    %11 = arith.addf %9, %10 : vector<2x7x8x31xf32>
    %cst_11 = arith.constant 0.000000e+00 : f32
    %12 = vector.broadcast %cst_11 : f32 to vector<2x7x8x31xf32>
    %13 = arith.maximumf %11, %12 : vector<2x7x8x31xf32>
    %cst_12 = arith.constant 0xFF800000 : f32
    %14 = vector.broadcast %cst_12 : f32 to vector<2x7x8x31xf32>
    %15 = arith.select %7, %13, %14 : vector<2x7x8x31xi1>, vector<2x7x8x31xf32>
    %cst_13 = arith.constant 0xFF800000 : f32
    %16 = vector.broadcast %cst_13 : f32 to vector<2x7x8x31xf32>
    %17 = arith.cmpf ogt, %1, %16 : vector<2x7x8x31xf32>
    %18 = vector.broadcast %3 : vector<1x1x8x1xf32> to vector<2x7x8x31xf32>
    %19 = arith.mulf %1, %18 : vector<2x7x8x31xf32>
    %20 = vector.broadcast %5 : vector<1x1x8x1xf32> to vector<2x7x8x31xf32>
    %21 = arith.addf %19, %20 : vector<2x7x8x31xf32>
    %cst_14 = arith.constant 0.000000e+00 : f32
    %22 = vector.broadcast %cst_14 : f32 to vector<2x7x8x31xf32>
    %23 = arith.maximumf %21, %22 : vector<2x7x8x31xf32>
    %cst_15 = arith.constant 0xFF800000 : f32
    %24 = vector.broadcast %cst_15 : f32 to vector<2x7x8x31xf32>
    %25 = arith.select %17, %23, %24 : vector<2x7x8x31xi1>, vector<2x7x8x31xf32>
    %26 = vector.extract_strided_slice %15 {offsets = [0, 0, 0, 0], sizes = [2, 6, 8, 31], strides = [1, 1, 1, 1]} : vector<2x7x8x31xf32> to vector<2x6x8x31xf32>
    %27 = vector.shape_cast %26 : vector<2x6x8x31xf32> to vector<6x2x8x31xf32>
    %28 = vector.extract_strided_slice %27 {offsets = [0, 0, 0, 0], sizes = [6, 1, 8, 31], strides = [1, 1, 1, 1]} : vector<6x2x8x31xf32> to vector<6x1x8x31xf32>
    %29 = vector.shape_cast %28 : vector<6x1x8x31xf32> to vector<6x8x31xf32>
    %30 = vector.extract_strided_slice %27 {offsets = [0, 1, 0, 0], sizes = [6, 1, 8, 31], strides = [1, 1, 1, 1]} : vector<6x2x8x31xf32> to vector<6x1x8x31xf32>
    %31 = vector.shape_cast %30 : vector<6x1x8x31xf32> to vector<6x8x31xf32>
    %32 = arith.maximumf %29, %31 : vector<6x8x31xf32>
    %33 = vector.extract_strided_slice %25 {offsets = [0, 0, 0, 0], sizes = [2, 6, 8, 31], strides = [1, 1, 1, 1]} : vector<2x7x8x31xf32> to vector<2x6x8x31xf32>
    %34 = vector.shape_cast %33 : vector<2x6x8x31xf32> to vector<6x2x8x31xf32>
    %35 = vector.extract_strided_slice %34 {offsets = [0, 0, 0, 0], sizes = [6, 1, 8, 31], strides = [1, 1, 1, 1]} : vector<6x2x8x31xf32> to vector<6x1x8x31xf32>
    %36 = vector.shape_cast %35 : vector<6x1x8x31xf32> to vector<6x8x31xf32>
    %37 = vector.extract_strided_slice %34 {offsets = [0, 1, 0, 0], sizes = [6, 1, 8, 31], strides = [1, 1, 1, 1]} : vector<6x2x8x31xf32> to vector<6x1x8x31xf32>
    %38 = vector.shape_cast %37 : vector<6x1x8x31xf32> to vector<6x8x31xf32>
    %39 = arith.maximumf %36, %38 : vector<6x8x31xf32>
    %40 = vector.extract_strided_slice %32 {offsets = [0, 0, 0], sizes = [6, 8, 30], strides = [1, 1, 1]} : vector<6x8x31xf32> to vector<6x8x30xf32>
    %41 = vector.extract_strided_slice %32 {offsets = [0, 0, 1], sizes = [6, 8, 30], strides = [1, 1, 1]} : vector<6x8x31xf32> to vector<6x8x30xf32>
    %42 = arith.maximumf %40, %41 : vector<6x8x30xf32>
    %43 = vector.extract_strided_slice %42 {offsets = [0, 0, 0], sizes = [6, 8, 28], strides = [1, 1, 1]} : vector<6x8x30xf32> to vector<6x8x28xf32>
    %44 = vector.extract_strided_slice %42 {offsets = [0, 0, 2], sizes = [6, 8, 28], strides = [1, 1, 1]} : vector<6x8x30xf32> to vector<6x8x28xf32>
    %45 = arith.maximumf %43, %44 : vector<6x8x28xf32>
    %46 = vector.extract_strided_slice %45 {offsets = [0, 0, 0], sizes = [6, 8, 24], strides = [1, 1, 1]} : vector<6x8x28xf32> to vector<6x8x24xf32>
    %47 = vector.extract_strided_slice %45 {offsets = [0, 0, 4], sizes = [6, 8, 24], strides = [1, 1, 1]} : vector<6x8x28xf32> to vector<6x8x24xf32>
    %48 = arith.maximumf %46, %47 : vector<6x8x24xf32>
    %49 = vector.extract_strided_slice %48 {offsets = [0, 0, 0], sizes = [6, 8, 16], strides = [1, 1, 1]} : vector<6x8x24xf32> to vector<6x8x16xf32>
    %50 = vector.extract_strided_slice %48 {offsets = [0, 0, 8], sizes = [6, 8, 16], strides = [1, 1, 1]} : vector<6x8x24xf32> to vector<6x8x16xf32>
    %51 = arith.maximumf %49, %50 : vector<6x8x16xf32>
    %52 = vector.extract_strided_slice %39 {offsets = [0, 0, 0], sizes = [6, 8, 30], strides = [1, 1, 1]} : vector<6x8x31xf32> to vector<6x8x30xf32>
    %53 = vector.extract_strided_slice %39 {offsets = [0, 0, 1], sizes = [6, 8, 30], strides = [1, 1, 1]} : vector<6x8x31xf32> to vector<6x8x30xf32>
    %54 = arith.maximumf %52, %53 : vector<6x8x30xf32>
    %55 = vector.extract_strided_slice %54 {offsets = [0, 0, 0], sizes = [6, 8, 28], strides = [1, 1, 1]} : vector<6x8x30xf32> to vector<6x8x28xf32>
    %56 = vector.extract_strided_slice %54 {offsets = [0, 0, 2], sizes = [6, 8, 28], strides = [1, 1, 1]} : vector<6x8x30xf32> to vector<6x8x28xf32>
    %57 = arith.maximumf %55, %56 : vector<6x8x28xf32>
    %58 = vector.extract_strided_slice %57 {offsets = [0, 0, 0], sizes = [6, 8, 24], strides = [1, 1, 1]} : vector<6x8x28xf32> to vector<6x8x24xf32>
    %59 = vector.extract_strided_slice %57 {offsets = [0, 0, 4], sizes = [6, 8, 24], strides = [1, 1, 1]} : vector<6x8x28xf32> to vector<6x8x24xf32>
    %60 = arith.maximumf %58, %59 : vector<6x8x24xf32>
    %61 = vector.extract_strided_slice %60 {offsets = [0, 0, 0], sizes = [6, 8, 17], strides = [1, 1, 1]} : vector<6x8x24xf32> to vector<6x8x17xf32>
    %62 = vector.extract_strided_slice %60 {offsets = [0, 0, 7], sizes = [6, 8, 17], strides = [1, 1, 1]} : vector<6x8x24xf32> to vector<6x8x17xf32>
    %63 = arith.maximumf %61, %62 : vector<6x8x17xf32>
    %64 = vector.extract_strided_slice %63 {offsets = [0, 0, 0], sizes = [6, 8, 16], strides = [1, 1, 1]} : vector<6x8x17xf32> to vector<6x8x16xf32>
    %65 = arith.maximumf %51, %64 : vector<6x8x16xf32>
    %c0_16 = arith.constant 0 : index
    %c0_17 = arith.constant 0 : index
    %c0_18 = arith.constant 0 : index
    %66 = vector.load %arg5[%c0_16, %c0_17, %c0_18] : memref<6x8x16xf32, #tpu.memory_space<vmem>>, vector<6x8x16xf32>
    tpu.vector_store %arg5[%c0_16, %c0_17, %c0_18], %65 {strides = array<i32>} : memref<6x8x16xf32, #tpu.memory_space<vmem>>, vector<6x8x16xf32>,
    return
  }
  func.func @transform_0(%arg0: i32) -> (i32, i32, i32, i32) {
    %c0_i32 = arith.constant 0 : i32
    %c0_i32_0 = arith.constant 0 : i32
    %c0_i32_1 = arith.constant 0 : i32
    %c0_i32_2 = arith.constant 0 : i32
    return %arg0, %c0_i32, %c0_i32_0, %c0_i32_1 : i32, i32, i32, i32
  }
  func.func @transform_1(%arg0: i32) -> (i32, i32, i32, i32) {
    %c0_i32 = arith.constant 0 : i32
    %c0_i32_0 = arith.constant 0 : i32
    %c0_i32_1 = arith.constant 0 : i32
    %c0_i32_2 = arith.constant 0 : i32
    return %arg0, %c0_i32, %c0_i32_0, %c0_i32_1 : i32, i32, i32, i32
  }
  func.func @transform_2(%arg0: i32) -> (i32, i32) {
    %c0_i32 = arith.constant 0 : i32
    %c0_i32_0 = arith.constant 0 : i32
    %c0_i32_1 = arith.constant 0 : i32
    return %c0_i32, %c0_i32_0 : i32, i32
  }
  func.func @transform_3(%arg0: i32) -> (i32, i32) {
    %c0_i32 = arith.constant 0 : i32
    %c0_i32_0 = arith.constant 0 : i32
    %c0_i32_1 = arith.constant 0 : i32
    return %c0_i32, %c0_i32_0 : i32, i32
  }
  func.func @transform_4(%arg0: i32) -> (i32, i32, i32) {
    %c0_i32 = arith.constant 0 : i32
    %c0_i32_0 = arith.constant 0 : i32
    %c0_i32_1 = arith.constant 0 : i32
    return %arg0, %c0_i32, %c0_i32_0 : i32, i32, i32
  }
}

module attributes {stable_mosaic.version = 11 : i64} {
  func.func @kernel(%arg0: i32, %arg1: memref<1x8x32xf32, #tpu.memory_space<vmem>>, %arg2: memref<8x1xf32, #tpu.memory_space<vmem>>, %arg3: memref<8x1xf32, #tpu.memory_space<vmem>>, %arg4: memref<1x8x32xf32, #tpu.memory_space<vmem>>) attributes {dimension_semantics = [#tpu.dimension_semantics<parallel>], iteration_bounds = array<i64: 2>, scalar_prefetch = 0 : i64, scratch_operands = 0 : i64, tpu.core_type = #tpu.core_type<tc>, window_params = [{transform_indices = @transform_0, window_bounds = array<i64: 1, 8, 32>}, {pipeline_mode = #tpu.pipeline_mode<synchronous>, transform_indices = @transform_1, window_bounds = array<i64: 8, 1>}, {pipeline_mode = #tpu.pipeline_mode<synchronous>, transform_indices = @transform_2, window_bounds = array<i64: 8, 1>}, {transform_indices = @transform_3, window_bounds = array<i64: 1, 8, 32>}]} {
    %c0 = arith.constant 0 : index
    %c0_0 = arith.constant 0 : index
    %c0_1 = arith.constant 0 : index
    %0 = vector.load %arg1[%c0, %c0_0, %c0_1] : memref<1x8x32xf32, #tpu.memory_space<vmem>>, vector<1x8x32xf32>
    %c0_2 = arith.constant 0 : index
    %c0_3 = arith.constant 0 : index
    %1 = vector.load %arg2[%c0_2, %c0_3] : memref<8x1xf32, #tpu.memory_space<vmem>>, vector<8x1xf32>
    %2 = vector.shape_cast %1 : vector<8x1xf32> to vector<1x8x1xf32>
    %3 = vector.broadcast %2 : vector<1x8x1xf32> to vector<1x8x32xf32>
    %4 = arith.mulf %0, %3 : vector<1x8x32xf32>
    %c0_4 = arith.constant 0 : index
    %c0_5 = arith.constant 0 : index
    %5 = vector.load %arg3[%c0_4, %c0_5] : memref<8x1xf32, #tpu.memory_space<vmem>>, vector<8x1xf32>
    %6 = vector.shape_cast %5 : vector<8x1xf32> to vector<1x8x1xf32>
    %7 = vector.broadcast %6 : vector<1x8x1xf32> to vector<1x8x32xf32>
    %8 = arith.addf %4, %7 : vector<1x8x32xf32>
    %cst = arith.constant 0.000000e+00 : f32
    %9 = vector.broadcast %cst : f32 to vector<1x8x32xf32>
    %10 = arith.maximumf %8, %9 : vector<1x8x32xf32>
    %c0_6 = arith.constant 0 : index
    %c0_7 = arith.constant 0 : index
    %c0_8 = arith.constant 0 : index
    %11 = vector.load %arg4[%c0_6, %c0_7, %c0_8] : memref<1x8x32xf32, #tpu.memory_space<vmem>>, vector<1x8x32xf32>
    tpu.vector_store %arg4[%c0_6, %c0_7, %c0_8], %10 {strides = array<i32>} : memref<1x8x32xf32, #tpu.memory_space<vmem>>, vector<1x8x32xf32>,
    return
  }
  func.func @transform_0(%arg0: i32) -> (i32, i32, i32) {
    %c0_i32 = arith.constant 0 : i32
    %c0_i32_0 = arith.constant 0 : i32
    %c0_i32_1 = arith.constant 0 : i32
    return %arg0, %c0_i32, %c0_i32_0 : i32, i32, i32
  }
  func.func @transform_1(%arg0: i32) -> (i32, i32) {
    %c0_i32 = arith.constant 0 : i32
    %c0_i32_0 = arith.constant 0 : i32
    %c0_i32_1 = arith.constant 0 : i32
    return %c0_i32, %c0_i32_0 : i32, i32
  }
  func.func @transform_2(%arg0: i32) -> (i32, i32) {
    %c0_i32 = arith.constant 0 : i32
    %c0_i32_0 = arith.constant 0 : i32
    %c0_i32_1 = arith.constant 0 : i32
    return %c0_i32, %c0_i32_0 : i32, i32
  }
  func.func @transform_3(%arg0: i32) -> (i32, i32, i32) {
    %c0_i32 = arith.constant 0 : i32
    %c0_i32_0 = arith.constant 0 : i32
    %c0_i32_1 = arith.constant 0 : i32
    return %arg0, %c0_i32, %c0_i32_0 : i32, i32, i32
  }
}

</mosaic_0001>

<bundles_post_ra>
// kernel: encoder2d_forward.5
= control target key start
LH: loop header
LB: loop body
LE: loop exit
PB: predicated region body
PF: predicated region fallthrough
CT: control target
= control target key end

     0   :  { %s789_s25 = smov 127   ;;  %s792_s27 = smov 120   ;;  %vm763_vm0 = vcmask 257024   ;;  %s1720_s0 = inlined_call_operand.vmem [shape: f32[2,16,4,47], index: 0, kind: input, shape index: {}]   ;;  %s1721_s1 = inlined_call_operand.vmem [shape: f32[2,16,4,47], index: 1, kind: input, shape index: {}]   ;;  %s1722_s2 = inlined_call_operand.vmem [shape: f32[16,4,32], index: 2, kind: output, shape index: {}]  }
   0x1   :  { %v11_v0 = vld [vmem:[%s1720_s0] sm:$0xf]  ;;  %v12_v1 = vld [vmem:[%s1720_s0 + $0x4] sm:$0xf]  ;;  %v15_v2 = vld [vmem:[%s1720_s0 + $0x10] sm:$0xf] }
   0x2   :  { %v818_v3 = vmax.f32 %v11_v0, %v12_v1  ;;  %v16_v4 = vld [vmem:[%s1720_s0 + $0x14] sm:$0xf]  ;;  %v13_v5 = vld [vmem:[%s1720_s0 + $0x8] sm:$0xf]  ;;  %v14_v6 = vld [vmem:[%s1720_s0 + $0xc] sm:$0xf] }
   0x3   :  { %v829_v7 = vmax.f32 %v15_v2, %v16_v4  ;;  %v17_v8 = vld [vmem:[%s1720_s0 + $0x18] sm:$0xf]  ;;  %v18_v9 = vld [vmem:[%s1720_s0 + $0x1c] sm:$0xf]  ;;  %v839_v10 = vmax.f32 %v13_v5, %v14_v6  ;;  %v19_v12 = vld [vmem:[%s1720_s0 + $0x20] sm:$0xf] }
   0x4   :  { %123 = vrot.lane.b32.xlu0 %v818_v3, %s789_s25  ;;  %v843_v11 = vmax.f32 %v17_v8, %v18_v9  ;;  %v20_v13 = vld [vmem:[%s1720_s0 + $0x24] sm:$0xf]  ;;  %v21_v14 = vld [vmem:[%s1720_s0 + $0x28] sm:$0xf]  ;;  %v22_v15 = vld [vmem:[%s1720_s0 + $0x2c] sm:$0xf] }
   0x5   :  { %127 = vrot.lane.b32.xlu1 %v829_v7, %s789_s25  ;;  %v859_v16 = vmax.f32 %v19_v12, %v20_v13  ;;  %v863_v17 = vmax.f32 %v21_v14, %v22_v15  ;;  %v23_v18 = vld [vmem:[%s1720_s0 + $0x30] sm:$0xf]  ;;  %v24_v19 = vld [vmem:[%s1720_s0 + $0x34] sm:$0xf]  ;;  %v25_v20 = vld [vmem:[%s1720_s0 + $0x38] sm:$0xf] }
   0x6   :  { %v26_v21 = vld [vmem:[%s1720_s0 + $0x3c] sm:$0xf]  ;;  %v879_v22 = vmax.f32 %v23_v18, %v24_v19  ;;  %v27_v24 = vld [vmem:[%s1720_s0 + $0x40] sm:$0xf]  ;;  %v28_v25 = vld [vmem:[%s1720_s0 + $0x44] sm:$0xf] }
   0x7   :  { %v883_v23 = vmax.f32 %v25_v20, %v26_v21  ;;  %v29_v26 = vld [vmem:[%s1720_s0 + $0x48] sm:$0xf]  ;;  %v30_v27 = vld [vmem:[%s1720_s0 + $0x4c] sm:$0xf]  ;;  %v899_v28 = vmax.f32 %v27_v24, %v28_v25  ;;  %v31_v30 = vld [vmem:[%s1720_s0 + $0x50] sm:$0xf] }
   0x8   :  { %125 = vrot.lane.b32.xlu0 %v839_v10, %s789_s25  ;;  %v903_v29 = vmax.f32 %v29_v26, %v30_v27  ;;  %v32_v31 = vld [vmem:[%s1720_s0 + $0x54] sm:$0xf]  ;;  %v33_v32 = vld [vmem:[%s1720_s0 + $0x58] sm:$0xf]  ;;  %v34_v33 = vld [vmem:[%s1720_s0 + $0x5c] sm:$0xf] }
   0x9   :  { %129 = vrot.lane.b32.xlu1 %v843_v11, %s789_s25  ;;  %v919_v34 = vmax.f32 %v31_v30, %v32_v31  ;;  %v923_v35 = vmax.f32 %v33_v32, %v34_v33  ;;  %v35_v36 = vld [vmem:[%s1720_s0 + $0x60] sm:$0xf]  ;;  %v36_v37 = vld [vmem:[%s1720_s0 + $0x64] sm:$0xf]  ;;  %v37_v38 = vld [vmem:[%s1720_s0 + $0x68] sm:$0xf] }
   0xa   :  { %v38_v39 = vld [vmem:[%s1720_s0 + $0x6c] sm:$0xf]  ;;  %v939_v40 = vmax.f32 %v35_v36, %v36_v37  ;;  %v39_v42 = vld [vmem:[%s1720_s0 + $0x70] sm:$0xf]  ;;  %v40_v43 = vld [vmem:[%s1720_s0 + $0x74] sm:$0xf] }
   0xb   :  { %v943_v41 = vmax.f32 %v37_v38, %v38_v39  ;;  %v41_v44 = vld [vmem:[%s1720_s0 + $0x78] sm:$0xf]  ;;  %v42_v45 = vld [vmem:[%s1720_s0 + $0x7c] sm:$0xf]  ;;  %v959_v46 = vmax.f32 %v39_v42, %v40_v43  ;;  %v43_v48 = vld [vmem:[%s1721_s1] sm:$0xf] }
   0xc   :  { %131 = vrot.lane.b32.xlu0 %v859_v16, %s789_s25  ;;  %v963_v47 = vmax.f32 %v41_v44, %v42_v45  ;;  %v44_v49 = vld [vmem:[%s1721_s1 + $0x4] sm:$0xf]  ;;  %v45_v50 = vld [vmem:[%s1721_s1 + $0x8] sm:$0xf]  ;;  %v46_v51 = vld [vmem:[%s1721_s1 + $0xc] sm:$0xf] }
   0xd   :  { %133 = vrot.lane.b32.xlu1 %v863_v17, %s789_s25  ;;  %v979_v52 = vmax.f32 %v43_v48, %v44_v49  ;;  %v983_v53 = vmax.f32 %v45_v50, %v46_v51  ;;  %v47_v54 = vld [vmem:[%s1721_s1 + $0x10] sm:$0xf]  ;;  %v48_v55 = vld [vmem:[%s1721_s1 + $0x14] sm:$0xf]  ;;  %v49_v56 = vld [vmem:[%s1721_s1 + $0x18] sm:$0xf] }
   0xe   :  { %v50_v57 = vld [vmem:[%s1721_s1 + $0x1c] sm:$0xf]  ;;  %v999_v58 = vmax.f32 %v47_v54, %v48_v55  ;;  %v51_v60 = vld [vmem:[%s1721_s1 + $0x20] sm:$0xf]  ;;  %v52_v61 = vld [vmem:[%s1721_s1 + $0x24] sm:$0xf] }
   0xf   :  { %v1003_v59 = vmax.f32 %v49_v56, %v50_v57  ;;  %v53_v62 = vld [vmem:[%s1721_s1 + $0x28] sm:$0xf]  ;;  %v54_v63 = vld [vmem:[%s1721_s1 + $0x2c] sm:$0xf]  ;;  %v1019_v0 = vmax.f32 %v51_v60, %v52_v61  ;;  %v55_v2 = vld [vmem:[%s1721_s1 + $0x30] sm:$0xf] }
  0x10   :  { %135 = vrot.lane.b32.xlu0 %v879_v22, %s789_s25  ;;  %v1023_v1 = vmax.f32 %v53_v62, %v54_v63  ;;  %v56_v4 = vld [vmem:[%s1721_s1 + $0x34] sm:$0xf]  ;;  %v57_v5 = vld [vmem:[%s1721_s1 + $0x38] sm:$0xf]  ;;  %v58_v6 = vld [vmem:[%s1721_s1 + $0x3c] sm:$0xf] }
  0x11   :  { %137 = vrot.lane.b32.xlu1 %v883_v23, %s789_s25  ;;  %v1039_v8 = vmax.f32 %v55_v2, %v56_v4  ;;  %v1043_v9 = vmax.f32 %v57_v5, %v58_v6  ;;  %v59_v12 = vld [vmem:[%s1721_s1 + $0x40] sm:$0xf]  ;;  %v60_v13 = vld [vmem:[%s1721_s1 + $0x44] sm:$0xf]  ;;  %v61_v14 = vld [vmem:[%s1721_s1 + $0x48] sm:$0xf] }
  0x12   :  { %v62_v15 = vld [vmem:[%s1721_s1 + $0x4c] sm:$0xf]  ;;  %v1059_v18 = vmax.f32 %v59_v12, %v60_v13  ;;  %v63_v20 = vld [vmem:[%s1721_s1 + $0x50] sm:$0xf]  ;;  %v64_v21 = vld [vmem:[%s1721_s1 + $0x54] sm:$0xf] }
  0x13   :  { %v1063_v19 = vmax.f32 %v61_v14, %v62_v15  ;;  %v65_v24 = vld [vmem:[%s1721_s1 + $0x58] sm:$0xf]  ;;  %v66_v25 = vld [vmem:[%s1721_s1 + $0x5c] sm:$0xf]  ;;  %v1079_v26 = vmax.f32 %v63_v20, %v64_v21  ;;  %v67_v30 = vld [vmem:[%s1721_s1 + $0x60] sm:$0xf] }
  0x14   :  { %139 = vrot.lane.b32.xlu0 %v899_v28, %s789_s25  ;;  %v1083_v27 = vmax.f32 %v65_v24, %v66_v25  ;;  %v68_v31 = vld [vmem:[%s1721_s1 + $0x64] sm:$0xf]  ;;  %v69_v32 = vld [vmem:[%s1721_s1 + $0x68] sm:$0xf]  ;;  %v70_v33 = vld [vmem:[%s1721_s1 + $0x6c] sm:$0xf] }
  0x15   :  { %141 = vrot.lane.b32.xlu1 %v903_v29, %s789_s25  ;;  %v1099_v36 = vmax.f32 %v67_v30, %v68_v31  ;;  %v1103_v37 = vmax.f32 %v69_v32, %v70_v33  ;;  %v71_v38 = vld [vmem:[%s1721_s1 + $0x70] sm:$0xf]  ;;  %v72_v39 = vld [vmem:[%s1721_s1 + $0x74] sm:$0xf]  ;;  %v73_v42 = vld [vmem:[%s1721_s1 + $0x78] sm:$0xf] }
  0x16   :  { %v74_v43 = vld [vmem:[%s1721_s1 + $0x7c] sm:$0xf]  ;;  %v1119_v44 = vmax.f32 %v71_v38, %v72_v39  ;;  %s790_s1 = smov 126   ;;  %s793_s28 = smov 121  }
  0x17   :  { %v1123_v45 = vmax.f32 %v73_v42, %v74_v43 }
  0x18   :  { %143 = vrot.lane.b32.xlu0 %v919_v34, %s789_s25 }
  0x19   :  { %145 = vrot.lane.b32.xlu1 %v923_v35, %s789_s25 }
  0x1c   :  { %147 = vrot.lane.b32.xlu0 %v939_v40, %s789_s25 }
  0x1d   :  { %149 = vrot.lane.b32.xlu1 %v943_v41, %s789_s25 }
  0x20   :  { %151 = vrot.lane.b32.xlu0 %v959_v46, %s789_s25 }
  0x21   :  { %153 = vrot.lane.b32.xlu1 %v963_v47, %s789_s25 }
  0x24   :  { %443 = vrot.lane.b32.xlu0 %v979_v52, %s789_s25 }
  0x25   :  { %445 = vrot.lane.b32.xlu1 %v983_v53, %s789_s25 }
  0x28   :  { %447 = vrot.lane.b32.xlu0 %v999_v58, %s789_s25 }
  0x29   :  { %449 = vrot.lane.b32.xlu1 %v1003_v59, %s789_s25 }
  0x2c   :  { %451 = vrot.lane.b32.xlu0 %v1019_v0, %s789_s25 }
  0x2d   :  { %453 = vrot.lane.b32.xlu1 %v1023_v1, %s789_s25 }
  0x30   :  { %455 = vrot.lane.b32.xlu0 %v1039_v8, %s789_s25 }
  0x31   :  { %457 = vrot.lane.b32.xlu1 %v1043_v9, %s789_s25 }
  0x34   :  { %459 = vrot.lane.b32.xlu0 %v1059_v18, %s789_s25 }
  0x35   :  { %461 = vrot.lane.b32.xlu1 %v1063_v19, %s789_s25 }
  0x38   :  { %463 = vrot.lane.b32.xlu0 %v1079_v26, %s789_s25 }
  0x39   :  { %465 = vrot.lane.b32.xlu1 %v1083_v27, %s789_s25 }
  0x3c   :  { %467 = vrot.lane.b32.xlu0 %v1099_v36, %s789_s25 }
  0x3d   :  { %469 = vrot.lane.b32.xlu1 %v1103_v37, %s789_s25 }
  0x40   :  { %471 = vrot.lane.b32.xlu0 %v1119_v44, %s789_s25 }
  0x41   :  { %473 = vrot.lane.b32.xlu1 %v1123_v45, %s789_s25  ;;  %s791_s25 = smov 124  }
  0x76   :  { %v124_v48 = vpop.permute.xlu0 %123 }
  0x77   :  { %v1130_v49 = vmax.f32 %v818_v3, %v124_v48  ;;  %v128_v50 = vpop.permute.xlu1 %127 }
  0x78   :  { %v1135_v51 = vmax.f32 %v829_v7, %v128_v50 }
  0x79   :  { %203 = vrot.lane.b32.xlu0 %v1130_v49, %s790_s1 }
  0x7a   :  { %v126_v54 = vpop.permute.xlu0 %125 }
  0x7b   :  { %v1138_v55 = vmax.f32 %v839_v10, %v126_v54  ;;  %v130_v56 = vpop.permute.xlu1 %129 }
  0x7c   :  { %v1145_v3 = vmax.f32 %v843_v11, %v130_v56 }
  0x7d   :  { %207 = vrot.lane.b32.xlu0 %v1135_v51, %s790_s1  ;;  %205 = vrot.lane.b32.xlu1 %v1138_v55, %s790_s1 }
  0x7e   :  { %v132_v57 = vpop.permute.xlu0 %131 }
  0x7f   :  { %v1148_v60 = vmax.f32 %v859_v16, %v132_v57  ;;  %v134_v7 = vpop.permute.xlu1 %133 }
  0x80   :  { %v1155_v10 = vmax.f32 %v863_v17, %v134_v7 }
  0x81   :  { %209 = vrot.lane.b32.xlu1 %v1145_v3, %s790_s1  ;;  %211 = vrot.lane.b32.xlu0 %v1148_v60, %s790_s1 }
  0x82   :  { %v136_v61 = vpop.permute.xlu0 %135 }
  0x83   :  { %v1158_v62 = vmax.f32 %v879_v22, %v136_v61  ;;  %v138_v11 = vpop.permute.xlu1 %137 }
  0x84   :  { %v1165_v16 = vmax.f32 %v883_v23, %v138_v11 }
  0x85   :  { %213 = vrot.lane.b32.xlu1 %v1155_v10, %s790_s1  ;;  %215 = vrot.lane.b32.xlu0 %v1158_v62, %s790_s1 }
  0x86   :  { %v140_v63 = vpop.permute.xlu0 %139 }
  0x87   :  { %v1168_v2 = vmax.f32 %v899_v28, %v140_v63  ;;  %v142_v17 = vpop.permute.xlu1 %141 }
  0x88   :  { %v1175_v22 = vmax.f32 %v903_v29, %v142_v17 }
  0x89   :  { %217 = vrot.lane.b32.xlu1 %v1165_v16, %s790_s1  ;;  %219 = vrot.lane.b32.xlu0 %v1168_v2, %s790_s1 }
  0x8a   :  { %v144_v4 = vpop.permute.xlu0 %143 }
  0x8b   :  { %v1178_v5 = vmax.f32 %v919_v34, %v144_v4  ;;  %v146_v23 = vpop.permute.xlu1 %145 }
  0x8c   :  { %v1185_v28 = vmax.f32 %v923_v35, %v146_v23 }
  0x8d   :  { %221 = vrot.lane.b32.xlu1 %v1175_v22, %s790_s1  ;;  %223 = vrot.lane.b32.xlu0 %v1178_v5, %s790_s1 }
  0x8e   :  { %v148_v6 = vpop.permute.xlu0 %147 }
  0x8f   :  { %v1188_v12 = vmax.f32 %v939_v40, %v148_v6  ;;  %v150_v29 = vpop.permute.xlu1 %149 }
  0x90   :  { %v1195_v34 = vmax.f32 %v943_v41, %v150_v29 }
  0x91   :  { %225 = vrot.lane.b32.xlu1 %v1185_v28, %s790_s1  ;;  %227 = vrot.lane.b32.xlu0 %v1188_v12, %s790_s1 }
  0x92   :  { %v152_v13 = vpop.permute.xlu0 %151 }
  0x93   :  { %v1198_v14 = vmax.f32 %v959_v46, %v152_v13  ;;  %v154_v35 = vpop.permute.xlu1 %153 }
  0x94   :  { %v1205_v40 = vmax.f32 %v963_v47, %v154_v35 }
  0x95   :  { %229 = vrot.lane.b32.xlu1 %v1195_v34, %s790_s1  ;;  %231 = vrot.lane.b32.xlu0 %v1198_v14, %s790_s1 }
  0x96   :  { %v444_v15 = vpop.permute.xlu0 %443 }
  0x97   :  { %v1208_v20 = vmax.f32 %v979_v52, %v444_v15  ;;  %v446_v41 = vpop.permute.xlu1 %445 }
  0x98   :  { %v1215_v46 = vmax.f32 %v983_v53, %v446_v41 }
  0x99   :  { %233 = vrot.lane.b32.xlu1 %v1205_v40, %s790_s1  ;;  %523 = vrot.lane.b32.xlu0 %v1208_v20, %s790_s1 }
  0x9a   :  { %v448_v21 = vpop.permute.xlu0 %447 }
  0x9b   :  { %v1218_v24 = vmax.f32 %v999_v58, %v448_v21  ;;  %v450_v47 = vpop.permute.xlu1 %449 }
  0x9c   :  { %v1225_v52 = vmax.f32 %v1003_v59, %v450_v47 }
  0x9d   :  { %525 = vrot.lane.b32.xlu1 %v1215_v46, %s790_s1  ;;  %527 = vrot.lane.b32.xlu0 %v1218_v24, %s790_s1 }
  0x9e   :  { %v452_v25 = vpop.permute.xlu0 %451 }
  0x9f   :  { %v1228_v30 = vmax.f32 %v1019_v0, %v452_v25  ;;  %v454_v53 = vpop.permute.xlu1 %453 }
  0xa0   :  { %v1235_v58 = vmax.f32 %v1023_v1, %v454_v53 }
  0xa1   :  { %529 = vrot.lane.b32.xlu1 %v1225_v52, %s790_s1  ;;  %531 = vrot.lane.b32.xlu0 %v1228_v30, %s790_s1 }
  0xa2   :  { %v456_v31 = vpop.permute.xlu0 %455 }
  0xa3   :  { %v1238_v32 = vmax.f32 %v1039_v8, %v456_v31  ;;  %v458_v59 = vpop.permute.xlu1 %457 }
  0xa4   :  { %v1245_v0 = vmax.f32 %v1043_v9, %v458_v59 }
  0xa5   :  { %533 = vrot.lane.b32.xlu1 %v1235_v58, %s790_s1  ;;  %535 = vrot.lane.b32.xlu0 %v1238_v32, %s790_s1 }
  0xa6   :  { %v460_v33 = vpop.permute.xlu0 %459 }
  0xa7   :  { %v1248_v38 = vmax.f32 %v1059_v18, %v460_v33  ;;  %v462_v1 = vpop.permute.xlu1 %461 }
  0xa8   :  { %v1255_v8 = vmax.f32 %v1063_v19, %v462_v1 }
  0xa9   :  { %537 = vrot.lane.b32.xlu1 %v1245_v0, %s790_s1  ;;  %539 = vrot.lane.b32.xlu0 %v1248_v38, %s790_s1 }
  0xaa   :  { %v464_v39 = vpop.permute.xlu0 %463 }
  0xab   :  { %v1258_v42 = vmax.f32 %v1079_v26, %v464_v39  ;;  %v466_v9 = vpop.permute.xlu1 %465 }
  0xac   :  { %v1265_v18 = vmax.f32 %v1083_v27, %v466_v9 }
  0xad   :  { %541 = vrot.lane.b32.xlu1 %v1255_v8, %s790_s1  ;;  %543 = vrot.lane.b32.xlu0 %v1258_v42, %s790_s1 }
  0xae   :  { %v468_v43 = vpop.permute.xlu0 %467 }
  0xaf   :  { %v1268_v48 = vmax.f32 %v1099_v36, %v468_v43  ;;  %v470_v19 = vpop.permute.xlu1 %469 }
  0xb0   :  { %v1275_v26 = vmax.f32 %v1103_v37, %v470_v19 }
  0xb1   :  { %545 = vrot.lane.b32.xlu1 %v1265_v18, %s790_s1  ;;  %547 = vrot.lane.b32.xlu0 %v1268_v48, %s790_s1 }
  0xb2   :  { %v472_v50 = vpop.permute.xlu0 %471 }
  0xb3   :  { %v1278_v54 = vmax.f32 %v1119_v44, %v472_v50  ;;  %v474_v27 = vpop.permute.xlu1 %473 }
  0xb4   :  { %v1285_v36 = vmax.f32 %v1123_v45, %v474_v27 }
  0xb5   :  { %549 = vrot.lane.b32.xlu1 %v1275_v26, %s790_s1  ;;  %551 = vrot.lane.b32.xlu0 %v1278_v54, %s790_s1 }
  0xb9   :  { %553 = vrot.lane.b32.xlu1 %v1285_v36, %s790_s1 }
  0xeb   :  { %v204_v56 = vpop.permute.xlu0 %203 }
  0xec   :  { %v1290_v37 = vmax.f32 %v1130_v49, %v204_v56 }
  0xee   :  { %283 = vrot.lane.b32.xlu0 %v1290_v37, %s791_s25 }
  0xef   :  { %v206_v44 = vpop.permute.xlu1 %205  ;;  %v208_v57 = vpop.permute.xlu0 %207 }
  0xf0   :  { %v1295_v7 = vmax.f32 %v1138_v55, %v206_v44  ;;  %v1298_v61 = vmax.f32 %v1135_v51, %v208_v57 }
  0xf2   :  { %285 = vrot.lane.b32.xlu1 %v1295_v7, %s791_s25  ;;  %287 = vrot.lane.b32.xlu0 %v1298_v61, %s791_s25 }
  0xf3   :  { %v210_v45 = vpop.permute.xlu1 %209  ;;  %v212_v49 = vpop.permute.xlu0 %211 }
  0xf4   :  { %v1305_v11 = vmax.f32 %v1145_v3, %v210_v45  ;;  %v1308_v63 = vmax.f32 %v1148_v60, %v212_v49 }
  0xf6   :  { %289 = vrot.lane.b32.xlu1 %v1305_v11, %s791_s25  ;;  %291 = vrot.lane.b32.xlu0 %v1308_v63, %s791_s25 }
  0xf7   :  { %v214_v51 = vpop.permute.xlu1 %213  ;;  %v216_v55 = vpop.permute.xlu0 %215 }
  0xf8   :  { %v1315_v17 = vmax.f32 %v1155_v10, %v214_v51  ;;  %v1318_v4 = vmax.f32 %v1158_v62, %v216_v55 }
  0xfa   :  { %293 = vrot.lane.b32.xlu1 %v1315_v17, %s791_s25  ;;  %295 = vrot.lane.b32.xlu0 %v1318_v4, %s791_s25 }
  0xfb   :  { %v218_v3 = vpop.permute.xlu1 %217  ;;  %v220_v60 = vpop.permute.xlu0 %219 }
  0xfc   :  { %v1325_v23 = vmax.f32 %v1165_v16, %v218_v3  ;;  %v1328_v6 = vmax.f32 %v1168_v2, %v220_v60 }
  0xfe   :  { %297 = vrot.lane.b32.xlu1 %v1325_v23, %s791_s25  ;;  %299 = vrot.lane.b32.xlu0 %v1328_v6, %s791_s25 }
  0xff   :  { %v222_v10 = vpop.permute.xlu1 %221  ;;  %v224_v62 = vpop.permute.xlu0 %223 }
 0x100   :  { %v1335_v29 = vmax.f32 %v1175_v22, %v222_v10  ;;  %v1338_v13 = vmax.f32 %v1178_v5, %v224_v62 }
 0x102   :  { %301 = vrot.lane.b32.xlu1 %v1335_v29, %s791_s25  ;;  %303 = vrot.lane.b32.xlu0 %v1338_v13, %s791_s25 }
 0x103   :  { %v226_v16 = vpop.permute.xlu1 %225  ;;  %v228_v2 = vpop.permute.xlu0 %227 }
 0x104   :  { %v1345_v35 = vmax.f32 %v1185_v28, %v226_v16  ;;  %v1348_v15 = vmax.f32 %v1188_v12, %v228_v2 }
 0x106   :  { %305 = vrot.lane.b32.xlu1 %v1345_v35, %s791_s25  ;;  %307 = vrot.lane.b32.xlu0 %v1348_v15, %s791_s25 }
 0x107   :  { %v230_v22 = vpop.permute.xlu1 %229  ;;  %v232_v5 = vpop.permute.xlu0 %231 }
 0x108   :  { %v1355_v41 = vmax.f32 %v1195_v34, %v230_v22  ;;  %v1358_v21 = vmax.f32 %v1198_v14, %v232_v5 }
 0x10a   :  { %309 = vrot.lane.b32.xlu1 %v1355_v41, %s791_s25  ;;  %311 = vrot.lane.b32.xlu0 %v1358_v21, %s791_s25 }
 0x10b   :  { %v234_v28 = vpop.permute.xlu1 %233  ;;  %v524_v12 = vpop.permute.xlu0 %523 }
 0x10c   :  { %v1365_v47 = vmax.f32 %v1205_v40, %v234_v28  ;;  %v1368_v25 = vmax.f32 %v1208_v20, %v524_v12 }
 0x10e   :  { %313 = vrot.lane.b32.xlu1 %v1365_v47, %s791_s25  ;;  %603 = vrot.lane.b32.xlu0 %v1368_v25, %s791_s25 }
 0x10f   :  { %v526_v34 = vpop.permute.xlu1 %525  ;;  %v528_v14 = vpop.permute.xlu0 %527 }
 0x110   :  { %v1375_v53 = vmax.f32 %v1215_v46, %v526_v34  ;;  %v1378_v31 = vmax.f32 %v1218_v24, %v528_v14 }
 0x112   :  { %605 = vrot.lane.b32.xlu1 %v1375_v53, %s791_s25  ;;  %607 = vrot.lane.b32.xlu0 %v1378_v31, %s791_s25 }
 0x113   :  { %v530_v40 = vpop.permute.xlu1 %529  ;;  %v532_v20 = vpop.permute.xlu0 %531 }
 0x114   :  { %v1385_v59 = vmax.f32 %v1225_v52, %v530_v40  ;;  %v1388_v33 = vmax.f32 %v1228_v30, %v532_v20 }
 0x116   :  { %609 = vrot.lane.b32.xlu1 %v1385_v59, %s791_s25  ;;  %611 = vrot.lane.b32.xlu0 %v1388_v33, %s791_s25 }
 0x117   :  { %v534_v46 = vpop.permute.xlu1 %533  ;;  %v536_v24 = vpop.permute.xlu0 %535 }
 0x118   :  { %v1395_v1 = vmax.f32 %v1235_v58, %v534_v46  ;;  %v1398_v39 = vmax.f32 %v1238_v32, %v536_v24 }
 0x11a   :  { %613 = vrot.lane.b32.xlu1 %v1395_v1, %s791_s25  ;;  %615 = vrot.lane.b32.xlu0 %v1398_v39, %s791_s25 }
 0x11b   :  { %v538_v52 = vpop.permute.xlu1 %537  ;;  %v540_v30 = vpop.permute.xlu0 %539 }
 0x11c   :  { %v1405_v9 = vmax.f32 %v1245_v0, %v538_v52  ;;  %v1408_v43 = vmax.f32 %v1248_v38, %v540_v30 }
 0x11e   :  { %617 = vrot.lane.b32.xlu1 %v1405_v9, %s791_s25  ;;  %619 = vrot.lane.b32.xlu0 %v1408_v43, %s791_s25 }
 0x11f   :  { %v542_v58 = vpop.permute.xlu1 %541  ;;  %v544_v32 = vpop.permute.xlu0 %543 }
 0x120   :  { %v1415_v19 = vmax.f32 %v1255_v8, %v542_v58  ;;  %v1418_v50 = vmax.f32 %v1258_v42, %v544_v32 }
 0x122   :  { %621 = vrot.lane.b32.xlu1 %v1415_v19, %s791_s25  ;;  %623 = vrot.lane.b32.xlu0 %v1418_v50, %s791_s25 }
 0x123   :  { %v546_v0 = vpop.permute.xlu1 %545  ;;  %v548_v38 = vpop.permute.xlu0 %547 }
 0x124   :  { %v1425_v27 = vmax.f32 %v1265_v18, %v546_v0  ;;  %v1428_v56 = vmax.f32 %v1268_v48, %v548_v38 }
 0x126   :  { %625 = vrot.lane.b32.xlu1 %v1425_v27, %s791_s25  ;;  %627 = vrot.lane.b32.xlu0 %v1428_v56, %s791_s25 }
 0x127   :  { %v550_v8 = vpop.permute.xlu1 %549  ;;  %v552_v42 = vpop.permute.xlu0 %551 }
 0x128   :  { %v1435_v44 = vmax.f32 %v1275_v26, %v550_v8  ;;  %v1438_v57 = vmax.f32 %v1278_v54, %v552_v42 }
 0x12a   :  { %629 = vrot.lane.b32.xlu1 %v1435_v44, %s791_s25  ;;  %631 = vrot.lane.b32.xlu0 %v1438_v57, %s791_s25 }
 0x12b   :  { %v554_v18 = vpop.permute.xlu1 %553 }
 0x12c   :  { %v1445_v48 = vmax.f32 %v1285_v36, %v554_v18 }
 0x12e   :  { %633 = vrot.lane.b32.xlu1 %v1445_v48, %s791_s25 }
 0x160   :  { %v284_v45 = vpop.permute.xlu0 %283 }
 0x161   :  { %v1450_v26 = vmax.f32 %v1290_v37, %v284_v45 }
 0x163   :  { %363 = vrot.lane.b32.xlu0 %v1450_v26, %s792_s27 }
 0x164   :  { %v286_v54 = vpop.permute.xlu1 %285  ;;  %v288_v49 = vpop.permute.xlu0 %287 }
 0x165   :  { %v1455_v51 = vmax.f32 %v1295_v7, %v286_v54  ;;  %v1458_v55 = vmax.f32 %v1298_v61, %v288_v49 }
 0x167   :  { %365 = vrot.lane.b32.xlu1 %v1455_v51, %s792_s27  ;;  %367 = vrot.lane.b32.xlu0 %v1458_v55, %s792_s27 }
 0x168   :  { %v290_v36 = vpop.permute.xlu1 %289  ;;  %v292_v37 = vpop.permute.xlu0 %291 }
 0x169   :  { %v1465_v3 = vmax.f32 %v1305_v11, %v290_v36  ;;  %v1468_v60 = vmax.f32 %v1308_v63, %v292_v37 }
 0x16b   :  { %369 = vrot.lane.b32.xlu1 %v1465_v3, %s792_s27  ;;  %371 = vrot.lane.b32.xlu0 %v1468_v60, %s792_s27 }
 0x16c   :  { %v294_v7 = vpop.permute.xlu1 %293  ;;  %v296_v61 = vpop.permute.xlu0 %295 }
 0x16d   :  { %v1475_v10 = vmax.f32 %v1315_v17, %v294_v7  ;;  %v1478_v62 = vmax.f32 %v1318_v4, %v296_v61 }
 0x16f   :  { %373 = vrot.lane.b32.xlu1 %v1475_v10, %s792_s27  ;;  %375 = vrot.lane.b32.xlu0 %v1478_v62, %s792_s27 }
 0x170   :  { %v298_v11 = vpop.permute.xlu1 %297  ;;  %v300_v63 = vpop.permute.xlu0 %299 }
 0x171   :  { %v1485_v16 = vmax.f32 %v1325_v23, %v298_v11  ;;  %v1488_v2 = vmax.f32 %v1328_v6, %v300_v63 }
 0x173   :  { %377 = vrot.lane.b32.xlu1 %v1485_v16, %s792_s27  ;;  %379 = vrot.lane.b32.xlu0 %v1488_v2, %s792_s27 }
 0x174   :  { %v302_v17 = vpop.permute.xlu1 %301  ;;  %v304_v4 = vpop.permute.xlu0 %303 }
 0x175   :  { %v1495_v22 = vmax.f32 %v1335_v29, %v302_v17  ;;  %v1498_v5 = vmax.f32 %v1338_v13, %v304_v4 }
 0x177   :  { %381 = vrot.lane.b32.xlu1 %v1495_v22, %s792_s27  ;;  %383 = vrot.lane.b32.xlu0 %v1498_v5, %s792_s27 }
 0x178   :  { %v306_v23 = vpop.permute.xlu1 %305  ;;  %v308_v6 = vpop.permute.xlu0 %307 }
 0x179   :  { %v1505_v28 = vmax.f32 %v1345_v35, %v306_v23  ;;  %v1508_v12 = vmax.f32 %v1348_v15, %v308_v6 }
 0x17b   :  { %385 = vrot.lane.b32.xlu1 %v1505_v28, %s792_s27  ;;  %387 = vrot.lane.b32.xlu0 %v1508_v12, %s792_s27 }
 0x17c   :  { %v310_v29 = vpop.permute.xlu1 %309  ;;  %v312_v13 = vpop.permute.xlu0 %311 }
 0x17d   :  { %v1515_v34 = vmax.f32 %v1355_v41, %v310_v29  ;;  %v1518_v14 = vmax.f32 %v1358_v21, %v312_v13 }
 0x17f   :  { %389 = vrot.lane.b32.xlu1 %v1515_v34, %s792_s27  ;;  %391 = vrot.lane.b32.xlu0 %v1518_v14, %s792_s27 }
 0x180   :  { %v314_v35 = vpop.permute.xlu1 %313  ;;  %v604_v15 = vpop.permute.xlu0 %603 }
 0x181   :  { %v1525_v40 = vmax.f32 %v1365_v47, %v314_v35  ;;  %v1528_v20 = vmax.f32 %v1368_v25, %v604_v15 }
 0x183   :  { %393 = vrot.lane.b32.xlu1 %v1525_v40, %s792_s27  ;;  %683 = vrot.lane.b32.xlu0 %v1528_v20, %s793_s28 }
 0x184   :  { %v606_v41 = vpop.permute.xlu1 %605  ;;  %v608_v21 = vpop.permute.xlu0 %607 }
 0x185   :  { %v1535_v46 = vmax.f32 %v1375_v53, %v606_v41  ;;  %v1538_v24 = vmax.f32 %v1378_v31, %v608_v21 }
 0x187   :  { %685 = vrot.lane.b32.xlu1 %v1535_v46, %s793_s28  ;;  %687 = vrot.lane.b32.xlu0 %v1538_v24, %s793_s28 }
 0x188   :  { %v610_v47 = vpop.permute.xlu1 %609  ;;  %v612_v25 = vpop.permute.xlu0 %611 }
 0x189   :  { %v1545_v52 = vmax.f32 %v1385_v59, %v610_v47  ;;  %v1548_v30 = vmax.f32 %v1388_v33, %v612_v25 }
 0x18b   :  { %689 = vrot.lane.b32.xlu1 %v1545_v52, %s793_s28  ;;  %691 = vrot.lane.b32.xlu0 %v1548_v30, %s793_s28 }
 0x18c   :  { %v614_v53 = vpop.permute.xlu1 %613  ;;  %v616_v31 = vpop.permute.xlu0 %615 }
 0x18d   :  { %v1555_v58 = vmax.f32 %v1395_v1, %v614_v53  ;;  %v1558_v32 = vmax.f32 %v1398_v39, %v616_v31 }
 0x18f   :  { %693 = vrot.lane.b32.xlu1 %v1555_v58, %s793_s28  ;;  %695 = vrot.lane.b32.xlu0 %v1558_v32, %s793_s28 }
 0x190   :  { %v618_v59 = vpop.permute.xlu1 %617  ;;  %v620_v33 = vpop.permute.xlu0 %619 }
 0x191   :  { %v1565_v0 = vmax.f32 %v1405_v9, %v618_v59  ;;  %v1568_v38 = vmax.f32 %v1408_v43, %v620_v33 }
 0x193   :  { %697 = vrot.lane.b32.xlu1 %v1565_v0, %s793_s28  ;;  %699 = vrot.lane.b32.xlu0 %v1568_v38, %s793_s28 }
 0x194   :  { %v622_v1 = vpop.permute.xlu1 %621  ;;  %v624_v39 = vpop.permute.xlu0 %623 }
 0x195   :  { %v1575_v8 = vmax.f32 %v1415_v19, %v622_v1  ;;  %v1578_v42 = vmax.f32 %v1418_v50, %v624_v39 }
 0x197   :  { %701 = vrot.lane.b32.xlu1 %v1575_v8, %s793_s28  ;;  %703 = vrot.lane.b32.xlu0 %v1578_v42, %s793_s28 }
 0x198   :  { %v626_v9 = vpop.permute.xlu1 %625  ;;  %v628_v43 = vpop.permute.xlu0 %627 }
 0x199   :  { %v1585_v18 = vmax.f32 %v1425_v27, %v626_v9  ;;  %v1588_v45 = vmax.f32 %v1428_v56, %v628_v43 }
 0x19b   :  { %705 = vrot.lane.b32.xlu1 %v1585_v18, %s793_s28  ;;  %707 = vrot.lane.b32.xlu0 %v1588_v45, %s793_s28 }
 0x19c   :  { %v630_v19 = vpop.permute.xlu1 %629  ;;  %v632_v50 = vpop.permute.xlu0 %631 }
 0x19d   :  { %v1595_v54 = vmax.f32 %v1435_v44, %v630_v19  ;;  %v1598_v49 = vmax.f32 %v1438_v57, %v632_v50 }
 0x19f   :  { %709 = vrot.lane.b32.xlu1 %v1595_v54, %s793_s28  ;;  %711 = vrot.lane.b32.xlu0 %v1598_v49, %s793_s28 }
 0x1a0   :  { %v634_v27 = vpop.permute.xlu1 %633 }
 0x1a1   :  { %v1605_v56 = vmax.f32 %v1445_v48, %v634_v27 }
 0x1a3   :  { %713 = vrot.lane.b32.xlu1 %v1605_v56, %s793_s28 }
 0x1d5   :  { %v364_v36 = vpop.permute.xlu0 %363 }
 0x1d6   :  { %v411_v41 = vmax.f32 %v1450_v26, %v364_v36 }
 0x1d9   :  { %v366_v37 = vpop.permute.xlu1 %365  ;;  %v368_v44 = vpop.permute.xlu0 %367 }
 0x1da   :  { %v412_v31 = vmax.f32 %v1455_v51, %v366_v37  ;;  %v413_v59 = vmax.f32 %v1458_v55, %v368_v44 }
 0x1dd   :  { %v370_v7 = vpop.permute.xlu1 %369  ;;  %v372_v61 = vpop.permute.xlu0 %371 }
 0x1de   :  { %v414_v43 = vmax.f32 %v1465_v3, %v370_v7  ;;  %v415_v19 = vmax.f32 %v1468_v60, %v372_v61 }
 0x1e1   :  { %v374_v57 = vpop.permute.xlu1 %373  ;;  %v376_v11 = vpop.permute.xlu0 %375 }
 0x1e2   :  { %v416_v60 = vmax.f32 %v1475_v10, %v374_v57  ;;  %v417_v27 = vmax.f32 %v1478_v62, %v376_v11 }
 0x1e5   :  { %v378_v63 = vpop.permute.xlu1 %377  ;;  %v380_v17 = vpop.permute.xlu0 %379 }
 0x1e6   :  { %v418_v62 = vmax.f32 %v1485_v16, %v378_v63  ;;  %v419_v7 = vmax.f32 %v1488_v2, %v380_v17 }
 0x1e9   :  { %v382_v4 = vpop.permute.xlu1 %381  ;;  %v384_v23 = vpop.permute.xlu0 %383 }
 0x1ea   :  { %v420_v2 = vmax.f32 %v1495_v22, %v382_v4  ;;  %v421_v63 = vmax.f32 %v1498_v5, %v384_v23 }
 0x1ed   :  { %v1609_v6 = vpop.permute.xlu1 %385  ;;  %v1611_v29 = vpop.permute.xlu0 %387 }
 0x1ee   :  { %v422_v5 = vmax.f32 %v1505_v28, %v1609_v6  ;;  %v423_v4 = vmax.f32 %v1508_v12, %v1611_v29 }
 0x1f1   :  { %v1613_v48 = vpop.permute.xlu1 %389  ;;  %v1615_v13 = vpop.permute.xlu0 %391 }
 0x1f2   :  { %v424_v12 = vmax.f32 %v1515_v34, %v1613_v48  ;;  %v425_v29 = vmax.f32 %v1518_v14, %v1615_v13 }
 0x1f5   :  { %v1617_v35 = vpop.permute.xlu1 %393  ;;  %v684_v15 = vpop.permute.xlu0 %683 }
 0x1f6   :  { %v731_v21 = vmax.f32 %v1528_v20, %v684_v15  ;;  %v426_v14 = vmax.f32 %v1525_v40, %v1617_v35 }
 0x1f8   :  { %v747_v47 = vmax.f32 %v411_v41, %v731_v21 }
 0x1f9   :  { %v686_v25 = vpop.permute.xlu1 %685  ;;  %v688_v53 = vpop.permute.xlu0 %687 }
 0x1fa   :  { %764 = vst.msk [vmem:[%s1722_s2] sm:$0xf] %vm763_vm0, %v747_v47  ;;  %v732_v33 = vmax.f32 %v1535_v46, %v686_v25  ;;  %v733_v1 = vmax.f32 %v1538_v24, %v688_v53 }
 0x1fc   :  { %v748_v26 = vmax.f32 %v412_v31, %v732_v33  ;;  %v749_v39 = vmax.f32 %v413_v59, %v733_v1 }
 0x1fd   :  { %v690_v20 = vpop.permute.xlu1 %689  ;;  %v692_v9 = vpop.permute.xlu0 %691 }
 0x1fe   :  { %765 = vst.msk [vmem:[%s1722_s2 + $0x4] sm:$0xf] %vm763_vm0, %v748_v26  ;;  %766 = vst.msk [vmem:[%s1722_s2 + $0x8] sm:$0xf] %vm763_vm0, %v749_v39  ;;  %v734_v51 = vmax.f32 %v1545_v52, %v690_v20  ;;  %v735_v55 = vmax.f32 %v1548_v30, %v692_v9 }
 0x200   :  { %v750_v46 = vmax.f32 %v414_v43, %v734_v51  ;;  %v751_v24 = vmax.f32 %v415_v19, %v735_v55 }
 0x201   :  { %v694_v50 = vpop.permute.xlu1 %693  ;;  %v696_v3 = vpop.permute.xlu0 %695 }
 0x202   :  { %767 = vst.msk [vmem:[%s1722_s2 + $0xc] sm:$0xf] %vm763_vm0, %v750_v46  ;;  %768 = vst.msk [vmem:[%s1722_s2 + $0x10] sm:$0xf] %vm763_vm0, %v751_v24  ;;  %v736_v52 = vmax.f32 %v1555_v58, %v694_v50  ;;  %v737_v30 = vmax.f32 %v1558_v32, %v696_v3 }
 0x204   :  { %v752_v36 = vmax.f32 %v416_v60, %v736_v52  ;;  %v753_v37 = vmax.f32 %v417_v27, %v737_v30 }
 0x205   :  { %v698_v44 = vpop.permute.xlu1 %697  ;;  %v700_v10 = vpop.permute.xlu0 %699 }
 0x206   :  { %769 = vst.msk [vmem:[%s1722_s2 + $0x14] sm:$0xf] %vm763_vm0, %v752_v36  ;;  %770 = vst.msk [vmem:[%s1722_s2 + $0x18] sm:$0xf] %vm763_vm0, %v753_v37  ;;  %v738_v58 = vmax.f32 %v1565_v0, %v698_v44  ;;  %v739_v32 = vmax.f32 %v1568_v38, %v700_v10 }
 0x208   :  { %v754_v61 = vmax.f32 %v418_v62, %v738_v58  ;;  %v755_v57 = vmax.f32 %v419_v7, %v739_v32 }
 0x209   :  { %v702_v11 = vpop.permute.xlu1 %701  ;;  %v704_v16 = vpop.permute.xlu0 %703 }
 0x20a   :  { %771 = vst.msk [vmem:[%s1722_s2 + $0x1c] sm:$0xf] %vm763_vm0, %v754_v61  ;;  %772 = vst.msk [vmem:[%s1722_s2 + $0x20] sm:$0xf] %vm763_vm0, %v755_v57  ;;  %v740_v0 = vmax.f32 %v1575_v8, %v702_v11  ;;  %v741_v38 = vmax.f32 %v1578_v42, %v704_v16 }
 0x20c   :  { %v756_v17 = vmax.f32 %v420_v2, %v740_v0  ;;  %v757_v15 = vmax.f32 %v421_v63, %v741_v38 }
 0x20d   :  { %v706_v41 = vpop.permute.xlu1 %705  ;;  %v708_v22 = vpop.permute.xlu0 %707 }
 0x20e   :  { %773 = vst.msk [vmem:[%s1722_s2 + $0x24] sm:$0xf] %vm763_vm0, %v756_v17  ;;  %774 = vst.msk [vmem:[%s1722_s2 + $0x28] sm:$0xf] %vm763_vm0, %v757_v15  ;;  %v742_v8 = vmax.f32 %v1585_v18, %v706_v41  ;;  %v743_v42 = vmax.f32 %v1588_v45, %v708_v22 }
 0x210   :  { %v758_v23 = vmax.f32 %v422_v5, %v742_v8  ;;  %v759_v21 = vmax.f32 %v423_v4, %v743_v42 }
 0x211   :  { %v710_v28 = vpop.permute.xlu1 %709  ;;  %v712_v6 = vpop.permute.xlu0 %711 }
 0x212   :  { %775 = vst.msk [vmem:[%s1722_s2 + $0x2c] sm:$0xf] %vm763_vm0, %v758_v23  ;;  %776 = vst.msk [vmem:[%s1722_s2 + $0x30] sm:$0xf] %vm763_vm0, %v759_v21  ;;  %v744_v18 = vmax.f32 %v1595_v54, %v710_v28  ;;  %v745_v45 = vmax.f32 %v1598_v49, %v712_v6 }
 0x214   :  { %v760_v47 = vmax.f32 %v424_v12, %v744_v18  ;;  %v761_v25 = vmax.f32 %v425_v29, %v745_v45 }
 0x215   :  { %v714_v34 = vpop.permute.xlu1 %713 }
 0x216   :  { %777 = vst.msk [vmem:[%s1722_s2 + $0x34] sm:$0xf] %vm763_vm0, %v760_v47  ;;  %778 = vst.msk [vmem:[%s1722_s2 + $0x38] sm:$0xf] %vm763_vm0, %v761_v25  ;;  %v746_v54 = vmax.f32 %v1605_v56, %v714_v34 }
 0x218   :  { %v762_v48 = vmax.f32 %v426_v14, %v746_v54 }
 0x21a   :  { %779 = vst.msk [vmem:[%s1722_s2 + $0x3c] sm:$0xf] %vm763_vm0, %v762_v48 }

// kernel: encoder2d_forward.7
= control target key start
LH: loop header
LB: loop body
LE: loop exit
PB: predicated region body
PF: predicated region fallthrough
CT: control target
= control target key end

     0   :  { %v449_v0 = vmov 0   ;;  %s452_s11 = smov 124   ;;  %s453_s12 = smov 120   ;;  %s818_s2 = inlined_call_operand.vmem [shape: f32[8,1], index: 2, kind: input, shape index: {}]   ;;  %s819_s3 = inlined_call_operand.vmem [shape: f32[8,1], index: 3, kind: input, shape index: {}]   ;;  %s820_s0 = inlined_call_operand.vmem [shape: f32[2,7,8,31], index: 0, kind: input, shape index: {}]   ;;  %s821_s1 = inlined_call_operand.vmem [shape: f32[2,7,8,31], index: 1, kind: input, shape index: {}]   ;;  %s822_s4 = inlined_call_operand.vmem [shape: f32[6,8,16], index: 4, kind: output, shape index: {}]  }
   0x1   :  { %448 = vset.pattern.permute.xlu0 %v449_v0  ;;  %v41_v1 = vld [vmem:[%s818_s2] sm:$0xff]  ;;  %v494_v4 = vld [vmem:[%s820_s0 + $0x28] sm:$0xff]  ;;  %v516_v8 = vld [vmem:[%s820_s0 + $0x50] sm:$0xff]  ;;  %s454_s13 = smov 121  }
   0x2   :  { %57 = vperm.xlu0 %448, %v41_v1   ;;  %v42_v2 = vld [vmem:[%s819_s3] sm:$0xff]  ;;  %v504_v6 = vld [vmem:[%s820_s0 + $0x8] sm:$0xff]  ;;  %vm48_vm1 = vcmp.gt.f32.partialorder %v494_v4, -inf  ;;  %v521_v9 = vld [vmem:[%s820_s0 + $0x10] sm:$0xff]  ;;  %vm52_vm5 = vcmp.gt.f32.partialorder %v516_v8, -inf }
   0x3   :  { %v489_v3 = vld [vmem:[%s820_s0 + $0x20] sm:$0xff]  ;;  %v511_v7 = vld [vmem:[%s820_s0 + $0x48] sm:$0xff]  ;;  %vm44_vm3 = vcmp.gt.f32.partialorder %v504_v6, -inf  ;;  %v529_v10 = vld [vmem:[%s820_s0 + $0x18] sm:$0xff]  ;;  %vm45_vm6 = vcmp.gt.f32.partialorder %v521_v9, -inf }
   0x4   :  { %v499_v5 = vld [vmem:[%s820_s0] sm:$0xff]  ;;  %vm47_vm0 = vcmp.gt.f32.partialorder %v489_v3, -inf  ;;  %vm51_vm4 = vcmp.gt.f32.partialorder %v511_v7, -inf  ;;  %v539_v12 = vld [vmem:[%s821_s1 + $0x8] sm:$0xff]  ;;  %vm46_vm7 = vcmp.gt.f32.partialorder %v529_v10, -inf  ;;  %v549_v14 = vld [vmem:[%s820_s0 + $0x38] sm:$0xff] }
   0x5   :  { %vm43_vm2 = vcmp.gt.f32.partialorder %v499_v5, -inf  ;;  %v534_v11 = vld [vmem:[%s821_s1] sm:$0xff]  ;;  %v572_v21 = vld [vmem:[%s821_s1 + $0x28] sm:$0xff]  ;;  %v577_v22 = vld [vmem:[%s820_s0 + $0x58] sm:$0xff]  ;;  %vm114_vm9 = vcmp.gt.f32.partialorder %v539_v12, -inf  ;;  %vm49_vm10 = vcmp.gt.f32.partialorder %v549_v14, -inf }
   0x6   :  { %74 = vperm.xlu0 %448, %v42_v2   ;;  %v554_v15 = vld [vmem:[%s820_s0 + $0x40] sm:$0xff]  ;;  %vm113_vm8 = vcmp.gt.f32.partialorder %v534_v11, -inf  ;;  %vm118_vm13 = vcmp.gt.f32.partialorder %v572_v21, -inf  ;;  %vm53_vm14 = vcmp.gt.f32.partialorder %v577_v22, -inf }
   0x7   :  { %v559_v16 = vld [vmem:[%s821_s1 + $0x20] sm:$0xff]  ;;  %vm50_vm11 = vcmp.gt.f32.partialorder %v554_v15, -inf }
   0x8   :  { %v582_v23 = vld [vmem:[%s820_s0 + $0x60] sm:$0xff]  ;;  %vm117_vm12 = vcmp.gt.f32.partialorder %v559_v16, -inf  ;;  %s450_s0 = smov 127  }
   0x9   :  { %vm54_vm15 = vcmp.gt.f32.partialorder %v582_v23, -inf }
  0x7d   :  { %v541_v13 = vpop.permute.xlu0 %57 }
  0x7e   :  { %v64_v17 = vmul.f32 %v541_v13, %v489_v3  ;;  %v65_v18 = vmul.f32 %v541_v13, %v494_v4  ;;  %v60_v19 = vmul.f32 %v541_v13, %v499_v5  ;;  %v61_v20 = vmul.f32 %v541_v13, %v504_v6 }
  0x7f   :  { %v68_v24 = vmul.f32 %v541_v13, %v511_v7  ;;  %v69_v25 = vmul.f32 %v541_v13, %v516_v8  ;;  %v62_v26 = vmul.f32 %v541_v13, %v521_v9  ;;  %v63_v27 = vmul.f32 %v541_v13, %v529_v10  ;;  %v663_v8 = vld [vmem:[%s821_s1 + $0x48] sm:$0xff]  ;;  %v668_v9 = vld [vmem:[%s821_s1 + $0x50] sm:$0xff] }
  0x80   :  { %v125_v28 = vmul.f32 %v541_v13, %v534_v11  ;;  %v126_v29 = vmul.f32 %v541_v13, %v539_v12  ;;  %v66_v30 = vmul.f32 %v541_v13, %v549_v14  ;;  %v67_v31 = vmul.f32 %v541_v13, %v554_v15  ;;  %v673_v10 = vld [vmem:[%s821_s1 + $0x10] sm:$0xff]  ;;  %v35_v12 = vld [vmem:[%s821_s1 + $0x38] sm:$0xff]  ;;  %v36_v14 = vld [vmem:[%s821_s1 + $0x40] sm:$0xff] }
  0x81   :  { %v600_v32 = vpop.permute.xlu0 %74  ;;  %v129_v33 = vmul.f32 %v541_v13, %v559_v16  ;;  %v130_v34 = vmul.f32 %v541_v13, %v572_v21  ;;  %v70_v35 = vmul.f32 %v541_v13, %v577_v22  ;;  %v71_v36 = vmul.f32 %v541_v13, %v582_v23  ;;  %v39_v21 = vld [vmem:[%s821_s1 + $0x58] sm:$0xff]  ;;  %v40_v22 = vld [vmem:[%s821_s1 + $0x60] sm:$0xff] }
  0x82   :  { %v81_v37 = vadd.f32 %v600_v32, %v64_v17  ;;  %v82_v38 = vadd.f32 %v600_v32, %v65_v18  ;;  %v77_v39 = vadd.f32 %v600_v32, %v60_v19  ;;  %v78_v40 = vadd.f32 %v600_v32, %v61_v20 }
  0x83   :  { %v85_v41 = vadd.f32 %v600_v32, %v68_v24  ;;  %v86_v42 = vadd.f32 %v600_v32, %v69_v25  ;;  %v79_v43 = vadd.f32 %v600_v32, %v62_v26  ;;  %v80_v44 = vadd.f32 %v600_v32, %v63_v27  ;;  %v32_v24 = vld [vmem:[%s821_s1 + $0x18] sm:$0xff]  ;;  %s451_s1 = smov 126  }
  0x84   :  { %v93_v45 = vmax.f32 %v81_v37, 0.0  ;;  %v94_v46 = vmax.f32 %v82_v38, 0.0  ;;  %v89_v47 = vmax.f32 %v77_v39, 0.0  ;;  %v90_v48 = vmax.f32 %v78_v40, 0.0 }
  0x85   :  { %v97_v49 = vmax.f32 %v85_v41, 0.0  ;;  %v98_v50 = vmax.f32 %v86_v42, 0.0  ;;  %v91_v51 = vmax.f32 %v79_v43, 0.0  ;;  %v92_v52 = vmax.f32 %v80_v44, 0.0 }
  0x86   :  { %v105_v53 = vsel %vm47_vm0, %v93_v45, -inf  ;;  %v106_v54 = vsel %vm48_vm1, %v94_v46, -inf  ;;  %v101_v55 = vsel %vm43_vm2, %v89_v47, -inf  ;;  %v102_v56 = vsel %vm44_vm3, %v90_v48, -inf }
  0x87   :  { %v633_v57 = vmax.f32 %v105_v53, %v106_v54  ;;  %v635_v58 = vmax.f32 %v101_v55, %v102_v56  ;;  %v109_v59 = vsel %vm51_vm4, %v97_v49, -inf  ;;  %v110_v60 = vsel %vm52_vm5, %v98_v50, -inf }
  0x88   :  { %v641_v61 = vmax.f32 %v109_v59, %v110_v60  ;;  %v103_v62 = vsel %vm45_vm6, %v91_v51, -inf  ;;  %v104_v63 = vsel %vm46_vm7, %v92_v52, -inf  ;;  %v137_v0 = vadd.f32 %v125_v28, %v600_v32 }
  0x89   :  { %195 = vrot.lane.b32.xlu0 %v633_v57, %s450_s0  ;;  %191 = vrot.lane.b32.xlu1 %v635_v58, %s450_s0  ;;  %v652_v1 = vmax.f32 %v103_v62, %v104_v63  ;;  %v138_v2 = vadd.f32 %v126_v29, %v600_v32  ;;  %v83_v3 = vadd.f32 %v600_v32, %v66_v30  ;;  %vm121_vm0 = vcmp.gt.f32.partialorder %v663_v8, -inf }
  0x8a   :  { %v149_v4 = vmax.f32 %v137_v0, 0.0  ;;  %v84_v5 = vadd.f32 %v600_v32, %v67_v31  ;;  %v141_v6 = vadd.f32 %v129_v33, %v600_v32  ;;  %v142_v7 = vadd.f32 %v130_v34, %v600_v32 }
  0x8b   :  { %v150_v17 = vmax.f32 %v138_v2, 0.0  ;;  %v95_v18 = vmax.f32 %v83_v3, 0.0  ;;  %v87_v19 = vadd.f32 %v600_v32, %v70_v35  ;;  %v88_v20 = vadd.f32 %v600_v32, %v71_v36 }
  0x8c   :  { %vm122_vm1 = vcmp.gt.f32.partialorder %v668_v9, -inf  ;;  %vm115_vm2 = vcmp.gt.f32.partialorder %v673_v10, -inf  ;;  %v161_v25 = vsel %vm113_vm8, %v149_v4, -inf  ;;  %v96_v26 = vmax.f32 %v84_v5, 0.0 }
  0x8d   :  { %v153_v27 = vmax.f32 %v141_v6, 0.0  ;;  %v154_v28 = vmax.f32 %v142_v7, 0.0  ;;  %vm116_vm3 = vcmp.gt.f32.partialorder %v32_v24, -inf  ;;  %199 = vrot.lane.b32.xlu0 %v641_v61, %s450_s0  ;;  %193 = vrot.lane.b32.xlu1 %v652_v1, %s450_s0  ;;  %v162_v29 = vsel %vm114_vm9, %v150_v17, -inf }
  0x8e   :  { %v107_v30 = vsel %vm49_vm10, %v95_v18, -inf  ;;  %v99_v31 = vmax.f32 %v87_v19, 0.0  ;;  %v100_v33 = vmax.f32 %v88_v20, 0.0  ;;  %v693_v11 = vmax.f32 %v161_v25, %v162_v29 }
  0x8f   :  { %v108_v34 = vsel %vm50_vm11, %v96_v26, -inf  ;;  %v165_v35 = vsel %vm117_vm12, %v153_v27, -inf  ;;  %v166_v36 = vsel %vm118_vm13, %v154_v28, -inf  ;;  %v133_v40 = vmul.f32 %v541_v13, %v663_v8 }
  0x90   :  { %v707_v37 = vmax.f32 %v107_v30, %v108_v34  ;;  %v709_v38 = vmax.f32 %v165_v35, %v166_v36  ;;  %v111_v15 = vsel %vm53_vm14, %v99_v31, -inf  ;;  %v112_v16 = vsel %vm54_vm15, %v100_v33, -inf }
  0x91   :  { %v718_v39 = vmax.f32 %v111_v15, %v112_v16  ;;  %v134_v41 = vmul.f32 %v541_v13, %v668_v9  ;;  %v127_v42 = vmul.f32 %v541_v13, %v673_v10  ;;  %311 = vrot.lane.b32.xlu0 %v693_v11, %s450_s0  ;;  %v128_v23 = vmul.f32 %v541_v13, %v32_v24 }
  0x92   :  { %197 = vrot.lane.b32.xlu1 %v707_v37, %s450_s0  ;;  %vm119_vm4 = vcmp.gt.f32.partialorder %v35_v12, -inf  ;;  %v131_v43 = vmul.f32 %v541_v13, %v35_v12  ;;  %v132_v44 = vmul.f32 %v541_v13, %v36_v14  ;;  %v145_v45 = vadd.f32 %v133_v40, %v600_v32 }
  0x93   :  { %v146_v46 = vadd.f32 %v134_v41, %v600_v32  ;;  %v139_v47 = vadd.f32 %v127_v42, %v600_v32  ;;  %v135_v48 = vmul.f32 %v541_v13, %v39_v21  ;;  %v140_v49 = vadd.f32 %v128_v23, %v600_v32 }
  0x94   :  { %v143_v50 = vadd.f32 %v131_v43, %v600_v32  ;;  %v144_v51 = vadd.f32 %v132_v44, %v600_v32  ;;  %v136_v52 = vmul.f32 %v541_v13, %v40_v22  ;;  %v157_v53 = vmax.f32 %v145_v45, 0.0 }
  0x95   :  { %v158_v54 = vmax.f32 %v146_v46, 0.0  ;;  %v151_v55 = vmax.f32 %v139_v47, 0.0  ;;  %v147_v56 = vadd.f32 %v135_v48, %v600_v32  ;;  %315 = vrot.lane.b32.xlu0 %v709_v38, %s450_s0  ;;  %v152_v59 = vmax.f32 %v140_v49, 0.0 }
  0x96   :  { %201 = vrot.lane.b32.xlu1 %v718_v39, %s450_s0  ;;  %v155_v60 = vmax.f32 %v143_v50, 0.0  ;;  %v156_v62 = vmax.f32 %v144_v51, 0.0  ;;  %v148_v63 = vadd.f32 %v136_v52, %v600_v32  ;;  %v169_v0 = vsel %vm121_vm0, %v157_v53, -inf }
  0x97   :  { %v170_v13 = vsel %vm122_vm1, %v158_v54, -inf  ;;  %v163_v2 = vsel %vm115_vm2, %v151_v55, -inf  ;;  %vm120_vm5 = vcmp.gt.f32.partialorder %v36_v14, -inf  ;;  %v164_v4 = vsel %vm116_vm3, %v152_v59, -inf }
  0x98   :  { %v183_v3 = vmax.f32 %v169_v0, %v170_v13  ;;  %v180_v5 = vmax.f32 %v163_v2, %v164_v4  ;;  %v167_v6 = vsel %vm119_vm4, %v155_v60, -inf  ;;  %v168_v7 = vsel %vm120_vm5, %v156_v62, -inf }
  0x99   :  { %v159_v32 = vmax.f32 %v147_v56, 0.0  ;;  %v160_v17 = vmax.f32 %v148_v63, 0.0  ;;  %vm123_vm6 = vcmp.gt.f32.partialorder %v39_v21, -inf  ;;  %vm124_vm7 = vcmp.gt.f32.partialorder %v40_v22, -inf }
  0x9a   :  { %319 = vrot.lane.b32.xlu0 %v183_v3, %s450_s0  ;;  %313 = vrot.lane.b32.xlu1 %v180_v5, %s450_s0  ;;  %v182_v8 = vmax.f32 %v167_v6, %v168_v7  ;;  %vm431_vm8 = vcmask 130048  }
  0x9b   :  { %v171_v9 = vsel %vm123_vm6, %v159_v32, -inf  ;;  %v172_v10 = vsel %vm124_vm7, %v160_v17, -inf }
  0x9c   :  { %v184_v18 = vmax.f32 %v171_v9, %v172_v10 }
  0x9e   :  { %317 = vrot.lane.b32.xlu1 %v182_v8, %s450_s0 }
  0xa2   :  { %321 = vrot.lane.b32.xlu1 %v184_v18, %s450_s0 }
  0xfb   :  { %v196_v19 = vpop.permute.xlu0 %195  ;;  %v192_v20 = vpop.permute.xlu1 %191 }
  0xfc   :  { %v209_v24 = vmax.f32 %v635_v58, %v192_v20  ;;  %v211_v27 = vmax.f32 %v633_v57, %v196_v19 }
  0xfe   :  { %221 = vrot.lane.b32.xlu0 %v209_v24, %s451_s1 }
  0xff   :  { %v200_v25 = vpop.permute.xlu0 %199  ;;  %v194_v26 = vpop.permute.xlu1 %193 }
 0x100   :  { %v210_v28 = vmax.f32 %v652_v1, %v194_v26  ;;  %v213_v31 = vmax.f32 %v641_v61, %v200_v25 }
 0x102   :  { %225 = vrot.lane.b32.xlu0 %v211_v27, %s451_s1  ;;  %223 = vrot.lane.b32.xlu1 %v210_v28, %s451_s1 }
 0x103   :  { %v312_v29 = vpop.permute.xlu0 %311 }
 0x104   :  { %v198_v30 = vpop.permute.xlu1 %197  ;;  %v329_v57 = vmax.f32 %v693_v11, %v312_v29 }
 0x105   :  { %v212_v33 = vmax.f32 %v707_v37, %v198_v30 }
 0x106   :  { %229 = vrot.lane.b32.xlu0 %v213_v31, %s451_s1 }
 0x107   :  { %227 = vrot.lane.b32.xlu1 %v212_v33, %s451_s1  ;;  %v316_v58 = vpop.permute.xlu0 %315 }
 0x108   :  { %v202_v34 = vpop.permute.xlu1 %201  ;;  %v331_v35 = vmax.f32 %v709_v38, %v316_v58 }
 0x109   :  { %v214_v1 = vmax.f32 %v718_v39, %v202_v34 }
 0x10a   :  { %341 = vrot.lane.b32.xlu0 %v329_v57, %s451_s1 }
 0x10b   :  { %231 = vrot.lane.b32.xlu1 %v214_v1, %s451_s1 }
 0x10c   :  { %v314_v36 = vpop.permute.xlu1 %313  ;;  %v320_v61 = vpop.permute.xlu0 %319 }
 0x10d   :  { %v330_v12 = vmax.f32 %v180_v5, %v314_v36  ;;  %v333_v14 = vmax.f32 %v183_v3, %v320_v61 }
 0x10e   :  { %345 = vrot.lane.b32.xlu0 %v331_v35, %s451_s1 }
 0x10f   :  { %343 = vrot.lane.b32.xlu1 %v330_v12, %s451_s1 }
 0x110   :  { %v318_v37 = vpop.permute.xlu1 %317 }
 0x111   :  { %v332_v15 = vmax.f32 %v182_v8, %v318_v37 }
 0x112   :  { %349 = vrot.lane.b32.xlu0 %v333_v14, %s451_s1 }
 0x113   :  { %347 = vrot.lane.b32.xlu1 %v332_v15, %s451_s1 }
 0x114   :  { %v322_v11 = vpop.permute.xlu1 %321 }
 0x115   :  { %v334_v16 = vmax.f32 %v184_v18, %v322_v11 }
 0x117   :  { %351 = vrot.lane.b32.xlu1 %v334_v16, %s451_s1 }
 0x170   :  { %v222_v21 = vpop.permute.xlu0 %221 }
 0x171   :  { %v239_v38 = vmax.f32 %v209_v24, %v222_v21 }
 0x173   :  { %251 = vrot.lane.b32.xlu0 %v239_v38, %s452_s11 }
 0x174   :  { %v226_v39 = vpop.permute.xlu0 %225  ;;  %v224_v40 = vpop.permute.xlu1 %223 }
 0x175   :  { %v241_v41 = vmax.f32 %v211_v27, %v226_v39  ;;  %v240_v42 = vmax.f32 %v210_v28, %v224_v40 }
 0x177   :  { %255 = vrot.lane.b32.xlu0 %v241_v41, %s452_s11  ;;  %253 = vrot.lane.b32.xlu1 %v240_v42, %s452_s11 }
 0x178   :  { %v230_v22 = vpop.permute.xlu0 %229 }
 0x179   :  { %v228_v23 = vpop.permute.xlu1 %227  ;;  %v243_v43 = vmax.f32 %v213_v31, %v230_v22 }
 0x17a   :  { %v242_v44 = vmax.f32 %v212_v33, %v228_v23 }
 0x17b   :  { %259 = vrot.lane.b32.xlu0 %v243_v43, %s452_s11 }
 0x17c   :  { %257 = vrot.lane.b32.xlu1 %v242_v44, %s452_s11  ;;  %v342_v45 = vpop.permute.xlu0 %341 }
 0x17d   :  { %v232_v46 = vpop.permute.xlu1 %231  ;;  %v359_v47 = vmax.f32 %v329_v57, %v342_v45 }
 0x17e   :  { %v244_v48 = vmax.f32 %v214_v1, %v232_v46 }
 0x17f   :  { %371 = vrot.lane.b32.xlu0 %v359_v47, %s452_s11 }
 0x180   :  { %261 = vrot.lane.b32.xlu1 %v244_v48, %s452_s11  ;;  %v346_v49 = vpop.permute.xlu0 %345 }
 0x181   :  { %v361_v50 = vmax.f32 %v331_v35, %v346_v49  ;;  %v344_v51 = vpop.permute.xlu1 %343 }
 0x182   :  { %v360_v52 = vmax.f32 %v330_v12, %v344_v51 }
 0x183   :  { %375 = vrot.lane.b32.xlu0 %v361_v50, %s452_s11 }
 0x184   :  { %373 = vrot.lane.b32.xlu1 %v360_v52, %s452_s11  ;;  %v350_v53 = vpop.permute.xlu0 %349 }
 0x185   :  { %v363_v54 = vmax.f32 %v333_v14, %v350_v53  ;;  %v348_v55 = vpop.permute.xlu1 %347 }
 0x186   :  { %v362_v56 = vmax.f32 %v332_v15, %v348_v55 }
 0x187   :  { %379 = vrot.lane.b32.xlu0 %v363_v54, %s452_s11 }
 0x188   :  { %377 = vrot.lane.b32.xlu1 %v362_v56, %s452_s11 }
 0x189   :  { %v352_v59 = vpop.permute.xlu1 %351 }
 0x18a   :  { %v364_v60 = vmax.f32 %v334_v16, %v352_v59 }
 0x18c   :  { %381 = vrot.lane.b32.xlu1 %v364_v60, %s452_s11 }
 0x1e5   :  { %v252_v62 = vpop.permute.xlu0 %251 }
 0x1e6   :  { %v269_v63 = vmax.f32 %v239_v38, %v252_v62 }
 0x1e8   :  { %281 = vrot.lane.b32.xlu0 %v269_v63, %s453_s12 }
 0x1e9   :  { %v256_v0 = vpop.permute.xlu0 %255  ;;  %v254_v13 = vpop.permute.xlu1 %253 }
 0x1ea   :  { %v271_v2 = vmax.f32 %v241_v41, %v256_v0  ;;  %v270_v3 = vmax.f32 %v240_v42, %v254_v13 }
 0x1ec   :  { %285 = vrot.lane.b32.xlu0 %v271_v2, %s453_s12  ;;  %283 = vrot.lane.b32.xlu1 %v270_v3, %s453_s12 }
 0x1ed   :  { %v260_v4 = vpop.permute.xlu0 %259 }
 0x1ee   :  { %v258_v5 = vpop.permute.xlu1 %257  ;;  %v273_v6 = vmax.f32 %v243_v43, %v260_v4 }
 0x1ef   :  { %v272_v7 = vmax.f32 %v242_v44, %v258_v5 }
 0x1f0   :  { %289 = vrot.lane.b32.xlu0 %v273_v6, %s453_s12 }
 0x1f1   :  { %287 = vrot.lane.b32.xlu1 %v272_v7, %s453_s12  ;;  %v372_v32 = vpop.permute.xlu0 %371 }
 0x1f2   :  { %v262_v17 = vpop.permute.xlu1 %261  ;;  %v389_v8 = vmax.f32 %v359_v47, %v372_v32 }
 0x1f3   :  { %v274_v9 = vmax.f32 %v244_v48, %v262_v17 }
 0x1f4   :  { %401 = vrot.lane.b32.xlu0 %v389_v8, %s454_s13 }
 0x1f5   :  { %291 = vrot.lane.b32.xlu1 %v274_v9, %s453_s12  ;;  %v376_v10 = vpop.permute.xlu0 %375 }
 0x1f6   :  { %v391_v18 = vmax.f32 %v361_v50, %v376_v10  ;;  %v374_v19 = vpop.permute.xlu1 %373 }
 0x1f7   :  { %v390_v20 = vmax.f32 %v360_v52, %v374_v19 }
 0x1f8   :  { %405 = vrot.lane.b32.xlu0 %v391_v18, %s454_s13 }
 0x1f9   :  { %403 = vrot.lane.b32.xlu1 %v390_v20, %s454_s13  ;;  %v380_v24 = vpop.permute.xlu0 %379 }
 0x1fa   :  { %v393_v25 = vmax.f32 %v363_v54, %v380_v24  ;;  %v378_v26 = vpop.permute.xlu1 %377 }
 0x1fb   :  { %v392_v27 = vmax.f32 %v362_v56, %v378_v26 }
 0x1fc   :  { %409 = vrot.lane.b32.xlu0 %v393_v25, %s454_s13 }
 0x1fd   :  { %407 = vrot.lane.b32.xlu1 %v392_v27, %s454_s13 }
 0x1fe   :  { %v382_v28 = vpop.permute.xlu1 %381 }
 0x1ff   :  { %v394_v29 = vmax.f32 %v364_v60, %v382_v28 }
 0x201   :  { %411 = vrot.lane.b32.xlu1 %v394_v29, %s454_s13 }
 0x25a   :  { %v282_v30 = vpop.permute.xlu0 %281 }
 0x25b   :  { %v299_v35 = vmax.f32 %v269_v63, %v282_v30 }
 0x25e   :  { %v286_v31 = vpop.permute.xlu0 %285  ;;  %v284_v33 = vpop.permute.xlu1 %283 }
 0x25f   :  { %v301_v14 = vmax.f32 %v271_v2, %v286_v31  ;;  %v300_v11 = vmax.f32 %v270_v3, %v284_v33 }
 0x262   :  { %v290_v58 = vpop.permute.xlu0 %289 }
 0x263   :  { %v288_v34 = vpop.permute.xlu1 %287  ;;  %v303_v40 = vmax.f32 %v273_v6, %v290_v58 }
 0x264   :  { %v302_v22 = vmax.f32 %v272_v7, %v288_v34 }
 0x266   :  { %v402_v57 = vpop.permute.xlu0 %401 }
 0x267   :  { %v292_v1 = vpop.permute.xlu1 %291  ;;  %v419_v36 = vmax.f32 %v389_v8, %v402_v57 }
 0x268   :  { %v304_v46 = vmax.f32 %v274_v9, %v292_v1 }
 0x269   :  { %v425_v61 = vmax.f32 %v299_v35, %v419_v36 }
 0x26a   :  { %v406_v12 = vpop.permute.xlu0 %405 }
 0x26b   :  { %432 = vst.msk [vmem:[%s822_s4] sm:$0xff] %vm431_vm8, %v425_v61  ;;  %v421_v37 = vmax.f32 %v391_v18, %v406_v12  ;;  %v404_v15 = vpop.permute.xlu1 %403 }
 0x26c   :  { %v420_v16 = vmax.f32 %v390_v20, %v404_v15 }
 0x26d   :  { %v427_v21 = vmax.f32 %v301_v14, %v421_v37 }
 0x26e   :  { %v426_v38 = vmax.f32 %v300_v11, %v420_v16  ;;  %v410_v39 = vpop.permute.xlu0 %409 }
 0x26f   :  { %434 = vst.msk [vmem:[%s822_s4 + $0x10] sm:$0xff] %vm431_vm8, %v427_v21  ;;  %v423_v41 = vmax.f32 %v393_v25, %v410_v39  ;;  %v408_v42 = vpop.permute.xlu1 %407 }
 0x270   :  { %433 = vst.msk [vmem:[%s822_s4 + $0x8] sm:$0xff] %vm431_vm8, %v426_v38  ;;  %v422_v23 = vmax.f32 %v392_v27, %v408_v42 }
 0x271   :  { %v429_v43 = vmax.f32 %v303_v40, %v423_v41 }
 0x272   :  { %v428_v44 = vmax.f32 %v302_v22, %v422_v23 }
 0x273   :  { %436 = vst.msk [vmem:[%s822_s4 + $0x20] sm:$0xff] %vm431_vm8, %v429_v43  ;;  %v412_v45 = vpop.permute.xlu1 %411 }
 0x274   :  { %435 = vst.msk [vmem:[%s822_s4 + $0x18] sm:$0xff] %vm431_vm8, %v428_v44  ;;  %v424_v47 = vmax.f32 %v394_v29, %v412_v45 }
 0x276   :  { %v430_v48 = vmax.f32 %v304_v46, %v424_v47 }
 0x278   :  { %437 = vst.msk [vmem:[%s822_s4 + $0x28] sm:$0xff] %vm431_vm8, %v430_v48 }

// kernel: encoder2d_forward.8
= control target key start
LH: loop header
LB: loop body
LE: loop exit
PB: predicated region body
PF: predicated region fallthrough
CT: control target
= control target key end

     0   :  { %s1366_s18 = smov 0   ;;  %s2042_s0 = inlined_call_operand.vmem [shape: f32[2,24,16], index: 0, kind: input, shape index: {}]   ;;  %s2043_s1 = inlined_call_operand.vmem [shape: f32[8,496], index: 1, kind: input, shape index: {}]   ;;  %s2044_s2 = inlined_call_operand.vmem [shape: f32[8,1], index: 2, kind: input, shape index: {}]   ;;  %s2045_s3 = inlined_call_operand.vmem [shape: f32[2,8,32], index: 3, kind: output, shape index: {0}]   ;;  %s2046_s4 = inlined_call_operand.vmem [shape: f32[2,8,1], index: 4, kind: output, shape index: {1}]   ;;  %s2047_s5 = inlined_call_operand.vmem [shape: f32[2,8,1], index: 5, kind: output, shape index: {2}]  }
   0x1 LB: > { %s1230_s19 = sadd.s32 4294967295, %s1314_s18   ;;  %p1234_p0 = scmp.ge.s32.totalorder %s1314_s18, 1  ;;  %s1314_s18 = sphi %s1366_s18, %s16_s18  }
   0x2   : > { %p192_p1 = scmp.lt.s32.totalorder %s1314_s18, 3 }
   0x4   : > { %p193_p2 = pnand %p1234_p0, %p192_p1 }
   0x5   : > { %p227_p3 = scmp.lt.s32.totalorder (!%p193_p2), %s1230_s19, 1  ;;  %s1317_s24 = smov (!%p193_p2), 15  }
   0x6   : > { %196 = sbr.rel (%p193_p2) target bundleno = 999 (0x3e7), region = 32  ;;  %s1318_s25 = smov (!%p193_p2), 121  }
   0x7   : > { %s1319_s26 = smov (!%p193_p2), 122   ;;  %s1320_s27 = smov (!%p193_p2), 123  }
   0x8   : > { %s1321_s28 = smov (!%p193_p2), 124   ;;  %s1322_s29 = smov (!%p193_p2), 125  }
   0x9   : > { %s1323_s30 = smov (!%p193_p2), 126   ;;  %s1324_s6 = smov (!%p193_p2), 127  }
   0xa   : > { %s1325_s7 = smov (!%p193_p2), 114   ;;  %s1326_s8 = smov (!%p193_p2), 115  }
   0xb   : > { %vm244_vm0 = vcmask 375808   ;;  %v1316_v0 = vmov 0.0   ;;  %s2049_s19 = smov (!%p227_p3, %s1230_s19), 1  ;;  %vm255_vm1 = vcmask 253048   ;;  %vm451_vm2 = vcmask 130048   ;;  %s1327_s9 = smov 116  }
   0xc   : > { %247 = vst.msk [vmem:[#allocation2 + $0x10] sm:$0xff] %vm244_vm0, %v1316_v0  ;;  %245 = vst.msk [vmem:[#allocation2] sm:$0xff] %vm244_vm0, %v1316_v0  ;;  %1033 = vmatprep.subr.mxu1 %v1316_v0  ;;  %s1277_s20 = smul.u32 24, %s2049_s19  ;;  %s1328_s10 = smov 117   ;;  %vm824_vm3 = vcmask 261248   ;;  %vm959_vm4 = vcmask 916480  }
   0xd   : > { %246 = vst.msk [vmem:[#allocation2 + $0x8] sm:$0xff] %vm244_vm0, %v1316_v0  ;;  %s1329_s11 = smov 118   ;;  %s1330_s12 = smov 119   ;;  %vm1103_vm5 = vcmask 261120   ;;  %vm1108_vm6 = vcmask 7168  }
   0xe   : > { %s231_s23 = scalar_lea.vmem %s2042_s0, %s1277_s20  ;;  %s1331_s13 = smov 120  }
   0xf   : > { %v250_v1 = vld [vmem:[%s231_s23 + $0x10] sm:$0xff]  ;;  %v248_v2 = vld [vmem:[%s231_s23] sm:$0xff]  ;;  %v249_v3 = vld [vmem:[%s231_s23 + $0x8] sm:$0xff]  ;;  %s1332_s14 = smov 113   ;;  %s1333_s15 = smov 112  }
  0x10   : > { %263 = vrot.lane.b32.xlu0 %v250_v1, %s1317_s24  ;;  %252 = vrot.lane.b32.xlu1 %v248_v2, %s1317_s24  ;;  %s1334_s16 = smov 16  }
  0x14   : > { %258 = vrot.lane.b32.xlu0 %v249_v3, %s1317_s24 }
  0x82   : > { %v264_v4 = vpop.permute.xlu0 %263  ;;  %v253_v5 = vpop.permute.xlu1 %252 }
  0x83   : > { %266 = vst.msk [vmem:[#allocation2 + $0x10] sm:$0xff] %vm255_vm1, %v264_v4  ;;  %256 = vst.msk [vmem:[#allocation2] sm:$0xff] %vm255_vm1, %v253_v5 }
  0x86   : > { %v259_v6 = vpop.permute.xlu0 %258 }
  0x87   : > { %261 = vst.msk [vmem:[#allocation2 + $0x8] sm:$0xff] %vm255_vm1, %v259_v6 }
  0x8a   : > { %v1384_v7 = vld [vmem:[#allocation2 + $0x10] sm:$0xff]  ;;  %v1386_v8 = vld [vmem:[#allocation2] sm:$0xff] }
  0x8b   : > { %544 = vrot.lane.b32.xlu1 %v1384_v7, %s1318_s25  ;;  %452 = vst.msk [vmem:[#allocation3] sm:$0xff] %vm451_vm2, %v1386_v8 }
  0x8e   : > { %v1392_v9 = vld [vmem:[#allocation2 + $0x8] sm:$0xff] }
  0x8f   : > { %542 = vrot.lane.b32.xlu0 %v1392_v9, %s1318_s25  ;;  %540 = vrot.lane.b32.xlu1 %v1384_v7, %s1319_s26  ;;  %453 = vst.msk [vmem:[#allocation3 + $0x8] sm:$0xff] %vm451_vm2, %v1392_v9 }
  0x93   : > { %538 = vrot.lane.b32.xlu0 %v1392_v9, %s1319_s26  ;;  %536 = vrot.lane.b32.xlu1 %v1384_v7, %s1320_s27 }
  0x97   : > { %534 = vrot.lane.b32.xlu0 %v1392_v9, %s1320_s27  ;;  %532 = vrot.lane.b32.xlu1 %v1384_v7, %s1321_s28 }
  0x9b   : > { %530 = vrot.lane.b32.xlu0 %v1392_v9, %s1321_s28  ;;  %528 = vrot.lane.b32.xlu1 %v1384_v7, %s1322_s29 }
  0x9f   : > { %526 = vrot.lane.b32.xlu0 %v1392_v9, %s1322_s29  ;;  %524 = vrot.lane.b32.xlu1 %v1384_v7, %s1323_s30 }
  0xa3   : > { %522 = vrot.lane.b32.xlu0 %v1392_v9, %s1323_s30  ;;  %520 = vrot.lane.b32.xlu1 %v1384_v7, %s1324_s6 }
  0xa7   : > { %518 = vrot.lane.b32.xlu0 %v1392_v9, %s1324_s6  ;;  %572 = vrot.lane.b32.xlu1 %v1384_v7, %s1325_s7 }
  0xab   : > { %570 = vrot.lane.b32.xlu0 %v1392_v9, %s1325_s7  ;;  %568 = vrot.lane.b32.xlu1 %v1384_v7, %s1326_s8 }
  0xaf   : > { %566 = vrot.lane.b32.xlu0 %v1392_v9, %s1326_s8  ;;  %564 = vrot.lane.b32.xlu1 %v1384_v7, %s1327_s9 }
  0xb3   : > { %562 = vrot.lane.b32.xlu0 %v1392_v9, %s1327_s9  ;;  %560 = vrot.lane.b32.xlu1 %v1384_v7, %s1328_s10 }
  0xb7   : > { %558 = vrot.lane.b32.xlu0 %v1392_v9, %s1328_s10  ;;  %556 = vrot.lane.b32.xlu1 %v1384_v7, %s1329_s11 }
  0xbb   : > { %554 = vrot.lane.b32.xlu0 %v1392_v9, %s1329_s11  ;;  %552 = vrot.lane.b32.xlu1 %v1384_v7, %s1330_s12 }
  0xbf   : > { %550 = vrot.lane.b32.xlu0 %v1392_v9, %s1330_s12  ;;  %548 = vrot.lane.b32.xlu1 %v1384_v7, %s1331_s13 }
  0xc3   : > { %309 = vrot.lane.b32.xlu0 %v1392_v9, %s1318_s25  ;;  %546 = vrot.lane.b32.xlu1 %v1392_v9, %s1331_s13 }
  0xc7   : > { %576 = vrot.lane.b32.xlu0 %v1384_v7, %s1332_s14  ;;  %307 = vrot.lane.b32.xlu1 %v1386_v8, %s1318_s25 }
  0xcb   : > { %273 = vrot.lane.b32.xlu0 %v1392_v9, %s1324_s6  ;;  %303 = vrot.lane.b32.xlu1 %v1392_v9, %s1319_s26 }
  0xcf   : > { %578 = vrot.lane.b32.xlu0 %v1392_v9, %s1333_s15  ;;  %301 = vrot.lane.b32.xlu1 %v1386_v8, %s1319_s26 }
  0xd3   : > { %357 = vrot.lane.b32.xlu0 %v1392_v9, %s1332_s14  ;;  %297 = vrot.lane.b32.xlu1 %v1392_v9, %s1320_s27 }
  0xd7   : > { %355 = vrot.lane.b32.xlu0 %v1386_v8, %s1332_s14  ;;  %295 = vrot.lane.b32.xlu1 %v1386_v8, %s1320_s27 }
  0xdb   : > { %291 = vrot.lane.b32.xlu1 %v1392_v9, %s1321_s28 }
  0xdf   : > { %289 = vrot.lane.b32.xlu1 %v1386_v8, %s1321_s28 }
  0xe3   : > { %285 = vrot.lane.b32.xlu1 %v1392_v9, %s1322_s29 }
  0xe7   : > { %283 = vrot.lane.b32.xlu1 %v1386_v8, %s1322_s29  ;;  %s1236_s29 = sshll.u32 %s2049_s19, 3 }
  0xeb   : > { %279 = vrot.lane.b32.xlu1 %v1392_v9, %s1323_s30 }
  0xef   : > { %277 = vrot.lane.b32.xlu1 %v1386_v8, %s1323_s30 }
  0xf3   : > { %574 = vrot.lane.b32.xlu1 %v1392_v9, %s1332_s14 }
  0xf7   : > { %271 = vrot.lane.b32.xlu1 %v1386_v8, %s1324_s6 }
  0xfb   : > { %580 = vrot.lane.b32.xlu1 %v1384_v7, %s1333_s15 }
  0xfd   : > { %v1486_v10 = vpop.permute.xlu1 %544 }
  0xfe   : > { %608 = vrot.lane.b32.xlu0 %v1486_v10, %s1333_s15 }
  0xff   : > { %351 = vrot.lane.b32.xlu1 %v1392_v9, %s1325_s7 }
 0x101   : > { %v1492_v11 = vpop.permute.xlu0 %542  ;;  %v1494_v12 = vpop.permute.xlu1 %540 }
 0x102   : > { %606 = vrot.lane.b32.xlu0 %v1492_v11, %s1333_s15 }
 0x103   : > { %349 = vrot.lane.b32.xlu1 %v1386_v8, %s1325_s7  ;;  %s235_s7 = scalar_lea.vmem %s2045_s3, %s1236_s29 }
 0x105   : > { %v1500_v13 = vpop.permute.xlu0 %538  ;;  %v1502_v14 = vpop.permute.xlu1 %536 }
 0x106   : > { %604 = vrot.lane.b32.xlu0 %v1494_v12, %s1333_s15 }
 0x107   : > { %345 = vrot.lane.b32.xlu1 %v1392_v9, %s1326_s8 }
 0x109   : > { %v1508_v15 = vpop.permute.xlu0 %534  ;;  %v1510_v16 = vpop.permute.xlu1 %532 }
 0x10a   : > { %602 = vrot.lane.b32.xlu0 %v1500_v13, %s1333_s15 }
 0x10b   : > { %343 = vrot.lane.b32.xlu1 %v1386_v8, %s1326_s8 }
 0x10d   : > { %v1516_v17 = vpop.permute.xlu0 %530  ;;  %v1518_v18 = vpop.permute.xlu1 %528 }
 0x10e   : > { %600 = vrot.lane.b32.xlu0 %v1502_v14, %s1333_s15 }
 0x10f   : > { %339 = vrot.lane.b32.xlu1 %v1392_v9, %s1327_s9 }
 0x111   : > { %v1524_v19 = vpop.permute.xlu0 %526  ;;  %v1526_v20 = vpop.permute.xlu1 %524 }
 0x112   : > { %598 = vrot.lane.b32.xlu0 %v1508_v15, %s1333_s15 }
 0x113   : > { %337 = vrot.lane.b32.xlu1 %v1386_v8, %s1327_s9 }
 0x115   : > { %v1532_v21 = vpop.permute.xlu0 %522  ;;  %v1534_v22 = vpop.permute.xlu1 %520 }
 0x116   : > { %596 = vrot.lane.b32.xlu0 %v1510_v16, %s1333_s15 }
 0x117   : > { %333 = vrot.lane.b32.xlu1 %v1392_v9, %s1328_s10 }
 0x119   : > { %v1540_v23 = vpop.permute.xlu0 %518  ;;  %v1542_v24 = vpop.permute.xlu1 %572 }
 0x11a   : > { %594 = vrot.lane.b32.xlu0 %v1516_v17, %s1333_s15 }
 0x11b   : > { %331 = vrot.lane.b32.xlu1 %v1386_v8, %s1328_s10  ;;  %s239_s10 = scalar_lea.vmem %s2046_s4, %s1236_s29 }
 0x11d   : > { %v1548_v25 = vpop.permute.xlu0 %570  ;;  %v1550_v26 = vpop.permute.xlu1 %568 }
 0x11e   : > { %592 = vrot.lane.b32.xlu0 %v1518_v18, %s1333_s15 }
 0x11f   : > { %327 = vrot.lane.b32.xlu1 %v1392_v9, %s1329_s11 }
 0x121   : > { %v1556_v27 = vpop.permute.xlu0 %566  ;;  %v1558_v28 = vpop.permute.xlu1 %564 }
 0x122   : > { %590 = vrot.lane.b32.xlu0 %v1524_v19, %s1333_s15 }
 0x123   : > { %325 = vrot.lane.b32.xlu1 %v1386_v8, %s1329_s11 }
 0x125   : > { %v1564_v29 = vpop.permute.xlu0 %562  ;;  %v1566_v30 = vpop.permute.xlu1 %560 }
 0x126   : > { %588 = vrot.lane.b32.xlu0 %v1526_v20, %s1333_s15 }
 0x127   : > { %321 = vrot.lane.b32.xlu1 %v1392_v9, %s1330_s12 }
 0x129   : > { %v1572_v31 = vpop.permute.xlu0 %558  ;;  %v1574_v32 = vpop.permute.xlu1 %556 }
 0x12a   : > { %584 = vrot.lane.b32.xlu0 %v1534_v22, %s1333_s15 }
 0x12b   : > { %319 = vrot.lane.b32.xlu1 %v1386_v8, %s1330_s12  ;;  %s243_s12 = scalar_lea.vmem %s2047_s5, %s1236_s29 }
 0x12d   : > { %v1580_v33 = vpop.permute.xlu0 %554  ;;  %v1582_v34 = vpop.permute.xlu1 %552 }
 0x12e   : > { %582 = vrot.lane.b32.xlu0 %v1540_v23, %s1333_s15 }
 0x12f   : > { %315 = vrot.lane.b32.xlu1 %v1392_v9, %s1331_s13 }
 0x131   : > { %v1588_v35 = vpop.permute.xlu0 %550  ;;  %v1590_v36 = vpop.permute.xlu1 %548 }
 0x132   : > { %636 = vrot.lane.b32.xlu0 %v1542_v24, %s1333_s15 }
 0x133   : > { %313 = vrot.lane.b32.xlu1 %v1386_v8, %s1331_s13 }
 0x135   : > { %v310_v37 = vpop.permute.xlu0 %309  ;;  %v1596_v38 = vpop.permute.xlu1 %546 }
 0x136   : > { %467 = vst.msk [vmem:[#allocation3 + $0x78] sm:$0xff] %vm451_vm2, %v310_v37  ;;  %634 = vrot.lane.b32.xlu0 %v1548_v25, %s1333_s15 }
 0x137   : > { %586 = vrot.lane.b32.xlu1 %v1532_v21, %s1333_s15 }
 0x139   : > { %v577_v39 = vpop.permute.xlu0 %576  ;;  %v308_v40 = vpop.permute.xlu1 %307 }
 0x13a   : > { %466 = vst.msk [vmem:[#allocation3 + $0x70] sm:$0xff] %vm451_vm2, %v308_v40  ;;  %632 = vrot.lane.b32.xlu0 %v1550_v26, %s1333_s15 }
 0x13b   : > { %610 = vrot.lane.b32.xlu1 %v1596_v38, %s1333_s15 }
 0x13d   : > { %v274_v41 = vpop.permute.xlu0 %273  ;;  %v304_v42 = vpop.permute.xlu1 %303 }
 0x13e   : > { %455 = vst.msk [vmem:[#allocation3 + $0x18] sm:$0xff] %vm451_vm2, %v274_v41  ;;  %465 = vst.msk [vmem:[#allocation3 + $0x68] sm:$0xff] %vm451_vm2, %v304_v42  ;;  %630 = vrot.lane.b32.xlu0 %v1556_v27, %s1333_s15 }
 0x13f   : > { %389 = vrot.lane.b32.xlu1 %v308_v40, %s1333_s15 }
 0x141   : > { %v1613_v43 = vpop.permute.xlu0 %578  ;;  %v302_v44 = vpop.permute.xlu1 %301 }
 0x142   : > { %464 = vst.msk [vmem:[#allocation3 + $0x60] sm:$0xff] %vm451_vm2, %v302_v44  ;;  %628 = vrot.lane.b32.xlu0 %v1558_v28, %s1333_s15 }
 0x143   : > { %387 = vrot.lane.b32.xlu1 %v304_v42, %s1333_s15 }
 0x145   : > { %v358_v45 = vpop.permute.xlu0 %357  ;;  %v298_v46 = vpop.permute.xlu1 %297 }
 0x146   : > { %483 = vst.msk [vmem:[#allocation3 + $0xf8] sm:$0xff] %vm451_vm2, %v358_v45  ;;  %463 = vst.msk [vmem:[#allocation3 + $0x58] sm:$0xff] %vm451_vm2, %v298_v46  ;;  %626 = vrot.lane.b32.xlu0 %v1564_v29, %s1333_s15 }
 0x147   : > { %385 = vrot.lane.b32.xlu1 %v302_v44, %s1333_s15 }
 0x149   : > { %v356_v47 = vpop.permute.xlu0 %355  ;;  %v296_v48 = vpop.permute.xlu1 %295 }
 0x14a   : > { %482 = vst.msk [vmem:[#allocation3 + $0xf0] sm:$0xff] %vm451_vm2, %v356_v47  ;;  %462 = vst.msk [vmem:[#allocation3 + $0x50] sm:$0xff] %vm451_vm2, %v296_v48  ;;  %624 = vrot.lane.b32.xlu0 %v1566_v30, %s1333_s15 }
 0x14b   : > { %383 = vrot.lane.b32.xlu1 %v298_v46, %s1333_s15 }
 0x14d   : > { %v292_v49 = vpop.permute.xlu1 %291 }
 0x14e   : > { %461 = vst.msk [vmem:[#allocation3 + $0x48] sm:$0xff] %vm451_vm2, %v292_v49  ;;  %622 = vrot.lane.b32.xlu0 %v1572_v31, %s1333_s15 }
 0x14f   : > { %381 = vrot.lane.b32.xlu1 %v296_v48, %s1333_s15 }
 0x151   : > { %v290_v50 = vpop.permute.xlu1 %289 }
 0x152   : > { %460 = vst.msk [vmem:[#allocation3 + $0x40] sm:$0xff] %vm451_vm2, %v290_v50  ;;  %620 = vrot.lane.b32.xlu0 %v1574_v32, %s1333_s15 }
 0x153   : > { %379 = vrot.lane.b32.xlu1 %v292_v49, %s1333_s15 }
 0x155   : > { %v286_v51 = vpop.permute.xlu1 %285 }
 0x156   : > { %459 = vst.msk [vmem:[#allocation3 + $0x38] sm:$0xff] %vm451_vm2, %v286_v51  ;;  %618 = vrot.lane.b32.xlu0 %v1580_v33, %s1333_s15 }
 0x157   : > { %377 = vrot.lane.b32.xlu1 %v290_v50, %s1333_s15 }
 0x159   : > { %v284_v52 = vpop.permute.xlu1 %283 }
 0x15a   : > { %458 = vst.msk [vmem:[#allocation3 + $0x30] sm:$0xff] %vm451_vm2, %v284_v52  ;;  %616 = vrot.lane.b32.xlu0 %v1582_v34, %s1333_s15 }
 0x15b   : > { %375 = vrot.lane.b32.xlu1 %v286_v51, %s1333_s15 }
 0x15d   : > { %v280_v53 = vpop.permute.xlu1 %279 }
 0x15e   : > { %457 = vst.msk [vmem:[#allocation3 + $0x28] sm:$0xff] %vm451_vm2, %v280_v53  ;;  %614 = vrot.lane.b32.xlu0 %v1588_v35, %s1333_s15 }
 0x15f   : > { %373 = vrot.lane.b32.xlu1 %v284_v52, %s1333_s15 }
 0x161   : > { %v278_v54 = vpop.permute.xlu1 %277 }
 0x162   : > { %456 = vst.msk [vmem:[#allocation3 + $0x20] sm:$0xff] %vm451_vm2, %v278_v54  ;;  %612 = vrot.lane.b32.xlu0 %v1590_v36, %s1333_s15 }
 0x163   : > { %371 = vrot.lane.b32.xlu1 %v280_v53, %s1333_s15 }
 0x165   : > { %v575_v55 = vpop.permute.xlu1 %574 }
 0x166   : > { %391 = vrot.lane.b32.xlu0 %v310_v37, %s1333_s15 }
 0x167   : > { %700 = vrot.lane.b32.xlu1 %v577_v39, %s1334_s16 }
 0x169   : > { %v272_v56 = vpop.permute.xlu1 %271 }
 0x16a   : > { %454 = vst.msk [vmem:[#allocation3 + $0x10] sm:$0xff] %vm451_vm2, %v272_v56  ;;  %369 = vrot.lane.b32.xlu0 %v278_v54, %s1333_s15 }
 0x16b   : > { %668 = vrot.lane.b32.xlu1 %v1486_v10, %s1334_s16 }
 0x16d   : > { %v581_v57 = vpop.permute.xlu1 %580 }
 0x16e   : > { %698 = vrot.lane.b32.xlu0 %v575_v55, %s1334_s16 }
 0x16f   : > { %367 = vrot.lane.b32.xlu1 %v274_v41, %s1333_s15 }
 0x170   : > { %v1661_v58 = vpop.permute.xlu0 %608 }
 0x171   : > { %v352_v59 = vpop.permute.xlu1 %351 }
 0x172   : > { %481 = vst.msk [vmem:[#allocation3 + $0xe8] sm:$0xff] %vm451_vm2, %v352_v59  ;;  %696 = vrot.lane.b32.xlu0 %v1542_v24, %s1334_s16 }
 0x173   : > { %666 = vrot.lane.b32.xlu1 %v1492_v11, %s1334_s16 }
 0x174   : > { %v1668_v60 = vpop.permute.xlu0 %606 }
 0x175   : > { %v350_v61 = vpop.permute.xlu1 %349 }
 0x176   : > { %480 = vst.msk [vmem:[#allocation3 + $0xe0] sm:$0xff] %vm451_vm2, %v350_v61  ;;  %694 = vrot.lane.b32.xlu0 %v1548_v25, %s1334_s16 }
 0x177   : > { %365 = vrot.lane.b32.xlu1 %v272_v56, %s1333_s15 }
 0x178   : > { %v1674_v62 = vpop.permute.xlu0 %604 }
 0x179   : > { %v346_v63 = vpop.permute.xlu1 %345 }
 0x17a   : > { %479 = vst.msk [vmem:[#allocation3 + $0xd8] sm:$0xff] %vm451_vm2, %v346_v63  ;;  %704 = vrot.lane.b32.xlu0 %v581_v57, %s1334_s16 }
 0x17b   : > { %664 = vrot.lane.b32.xlu1 %v1494_v12, %s1334_s16 }
 0x17c   : > { %v1680_v1 = vpop.permute.xlu0 %602 }
 0x17d   : > { %v344_v2 = vpop.permute.xlu1 %343 }
 0x17e   : > { %478 = vst.msk [vmem:[#allocation3 + $0xd0] sm:$0xff] %vm451_vm2, %v344_v2  ;;  %692 = vrot.lane.b32.xlu0 %v1550_v26, %s1334_s16 }
 0x17f   : > { %363 = vrot.lane.b32.xlu1 %v1392_v9, %s1333_s15 }
 0x180   : > { %v1687_v3 = vpop.permute.xlu0 %600 }
 0x181   : > { %v340_v4 = vpop.permute.xlu1 %339 }
 0x182   : > { %477 = vst.msk [vmem:[#allocation3 + $0xc8] sm:$0xff] %vm451_vm2, %v340_v4  ;;  %702 = vrot.lane.b32.xlu0 %v1613_v43, %s1334_s16 }
 0x183   : > { %662 = vrot.lane.b32.xlu1 %v1500_v13, %s1334_s16 }
 0x184   : > { %v1694_v5 = vpop.permute.xlu0 %598 }
 0x185   : > { %v338_v6 = vpop.permute.xlu1 %337 }
 0x186   : > { %476 = vst.msk [vmem:[#allocation3 + $0xc0] sm:$0xff] %vm451_vm2, %v338_v6  ;;  %690 = vrot.lane.b32.xlu0 %v1556_v27, %s1334_s16 }
 0x187   : > { %361 = vrot.lane.b32.xlu1 %v1386_v8, %s1333_s15 }
 0x188   : > { %v1701_v10 = vpop.permute.xlu0 %596 }
 0x189   : > { %v1703_v11 = vpop.permute.xlu1 %333 }
 0x18a   : > { %475 = vst.msk [vmem:[#allocation3 + $0xb8] sm:$0xff] %vm451_vm2, %v1703_v11  ;;  %688 = vrot.lane.b32.xlu0 %v1558_v28, %s1334_s16 }
 0x18b   : > { %660 = vrot.lane.b32.xlu1 %v1502_v14, %s1334_s16 }
 0x18c   : > { %v1711_v12 = vpop.permute.xlu0 %594 }
 0x18d   : > { %v1713_v13 = vpop.permute.xlu1 %331 }
 0x18e   : > { %474 = vst.msk [vmem:[#allocation3 + $0xb0] sm:$0xff] %vm451_vm2, %v1713_v13  ;;  %686 = vrot.lane.b32.xlu0 %v1564_v29, %s1334_s16 }
 0x18f   : > { %419 = vrot.lane.b32.xlu1 %v352_v59, %s1333_s15 }
 0x190   : > { %v1720_v8 = vpop.permute.xlu0 %592 }
 0x191   : > { %v1722_v24 = vpop.permute.xlu1 %327 }
 0x192   : > { %473 = vst.msk [vmem:[#allocation3 + $0xa8] sm:$0xff] %vm451_vm2, %v1722_v24  ;;  %684 = vrot.lane.b32.xlu0 %v1566_v30, %s1334_s16 }
 0x193   : > { %658 = vrot.lane.b32.xlu1 %v1508_v15, %s1334_s16 }
 0x194   : > { %v1730_v14 = vpop.permute.xlu0 %590 }
 0x195   : > { %v1732_v25 = vpop.permute.xlu1 %325 }
 0x196   : > { %472 = vst.msk [vmem:[#allocation3 + $0xa0] sm:$0xff] %vm451_vm2, %v1732_v25  ;;  %682 = vrot.lane.b32.xlu0 %v1572_v31, %s1334_s16 }
 0x197   : > { %417 = vrot.lane.b32.xlu1 %v350_v61, %s1333_s15 }
 0x198   : > { %v589_v26 = vpop.permute.xlu0 %588 }
 0x199   : > { %v1739_v27 = vpop.permute.xlu1 %321 }
 0x19a   : > { %471 = vst.msk [vmem:[#allocation3 + $0x98] sm:$0xff] %vm451_vm2, %v1739_v27  ;;  %680 = vrot.lane.b32.xlu0 %v1574_v32, %s1334_s16 }
 0x19b   : > { %656 = vrot.lane.b32.xlu1 %v1510_v16, %s1334_s16 }
 0x19c   : > { %v1747_v15 = vpop.permute.xlu0 %584 }
 0x19d   : > { %v1749_v28 = vpop.permute.xlu1 %319 }
 0x19e   : > { %470 = vst.msk [vmem:[#allocation3 + $0x90] sm:$0xff] %vm451_vm2, %v1749_v28  ;;  %678 = vrot.lane.b32.xlu0 %v1580_v33, %s1334_s16 }
 0x19f   : > { %415 = vrot.lane.b32.xlu1 %v346_v63, %s1333_s15 }
 0x1a0   : > { %v1756_v29 = vpop.permute.xlu0 %582 }
 0x1a1   : > { %v1758_v30 = vpop.permute.xlu1 %315 }
 0x1a2   : > { %469 = vst.msk [vmem:[#allocation3 + $0x88] sm:$0xff] %vm451_vm2, %v1758_v30  ;;  %676 = vrot.lane.b32.xlu0 %v1582_v34, %s1334_s16 }
 0x1a3   : > { %654 = vrot.lane.b32.xlu1 %v1516_v17, %s1334_s16 }
 0x1a4   : > { %v1766_v16 = vpop.permute.xlu0 %636 }
 0x1a5   : > { %v1768_v31 = vpop.permute.xlu1 %313 }
 0x1a6   : > { %468 = vst.msk [vmem:[#allocation3 + $0x80] sm:$0xff] %vm451_vm2, %v1768_v31  ;;  %732 = vrot.lane.b32.xlu0 %v1661_v58, %s1334_s16 }
 0x1a7   : > { %413 = vrot.lane.b32.xlu1 %v344_v2, %s1333_s15 }
 0x1a8   : > { %v1775_v32 = vpop.permute.xlu0 %634 }
 0x1a9   : > { %v587_v33 = vpop.permute.xlu1 %586 }
 0x1aa   : > { %730 = vrot.lane.b32.xlu0 %v1668_v60, %s1334_s16 }
 0x1ab   : > { %652 = vrot.lane.b32.xlu1 %v1518_v18, %s1334_s16 }
 0x1ac   : > { %v1781_v17 = vpop.permute.xlu0 %632 }
 0x1ad   : > { %v1783_v34 = vpop.permute.xlu1 %610 }
 0x1ae   : > { %728 = vrot.lane.b32.xlu0 %v1674_v62, %s1334_s16 }
 0x1af   : > { %411 = vrot.lane.b32.xlu1 %v340_v4, %s1333_s15 }
 0x1b0   : > { %v1788_v37 = vpop.permute.xlu0 %630 }
 0x1b1   : > { %v390_v39 = vpop.permute.xlu1 %389 }
 0x1b2   : > { %498 = vst.msk [vmem:[#allocation3 + $0x170] sm:$0xff] %vm451_vm2, %v390_v39  ;;  %726 = vrot.lane.b32.xlu0 %v1680_v1, %s1334_s16 }
 0x1b3   : > { %650 = vrot.lane.b32.xlu1 %v1524_v19, %s1334_s16 }
 0x1b4   : > { %v1795_v18 = vpop.permute.xlu0 %628 }
 0x1b5   : > { %v388_v40 = vpop.permute.xlu1 %387 }
 0x1b6   : > { %497 = vst.msk [vmem:[#allocation3 + $0x168] sm:$0xff] %vm451_vm2, %v388_v40  ;;  %724 = vrot.lane.b32.xlu0 %v1687_v3, %s1334_s16  ;;  %v890_v40 = vld [vmem:[%s2043_s1 + $0x18] sm:$0xff] }
 0x1b7   : > { %409 = vrot.lane.b32.xlu1 %v338_v6, %s1333_s15  ;;  %1239 = vmatprep.mubr.msk.f32.mxu1 %vm959_vm4, %v890_v40 }
 0x1b8   : > { %v1801_v41 = vpop.permute.xlu0 %626 }
 0x1b9   : > { %v386_v42 = vpop.permute.xlu1 %385 }
 0x1ba   : > { %496 = vst.msk [vmem:[#allocation3 + $0x160] sm:$0xff] %vm451_vm2, %v386_v42  ;;  %722 = vrot.lane.b32.xlu0 %v1694_v5, %s1334_s16 }
 0x1bb   : > { %648 = vrot.lane.b32.xlu1 %v1526_v20, %s1334_s16 }
 0x1bc   : > { %v1808_v19 = vpop.permute.xlu0 %624 }
 0x1bd   : > { %v384_v43 = vpop.permute.xlu1 %383 }
 0x1be   : > { %495 = vst.msk [vmem:[#allocation3 + $0x158] sm:$0xff] %vm451_vm2, %v384_v43  ;;  %720 = vrot.lane.b32.xlu0 %v1701_v10, %s1334_s16  ;;  %v953_v43 = vld [vmem:[%s2044_s2] sm:$0xff] }
 0x1bf   : > { %407 = vrot.lane.b32.xlu1 %v1703_v11, %s1333_s15 }
 0x1c0   : > { %v1815_v44 = vpop.permute.xlu0 %622 }
 0x1c1   : > { %v382_v45 = vpop.permute.xlu1 %381 }
 0x1c2   : > { %494 = vst.msk [vmem:[#allocation3 + $0x150] sm:$0xff] %vm451_vm2, %v382_v45  ;;  %718 = vrot.lane.b32.xlu0 %v1711_v12, %s1334_s16 }
 0x1c3   : > { %646 = vrot.lane.b32.xlu1 %v1532_v21, %s1334_s16 }
 0x1c4   : > { %v1822_v20 = vpop.permute.xlu0 %620 }
 0x1c5   : > { %v380_v46 = vpop.permute.xlu1 %379 }
 0x1c6   : > { %493 = vst.msk [vmem:[#allocation3 + $0x148] sm:$0xff] %vm451_vm2, %v380_v46  ;;  %716 = vrot.lane.b32.xlu0 %v1720_v8, %s1334_s16 }
 0x1c7   : > { %405 = vrot.lane.b32.xlu1 %v1713_v13, %s1333_s15 }
 0x1c8   : > { %v1829_v47 = vpop.permute.xlu0 %618 }
 0x1c9   : > { %v378_v48 = vpop.permute.xlu1 %377 }
 0x1ca   : > { %492 = vst.msk [vmem:[#allocation3 + $0x140] sm:$0xff] %vm451_vm2, %v378_v48  ;;  %714 = vrot.lane.b32.xlu0 %v1730_v14, %s1334_s16 }
 0x1cb   : > { %712 = vrot.lane.b32.xlu1 %v589_v26, %s1334_s16 }
 0x1cc   : > { %v1835_v21 = vpop.permute.xlu0 %616 }
 0x1cd   : > { %v376_v49 = vpop.permute.xlu1 %375 }
 0x1ce   : > { %491 = vst.msk [vmem:[#allocation3 + $0x138] sm:$0xff] %vm451_vm2, %v376_v49  ;;  %674 = vrot.lane.b32.xlu0 %v1588_v35, %s1334_s16 }
 0x1cf   : > { %644 = vrot.lane.b32.xlu1 %v1534_v22, %s1334_s16 }
 0x1d0   : > { %v1842_v50 = vpop.permute.xlu0 %614 }
 0x1d1   : > { %v374_v51 = vpop.permute.xlu1 %373 }
 0x1d2   : > { %490 = vst.msk [vmem:[#allocation3 + $0x130] sm:$0xff] %vm451_vm2, %v374_v51  ;;  %672 = vrot.lane.b32.xlu0 %v1590_v36, %s1334_s16 }
 0x1d3   : > { %403 = vrot.lane.b32.xlu1 %v1722_v24, %s1333_s15 }
 0x1d4   : > { %v1849_v52 = vpop.permute.xlu0 %612 }
 0x1d5   : > { %v372_v53 = vpop.permute.xlu1 %371 }
 0x1d6   : > { %489 = vst.msk [vmem:[#allocation3 + $0x128] sm:$0xff] %vm451_vm2, %v372_v53  ;;  %670 = vrot.lane.b32.xlu0 %v1596_v38, %s1334_s16 }
 0x1d7   : > { %642 = vrot.lane.b32.xlu1 %v1540_v23, %s1334_s16 }
 0x1d8   : > { %v392_v22 = vpop.permute.xlu0 %391 }
 0x1d9   : > { %499 = vst.msk [vmem:[#allocation3 + $0x178] sm:$0xff] %vm451_vm2, %v392_v22  ;;  %v701_v35 = vpop.permute.xlu1 %700 }
 0x1da   : > { %856 = vst.msk [vmem:[#allocation3 + $0xf8] sm:$0xff] %vm824_vm3, %v701_v35  ;;  %710 = vrot.lane.b32.xlu0 %v587_v33, %s1334_s16 }
 0x1db   : > { %401 = vrot.lane.b32.xlu1 %v1732_v25, %s1333_s15 }
 0x1dc   : > { %v370_v36 = vpop.permute.xlu0 %369 }
 0x1dd   : > { %488 = vst.msk [vmem:[#allocation3 + $0x120] sm:$0xff] %vm451_vm2, %v370_v36  ;;  %v669_v54 = vpop.permute.xlu1 %668 }
 0x1de   : > { %840 = vst.msk [vmem:[#allocation3 + $0x78] sm:$0xff] %vm824_vm3, %v669_v54  ;;  %708 = vrot.lane.b32.xlu0 %v1747_v15, %s1334_s16 }
 0x1df   : > { %640 = vrot.lane.b32.xlu1 %v1384_v7, %s1334_s16 }
 0x1e0   : > { %v699_v23 = vpop.permute.xlu0 %698 }
 0x1e1   : > { %855 = vst.msk [vmem:[#allocation3 + $0xf0] sm:$0xff] %vm824_vm3, %v699_v23  ;;  %v368_v38 = vpop.permute.xlu1 %367  ;;  %v922_v55 = vld [vmem:[#allocation3 + $0xf8] sm:$0xff] }
 0x1e2   : > { %487 = vst.msk [vmem:[#allocation3 + $0x118] sm:$0xff] %vm451_vm2, %v368_v38  ;;  %706 = vrot.lane.b32.xlu0 %v1756_v29, %s1334_s16  ;;  %1242 = vmatprep.subr.mxu0 %v922_v55 }
 0x1e3   : > { %399 = vrot.lane.b32.xlu1 %v1739_v27, %s1333_s15 }
 0x1e4   : > { %v697_v56 = vpop.permute.xlu0 %696 }
 0x1e5   : > { %854 = vst.msk [vmem:[#allocation3 + $0xe8] sm:$0xff] %vm824_vm3, %v697_v56  ;;  %v667_v57 = vpop.permute.xlu1 %666  ;;  %v906_v58 = vld [vmem:[#allocation3 + $0x78] sm:$0xff] }
 0x1e6   : > { %839 = vst.msk [vmem:[#allocation3 + $0x70] sm:$0xff] %vm824_vm3, %v667_v57  ;;  %760 = vrot.lane.b32.xlu0 %v1766_v16, %s1334_s16  ;;  %1243 = vmatpush3.msra.mxu0 %v906_v58 }
 0x1e7   : > { %638 = vrot.lane.b32.xlu1 %v1392_v9, %s1334_s16 }
 0x1e8   : > { %v695_v7 = vpop.permute.xlu0 %694  ;;  %v921_v59 = vld [vmem:[#allocation3 + $0xf0] sm:$0xff] }
 0x1e9   : > { %853 = vst.msk [vmem:[#allocation3 + $0xe0] sm:$0xff] %vm824_vm3, %v695_v7  ;;  %1244 = vmatprep.subr.mxu0 %v921_v59  ;;  %v366_v60 = vpop.permute.xlu1 %365 }
 0x1ea   : > { %486 = vst.msk [vmem:[#allocation3 + $0x110] sm:$0xff] %vm451_vm2, %v366_v60  ;;  %758 = vrot.lane.b32.xlu0 %v1775_v32, %s1334_s16 }
 0x1eb   : > { %397 = vrot.lane.b32.xlu1 %v1749_v28, %s1333_s15 }
 0x1ec   : > { %v705_v61 = vpop.permute.xlu0 %704  ;;  %v920_v9 = vld [vmem:[#allocation3 + $0xe8] sm:$0xff] }
 0x1ed   : > { %v665_v62 = vpop.permute.xlu1 %664  ;;  %v905_v63 = vld [vmem:[#allocation3 + $0x70] sm:$0xff] }
 0x1ee   : > { %838 = vst.msk [vmem:[#allocation3 + $0x68] sm:$0xff] %vm824_vm3, %v665_v62  ;;  %756 = vrot.lane.b32.xlu0 %v1781_v17, %s1334_s16  ;;  %1245 = vmatpush3.msra.mxu0 %v905_v63 }
 0x1ef   : > { %395 = vrot.lane.b32.xlu1 %v1758_v30, %s1333_s15  ;;  %1246 = vmatprep.subr.mxu0 %v920_v9 }
 0x1f0   : > { %v693_v1 = vpop.permute.xlu0 %692  ;;  %v919_v6 = vld [vmem:[#allocation3 + $0xe0] sm:$0xff] }
 0x1f1   : > { %852 = vst.msk [vmem:[#allocation3 + $0xd8] sm:$0xff] %vm824_vm3, %v693_v1  ;;  %v364_v2 = vpop.permute.xlu1 %363 }
 0x1f2   : > { %485 = vst.msk [vmem:[#allocation3 + $0x108] sm:$0xff] %vm451_vm2, %v364_v2  ;;  %754 = vrot.lane.b32.xlu0 %v1788_v37, %s1334_s16 }
 0x1f3   : > { %858 = vst.msk [vmem:[#allocation3 + $0x108] sm:$0xff] %vm824_vm3, %v705_v61  ;;  %393 = vrot.lane.b32.xlu1 %v1768_v31, %s1333_s15  ;;  %v888_v31 = vld [vmem:[%s2043_s1 + $0x8] sm:$0xff] }
 0x1f4   : > { %v703_v3 = vpop.permute.xlu0 %702  ;;  %1027 = vmatprep.mubr.f32.mxu0 %v888_v31 }
 0x1f5   : > { %v663_v4 = vpop.permute.xlu1 %662  ;;  %v904_v5 = vld [vmem:[#allocation3 + $0x68] sm:$0xff] }
 0x1f6   : > { %837 = vst.msk [vmem:[#allocation3 + $0x60] sm:$0xff] %vm824_vm3, %v663_v4  ;;  %752 = vrot.lane.b32.xlu0 %v1795_v18, %s1334_s16  ;;  %1247 = vmatpush3.msra.mxu0 %v904_v5 }
 0x1f7   : > { %1248 = vmatprep.subr.mxu0 %v919_v6 }
 0x1f8   : > { %v691_v10 = vpop.permute.xlu0 %690  ;;  %v918_v24 = vld [vmem:[#allocation3 + $0xd8] sm:$0xff] }
 0x1f9   : > { %851 = vst.msk [vmem:[#allocation3 + $0xd0] sm:$0xff] %vm824_vm3, %v691_v10  ;;  %v362_v11 = vpop.permute.xlu1 %361 }
 0x1fa   : > { %484 = vst.msk [vmem:[#allocation3 + $0x100] sm:$0xff] %vm451_vm2, %v362_v11  ;;  %750 = vrot.lane.b32.xlu0 %v1801_v41, %s1334_s16 }
 0x1fb   : > { %857 = vst.msk [vmem:[#allocation3 + $0x100] sm:$0xff] %vm824_vm3, %v703_v3 }
 0x1fc   : > { %v689_v12 = vpop.permute.xlu0 %688 }
 0x1fd   : > { %850 = vst.msk [vmem:[#allocation3 + $0xc8] sm:$0xff] %vm824_vm3, %v689_v12  ;;  %v661_v13 = vpop.permute.xlu1 %660  ;;  %v903_v8 = vld [vmem:[#allocation3 + $0x60] sm:$0xff] }
 0x1fe   : > { %836 = vst.msk [vmem:[#allocation3 + $0x58] sm:$0xff] %vm824_vm3, %v661_v13  ;;  %748 = vrot.lane.b32.xlu0 %v1808_v19, %s1334_s16  ;;  %1249 = vmatpush3.msra.mxu0 %v903_v8 }
 0x1ff   : > { %1250 = vmatprep.subr.mxu0 %v918_v24 }
 0x200   : > { %v687_v14 = vpop.permute.xlu0 %686  ;;  %v917_v28 = vld [vmem:[#allocation3 + $0xd0] sm:$0xff] }
 0x201   : > { %849 = vst.msk [vmem:[#allocation3 + $0xc0] sm:$0xff] %vm824_vm3, %v687_v14  ;;  %v420_v25 = vpop.permute.xlu1 %419 }
 0x202   : > { %513 = vst.msk [vmem:[#allocation3 + $0x1e8] sm:$0xff] %vm451_vm2, %v420_v25  ;;  %746 = vrot.lane.b32.xlu0 %v1815_v44, %s1334_s16  ;;  %v1335_v44 = vmov 0  }
 0x203   : > { %1306 = vset.pattern.permute.xlu1 %v1335_v44  ;;  %1307 = vset.pattern.permute.xlu0 %v1335_v44 }
 0x204   : > { %v685_v26 = vpop.permute.xlu0 %684  ;;  %v916_v17 = vld [vmem:[#allocation3 + $0xc8] sm:$0xff]  ;;  %956 = vperm.xlu1 %1306, %v953_v43  }
 0x205   : > { %848 = vst.msk [vmem:[#allocation3 + $0xb8] sm:$0xff] %vm824_vm3, %v685_v26  ;;  %v659_v27 = vpop.permute.xlu1 %658  ;;  %v902_v15 = vld [vmem:[#allocation3 + $0x58] sm:$0xff] }
 0x206   : > { %835 = vst.msk [vmem:[#allocation3 + $0x50] sm:$0xff] %vm824_vm3, %v659_v27  ;;  %744 = vrot.lane.b32.xlu0 %v1822_v20, %s1334_s16  ;;  %1251 = vmatpush3.msra.mxu0 %v902_v15 }
 0x207   : > { %1252 = vmatprep.subr.mxu0 %v917_v28 }
 0x208   : > { %v683_v29 = vpop.permute.xlu0 %682  ;;  %v915_v19 = vld [vmem:[#allocation3 + $0xc0] sm:$0xff] }
 0x209   : > { %847 = vst.msk [vmem:[#allocation3 + $0xb0] sm:$0xff] %vm824_vm3, %v683_v29  ;;  %v418_v30 = vpop.permute.xlu1 %417 }
 0x20a   : > { %512 = vst.msk [vmem:[#allocation3 + $0x1e0] sm:$0xff] %vm451_vm2, %v418_v30  ;;  %742 = vrot.lane.b32.xlu0 %v1829_v47, %s1334_s16 }
 0x20c   : > { %v681_v16 = vpop.permute.xlu0 %680 }
 0x20d   : > { %846 = vst.msk [vmem:[#allocation3 + $0xa8] sm:$0xff] %vm824_vm3, %v681_v16  ;;  %v657_v32 = vpop.permute.xlu1 %656  ;;  %v901_v33 = vld [vmem:[#allocation3 + $0x50] sm:$0xff] }
 0x20e   : > { %834 = vst.msk [vmem:[#allocation3 + $0x48] sm:$0xff] %vm824_vm3, %v657_v32  ;;  %740 = vrot.lane.b32.xlu0 %v1835_v21, %s1334_s16  ;;  %1253 = vmatpush3.msra.mxu0 %v901_v33  ;;  %v914_v21 = vld [vmem:[#allocation3 + $0xb8] sm:$0xff] }
 0x20f   : > { %1254 = vmatprep.subr.mxu0 %v916_v17 }
 0x210   : > { %v679_v37 = vpop.permute.xlu0 %678  ;;  %v913_v35 = vld [vmem:[#allocation3 + $0xb0] sm:$0xff] }
 0x211   : > { %845 = vst.msk [vmem:[#allocation3 + $0xa0] sm:$0xff] %vm824_vm3, %v679_v37  ;;  %v416_v39 = vpop.permute.xlu1 %415 }
 0x212   : > { %511 = vst.msk [vmem:[#allocation3 + $0x1d8] sm:$0xff] %vm451_vm2, %v416_v39  ;;  %738 = vrot.lane.b32.xlu0 %v1842_v50, %s1334_s16 }
 0x214   : > { %v677_v18 = vpop.permute.xlu0 %676  ;;  %v912_v58 = vld [vmem:[#allocation3 + $0xa8] sm:$0xff] }
 0x215   : > { %844 = vst.msk [vmem:[#allocation3 + $0x98] sm:$0xff] %vm824_vm3, %v677_v18  ;;  %v655_v41 = vpop.permute.xlu1 %654  ;;  %v900_v42 = vld [vmem:[#allocation3 + $0x48] sm:$0xff] }
 0x216   : > { %833 = vst.msk [vmem:[#allocation3 + $0x40] sm:$0xff] %vm824_vm3, %v655_v41  ;;  %736 = vrot.lane.b32.xlu0 %v1849_v52, %s1334_s16  ;;  %1255 = vmatpush3.msra.mxu0 %v900_v42 }
 0x217   : > { %1256 = vmatprep.subr.mxu0 %v915_v19 }
 0x218   : > { %v733_v45 = vpop.permute.xlu0 %732  ;;  %v911_v1 = vld [vmem:[#allocation3 + $0xa0] sm:$0xff] }
 0x219   : > { %872 = vst.msk [vmem:[#allocation3 + $0x178] sm:$0xff] %vm824_vm3, %v733_v45  ;;  %v414_v20 = vpop.permute.xlu1 %413 }
 0x21a   : > { %510 = vst.msk [vmem:[#allocation3 + $0x1d0] sm:$0xff] %vm451_vm2, %v414_v20  ;;  %734 = vrot.lane.b32.xlu0 %v1783_v34, %s1334_s16 }
 0x21c   : > { %v731_v46 = vpop.permute.xlu0 %730  ;;  %v910_v12 = vld [vmem:[#allocation3 + $0x98] sm:$0xff] }
 0x21d   : > { %871 = vst.msk [vmem:[#allocation3 + $0x170] sm:$0xff] %vm824_vm3, %v731_v46  ;;  %v653_v47 = vpop.permute.xlu1 %652  ;;  %v899_v48 = vld [vmem:[#allocation3 + $0x40] sm:$0xff] }
 0x21e   : > { %832 = vst.msk [vmem:[#allocation3 + $0x38] sm:$0xff] %vm824_vm3, %v653_v47  ;;  %1257 = vmatpush3.msra.mxu0 %v899_v48  ;;  %v924_v47 = vld [vmem:[#allocation3 + $0x108] sm:$0xff] }
 0x21f   : > { %1258 = vmatprep.subr.mxu0 %v914_v21  ;;  %v923_v21 = vld [vmem:[#allocation3 + $0x100] sm:$0xff] }
 0x220   : > { %v729_v49 = vpop.permute.xlu0 %728  ;;  %v938_v50 = vld [vmem:[#allocation3 + $0x178] sm:$0xff] }
 0x221   : > { %870 = vst.msk [vmem:[#allocation3 + $0x168] sm:$0xff] %vm824_vm3, %v729_v49  ;;  %1034 = vmatpush1.msra.mxu1 %v938_v50  ;;  %v412_v51 = vpop.permute.xlu1 %411  ;;  %v887_v49 = vld [vmem:[%s2043_s1] sm:$0xff] }
 0x222   : > { %509 = vst.msk [vmem:[#allocation3 + $0x1c8] sm:$0xff] %vm451_vm2, %v412_v51  ;;  %1035 = vmatprep.subr.mxu1 %v1316_v0 }
 0x224   : > { %v727_v34 = vpop.permute.xlu0 %726  ;;  %v937_v52 = vld [vmem:[#allocation3 + $0x170] sm:$0xff] }
 0x225   : > { %869 = vst.msk [vmem:[#allocation3 + $0x160] sm:$0xff] %vm824_vm3, %v727_v34  ;;  %1036 = vmatpush1.msra.mxu1 %v937_v52  ;;  %v651_v53 = vpop.permute.xlu1 %650  ;;  %v898_v22 = vld [vmem:[#allocation3 + $0x38] sm:$0xff] }
 0x226   : > { %831 = vst.msk [vmem:[#allocation3 + $0x30] sm:$0xff] %vm824_vm3, %v651_v53  ;;  %1259 = vmatpush3.msra.mxu0 %v898_v22  ;;  %1037 = vmatprep.subr.mxu1 %v1316_v0 }
 0x227   : > { %1260 = vmatprep.subr.mxu0 %v913_v35 }
 0x228   : > { %v725_v36 = vpop.permute.xlu0 %724  ;;  %v936_v54 = vld [vmem:[#allocation3 + $0x168] sm:$0xff] }
 0x229   : > { %868 = vst.msk [vmem:[#allocation3 + $0x158] sm:$0xff] %vm824_vm3, %v725_v36  ;;  %1038 = vmatpush1.msra.mxu1 %v936_v54  ;;  %v410_v23 = vpop.permute.xlu1 %409 }
 0x22a   : > { %508 = vst.msk [vmem:[#allocation3 + $0x1c0] sm:$0xff] %vm451_vm2, %v410_v23  ;;  %1039 = vmatprep.subr.mxu1 %v1316_v0 }
 0x22c   : > { %v723_v38 = vpop.permute.xlu0 %722  ;;  %v935_v55 = vld [vmem:[#allocation3 + $0x160] sm:$0xff] }
 0x22d   : > { %867 = vst.msk [vmem:[#allocation3 + $0x150] sm:$0xff] %vm824_vm3, %v723_v38  ;;  %1040 = vmatpush1.msra.mxu1 %v935_v55  ;;  %v649_v56 = vpop.permute.xlu1 %648  ;;  %v897_v57 = vld [vmem:[#allocation3 + $0x30] sm:$0xff] }
 0x22e   : > { %830 = vst.msk [vmem:[#allocation3 + $0x28] sm:$0xff] %vm824_vm3, %v649_v56  ;;  %1261 = vmatpush3.msra.mxu0 %v897_v57  ;;  %1041 = vmatprep.subr.mxu1 %v1316_v0 }
 0x22f   : > { %1262 = vmatprep.subr.mxu0 %v912_v58 }
 0x230   : > { %v721_v7 = vpop.permute.xlu0 %720  ;;  %v934_v59 = vld [vmem:[#allocation3 + $0x158] sm:$0xff] }
 0x231   : > { %866 = vst.msk [vmem:[#allocation3 + $0x148] sm:$0xff] %vm824_vm3, %v721_v7  ;;  %1042 = vmatpush1.msra.mxu1 %v934_v59  ;;  %v408_v60 = vpop.permute.xlu1 %407 }
 0x232   : > { %507 = vst.msk [vmem:[#allocation3 + $0x1b8] sm:$0xff] %vm451_vm2, %v408_v60  ;;  %1043 = vmatprep.subr.mxu1 %v1316_v0 }
 0x234   : > { %v719_v61 = vpop.permute.xlu0 %718  ;;  %v933_v62 = vld [vmem:[#allocation3 + $0x150] sm:$0xff] }
 0x235   : > { %865 = vst.msk [vmem:[#allocation3 + $0x140] sm:$0xff] %vm824_vm3, %v719_v61  ;;  %1044 = vmatpush1.msra.mxu1 %v933_v62  ;;  %v647_v63 = vpop.permute.xlu1 %646  ;;  %v896_v9 = vld [vmem:[#allocation3 + $0x28] sm:$0xff] }
 0x236   : > { %829 = vst.msk [vmem:[#allocation3 + $0x20] sm:$0xff] %vm824_vm3, %v647_v63  ;;  %1263 = vmatpush3.msra.mxu0 %v896_v9  ;;  %1045 = vmatprep.subr.mxu1 %v1316_v0 }
 0x237   : > { %1264 = vmatprep.subr.mxu0 %v911_v1 }
 0x238   : > { %v717_v2 = vpop.permute.xlu0 %716  ;;  %v932_v3 = vld [vmem:[#allocation3 + $0x148] sm:$0xff] }
 0x239   : > { %864 = vst.msk [vmem:[#allocation3 + $0x138] sm:$0xff] %vm824_vm3, %v717_v2  ;;  %1046 = vmatpush1.msra.mxu1 %v932_v3  ;;  %v406_v4 = vpop.permute.xlu1 %405 }
 0x23a   : > { %506 = vst.msk [vmem:[#allocation3 + $0x1b0] sm:$0xff] %vm451_vm2, %v406_v4  ;;  %1047 = vmatprep.subr.mxu1 %v1316_v0 }
 0x23c   : > { %v715_v5 = vpop.permute.xlu0 %714  ;;  %v931_v6 = vld [vmem:[#allocation3 + $0x140] sm:$0xff] }
 0x23d   : > { %863 = vst.msk [vmem:[#allocation3 + $0x130] sm:$0xff] %vm824_vm3, %v715_v5  ;;  %1048 = vmatpush1.msra.mxu1 %v931_v6  ;;  %v713_v10 = vpop.permute.xlu1 %712  ;;  %v895_v11 = vld [vmem:[#allocation3 + $0x20] sm:$0xff]  ;;  %v889_v6 = vld [vmem:[%s2043_s1 + $0x10] sm:$0xff] }
 0x23e   : > { %862 = vst.msk [vmem:[#allocation3 + $0x128] sm:$0xff] %vm824_vm3, %v713_v10  ;;  %1265 = vmatpush3.msra.mxu0 %v895_v11  ;;  %1049 = vmatprep.subr.mxu1 %v1316_v0 }
 0x23f   : > { %1266 = vmatprep.subr.mxu0 %v910_v12 }
 0x240   : > { %v675_v13 = vpop.permute.xlu0 %674  ;;  %v930_v8 = vld [vmem:[#allocation3 + $0x138] sm:$0xff] }
 0x241   : > { %843 = vst.msk [vmem:[#allocation3 + $0x90] sm:$0xff] %vm824_vm3, %v675_v13  ;;  %1050 = vmatpush1.msra.mxu1 %v930_v8  ;;  %v645_v24 = vpop.permute.xlu1 %644 }
 0x242   : > { %828 = vst.msk [vmem:[#allocation3 + $0x18] sm:$0xff] %vm824_vm3, %v645_v24  ;;  %1051 = vmatprep.subr.mxu1 %v1316_v0 }
 0x244   : > { %v673_v14 = vpop.permute.xlu0 %672  ;;  %v929_v25 = vld [vmem:[#allocation3 + $0x130] sm:$0xff] }
 0x245   : > { %842 = vst.msk [vmem:[#allocation3 + $0x88] sm:$0xff] %vm824_vm3, %v673_v14  ;;  %1052 = vmatpush1.msra.mxu1 %v929_v25  ;;  %v404_v26 = vpop.permute.xlu1 %403  ;;  %v928_v27 = vld [vmem:[#allocation3 + $0x128] sm:$0xff] }
 0x246   : > { %505 = vst.msk [vmem:[#allocation3 + $0x1a8] sm:$0xff] %vm451_vm2, %v404_v26  ;;  %1053 = vmatprep.subr.mxu1 %v1316_v0 }
 0x247   : > { %1054 = vmatpush1.msra.mxu1 %v928_v27 }
 0x248   : > { %v671_v15 = vpop.permute.xlu0 %670  ;;  %1055 = vmatprep.subr.mxu1 %v1316_v0  ;;  %v909_v30 = vld [vmem:[#allocation3 + $0x90] sm:$0xff] }
 0x249   : > { %841 = vst.msk [vmem:[#allocation3 + $0x80] sm:$0xff] %vm824_vm3, %v671_v15  ;;  %v643_v28 = vpop.permute.xlu1 %642  ;;  %v894_v29 = vld [vmem:[#allocation3 + $0x18] sm:$0xff] }
 0x24a   : > { %827 = vst.msk [vmem:[#allocation3 + $0x10] sm:$0xff] %vm824_vm3, %v643_v28  ;;  %1267 = vmatpush3.msra.mxu0 %v894_v29 }
 0x24b   : > { %1268 = vmatprep.subr.mxu0 %v909_v30 }
 0x24c   : > { %v711_v16 = vpop.permute.xlu0 %710  ;;  %v908_v37 = vld [vmem:[#allocation3 + $0x88] sm:$0xff] }
 0x24d   : > { %861 = vst.msk [vmem:[#allocation3 + $0x120] sm:$0xff] %vm824_vm3, %v711_v16  ;;  %v402_v31 = vpop.permute.xlu1 %401 }
 0x24e   : > { %504 = vst.msk [vmem:[#allocation3 + $0x1a0] sm:$0xff] %vm451_vm2, %v402_v31 }
 0x250   : > { %v709_v32 = vpop.permute.xlu0 %708  ;;  %v907_v44 = vld [vmem:[#allocation3 + $0x80] sm:$0xff] }
 0x251   : > { %860 = vst.msk [vmem:[#allocation3 + $0x118] sm:$0xff] %vm824_vm3, %v709_v32  ;;  %v641_v33 = vpop.permute.xlu1 %640  ;;  %v893_v17 = vld [vmem:[#allocation3 + $0x10] sm:$0xff] }
 0x252   : > { %826 = vst.msk [vmem:[#allocation3 + $0x8] sm:$0xff] %vm824_vm3, %v641_v33  ;;  %1269 = vmatpush3.msra.mxu0 %v893_v17 }
 0x253   : > { %1270 = vmatprep.subr.mxu0 %v908_v37 }
 0x254   : > { %v707_v39 = vpop.permute.xlu0 %706  ;;  %v927_v18 = vld [vmem:[#allocation3 + $0x120] sm:$0xff] }
 0x255   : > { %859 = vst.msk [vmem:[#allocation3 + $0x110] sm:$0xff] %vm824_vm3, %v707_v39  ;;  %1056 = vmatpush1.msra.mxu1 %v927_v18  ;;  %v400_v40 = vpop.permute.xlu1 %399 }
 0x256   : > { %503 = vst.msk [vmem:[#allocation3 + $0x198] sm:$0xff] %vm451_vm2, %v400_v40  ;;  %1057 = vmatprep.subr.mxu1 %v1316_v0 }
 0x258   : > { %v761_v41 = vpop.permute.xlu0 %760  ;;  %v926_v42 = vld [vmem:[#allocation3 + $0x118] sm:$0xff] }
 0x259   : > { %886 = vst.msk [vmem:[#allocation3 + $0x1e8] sm:$0xff] %vm824_vm3, %v761_v41  ;;  %1058 = vmatpush1.msra.mxu1 %v926_v42  ;;  %v639_v19 = vpop.permute.xlu1 %638  ;;  %v892_v43 = vld [vmem:[#allocation3 + $0x8] sm:$0xff] }
 0x25a   : > { %825 = vst.msk [vmem:[#allocation3] sm:$0xff] %vm824_vm3, %v639_v19  ;;  %1271 = vmatpush3.msra.mxu0 %v892_v43  ;;  %1059 = vmatprep.subr.mxu1 %v1316_v0 }
 0x25b   : > { %1272 = vmatprep.subr.mxu0 %v907_v44 }
 0x25c   : > { %v759_v45 = vpop.permute.xlu0 %758  ;;  %v925_v20 = vld [vmem:[#allocation3 + $0x110] sm:$0xff] }
 0x25d   : > { %885 = vst.msk [vmem:[#allocation3 + $0x1e0] sm:$0xff] %vm824_vm3, %v759_v45  ;;  %1060 = vmatpush1.msra.mxu1 %v925_v20  ;;  %v398_v46 = vpop.permute.xlu1 %397 }
 0x25e   : > { %502 = vst.msk [vmem:[#allocation3 + $0x190] sm:$0xff] %vm451_vm2, %v398_v46  ;;  %1061 = vmatprep.subr.mxu1 %v1316_v0 }
 0x25f   : > { %1062 = vmatpush1.msra.mxu1 %v924_v47 }
 0x260   : > { %v757_v48 = vpop.permute.xlu0 %756  ;;  %1063 = vmatprep.subr.mxu1 %v1316_v0  ;;  %v952_v34 = vld [vmem:[#allocation3 + $0x1e8] sm:$0xff] }
 0x261   : > { %884 = vst.msk [vmem:[#allocation3 + $0x1d8] sm:$0xff] %vm824_vm3, %v757_v48  ;;  %1064 = vmatpush1.msra.mxu1 %v923_v21  ;;  %v396_v50 = vpop.permute.xlu1 %395  ;;  %v891_v51 = vld [vmem:[#allocation3] sm:$0xff] }
 0x262   : > { %501 = vst.msk [vmem:[#allocation3 + $0x188] sm:$0xff] %vm451_vm2, %v396_v50  ;;  %1273 = vmatpush3.msra.mxu0 %v891_v51  ;;  %1069 = vmatprep.subr.mxu1 %v1316_v0 }
 0x263   : > { %1070 = vmatpush2.msra.mxu1 %v952_v34  ;;  %1028 = vmatmul.mubr.f32.vlgmr.msra.gmra.mxu0 %v887_v49 }
 0x264   : > { %v755_v52 = vpop.permute.xlu0 %754  ;;  %1071 = vmatprep.subr.mxu1 %v1316_v0  ;;  %v951_v53 = vld [vmem:[#allocation3 + $0x1e0] sm:$0xff] }
 0x265   : > { %883 = vst.msk [vmem:[#allocation3 + $0x1d0] sm:$0xff] %vm824_vm3, %v755_v52  ;;  %1072 = vmatpush2.msra.mxu1 %v951_v53  ;;  %v394_v22 = vpop.permute.xlu1 %393 }
 0x266   : > { %500 = vst.msk [vmem:[#allocation3 + $0x180] sm:$0xff] %vm451_vm2, %v394_v22  ;;  %1073 = vmatprep.subr.mxu1 %v1316_v0 }
 0x268   : > { %v753_v35 = vpop.permute.xlu0 %752  ;;  %v950_v36 = vld [vmem:[#allocation3 + $0x1d8] sm:$0xff] }
 0x269   : > { %882 = vst.msk [vmem:[#allocation3 + $0x1c8] sm:$0xff] %vm824_vm3, %v753_v35  ;;  %1074 = vmatpush2.msra.mxu1 %v950_v36 }
 0x26a   : > { %1075 = vmatprep.subr.mxu1 %v1316_v0 }
 0x26c   : > { %v751_v54 = vpop.permute.xlu0 %750  ;;  %v949_v23 = vld [vmem:[#allocation3 + $0x1d0] sm:$0xff] }
 0x26d   : > { %881 = vst.msk [vmem:[#allocation3 + $0x1c0] sm:$0xff] %vm824_vm3, %v751_v54  ;;  %1076 = vmatpush2.msra.mxu1 %v949_v23 }
 0x26e   : > { %1077 = vmatprep.subr.mxu1 %v1316_v0 }
 0x270   : > { %v749_v38 = vpop.permute.xlu0 %748  ;;  %v948_v55 = vld [vmem:[#allocation3 + $0x1c8] sm:$0xff] }
 0x271   : > { %880 = vst.msk [vmem:[#allocation3 + $0x1b8] sm:$0xff] %vm824_vm3, %v749_v38  ;;  %1078 = vmatpush2.msra.mxu1 %v948_v55 }
 0x272   : > { %1079 = vmatprep.subr.mxu1 %v1316_v0 }
 0x274   : > { %v747_v56 = vpop.permute.xlu0 %746  ;;  %v947_v57 = vld [vmem:[#allocation3 + $0x1c0] sm:$0xff] }
 0x275   : > { %879 = vst.msk [vmem:[#allocation3 + $0x1b0] sm:$0xff] %vm824_vm3, %v747_v56  ;;  %1080 = vmatpush2.msra.mxu1 %v947_v57 }
 0x276   : > { %1081 = vmatprep.subr.mxu1 %v1316_v0 }
 0x278   : > { %v745_v58 = vpop.permute.xlu0 %744  ;;  %v946_v7 = vld [vmem:[#allocation3 + $0x1b8] sm:$0xff] }
 0x279   : > { %878 = vst.msk [vmem:[#allocation3 + $0x1a8] sm:$0xff] %vm824_vm3, %v745_v58  ;;  %1082 = vmatpush2.msra.mxu1 %v946_v7 }
 0x27a   : > { %1083 = vmatprep.subr.mxu1 %v1316_v0 }
 0x27c   : > { %v743_v59 = vpop.permute.xlu0 %742  ;;  %v945_v60 = vld [vmem:[#allocation3 + $0x1b0] sm:$0xff] }
 0x27d   : > { %877 = vst.msk [vmem:[#allocation3 + $0x1a0] sm:$0xff] %vm824_vm3, %v743_v59  ;;  %1084 = vmatpush2.msra.mxu1 %v945_v60 }
 0x27e   : > { %1085 = vmatprep.subr.mxu1 %v1316_v0 }
 0x27f   : > { %v957_v8 = vpop.permute.xlu1 %956 }
 0x280   : > { %v741_v61 = vpop.permute.xlu0 %740  ;;  %v944_v62 = vld [vmem:[#allocation3 + $0x1a8] sm:$0xff] }
 0x281   : > { %876 = vst.msk [vmem:[#allocation3 + $0x198] sm:$0xff] %vm824_vm3, %v741_v61  ;;  %1086 = vmatpush2.msra.mxu1 %v944_v62 }
 0x282   : > { %1087 = vmatprep.subr.mxu1 %v1316_v0 }
 0x284   : > { %v739_v63 = vpop.permute.xlu0 %738  ;;  %v943_v9 = vld [vmem:[#allocation3 + $0x1a0] sm:$0xff] }
 0x285   : > { %875 = vst.msk [vmem:[#allocation3 + $0x190] sm:$0xff] %vm824_vm3, %v739_v63  ;;  %1088 = vmatpush2.msra.mxu1 %v943_v9 }
 0x286   : > { %1089 = vmatprep.subr.mxu1 %v1316_v0 }
 0x288   : > { %v737_v1 = vpop.permute.xlu0 %736  ;;  %v942_v2 = vld [vmem:[#allocation3 + $0x198] sm:$0xff] }
 0x289   : > { %874 = vst.msk [vmem:[#allocation3 + $0x188] sm:$0xff] %vm824_vm3, %v737_v1  ;;  %1090 = vmatpush2.msra.mxu1 %v942_v2 }
 0x28a   : > { %1091 = vmatprep.subr.mxu1 %v1316_v0 }
 0x28c   : > { %v735_v3 = vpop.permute.xlu0 %734  ;;  %v941_v4 = vld [vmem:[#allocation3 + $0x190] sm:$0xff] }
 0x28d   : > { %873 = vst.msk [vmem:[#allocation3 + $0x180] sm:$0xff] %vm824_vm3, %v735_v3  ;;  %1092 = vmatpush2.msra.mxu1 %v941_v4 }
 0x28e   : > { %1093 = vmatprep.subr.mxu1 %v1316_v0 }
 0x290   : > { %v940_v5 = vld [vmem:[#allocation3 + $0x188] sm:$0xff] }
 0x291   : > { %1094 = vmatpush2.msra.mxu1 %v940_v5 }
 0x292   : > { %1095 = vmatprep.subr.mxu1 %v1316_v0 }
 0x294   : > { %v939_v10 = vld [vmem:[#allocation3 + $0x180] sm:$0xff] }
 0x295   : > { %1096 = vmatpush2.msra.mxu1 %v939_v10 }
 0x296   : > { %1098 = vmatmul.mubr.f32.vlgmr.msra.gmra.mxu1 %v889_v6 }
 0x323   : > { %v1274_v11 = vpop.f32.mrf.mxu0 }
 0x325   : > { %v1275_v12 = vpop.f32.mrf.mxu0 }
 0x326   : > { %v1276_v13 = vadd.f32 %v1275_v12, %v1274_v11 }
 0x328   : > { %v1030_v24 = vadd.f32 %v1276_v13, %v957_v8 }
 0x356   : > { %v1099_v14 = vpop.f32.mrf.mxu1 }
 0x357   : > { %v1100_v0 = vadd.f32 %v1099_v14, %v1030_v24 }
 0x358   : > { %v1101_v25 = vpop.f32.mrf.mxu1 }
 0x359   : > { %v1105_v26 = vsel %vm1103_vm5, %v1100_v0, 0.0  ;;  %1104 = vst.msk [vmem:[%s235_s7] sm:$0xff] %vm1103_vm5, %v1100_v0  ;;  %v1110_v27 = vmul.f32 %v1100_v0, %v1100_v0 }
 0x35a   : > { %1106 = vadd.xlane.f32.xlu0 %v1105_v26 }
 0x35b   : > { %v1111_v15 = vsel %vm1103_vm5, %v1110_v27, 0.0 }
 0x35c   : > { %1112 = vadd.xlane.f32.xlu1 %v1111_v15 }
 0x3e3   : > { %v1107_v28 = vpop.xlane.xlu0 %1106 }
 0x3e4   : > { %1109 = vst.msk [vmem:[%s239_s10] sm:$0xff] %vm1108_vm6, %v1107_v28 }
 0x3e5   : > { %v1113_v29 = vpop.xlane.xlu1 %1112 }
 0x3e6   : > { %1114 = vst.msk [vmem:[%s243_s12] sm:$0xff] %vm1108_vm6, %v1113_v29 }
 0x3e7 PF: > { %s16_s18 = sadd.s32 1, %s1314_s18  }
 0x3e8   : > { %p13_p4 = scmp.ge.s32.totalorder %s16_s18, 4  }
 0x3ea   :  { %15 = sbr.rel (!%p13_p4) target bundleno = 1 (0x1), region = 86 }

// kernel: encoder2d_forward.9
= control target key start
LH: loop header
LB: loop body
LE: loop exit
PB: predicated region body
PF: predicated region fallthrough
CT: control target
= control target key end

     0   :  { %s285_s12 = smov 0   ;;  %s302_s0 = inlined_call_operand.vmem [shape: f32[2,8,32], index: 0, kind: input, shape index: {}]   ;;  %s303_s1 = inlined_call_operand.vmem [shape: f32[8,1], index: 1, kind: input, shape index: {}]   ;;  %s304_s2 = inlined_call_operand.vmem [shape: f32[8,1], index: 2, kind: input, shape index: {}]   ;;  %s305_s3 = inlined_call_operand.vmem [shape: f32[2,8,32], index: 3, kind: output, shape index: {}]  }
   0x1 LB: > { %s237_s13 = sadd.s32 4294967295, %s262_s12   ;;  %p241_p0 = scmp.ge.s32.totalorder %s262_s12, 1  ;;  %s262_s12 = sphi %s285_s12, %s13_s12  }
   0x2   : > { %p136_p1 = scmp.lt.s32.totalorder %s262_s12, 3 }
   0x4   : > { %p137_p2 = pnand %p241_p0, %p136_p1 }
   0x5   : > { %p158_p3 = scmp.lt.s32.totalorder (!%p137_p2), %s237_s13, 1 }
   0x6   : > { %140 = sbr.rel (%p137_p2) target bundleno = 146 (0x92), region = 32 }
   0xb   : > { %v167_v0 = vld [vmem:[%s303_s1] sm:$0xff]  ;;  %v264_v1 = vmov 0   ;;  %s307_s13 = smov (!%p158_p3, %s237_s13), 1  ;;  %vm182_vm0 = vcmask 261120  }
   0xc   : > { %255 = vset.pattern.permute.xlu0 %v264_v1  ;;  %v174_v2 = vld [vmem:[%s304_s2] sm:$0xff]  ;;  %s242_s18 = sshll.u32 %s307_s13, 3 }
   0xd   : > { %170 = vperm.xlu0 %255, %v167_v0   ;;  %s161_s21 = scalar_lea.vmem %s302_s0, %s242_s18  ;;  %s165_s24 = scalar_lea.vmem %s305_s3, %s242_s18 }
   0xe   : > { %v166_v4 = vld [vmem:[%s161_s21] sm:$0xff] }
  0x11   : > { %177 = vperm.xlu0 %255, %v174_v2  }
  0x88   : > { %v171_v3 = vpop.permute.xlu0 %170 }
  0x89   : > { %v173_v5 = vmul.f32 %v171_v3, %v166_v4 }
  0x8c   : > { %v178_v6 = vpop.permute.xlu0 %177 }
  0x8d   : > { %v180_v7 = vadd.f32 %v178_v6, %v173_v5 }
  0x8f   : > { %v181_v8 = vmax.f32 %v180_v7, 0.0 }
  0x91   : > { %183 = vst.msk [vmem:[%s165_s24] sm:$0xff] %vm182_vm0, %v181_v8 }
  0x92 PF: > { %s13_s12 = sadd.s32 1, %s262_s12  }
  0x93   : > { %p10_p4 = scmp.ge.s32.totalorder %s13_s12, 4  }
  0x95   :  { %12 = sbr.rel (!%p10_p4) target bundleno = 1 (0x1), region = 62 }

// kernel: encoder2d_forward.6
= control target key start
LH: loop header
LB: loop body
LE: loop exit
PB: predicated region body
PF: predicated region fallthrough
CT: control target
= control target key end

     0   :  { %s3163_s18 = smov 0   ;;  %s5097_s0 = inlined_call_operand.vmem [shape: f32[2,32,32], index: 0, kind: input, shape index: {}]   ;;  %s5098_s1 = inlined_call_operand.vmem [shape: f32[8,496], index: 1, kind: input, shape index: {}]   ;;  %s5099_s2 = inlined_call_operand.vmem [shape: f32[8,1], index: 2, kind: input, shape index: {}]   ;;  %s5100_s3 = inlined_call_operand.vmem [shape: f32[2,8,224], index: 3, kind: output, shape index: {0}]   ;;  %s5101_s4 = inlined_call_operand.vmem [shape: f32[2,8,1], index: 4, kind: output, shape index: {1}]   ;;  %s5102_s5 = inlined_call_operand.vmem [shape: f32[2,8,1], index: 5, kind: output, shape index: {2}]  }
   0x1 LB: > { %s3054_s19 = sadd.s32 4294967295, %s3109_s18   ;;  %p3058_p0 = scmp.ge.s32.totalorder %s3109_s18, 1  ;;  %s3109_s18 = sphi %s3163_s18, %s16_s18  }
   0x2   : > { %p192_p1 = scmp.lt.s32.totalorder %s3109_s18, 3 }
   0x4   : > { %p193_p2 = pnand %p3058_p0, %p192_p1 }
   0x6   : > { %196 = sbr.rel (%p193_p2) target bundleno = 2222 (0x8ae), region = 32 }
   0xb   : > { %p228_p3 = scmp.lt.s32.totalorder %s3054_s19, 1  ;;  %vm246_vm0 = vcmask 506880   ;;  %v3111_v0 = vmov 0.0   ;;  %s3112_s24 = smov 15   ;;  %vm263_vm1 = vcmask 380024   ;;  %vm265_vm2 = vcmask 384124  }
   0xc   : > { %247 = vst.msk [vmem:[#allocation2] sm:$0xff] %vm246_vm0, %v3111_v0  ;;  %248 = vst.msk [vmem:[#allocation2 + $0x8] sm:$0xff] %vm246_vm0, %v3111_v0  ;;  %vm469_vm3 = vcmask 261120   ;;  %s3113_s25 = smov 127   ;;  %s3114_s26 = smov 126   ;;  %vm842_vm4 = vcmask 523520  }
   0xd   : > { %249 = vst.msk [vmem:[#allocation2 + $0x10] sm:$0xff] %vm246_vm0, %v3111_v0  ;;  %250 = vst.msk [vmem:[#allocation2 + $0x18] sm:$0xff] %vm246_vm0, %v3111_v0  ;;  %s5134_s19 = smov (!%p228_p3, %s3054_s19), 1  ;;  %s3115_s27 = smov 125   ;;  %vm1215_vm5 = vcmask 785920   ;;  %vm1588_vm6 = vcmask 1048320  }
   0xe   : > { %251 = vst.msk [vmem:[#allocation2 + $0x20] sm:$0xff] %vm246_vm0, %v3111_v0  ;;  %252 = vst.msk [vmem:[#allocation2 + $0x28] sm:$0xff] %vm246_vm0, %v3111_v0  ;;  %s3068_s20 = sshll.u32 %s5134_s19, 5  ;;  %s3116_s28 = smov 124   ;;  %vm2775_vm7 = vcmask 916480   ;;  %vm2922_vm8 = vcmask 785408  }
   0xf   : > { %253 = vst.msk [vmem:[#allocation2 + $0x30] sm:$0xff] %vm246_vm0, %v3111_v0  ;;  %254 = vst.msk [vmem:[#allocation2 + $0x38] sm:$0xff] %vm246_vm0, %v3111_v0  ;;  %s232_s23 = scalar_lea.vmem %s5097_s0, %s3068_s20  ;;  %s3117_s29 = smov 123   ;;  %vm2928_vm9 = vcmask 7168  }
  0x10   : > { %v255_v1 = vld [vmem:[%s232_s23] sm:$0xff]  ;;  %v257_v2 = vld [vmem:[%s232_s23 + $0x10] sm:$0xff]  ;;  %v256_v3 = vld [vmem:[%s232_s23 + $0x8] sm:$0xff]  ;;  %s3118_s30 = smov 122   ;;  %s3119_s6 = smov 121  }
  0x11   : > { %260 = vrot.lane.b32.xlu0 %v255_v1, %s3112_s24  ;;  %274 = vrot.lane.b32.xlu1 %v257_v2, %s3112_s24  ;;  %v258_v4 = vld [vmem:[%s232_s23 + $0x18] sm:$0xff]  ;;  %s3120_s7 = smov 120   ;;  %s3121_s8 = smov 119  }
  0x12   : > { %s3122_s9 = smov 118   ;;  %s3123_s10 = smov 117  }
  0x13   : > { %s3124_s11 = smov 116   ;;  %s3125_s12 = smov 115  }
  0x14   : > { %s3126_s13 = smov 114   ;;  %s3127_s14 = smov 113  }
  0x15   : > { %268 = vrot.lane.b32.xlu0 %v256_v3, %s3112_s24  ;;  %280 = vrot.lane.b32.xlu1 %v258_v4, %s3112_s24  ;;  %s3128_s15 = smov 112   ;;  %s3129_s16 = smov 32  }
  0x16   : > { %s3130_s17 = smov 64   ;;  %s3131_s20 = smov 96  }
  0x83   : > { %v261_v5 = vpop.permute.xlu0 %260  ;;  %v275_v6 = vpop.permute.xlu1 %274 }
  0x84   : > { %264 = vst.msk [vmem:[#allocation2] sm:$0xf] %vm263_vm1, %v261_v5  ;;  %277 = vst.msk [vmem:[#allocation2 + $0x20] sm:$0xf] %vm263_vm1, %v275_v6 }
  0x85   : > { %266 = vst.msk [vmem:[#allocation2 + $0x4] sm:$0xf0] %vm265_vm2, %v261_v5  ;;  %278 = vst.msk [vmem:[#allocation2 + $0x24] sm:$0xf0] %vm265_vm2, %v275_v6 }
  0x87   : > { %v269_v7 = vpop.permute.xlu0 %268  ;;  %v281_v8 = vpop.permute.xlu1 %280 }
  0x88   : > { %271 = vst.msk [vmem:[#allocation2 + $0x10] sm:$0xf] %vm263_vm1, %v269_v7  ;;  %283 = vst.msk [vmem:[#allocation2 + $0x30] sm:$0xf] %vm263_vm1, %v281_v8 }
  0x89   : > { %272 = vst.msk [vmem:[#allocation2 + $0x14] sm:$0xf0] %vm265_vm2, %v269_v7  ;;  %284 = vst.msk [vmem:[#allocation2 + $0x34] sm:$0xf0] %vm265_vm2, %v281_v8 }
  0x8b   : > { %v285_v9 = vld [vmem:[#allocation2] sm:$0xff] }
  0x8c   : > { %v3177_v10 = vld [vmem:[#allocation2 + $0x8] sm:$0xff]  ;;  %v3179_v11 = vld [vmem:[#allocation2 + $0x20] sm:$0xff]  ;;  %289 = vrot.lane.b32.xlu0 %v285_v9, %s3113_s25  ;;  %470 = vst.msk [vmem:[#allocation3] sm:$0xff] %vm469_vm3, %v285_v9 }
  0x8d   : > { %291 = vrot.lane.b32.xlu1 %v3177_v10, %s3113_s25  ;;  %v3184_v12 = vld [vmem:[#allocation2 + $0x28] sm:$0xff]  ;;  %471 = vst.msk [vmem:[#allocation3 + $0x10] sm:$0xff] %vm469_vm3, %v3177_v10  ;;  %1835 = vst.msk [vmem:[#allocation3 + $0x8] sm:$0xff] %vm469_vm3, %v3179_v11 }
  0x8e   : > { %1836 = vst.msk [vmem:[#allocation3 + $0x18] sm:$0xff] %vm469_vm3, %v3184_v12 }
  0x8f   : > { %v3238_v13 = vld [vmem:[#allocation2 + $0x10] sm:$0xff] }
  0x90   : > { %295 = vrot.lane.b32.xlu0 %v285_v9, %s3114_s26 }
  0x91   : > { %297 = vrot.lane.b32.xlu1 %v3177_v10, %s3114_s26 }
  0x94   : > { %301 = vrot.lane.b32.xlu0 %v285_v9, %s3115_s27 }
  0x95   : > { %303 = vrot.lane.b32.xlu1 %v3177_v10, %s3115_s27 }
  0x98   : > { %307 = vrot.lane.b32.xlu0 %v285_v9, %s3116_s28 }
  0x99   : > { %309 = vrot.lane.b32.xlu1 %v3177_v10, %s3116_s28 }
  0x9c   : > { %313 = vrot.lane.b32.xlu0 %v285_v9, %s3117_s29 }
  0x9d   : > { %315 = vrot.lane.b32.xlu1 %v3177_v10, %s3117_s29 }
  0xa0   : > { %319 = vrot.lane.b32.xlu0 %v285_v9, %s3118_s30 }
  0xa1   : > { %321 = vrot.lane.b32.xlu1 %v3177_v10, %s3118_s30 }
  0xa4   : > { %325 = vrot.lane.b32.xlu0 %v285_v9, %s3119_s6 }
  0xa5   : > { %327 = vrot.lane.b32.xlu1 %v3177_v10, %s3119_s6 }
  0xa8   : > { %331 = vrot.lane.b32.xlu0 %v285_v9, %s3120_s7 }
  0xa9   : > { %333 = vrot.lane.b32.xlu1 %v3177_v10, %s3120_s7 }
  0xac   : > { %337 = vrot.lane.b32.xlu0 %v285_v9, %s3121_s8 }
  0xad   : > { %339 = vrot.lane.b32.xlu1 %v3177_v10, %s3121_s8 }
  0xb0   : > { %343 = vrot.lane.b32.xlu0 %v285_v9, %s3122_s9 }
  0xb1   : > { %345 = vrot.lane.b32.xlu1 %v3177_v10, %s3122_s9 }
  0xb4   : > { %349 = vrot.lane.b32.xlu0 %v285_v9, %s3123_s10 }
  0xb5   : > { %351 = vrot.lane.b32.xlu1 %v3177_v10, %s3123_s10 }
  0xb8   : > { %355 = vrot.lane.b32.xlu0 %v285_v9, %s3124_s11 }
  0xb9   : > { %357 = vrot.lane.b32.xlu1 %v3177_v10, %s3124_s11 }
  0xbc   : > { %361 = vrot.lane.b32.xlu0 %v285_v9, %s3125_s12 }
  0xbd   : > { %363 = vrot.lane.b32.xlu1 %v3177_v10, %s3125_s12 }
  0xc0   : > { %367 = vrot.lane.b32.xlu0 %v285_v9, %s3126_s13 }
  0xc1   : > { %369 = vrot.lane.b32.xlu1 %v3177_v10, %s3126_s13 }
  0xc4   : > { %373 = vrot.lane.b32.xlu0 %v285_v9, %s3127_s14 }
  0xc5   : > { %375 = vrot.lane.b32.xlu1 %v3177_v10, %s3127_s14 }
  0xc8   : > { %379 = vrot.lane.b32.xlu0 %v285_v9, %s3128_s15 }
  0xc9   : > { %381 = vrot.lane.b32.xlu1 %v3177_v10, %s3128_s15 }
  0xcc   : > { %536 = vrot.lane.b32.xlu0 %v3177_v10, %s3113_s25 }
  0xcd   : > { %538 = vrot.lane.b32.xlu1 %v3238_v13, %s3113_s25 }
  0xd0   : > { %540 = vrot.lane.b32.xlu0 %v3177_v10, %s3114_s26 }
  0xd1   : > { %542 = vrot.lane.b32.xlu1 %v3238_v13, %s3114_s26 }
  0xd4   : > { %544 = vrot.lane.b32.xlu0 %v3177_v10, %s3115_s27 }
  0xd5   : > { %546 = vrot.lane.b32.xlu1 %v3238_v13, %s3115_s27 }
  0xd8   : > { %548 = vrot.lane.b32.xlu0 %v3177_v10, %s3116_s28 }
  0xd9   : > { %550 = vrot.lane.b32.xlu1 %v3238_v13, %s3116_s28 }
  0xdc   : > { %552 = vrot.lane.b32.xlu0 %v3177_v10, %s3117_s29 }
  0xdd   : > { %554 = vrot.lane.b32.xlu1 %v3238_v13, %s3117_s29 }
  0xe0   : > { %556 = vrot.lane.b32.xlu0 %v3177_v10, %s3118_s30 }
  0xe1   : > { %558 = vrot.lane.b32.xlu1 %v3238_v13, %s3118_s30 }
  0xe4   : > { %560 = vrot.lane.b32.xlu0 %v3177_v10, %s3119_s6 }
  0xe5   : > { %562 = vrot.lane.b32.xlu1 %v3238_v13, %s3119_s6 }
  0xe8   : > { %564 = vrot.lane.b32.xlu0 %v3177_v10, %s3120_s7 }
  0xe9   : > { %566 = vrot.lane.b32.xlu1 %v3238_v13, %s3120_s7 }
  0xec   : > { %568 = vrot.lane.b32.xlu0 %v3177_v10, %s3121_s8 }
  0xed   : > { %570 = vrot.lane.b32.xlu1 %v3238_v13, %s3121_s8 }
  0xf0   : > { %572 = vrot.lane.b32.xlu0 %v3177_v10, %s3122_s9 }
  0xf1   : > { %574 = vrot.lane.b32.xlu1 %v3238_v13, %s3122_s9 }
  0xf4   : > { %576 = vrot.lane.b32.xlu0 %v3177_v10, %s3123_s10 }
  0xf5   : > { %578 = vrot.lane.b32.xlu1 %v3238_v13, %s3123_s10 }
  0xf8   : > { %580 = vrot.lane.b32.xlu0 %v3177_v10, %s3124_s11 }
  0xf9   : > { %582 = vrot.lane.b32.xlu1 %v3238_v13, %s3124_s11 }
  0xfc   : > { %584 = vrot.lane.b32.xlu0 %v3177_v10, %s3125_s12 }
  0xfd   : > { %586 = vrot.lane.b32.xlu1 %v3238_v13, %s3125_s12 }
  0xfe   : > { %v290_v15 = vpop.permute.xlu0 %289 }
  0xff   : > { %v292_v14 = vpop.permute.xlu1 %291  ;;  %472 = vst.msk [vmem:[#allocation3 + $0x20] sm:$0xff] %vm469_vm3, %v290_v15 }
 0x100   : > { %473 = vst.msk [vmem:[#allocation3 + $0x30] sm:$0xff] %vm469_vm3, %v292_v14  ;;  %588 = vrot.lane.b32.xlu0 %v3177_v10, %s3126_s13 }
 0x101   : > { %590 = vrot.lane.b32.xlu1 %v3238_v13, %s3126_s13 }
 0x102   : > { %v296_v17 = vpop.permute.xlu0 %295 }
 0x103   : > { %v298_v16 = vpop.permute.xlu1 %297  ;;  %474 = vst.msk [vmem:[#allocation3 + $0x40] sm:$0xff] %vm469_vm3, %v296_v17 }
 0x104   : > { %475 = vst.msk [vmem:[#allocation3 + $0x50] sm:$0xff] %vm469_vm3, %v298_v16  ;;  %592 = vrot.lane.b32.xlu0 %v3177_v10, %s3127_s14 }
 0x105   : > { %594 = vrot.lane.b32.xlu1 %v3238_v13, %s3127_s14 }
 0x106   : > { %v302_v19 = vpop.permute.xlu0 %301 }
 0x107   : > { %v304_v18 = vpop.permute.xlu1 %303  ;;  %476 = vst.msk [vmem:[#allocation3 + $0x60] sm:$0xff] %vm469_vm3, %v302_v19 }
 0x108   : > { %477 = vst.msk [vmem:[#allocation3 + $0x70] sm:$0xff] %vm469_vm3, %v304_v18  ;;  %596 = vrot.lane.b32.xlu0 %v3177_v10, %s3128_s15 }
 0x109   : > { %598 = vrot.lane.b32.xlu1 %v3238_v13, %s3128_s15 }
 0x10a   : > { %v308_v21 = vpop.permute.xlu0 %307 }
 0x10b   : > { %v310_v20 = vpop.permute.xlu1 %309  ;;  %478 = vst.msk [vmem:[#allocation3 + $0x80] sm:$0xff] %vm469_vm3, %v308_v21 }
 0x10c   : > { %479 = vst.msk [vmem:[#allocation3 + $0x90] sm:$0xff] %vm469_vm3, %v310_v20  ;;  %383 = vrot.lane.b32.xlu0 %v290_v15, %s3128_s15 }
 0x10d   : > { %385 = vrot.lane.b32.xlu1 %v292_v14, %s3128_s15 }
 0x10e   : > { %v314_v23 = vpop.permute.xlu0 %313 }
 0x10f   : > { %v316_v22 = vpop.permute.xlu1 %315  ;;  %480 = vst.msk [vmem:[#allocation3 + $0xa0] sm:$0xff] %vm469_vm3, %v314_v23 }
 0x110   : > { %481 = vst.msk [vmem:[#allocation3 + $0xb0] sm:$0xff] %vm469_vm3, %v316_v22  ;;  %387 = vrot.lane.b32.xlu0 %v296_v17, %s3128_s15 }
 0x111   : > { %389 = vrot.lane.b32.xlu1 %v298_v16, %s3128_s15 }
 0x112   : > { %v320_v25 = vpop.permute.xlu0 %319 }
 0x113   : > { %v322_v24 = vpop.permute.xlu1 %321  ;;  %482 = vst.msk [vmem:[#allocation3 + $0xc0] sm:$0xff] %vm469_vm3, %v320_v25 }
 0x114   : > { %483 = vst.msk [vmem:[#allocation3 + $0xd0] sm:$0xff] %vm469_vm3, %v322_v24  ;;  %391 = vrot.lane.b32.xlu0 %v302_v19, %s3128_s15 }
 0x115   : > { %393 = vrot.lane.b32.xlu1 %v304_v18, %s3128_s15 }
 0x116   : > { %v326_v27 = vpop.permute.xlu0 %325 }
 0x117   : > { %v328_v26 = vpop.permute.xlu1 %327  ;;  %484 = vst.msk [vmem:[#allocation3 + $0xe0] sm:$0xff] %vm469_vm3, %v326_v27 }
 0x118   : > { %485 = vst.msk [vmem:[#allocation3 + $0xf0] sm:$0xff] %vm469_vm3, %v328_v26  ;;  %395 = vrot.lane.b32.xlu0 %v308_v21, %s3128_s15 }
 0x119   : > { %397 = vrot.lane.b32.xlu1 %v310_v20, %s3128_s15 }
 0x11a   : > { %v332_v29 = vpop.permute.xlu0 %331 }
 0x11b   : > { %v334_v28 = vpop.permute.xlu1 %333  ;;  %486 = vst.msk [vmem:[#allocation3 + $0x100] sm:$0xff] %vm469_vm3, %v332_v29 }
 0x11c   : > { %487 = vst.msk [vmem:[#allocation3 + $0x110] sm:$0xff] %vm469_vm3, %v334_v28  ;;  %399 = vrot.lane.b32.xlu0 %v314_v23, %s3128_s15 }
 0x11d   : > { %401 = vrot.lane.b32.xlu1 %v316_v22, %s3128_s15 }
 0x11e   : > { %v338_v31 = vpop.permute.xlu0 %337 }
 0x11f   : > { %v340_v30 = vpop.permute.xlu1 %339  ;;  %488 = vst.msk [vmem:[#allocation3 + $0x120] sm:$0xff] %vm469_vm3, %v338_v31 }
 0x120   : > { %489 = vst.msk [vmem:[#allocation3 + $0x130] sm:$0xff] %vm469_vm3, %v340_v30  ;;  %403 = vrot.lane.b32.xlu0 %v320_v25, %s3128_s15 }
 0x121   : > { %405 = vrot.lane.b32.xlu1 %v322_v24, %s3128_s15 }
 0x122   : > { %v344_v33 = vpop.permute.xlu0 %343 }
 0x123   : > { %v346_v32 = vpop.permute.xlu1 %345  ;;  %490 = vst.msk [vmem:[#allocation3 + $0x140] sm:$0xff] %vm469_vm3, %v344_v33 }
 0x124   : > { %491 = vst.msk [vmem:[#allocation3 + $0x150] sm:$0xff] %vm469_vm3, %v346_v32  ;;  %407 = vrot.lane.b32.xlu0 %v326_v27, %s3128_s15 }
 0x125   : > { %409 = vrot.lane.b32.xlu1 %v328_v26, %s3128_s15 }
 0x126   : > { %v350_v35 = vpop.permute.xlu0 %349 }
 0x127   : > { %v352_v34 = vpop.permute.xlu1 %351  ;;  %492 = vst.msk [vmem:[#allocation3 + $0x160] sm:$0xff] %vm469_vm3, %v350_v35 }
 0x128   : > { %493 = vst.msk [vmem:[#allocation3 + $0x170] sm:$0xff] %vm469_vm3, %v352_v34  ;;  %411 = vrot.lane.b32.xlu0 %v332_v29, %s3128_s15 }
 0x129   : > { %413 = vrot.lane.b32.xlu1 %v334_v28, %s3128_s15 }
 0x12a   : > { %v356_v37 = vpop.permute.xlu0 %355 }
 0x12b   : > { %v358_v36 = vpop.permute.xlu1 %357  ;;  %494 = vst.msk [vmem:[#allocation3 + $0x180] sm:$0xff] %vm469_vm3, %v356_v37 }
 0x12c   : > { %495 = vst.msk [vmem:[#allocation3 + $0x190] sm:$0xff] %vm469_vm3, %v358_v36  ;;  %415 = vrot.lane.b32.xlu0 %v338_v31, %s3128_s15 }
 0x12d   : > { %417 = vrot.lane.b32.xlu1 %v340_v30, %s3128_s15 }
 0x12e   : > { %v362_v39 = vpop.permute.xlu0 %361 }
 0x12f   : > { %v364_v38 = vpop.permute.xlu1 %363  ;;  %496 = vst.msk [vmem:[#allocation3 + $0x1a0] sm:$0xff] %vm469_vm3, %v362_v39 }
 0x130   : > { %497 = vst.msk [vmem:[#allocation3 + $0x1b0] sm:$0xff] %vm469_vm3, %v364_v38  ;;  %419 = vrot.lane.b32.xlu0 %v344_v33, %s3128_s15 }
 0x131   : > { %421 = vrot.lane.b32.xlu1 %v346_v32, %s3128_s15 }
 0x132   : > { %v368_v41 = vpop.permute.xlu0 %367 }
 0x133   : > { %v370_v40 = vpop.permute.xlu1 %369  ;;  %498 = vst.msk [vmem:[#allocation3 + $0x1c0] sm:$0xff] %vm469_vm3, %v368_v41 }
 0x134   : > { %499 = vst.msk [vmem:[#allocation3 + $0x1d0] sm:$0xff] %vm469_vm3, %v370_v40  ;;  %423 = vrot.lane.b32.xlu0 %v350_v35, %s3128_s15 }
 0x135   : > { %425 = vrot.lane.b32.xlu1 %v352_v34, %s3128_s15 }
 0x136   : > { %v374_v43 = vpop.permute.xlu0 %373 }
 0x137   : > { %v376_v42 = vpop.permute.xlu1 %375  ;;  %500 = vst.msk [vmem:[#allocation3 + $0x1e0] sm:$0xff] %vm469_vm3, %v374_v43 }
 0x138   : > { %501 = vst.msk [vmem:[#allocation3 + $0x1f0] sm:$0xff] %vm469_vm3, %v376_v42  ;;  %427 = vrot.lane.b32.xlu0 %v356_v37, %s3128_s15 }
 0x139   : > { %429 = vrot.lane.b32.xlu1 %v358_v36, %s3128_s15 }
 0x13a   : > { %v380_v45 = vpop.permute.xlu0 %379 }
 0x13b   : > { %v382_v44 = vpop.permute.xlu1 %381  ;;  %502 = vst.msk [vmem:[#allocation3 + $0x200] sm:$0xff] %vm469_vm3, %v380_v45 }
 0x13c   : > { %503 = vst.msk [vmem:[#allocation3 + $0x210] sm:$0xff] %vm469_vm3, %v382_v44  ;;  %431 = vrot.lane.b32.xlu0 %v362_v39, %s3128_s15 }
 0x13d   : > { %433 = vrot.lane.b32.xlu1 %v364_v38, %s3128_s15 }
 0x13e   : > { %v3364_v47 = vpop.permute.xlu0 %536 }
 0x13f   : > { %v3362_v46 = vpop.permute.xlu1 %538 }
 0x140   : > { %435 = vrot.lane.b32.xlu0 %v368_v41, %s3128_s15 }
 0x141   : > { %437 = vrot.lane.b32.xlu1 %v370_v40, %s3128_s15 }
 0x142   : > { %v3370_v49 = vpop.permute.xlu0 %540 }
 0x143   : > { %v3368_v48 = vpop.permute.xlu1 %542 }
 0x144   : > { %600 = vrot.lane.b32.xlu0 %v3364_v47, %s3128_s15 }
 0x145   : > { %602 = vrot.lane.b32.xlu1 %v3362_v46, %s3128_s15 }
 0x146   : > { %v3378_v51 = vpop.permute.xlu0 %544 }
 0x147   : > { %v3376_v50 = vpop.permute.xlu1 %546 }
 0x148   : > { %604 = vrot.lane.b32.xlu0 %v3370_v49, %s3128_s15 }
 0x149   : > { %606 = vrot.lane.b32.xlu1 %v3368_v48, %s3128_s15 }
 0x14a   : > { %v3386_v53 = vpop.permute.xlu0 %548 }
 0x14b   : > { %v3384_v52 = vpop.permute.xlu1 %550 }
 0x14c   : > { %608 = vrot.lane.b32.xlu0 %v3378_v51, %s3128_s15 }
 0x14d   : > { %610 = vrot.lane.b32.xlu1 %v3376_v50, %s3128_s15 }
 0x14e   : > { %v3394_v55 = vpop.permute.xlu0 %552 }
 0x14f   : > { %v3392_v54 = vpop.permute.xlu1 %554 }
 0x150   : > { %612 = vrot.lane.b32.xlu0 %v3386_v53, %s3128_s15 }
 0x151   : > { %614 = vrot.lane.b32.xlu1 %v3384_v52, %s3128_s15 }
 0x152   : > { %v3402_v57 = vpop.permute.xlu0 %556 }
 0x153   : > { %v3400_v56 = vpop.permute.xlu1 %558 }
 0x154   : > { %616 = vrot.lane.b32.xlu0 %v3394_v55, %s3128_s15 }
 0x155   : > { %618 = vrot.lane.b32.xlu1 %v3392_v54, %s3128_s15 }
 0x156   : > { %v3410_v59 = vpop.permute.xlu0 %560 }
 0x157   : > { %v3408_v58 = vpop.permute.xlu1 %562 }
 0x158   : > { %620 = vrot.lane.b32.xlu0 %v3402_v57, %s3128_s15 }
 0x159   : > { %622 = vrot.lane.b32.xlu1 %v3400_v56, %s3128_s15 }
 0x15a   : > { %v3418_v61 = vpop.permute.xlu0 %564 }
 0x15b   : > { %v3416_v60 = vpop.permute.xlu1 %566 }
 0x15c   : > { %624 = vrot.lane.b32.xlu0 %v3410_v59, %s3128_s15 }
 0x15d   : > { %626 = vrot.lane.b32.xlu1 %v3408_v58, %s3128_s15 }
 0x15e   : > { %v3426_v63 = vpop.permute.xlu0 %568 }
 0x15f   : > { %v3424_v62 = vpop.permute.xlu1 %570 }
 0x160   : > { %628 = vrot.lane.b32.xlu0 %v3418_v61, %s3128_s15 }
 0x161   : > { %630 = vrot.lane.b32.xlu1 %v3416_v60, %s3128_s15 }
 0x162   : > { %v3434_v1 = vpop.permute.xlu0 %572 }
 0x163   : > { %v3432_v0 = vpop.permute.xlu1 %574 }
 0x164   : > { %632 = vrot.lane.b32.xlu0 %v3426_v63, %s3128_s15 }
 0x165   : > { %634 = vrot.lane.b32.xlu1 %v3424_v62, %s3128_s15 }
 0x166   : > { %v3442_v3 = vpop.permute.xlu0 %576 }
 0x167   : > { %v3440_v2 = vpop.permute.xlu1 %578 }
 0x168   : > { %636 = vrot.lane.b32.xlu0 %v3434_v1, %s3128_s15 }
 0x169   : > { %638 = vrot.lane.b32.xlu1 %v3432_v0, %s3128_s15 }
 0x16a   : > { %v3450_v5 = vpop.permute.xlu0 %580 }
 0x16b   : > { %v3448_v4 = vpop.permute.xlu1 %582 }
 0x16c   : > { %640 = vrot.lane.b32.xlu0 %v3442_v3, %s3128_s15 }
 0x16d   : > { %642 = vrot.lane.b32.xlu1 %v3440_v2, %s3128_s15 }
 0x16e   : > { %v3458_v7 = vpop.permute.xlu0 %584 }
 0x16f   : > { %v3456_v6 = vpop.permute.xlu1 %586 }
 0x170   : > { %644 = vrot.lane.b32.xlu0 %v3450_v5, %s3128_s15 }
 0x171   : > { %646 = vrot.lane.b32.xlu1 %v3448_v4, %s3128_s15 }
 0x172   : > { %v3466_v9 = vpop.permute.xlu0 %588 }
 0x173   : > { %v3464_v8 = vpop.permute.xlu1 %590 }
 0x174   : > { %648 = vrot.lane.b32.xlu0 %v3458_v7, %s3128_s15 }
 0x175   : > { %650 = vrot.lane.b32.xlu1 %v3456_v6, %s3128_s15 }
 0x176   : > { %v3474_v15 = vpop.permute.xlu0 %592 }
 0x177   : > { %v3472_v14 = vpop.permute.xlu1 %594 }
 0x178   : > { %652 = vrot.lane.b32.xlu0 %v3466_v9, %s3128_s15 }
 0x179   : > { %654 = vrot.lane.b32.xlu1 %v3464_v8, %s3128_s15 }
 0x17a   : > { %v3482_v17 = vpop.permute.xlu0 %596 }
 0x17b   : > { %v3480_v16 = vpop.permute.xlu1 %598 }
 0x17c   : > { %656 = vrot.lane.b32.xlu0 %v3177_v10, %s3129_s16 }
 0x17d   : > { %658 = vrot.lane.b32.xlu1 %v3238_v13, %s3129_s16 }
 0x17e   : > { %v384_v19 = vpop.permute.xlu0 %383 }
 0x17f   : > { %v386_v18 = vpop.permute.xlu1 %385  ;;  %504 = vst.msk [vmem:[#allocation3 + $0x220] sm:$0xff] %vm469_vm3, %v384_v19  ;;  %v3612_v19 = vld [vmem:[#allocation2 + $0x18] sm:$0xff] }
 0x180   : > { %505 = vst.msk [vmem:[#allocation3 + $0x230] sm:$0xff] %vm469_vm3, %v386_v18  ;;  %660 = vrot.lane.b32.xlu0 %v3364_v47, %s3129_s16 }
 0x181   : > { %662 = vrot.lane.b32.xlu1 %v3362_v46, %s3129_s16 }
 0x182   : > { %v388_v21 = vpop.permute.xlu0 %387 }
 0x183   : > { %v390_v20 = vpop.permute.xlu1 %389  ;;  %506 = vst.msk [vmem:[#allocation3 + $0x240] sm:$0xff] %vm469_vm3, %v388_v21 }
 0x184   : > { %507 = vst.msk [vmem:[#allocation3 + $0x250] sm:$0xff] %vm469_vm3, %v390_v20  ;;  %664 = vrot.lane.b32.xlu0 %v3370_v49, %s3129_s16 }
 0x185   : > { %666 = vrot.lane.b32.xlu1 %v3368_v48, %s3129_s16 }
 0x186   : > { %v392_v22 = vpop.permute.xlu0 %391 }
 0x187   : > { %v394_v10 = vpop.permute.xlu1 %393  ;;  %508 = vst.msk [vmem:[#allocation3 + $0x260] sm:$0xff] %vm469_vm3, %v392_v22 }
 0x188   : > { %509 = vst.msk [vmem:[#allocation3 + $0x270] sm:$0xff] %vm469_vm3, %v394_v10  ;;  %668 = vrot.lane.b32.xlu0 %v3378_v51, %s3129_s16 }
 0x189   : > { %670 = vrot.lane.b32.xlu1 %v3376_v50, %s3129_s16 }
 0x18a   : > { %v396_v24 = vpop.permute.xlu0 %395 }
 0x18b   : > { %v398_v23 = vpop.permute.xlu1 %397  ;;  %510 = vst.msk [vmem:[#allocation3 + $0x280] sm:$0xff] %vm469_vm3, %v396_v24 }
 0x18c   : > { %511 = vst.msk [vmem:[#allocation3 + $0x290] sm:$0xff] %vm469_vm3, %v398_v23  ;;  %672 = vrot.lane.b32.xlu0 %v3386_v53, %s3129_s16 }
 0x18d   : > { %674 = vrot.lane.b32.xlu1 %v3384_v52, %s3129_s16 }
 0x18e   : > { %v400_v26 = vpop.permute.xlu0 %399 }
 0x18f   : > { %v402_v25 = vpop.permute.xlu1 %401  ;;  %512 = vst.msk [vmem:[#allocation3 + $0x2a0] sm:$0xff] %vm469_vm3, %v400_v26 }
 0x190   : > { %513 = vst.msk [vmem:[#allocation3 + $0x2b0] sm:$0xff] %vm469_vm3, %v402_v25  ;;  %676 = vrot.lane.b32.xlu0 %v3394_v55, %s3129_s16 }
 0x191   : > { %678 = vrot.lane.b32.xlu1 %v3392_v54, %s3129_s16 }
 0x192   : > { %v404_v28 = vpop.permute.xlu0 %403 }
 0x193   : > { %v406_v27 = vpop.permute.xlu1 %405  ;;  %514 = vst.msk [vmem:[#allocation3 + $0x2c0] sm:$0xff] %vm469_vm3, %v404_v28 }
 0x194   : > { %515 = vst.msk [vmem:[#allocation3 + $0x2d0] sm:$0xff] %vm469_vm3, %v406_v27  ;;  %680 = vrot.lane.b32.xlu0 %v3402_v57, %s3129_s16 }
 0x195   : > { %682 = vrot.lane.b32.xlu1 %v3400_v56, %s3129_s16 }
 0x196   : > { %v408_v30 = vpop.permute.xlu0 %407 }
 0x197   : > { %v410_v29 = vpop.permute.xlu1 %409  ;;  %516 = vst.msk [vmem:[#allocation3 + $0x2e0] sm:$0xff] %vm469_vm3, %v408_v30 }
 0x198   : > { %517 = vst.msk [vmem:[#allocation3 + $0x2f0] sm:$0xff] %vm469_vm3, %v410_v29  ;;  %684 = vrot.lane.b32.xlu0 %v3410_v59, %s3129_s16 }
 0x199   : > { %686 = vrot.lane.b32.xlu1 %v3408_v58, %s3129_s16 }
 0x19a   : > { %v412_v32 = vpop.permute.xlu0 %411 }
 0x19b   : > { %v414_v31 = vpop.permute.xlu1 %413  ;;  %518 = vst.msk [vmem:[#allocation3 + $0x300] sm:$0xff] %vm469_vm3, %v412_v32 }
 0x19c   : > { %519 = vst.msk [vmem:[#allocation3 + $0x310] sm:$0xff] %vm469_vm3, %v414_v31  ;;  %688 = vrot.lane.b32.xlu0 %v3418_v61, %s3129_s16 }
 0x19d   : > { %690 = vrot.lane.b32.xlu1 %v3416_v60, %s3129_s16 }
 0x19e   : > { %v416_v34 = vpop.permute.xlu0 %415 }
 0x19f   : > { %v418_v33 = vpop.permute.xlu1 %417  ;;  %520 = vst.msk [vmem:[#allocation3 + $0x320] sm:$0xff] %vm469_vm3, %v416_v34 }
 0x1a0   : > { %521 = vst.msk [vmem:[#allocation3 + $0x330] sm:$0xff] %vm469_vm3, %v418_v33  ;;  %692 = vrot.lane.b32.xlu0 %v3426_v63, %s3129_s16 }
 0x1a1   : > { %694 = vrot.lane.b32.xlu1 %v3424_v62, %s3129_s16 }
 0x1a2   : > { %v420_v36 = vpop.permute.xlu0 %419 }
 0x1a3   : > { %v422_v35 = vpop.permute.xlu1 %421  ;;  %522 = vst.msk [vmem:[#allocation3 + $0x340] sm:$0xff] %vm469_vm3, %v420_v36 }
 0x1a4   : > { %523 = vst.msk [vmem:[#allocation3 + $0x350] sm:$0xff] %vm469_vm3, %v422_v35  ;;  %696 = vrot.lane.b32.xlu0 %v3434_v1, %s3129_s16 }
 0x1a5   : > { %698 = vrot.lane.b32.xlu1 %v3432_v0, %s3129_s16 }
 0x1a6   : > { %v424_v38 = vpop.permute.xlu0 %423 }
 0x1a7   : > { %v426_v37 = vpop.permute.xlu1 %425  ;;  %524 = vst.msk [vmem:[#allocation3 + $0x360] sm:$0xff] %vm469_vm3, %v424_v38 }
 0x1a8   : > { %525 = vst.msk [vmem:[#allocation3 + $0x370] sm:$0xff] %vm469_vm3, %v426_v37  ;;  %700 = vrot.lane.b32.xlu0 %v3442_v3, %s3129_s16 }
 0x1a9   : > { %702 = vrot.lane.b32.xlu1 %v3440_v2, %s3129_s16 }
 0x1aa   : > { %v428_v40 = vpop.permute.xlu0 %427 }
 0x1ab   : > { %v430_v39 = vpop.permute.xlu1 %429  ;;  %526 = vst.msk [vmem:[#allocation3 + $0x380] sm:$0xff] %vm469_vm3, %v428_v40 }
 0x1ac   : > { %527 = vst.msk [vmem:[#allocation3 + $0x390] sm:$0xff] %vm469_vm3, %v430_v39  ;;  %704 = vrot.lane.b32.xlu0 %v3450_v5, %s3129_s16 }
 0x1ad   : > { %706 = vrot.lane.b32.xlu1 %v3448_v4, %s3129_s16 }
 0x1ae   : > { %v432_v42 = vpop.permute.xlu0 %431 }
 0x1af   : > { %v434_v41 = vpop.permute.xlu1 %433  ;;  %528 = vst.msk [vmem:[#allocation3 + $0x3a0] sm:$0xff] %vm469_vm3, %v432_v42 }
 0x1b0   : > { %529 = vst.msk [vmem:[#allocation3 + $0x3b0] sm:$0xff] %vm469_vm3, %v434_v41  ;;  %708 = vrot.lane.b32.xlu0 %v3458_v7, %s3129_s16 }
 0x1b1   : > { %710 = vrot.lane.b32.xlu1 %v3456_v6, %s3129_s16 }
 0x1b2   : > { %v436_v44 = vpop.permute.xlu0 %435 }
 0x1b3   : > { %v438_v43 = vpop.permute.xlu1 %437  ;;  %530 = vst.msk [vmem:[#allocation3 + $0x3c0] sm:$0xff] %vm469_vm3, %v436_v44 }
 0x1b4   : > { %531 = vst.msk [vmem:[#allocation3 + $0x3d0] sm:$0xff] %vm469_vm3, %v438_v43  ;;  %712 = vrot.lane.b32.xlu0 %v3466_v9, %s3129_s16 }
 0x1b5   : > { %714 = vrot.lane.b32.xlu1 %v3464_v8, %s3129_s16 }
 0x1b6   : > { %v601_v46 = vpop.permute.xlu0 %600 }
 0x1b7   : > { %v603_v45 = vpop.permute.xlu1 %602 }
 0x1b8   : > { %716 = vrot.lane.b32.xlu0 %v3474_v15, %s3129_s16 }
 0x1b9   : > { %718 = vrot.lane.b32.xlu1 %v3472_v14, %s3129_s16 }
 0x1ba   : > { %v605_v48 = vpop.permute.xlu0 %604 }
 0x1bb   : > { %v607_v47 = vpop.permute.xlu1 %606 }
 0x1bc   : > { %720 = vrot.lane.b32.xlu0 %v3482_v17, %s3129_s16 }
 0x1bd   : > { %722 = vrot.lane.b32.xlu1 %v3480_v16, %s3129_s16 }
 0x1be   : > { %v609_v50 = vpop.permute.xlu0 %608 }
 0x1bf   : > { %v611_v49 = vpop.permute.xlu1 %610 }
 0x1c0   : > { %724 = vrot.lane.b32.xlu0 %v601_v46, %s3129_s16 }
 0x1c1   : > { %726 = vrot.lane.b32.xlu1 %v603_v45, %s3129_s16 }
 0x1c2   : > { %v613_v52 = vpop.permute.xlu0 %612 }
 0x1c3   : > { %v615_v51 = vpop.permute.xlu1 %614 }
 0x1c4   : > { %728 = vrot.lane.b32.xlu0 %v605_v48, %s3129_s16 }
 0x1c5   : > { %730 = vrot.lane.b32.xlu1 %v607_v47, %s3129_s16 }
 0x1c6   : > { %v617_v54 = vpop.permute.xlu0 %616 }
 0x1c7   : > { %v619_v53 = vpop.permute.xlu1 %618 }
 0x1c8   : > { %732 = vrot.lane.b32.xlu0 %v609_v50, %s3129_s16 }
 0x1c9   : > { %734 = vrot.lane.b32.xlu1 %v611_v49, %s3129_s16 }
 0x1ca   : > { %v621_v56 = vpop.permute.xlu0 %620 }
 0x1cb   : > { %v623_v55 = vpop.permute.xlu1 %622 }
 0x1cc   : > { %736 = vrot.lane.b32.xlu0 %v613_v52, %s3129_s16 }
 0x1cd   : > { %738 = vrot.lane.b32.xlu1 %v615_v51, %s3129_s16 }
 0x1ce   : > { %v625_v58 = vpop.permute.xlu0 %624 }
 0x1cf   : > { %v627_v57 = vpop.permute.xlu1 %626 }
 0x1d0   : > { %740 = vrot.lane.b32.xlu0 %v617_v54, %s3129_s16 }
 0x1d1   : > { %742 = vrot.lane.b32.xlu1 %v619_v53, %s3129_s16 }
 0x1d2   : > { %v629_v60 = vpop.permute.xlu0 %628 }
 0x1d3   : > { %v631_v59 = vpop.permute.xlu1 %630 }
 0x1d4   : > { %744 = vrot.lane.b32.xlu0 %v621_v56, %s3129_s16 }
 0x1d5   : > { %746 = vrot.lane.b32.xlu1 %v623_v55, %s3129_s16 }
 0x1d6   : > { %v633_v62 = vpop.permute.xlu0 %632 }
 0x1d7   : > { %v635_v61 = vpop.permute.xlu1 %634 }
 0x1d8   : > { %748 = vrot.lane.b32.xlu0 %v625_v58, %s3129_s16 }
 0x1d9   : > { %750 = vrot.lane.b32.xlu1 %v627_v57, %s3129_s16 }
 0x1da   : > { %v637_v0 = vpop.permute.xlu0 %636 }
 0x1db   : > { %v639_v63 = vpop.permute.xlu1 %638 }
 0x1dc   : > { %752 = vrot.lane.b32.xlu0 %v629_v60, %s3129_s16 }
 0x1dd   : > { %754 = vrot.lane.b32.xlu1 %v631_v59, %s3129_s16 }
 0x1de   : > { %v641_v2 = vpop.permute.xlu0 %640 }
 0x1df   : > { %v643_v1 = vpop.permute.xlu1 %642 }
 0x1e0   : > { %756 = vrot.lane.b32.xlu0 %v633_v62, %s3129_s16 }
 0x1e1   : > { %758 = vrot.lane.b32.xlu1 %v635_v61, %s3129_s16 }
 0x1e2   : > { %v645_v4 = vpop.permute.xlu0 %644 }
 0x1e3   : > { %v647_v3 = vpop.permute.xlu1 %646 }
 0x1e4   : > { %760 = vrot.lane.b32.xlu0 %v637_v0, %s3129_s16 }
 0x1e5   : > { %762 = vrot.lane.b32.xlu1 %v639_v63, %s3129_s16 }
 0x1e6   : > { %v649_v6 = vpop.permute.xlu0 %648 }
 0x1e7   : > { %v651_v5 = vpop.permute.xlu1 %650 }
 0x1e8   : > { %764 = vrot.lane.b32.xlu0 %v641_v2, %s3129_s16 }
 0x1e9   : > { %766 = vrot.lane.b32.xlu1 %v643_v1, %s3129_s16 }
 0x1ea   : > { %v653_v8 = vpop.permute.xlu0 %652 }
 0x1eb   : > { %v655_v7 = vpop.permute.xlu1 %654 }
 0x1ec   : > { %768 = vrot.lane.b32.xlu0 %v645_v4, %s3129_s16 }
 0x1ed   : > { %770 = vrot.lane.b32.xlu1 %v647_v3, %s3129_s16 }
 0x1ee   : > { %v657_v14 = vpop.permute.xlu0 %656 }
 0x1ef   : > { %v659_v9 = vpop.permute.xlu1 %658  ;;  %843 = vst.msk [vmem:[#allocation3] sm:$0xff] %vm842_vm4, %v657_v14 }
 0x1f0   : > { %844 = vst.msk [vmem:[#allocation3 + $0x10] sm:$0xff] %vm842_vm4, %v659_v9  ;;  %772 = vrot.lane.b32.xlu0 %v649_v6, %s3129_s16 }
 0x1f1   : > { %774 = vrot.lane.b32.xlu1 %v651_v5, %s3129_s16 }
 0x1f2   : > { %v661_v16 = vpop.permute.xlu0 %660 }
 0x1f3   : > { %v663_v15 = vpop.permute.xlu1 %662  ;;  %845 = vst.msk [vmem:[#allocation3 + $0x20] sm:$0xff] %vm842_vm4, %v661_v16 }
 0x1f4   : > { %846 = vst.msk [vmem:[#allocation3 + $0x30] sm:$0xff] %vm842_vm4, %v663_v15  ;;  %776 = vrot.lane.b32.xlu0 %v653_v8, %s3129_s16 }
 0x1f5   : > { %778 = vrot.lane.b32.xlu1 %v655_v7, %s3129_s16 }
 0x1f6   : > { %v665_v18 = vpop.permute.xlu0 %664 }
 0x1f7   : > { %v667_v17 = vpop.permute.xlu1 %666  ;;  %847 = vst.msk [vmem:[#allocation3 + $0x40] sm:$0xff] %vm842_vm4, %v665_v18 }
 0x1f8   : > { %848 = vst.msk [vmem:[#allocation3 + $0x50] sm:$0xff] %vm842_vm4, %v667_v17  ;;  %909 = vrot.lane.b32.xlu0 %v3238_v13, %s3113_s25 }
 0x1f9   : > { %911 = vrot.lane.b32.xlu1 %v3612_v19, %s3113_s25 }
 0x1fa   : > { %v669_v21 = vpop.permute.xlu0 %668 }
 0x1fb   : > { %v671_v20 = vpop.permute.xlu1 %670  ;;  %849 = vst.msk [vmem:[#allocation3 + $0x60] sm:$0xff] %vm842_vm4, %v669_v21 }
 0x1fc   : > { %850 = vst.msk [vmem:[#allocation3 + $0x70] sm:$0xff] %vm842_vm4, %v671_v20  ;;  %913 = vrot.lane.b32.xlu0 %v3238_v13, %s3114_s26 }
 0x1fd   : > { %915 = vrot.lane.b32.xlu1 %v3612_v19, %s3114_s26 }
 0x1fe   : > { %v673_v22 = vpop.permute.xlu0 %672 }
 0x1ff   : > { %v675_v10 = vpop.permute.xlu1 %674  ;;  %851 = vst.msk [vmem:[#allocation3 + $0x80] sm:$0xff] %vm842_vm4, %v673_v22 }
 0x200   : > { %852 = vst.msk [vmem:[#allocation3 + $0x90] sm:$0xff] %vm842_vm4, %v675_v10  ;;  %917 = vrot.lane.b32.xlu0 %v3238_v13, %s3115_s27 }
 0x201   : > { %919 = vrot.lane.b32.xlu1 %v3612_v19, %s3115_s27 }
 0x202   : > { %v677_v24 = vpop.permute.xlu0 %676 }
 0x203   : > { %v679_v23 = vpop.permute.xlu1 %678  ;;  %853 = vst.msk [vmem:[#allocation3 + $0xa0] sm:$0xff] %vm842_vm4, %v677_v24 }
 0x204   : > { %854 = vst.msk [vmem:[#allocation3 + $0xb0] sm:$0xff] %vm842_vm4, %v679_v23  ;;  %921 = vrot.lane.b32.xlu0 %v3238_v13, %s3116_s28 }
 0x205   : > { %923 = vrot.lane.b32.xlu1 %v3612_v19, %s3116_s28 }
 0x206   : > { %v681_v26 = vpop.permute.xlu0 %680 }
 0x207   : > { %v683_v25 = vpop.permute.xlu1 %682  ;;  %855 = vst.msk [vmem:[#allocation3 + $0xc0] sm:$0xff] %vm842_vm4, %v681_v26 }
 0x208   : > { %856 = vst.msk [vmem:[#allocation3 + $0xd0] sm:$0xff] %vm842_vm4, %v683_v25  ;;  %925 = vrot.lane.b32.xlu0 %v3238_v13, %s3117_s29 }
 0x209   : > { %927 = vrot.lane.b32.xlu1 %v3612_v19, %s3117_s29 }
 0x20a   : > { %v685_v28 = vpop.permute.xlu0 %684 }
 0x20b   : > { %v687_v27 = vpop.permute.xlu1 %686  ;;  %857 = vst.msk [vmem:[#allocation3 + $0xe0] sm:$0xff] %vm842_vm4, %v685_v28 }
 0x20c   : > { %858 = vst.msk [vmem:[#allocation3 + $0xf0] sm:$0xff] %vm842_vm4, %v687_v27  ;;  %929 = vrot.lane.b32.xlu0 %v3238_v13, %s3118_s30 }
 0x20d   : > { %931 = vrot.lane.b32.xlu1 %v3612_v19, %s3118_s30 }
 0x20e   : > { %v689_v30 = vpop.permute.xlu0 %688 }
 0x20f   : > { %v691_v29 = vpop.permute.xlu1 %690  ;;  %859 = vst.msk [vmem:[#allocation3 + $0x100] sm:$0xff] %vm842_vm4, %v689_v30 }
 0x210   : > { %860 = vst.msk [vmem:[#allocation3 + $0x110] sm:$0xff] %vm842_vm4, %v691_v29  ;;  %933 = vrot.lane.b32.xlu0 %v3238_v13, %s3119_s6 }
 0x211   : > { %935 = vrot.lane.b32.xlu1 %v3612_v19, %s3119_s6 }
 0x212   : > { %v693_v32 = vpop.permute.xlu0 %692 }
 0x213   : > { %v695_v31 = vpop.permute.xlu1 %694  ;;  %861 = vst.msk [vmem:[#allocation3 + $0x120] sm:$0xff] %vm842_vm4, %v693_v32 }
 0x214   : > { %862 = vst.msk [vmem:[#allocation3 + $0x130] sm:$0xff] %vm842_vm4, %v695_v31  ;;  %937 = vrot.lane.b32.xlu0 %v3238_v13, %s3120_s7 }
 0x215   : > { %939 = vrot.lane.b32.xlu1 %v3612_v19, %s3120_s7 }
 0x216   : > { %v697_v34 = vpop.permute.xlu0 %696 }
 0x217   : > { %v699_v33 = vpop.permute.xlu1 %698  ;;  %863 = vst.msk [vmem:[#allocation3 + $0x140] sm:$0xff] %vm842_vm4, %v697_v34 }
 0x218   : > { %864 = vst.msk [vmem:[#allocation3 + $0x150] sm:$0xff] %vm842_vm4, %v699_v33  ;;  %941 = vrot.lane.b32.xlu0 %v3238_v13, %s3121_s8 }
 0x219   : > { %943 = vrot.lane.b32.xlu1 %v3612_v19, %s3121_s8 }
 0x21a   : > { %v701_v36 = vpop.permute.xlu0 %700 }
 0x21b   : > { %v703_v35 = vpop.permute.xlu1 %702  ;;  %865 = vst.msk [vmem:[#allocation3 + $0x160] sm:$0xff] %vm842_vm4, %v701_v36 }
 0x21c   : > { %866 = vst.msk [vmem:[#allocation3 + $0x170] sm:$0xff] %vm842_vm4, %v703_v35  ;;  %945 = vrot.lane.b32.xlu0 %v3238_v13, %s3122_s9 }
 0x21d   : > { %947 = vrot.lane.b32.xlu1 %v3612_v19, %s3122_s9 }
 0x21e   : > { %v705_v38 = vpop.permute.xlu0 %704 }
 0x21f   : > { %v707_v37 = vpop.permute.xlu1 %706  ;;  %867 = vst.msk [vmem:[#allocation3 + $0x180] sm:$0xff] %vm842_vm4, %v705_v38 }
 0x220   : > { %868 = vst.msk [vmem:[#allocation3 + $0x190] sm:$0xff] %vm842_vm4, %v707_v37  ;;  %949 = vrot.lane.b32.xlu0 %v3238_v13, %s3123_s10 }
 0x221   : > { %951 = vrot.lane.b32.xlu1 %v3612_v19, %s3123_s10 }
 0x222   : > { %v709_v40 = vpop.permute.xlu0 %708 }
 0x223   : > { %v711_v39 = vpop.permute.xlu1 %710  ;;  %869 = vst.msk [vmem:[#allocation3 + $0x1a0] sm:$0xff] %vm842_vm4, %v709_v40 }
 0x224   : > { %870 = vst.msk [vmem:[#allocation3 + $0x1b0] sm:$0xff] %vm842_vm4, %v711_v39  ;;  %953 = vrot.lane.b32.xlu0 %v3238_v13, %s3124_s11 }
 0x225   : > { %955 = vrot.lane.b32.xlu1 %v3612_v19, %s3124_s11 }
 0x226   : > { %v713_v42 = vpop.permute.xlu0 %712 }
 0x227   : > { %v715_v41 = vpop.permute.xlu1 %714  ;;  %871 = vst.msk [vmem:[#allocation3 + $0x1c0] sm:$0xff] %vm842_vm4, %v713_v42  ;;  %v3101_v42 = vld [vmem:[#allocation2 + $0x10] sm:$0xff] }
 0x228   : > { %872 = vst.msk [vmem:[#allocation3 + $0x1d0] sm:$0xff] %vm842_vm4, %v715_v41  ;;  %957 = vrot.lane.b32.xlu0 %v3238_v13, %s3125_s12 }
 0x229   : > { %959 = vrot.lane.b32.xlu1 %v3612_v19, %s3125_s12 }
 0x22a   : > { %v717_v44 = vpop.permute.xlu0 %716 }
 0x22b   : > { %v719_v43 = vpop.permute.xlu1 %718  ;;  %873 = vst.msk [vmem:[#allocation3 + $0x1e0] sm:$0xff] %vm842_vm4, %v717_v44 }
 0x22c   : > { %874 = vst.msk [vmem:[#allocation3 + $0x1f0] sm:$0xff] %vm842_vm4, %v719_v43  ;;  %961 = vrot.lane.b32.xlu0 %v3238_v13, %s3126_s13 }
 0x22d   : > { %963 = vrot.lane.b32.xlu1 %v3612_v19, %s3126_s13 }
 0x22e   : > { %v721_v46 = vpop.permute.xlu0 %720 }
 0x22f   : > { %v723_v45 = vpop.permute.xlu1 %722  ;;  %875 = vst.msk [vmem:[#allocation3 + $0x200] sm:$0xff] %vm842_vm4, %v721_v46 }
 0x230   : > { %876 = vst.msk [vmem:[#allocation3 + $0x210] sm:$0xff] %vm842_vm4, %v723_v45  ;;  %965 = vrot.lane.b32.xlu0 %v3238_v13, %s3127_s14 }
 0x231   : > { %967 = vrot.lane.b32.xlu1 %v3612_v19, %s3127_s14 }
 0x232   : > { %v725_v48 = vpop.permute.xlu0 %724 }
 0x233   : > { %v727_v47 = vpop.permute.xlu1 %726  ;;  %877 = vst.msk [vmem:[#allocation3 + $0x220] sm:$0xff] %vm842_vm4, %v725_v48 }
 0x234   : > { %878 = vst.msk [vmem:[#allocation3 + $0x230] sm:$0xff] %vm842_vm4, %v727_v47  ;;  %969 = vrot.lane.b32.xlu0 %v3238_v13, %s3128_s15 }
 0x235   : > { %971 = vrot.lane.b32.xlu1 %v3612_v19, %s3128_s15 }
 0x236   : > { %v729_v50 = vpop.permute.xlu0 %728 }
 0x237   : > { %v731_v49 = vpop.permute.xlu1 %730  ;;  %879 = vst.msk [vmem:[#allocation3 + $0x240] sm:$0xff] %vm842_vm4, %v729_v50 }
 0x238   : > { %880 = vst.msk [vmem:[#allocation3 + $0x250] sm:$0xff] %vm842_vm4, %v731_v49 }
 0x23a   : > { %v733_v52 = vpop.permute.xlu0 %732 }
 0x23b   : > { %v735_v51 = vpop.permute.xlu1 %734  ;;  %881 = vst.msk [vmem:[#allocation3 + $0x260] sm:$0xff] %vm842_vm4, %v733_v52 }
 0x23c   : > { %882 = vst.msk [vmem:[#allocation3 + $0x270] sm:$0xff] %vm842_vm4, %v735_v51 }
 0x23e   : > { %v737_v54 = vpop.permute.xlu0 %736 }
 0x23f   : > { %v739_v53 = vpop.permute.xlu1 %738  ;;  %883 = vst.msk [vmem:[#allocation3 + $0x280] sm:$0xff] %vm842_vm4, %v737_v54 }
 0x240   : > { %884 = vst.msk [vmem:[#allocation3 + $0x290] sm:$0xff] %vm842_vm4, %v739_v53 }
 0x242   : > { %v741_v13 = vpop.permute.xlu0 %740 }
 0x243   : > { %v743_v55 = vpop.permute.xlu1 %742  ;;  %885 = vst.msk [vmem:[#allocation3 + $0x2a0] sm:$0xff] %vm842_vm4, %v741_v13 }
 0x244   : > { %886 = vst.msk [vmem:[#allocation3 + $0x2b0] sm:$0xff] %vm842_vm4, %v743_v55 }
 0x246   : > { %v745_v57 = vpop.permute.xlu0 %744 }
 0x247   : > { %v747_v56 = vpop.permute.xlu1 %746  ;;  %887 = vst.msk [vmem:[#allocation3 + $0x2c0] sm:$0xff] %vm842_vm4, %v745_v57 }
 0x248   : > { %888 = vst.msk [vmem:[#allocation3 + $0x2d0] sm:$0xff] %vm842_vm4, %v747_v56 }
 0x24a   : > { %v749_v59 = vpop.permute.xlu0 %748 }
 0x24b   : > { %v751_v58 = vpop.permute.xlu1 %750  ;;  %889 = vst.msk [vmem:[#allocation3 + $0x2e0] sm:$0xff] %vm842_vm4, %v749_v59 }
 0x24c   : > { %890 = vst.msk [vmem:[#allocation3 + $0x2f0] sm:$0xff] %vm842_vm4, %v751_v58 }
 0x24e   : > { %v753_v61 = vpop.permute.xlu0 %752 }
 0x24f   : > { %v755_v60 = vpop.permute.xlu1 %754  ;;  %891 = vst.msk [vmem:[#allocation3 + $0x300] sm:$0xff] %vm842_vm4, %v753_v61 }
 0x250   : > { %892 = vst.msk [vmem:[#allocation3 + $0x310] sm:$0xff] %vm842_vm4, %v755_v60 }
 0x252   : > { %v757_v63 = vpop.permute.xlu0 %756 }
 0x253   : > { %v759_v62 = vpop.permute.xlu1 %758  ;;  %893 = vst.msk [vmem:[#allocation3 + $0x320] sm:$0xff] %vm842_vm4, %v757_v63 }
 0x254   : > { %894 = vst.msk [vmem:[#allocation3 + $0x330] sm:$0xff] %vm842_vm4, %v759_v62 }
 0x256   : > { %v761_v1 = vpop.permute.xlu0 %760 }
 0x257   : > { %v763_v0 = vpop.permute.xlu1 %762  ;;  %895 = vst.msk [vmem:[#allocation3 + $0x340] sm:$0xff] %vm842_vm4, %v761_v1 }
 0x258   : > { %896 = vst.msk [vmem:[#allocation3 + $0x350] sm:$0xff] %vm842_vm4, %v763_v0 }
 0x25a   : > { %v765_v3 = vpop.permute.xlu0 %764 }
 0x25b   : > { %v767_v2 = vpop.permute.xlu1 %766  ;;  %897 = vst.msk [vmem:[#allocation3 + $0x360] sm:$0xff] %vm842_vm4, %v765_v3 }
 0x25c   : > { %898 = vst.msk [vmem:[#allocation3 + $0x370] sm:$0xff] %vm842_vm4, %v767_v2 }
 0x25e   : > { %v769_v5 = vpop.permute.xlu0 %768 }
 0x25f   : > { %v771_v4 = vpop.permute.xlu1 %770  ;;  %899 = vst.msk [vmem:[#allocation3 + $0x380] sm:$0xff] %vm842_vm4, %v769_v5 }
 0x260   : > { %900 = vst.msk [vmem:[#allocation3 + $0x390] sm:$0xff] %vm842_vm4, %v771_v4 }
 0x262   : > { %v773_v7 = vpop.permute.xlu0 %772 }
 0x263   : > { %v775_v6 = vpop.permute.xlu1 %774  ;;  %901 = vst.msk [vmem:[#allocation3 + $0x3a0] sm:$0xff] %vm842_vm4, %v773_v7 }
 0x264   : > { %902 = vst.msk [vmem:[#allocation3 + $0x3b0] sm:$0xff] %vm842_vm4, %v775_v6 }
 0x266   : > { %v777_v9 = vpop.permute.xlu0 %776 }
 0x267   : > { %v779_v8 = vpop.permute.xlu1 %778  ;;  %903 = vst.msk [vmem:[#allocation3 + $0x3c0] sm:$0xff] %vm842_vm4, %v777_v9 }
 0x268   : > { %904 = vst.msk [vmem:[#allocation3 + $0x3d0] sm:$0xff] %vm842_vm4, %v779_v8 }
 0x26a   : > { %v910_v15 = vpop.permute.xlu0 %909 }
 0x26b   : > { %v912_v14 = vpop.permute.xlu1 %911  ;;  %973 = vrot.lane.b32.xlu0 %v910_v15, %s3128_s15 }
 0x26c   : > { %975 = vrot.lane.b32.xlu1 %v912_v14, %s3128_s15 }
 0x26e   : > { %v914_v17 = vpop.permute.xlu0 %913 }
 0x26f   : > { %v916_v16 = vpop.permute.xlu1 %915  ;;  %977 = vrot.lane.b32.xlu0 %v914_v17, %s3128_s15 }
 0x270   : > { %979 = vrot.lane.b32.xlu1 %v916_v16, %s3128_s15 }
 0x272   : > { %v918_v20 = vpop.permute.xlu0 %917 }
 0x273   : > { %v920_v18 = vpop.permute.xlu1 %919  ;;  %981 = vrot.lane.b32.xlu0 %v918_v20, %s3128_s15 }
 0x274   : > { %983 = vrot.lane.b32.xlu1 %v920_v18, %s3128_s15 }
 0x276   : > { %v922_v10 = vpop.permute.xlu0 %921 }
 0x277   : > { %v924_v21 = vpop.permute.xlu1 %923  ;;  %985 = vrot.lane.b32.xlu0 %v922_v10, %s3128_s15 }
 0x278   : > { %987 = vrot.lane.b32.xlu1 %v924_v21, %s3128_s15 }
 0x27a   : > { %v926_v23 = vpop.permute.xlu0 %925 }
 0x27b   : > { %v928_v22 = vpop.permute.xlu1 %927  ;;  %989 = vrot.lane.b32.xlu0 %v926_v23, %s3128_s15 }
 0x27c   : > { %991 = vrot.lane.b32.xlu1 %v928_v22, %s3128_s15 }
 0x27e   : > { %v930_v25 = vpop.permute.xlu0 %929 }
 0x27f   : > { %v932_v24 = vpop.permute.xlu1 %931  ;;  %993 = vrot.lane.b32.xlu0 %v930_v25, %s3128_s15 }
 0x280   : > { %995 = vrot.lane.b32.xlu1 %v932_v24, %s3128_s15 }
 0x282   : > { %v934_v27 = vpop.permute.xlu0 %933 }
 0x283   : > { %v936_v26 = vpop.permute.xlu1 %935  ;;  %997 = vrot.lane.b32.xlu0 %v934_v27, %s3128_s15 }
 0x284   : > { %999 = vrot.lane.b32.xlu1 %v936_v26, %s3128_s15 }
 0x286   : > { %v938_v29 = vpop.permute.xlu0 %937 }
 0x287   : > { %v940_v28 = vpop.permute.xlu1 %939  ;;  %1001 = vrot.lane.b32.xlu0 %v938_v29, %s3128_s15 }
 0x288   : > { %1003 = vrot.lane.b32.xlu1 %v940_v28, %s3128_s15 }
 0x28a   : > { %v942_v31 = vpop.permute.xlu0 %941 }
 0x28b   : > { %v944_v30 = vpop.permute.xlu1 %943  ;;  %1005 = vrot.lane.b32.xlu0 %v942_v31, %s3128_s15 }
 0x28c   : > { %1007 = vrot.lane.b32.xlu1 %v944_v30, %s3128_s15 }
 0x28e   : > { %v946_v33 = vpop.permute.xlu0 %945 }
 0x28f   : > { %v948_v32 = vpop.permute.xlu1 %947  ;;  %1009 = vrot.lane.b32.xlu0 %v946_v33, %s3128_s15 }
 0x290   : > { %1011 = vrot.lane.b32.xlu1 %v948_v32, %s3128_s15 }
 0x292   : > { %v950_v35 = vpop.permute.xlu0 %949 }
 0x293   : > { %v952_v34 = vpop.permute.xlu1 %951  ;;  %1013 = vrot.lane.b32.xlu0 %v950_v35, %s3128_s15 }
 0x294   : > { %1015 = vrot.lane.b32.xlu1 %v952_v34, %s3128_s15 }
 0x296   : > { %v954_v37 = vpop.permute.xlu0 %953 }
 0x297   : > { %v956_v36 = vpop.permute.xlu1 %955  ;;  %1017 = vrot.lane.b32.xlu0 %v954_v37, %s3128_s15 }
 0x298   : > { %1019 = vrot.lane.b32.xlu1 %v956_v36, %s3128_s15 }
 0x29a   : > { %v958_v39 = vpop.permute.xlu0 %957 }
 0x29b   : > { %v960_v38 = vpop.permute.xlu1 %959  ;;  %1021 = vrot.lane.b32.xlu0 %v958_v39, %s3128_s15 }
 0x29c   : > { %1023 = vrot.lane.b32.xlu1 %v960_v38, %s3128_s15 }
 0x29e   : > { %v962_v41 = vpop.permute.xlu0 %961 }
 0x29f   : > { %v964_v40 = vpop.permute.xlu1 %963  ;;  %1025 = vrot.lane.b32.xlu0 %v962_v41, %s3128_s15 }
 0x2a0   : > { %1027 = vrot.lane.b32.xlu1 %v964_v40, %s3128_s15 }
 0x2a2   : > { %v966_v44 = vpop.permute.xlu0 %965 }
 0x2a3   : > { %1029 = vrot.lane.b32.xlu0 %v3101_v42, %s3130_s17  ;;  %v968_v43 = vpop.permute.xlu1 %967 }
 0x2a4   : > { %1031 = vrot.lane.b32.xlu1 %v3612_v19, %s3130_s17 }
 0x2a6   : > { %v970_v46 = vpop.permute.xlu0 %969 }
 0x2a7   : > { %1033 = vrot.lane.b32.xlu0 %v910_v15, %s3130_s17  ;;  %v972_v45 = vpop.permute.xlu1 %971 }
 0x2a8   : > { %1035 = vrot.lane.b32.xlu1 %v912_v14, %s3130_s17 }
 0x2ab   : > { %1037 = vrot.lane.b32.xlu0 %v914_v17, %s3130_s17 }
 0x2ac   : > { %1039 = vrot.lane.b32.xlu1 %v916_v16, %s3130_s17 }
 0x2af   : > { %1041 = vrot.lane.b32.xlu0 %v918_v20, %s3130_s17 }
 0x2b0   : > { %1043 = vrot.lane.b32.xlu1 %v920_v18, %s3130_s17 }
 0x2b3   : > { %1045 = vrot.lane.b32.xlu0 %v922_v10, %s3130_s17 }
 0x2b4   : > { %1047 = vrot.lane.b32.xlu1 %v924_v21, %s3130_s17 }
 0x2b7   : > { %1049 = vrot.lane.b32.xlu0 %v926_v23, %s3130_s17 }
 0x2b8   : > { %1051 = vrot.lane.b32.xlu1 %v928_v22, %s3130_s17 }
 0x2bb   : > { %1053 = vrot.lane.b32.xlu0 %v930_v25, %s3130_s17 }
 0x2bc   : > { %1055 = vrot.lane.b32.xlu1 %v932_v24, %s3130_s17 }
 0x2bf   : > { %1057 = vrot.lane.b32.xlu0 %v934_v27, %s3130_s17 }
 0x2c0   : > { %1059 = vrot.lane.b32.xlu1 %v936_v26, %s3130_s17 }
 0x2c3   : > { %1061 = vrot.lane.b32.xlu0 %v938_v29, %s3130_s17 }
 0x2c4   : > { %1063 = vrot.lane.b32.xlu1 %v940_v28, %s3130_s17 }
 0x2c7   : > { %1065 = vrot.lane.b32.xlu0 %v942_v31, %s3130_s17 }
 0x2c8   : > { %1067 = vrot.lane.b32.xlu1 %v944_v30, %s3130_s17 }
 0x2cb   : > { %1069 = vrot.lane.b32.xlu0 %v946_v33, %s3130_s17 }
 0x2cc   : > { %1071 = vrot.lane.b32.xlu1 %v948_v32, %s3130_s17 }
 0x2cf   : > { %1073 = vrot.lane.b32.xlu0 %v950_v35, %s3130_s17 }
 0x2d0   : > { %1075 = vrot.lane.b32.xlu1 %v952_v34, %s3130_s17 }
 0x2d3   : > { %1077 = vrot.lane.b32.xlu0 %v954_v37, %s3130_s17 }
 0x2d4   : > { %1079 = vrot.lane.b32.xlu1 %v956_v36, %s3130_s17 }
 0x2d7   : > { %1081 = vrot.lane.b32.xlu0 %v958_v39, %s3130_s17 }
 0x2d8   : > { %1083 = vrot.lane.b32.xlu1 %v960_v38, %s3130_s17 }
 0x2db   : > { %1085 = vrot.lane.b32.xlu0 %v962_v41, %s3130_s17 }
 0x2dc   : > { %1087 = vrot.lane.b32.xlu1 %v964_v40, %s3130_s17 }
 0x2dd   : > { %v974_v48 = vpop.permute.xlu0 %973 }
 0x2de   : > { %v976_v47 = vpop.permute.xlu1 %975 }
 0x2df   : > { %1089 = vrot.lane.b32.xlu0 %v966_v44, %s3130_s17 }
 0x2e0   : > { %1091 = vrot.lane.b32.xlu1 %v968_v43, %s3130_s17 }
 0x2e1   : > { %v978_v50 = vpop.permute.xlu0 %977 }
 0x2e2   : > { %v980_v49 = vpop.permute.xlu1 %979 }
 0x2e3   : > { %1093 = vrot.lane.b32.xlu0 %v970_v46, %s3130_s17 }
 0x2e4   : > { %1095 = vrot.lane.b32.xlu1 %v972_v45, %s3130_s17 }
 0x2e5   : > { %v982_v52 = vpop.permute.xlu0 %981 }
 0x2e6   : > { %v984_v51 = vpop.permute.xlu1 %983 }
 0x2e7   : > { %1097 = vrot.lane.b32.xlu0 %v974_v48, %s3130_s17 }
 0x2e8   : > { %1099 = vrot.lane.b32.xlu1 %v976_v47, %s3130_s17 }
 0x2e9   : > { %v986_v54 = vpop.permute.xlu0 %985 }
 0x2ea   : > { %v988_v53 = vpop.permute.xlu1 %987 }
 0x2eb   : > { %1101 = vrot.lane.b32.xlu0 %v978_v50, %s3130_s17 }
 0x2ec   : > { %1103 = vrot.lane.b32.xlu1 %v980_v49, %s3130_s17 }
 0x2ed   : > { %v990_v13 = vpop.permute.xlu0 %989 }
 0x2ee   : > { %v992_v55 = vpop.permute.xlu1 %991 }
 0x2ef   : > { %1105 = vrot.lane.b32.xlu0 %v982_v52, %s3130_s17 }
 0x2f0   : > { %1107 = vrot.lane.b32.xlu1 %v984_v51, %s3130_s17 }
 0x2f1   : > { %v994_v57 = vpop.permute.xlu0 %993 }
 0x2f2   : > { %v996_v56 = vpop.permute.xlu1 %995 }
 0x2f3   : > { %1109 = vrot.lane.b32.xlu0 %v986_v54, %s3130_s17 }
 0x2f4   : > { %1111 = vrot.lane.b32.xlu1 %v988_v53, %s3130_s17 }
 0x2f5   : > { %v998_v59 = vpop.permute.xlu0 %997 }
 0x2f6   : > { %v1000_v58 = vpop.permute.xlu1 %999 }
 0x2f7   : > { %1113 = vrot.lane.b32.xlu0 %v990_v13, %s3130_s17 }
 0x2f8   : > { %1115 = vrot.lane.b32.xlu1 %v992_v55, %s3130_s17 }
 0x2f9   : > { %v1002_v61 = vpop.permute.xlu0 %1001 }
 0x2fa   : > { %v1004_v60 = vpop.permute.xlu1 %1003 }
 0x2fb   : > { %1117 = vrot.lane.b32.xlu0 %v994_v57, %s3130_s17 }
 0x2fc   : > { %1119 = vrot.lane.b32.xlu1 %v996_v56, %s3130_s17 }
 0x2fd   : > { %v1006_v63 = vpop.permute.xlu0 %1005 }
 0x2fe   : > { %v1008_v62 = vpop.permute.xlu1 %1007 }
 0x2ff   : > { %1121 = vrot.lane.b32.xlu0 %v998_v59, %s3130_s17 }
 0x300   : > { %1123 = vrot.lane.b32.xlu1 %v1000_v58, %s3130_s17 }
 0x301   : > { %v1010_v1 = vpop.permute.xlu0 %1009 }
 0x302   : > { %v1012_v0 = vpop.permute.xlu1 %1011 }
 0x303   : > { %1125 = vrot.lane.b32.xlu0 %v1002_v61, %s3130_s17 }
 0x304   : > { %1127 = vrot.lane.b32.xlu1 %v1004_v60, %s3130_s17 }
 0x305   : > { %v1014_v3 = vpop.permute.xlu0 %1013 }
 0x306   : > { %v1016_v2 = vpop.permute.xlu1 %1015 }
 0x307   : > { %1129 = vrot.lane.b32.xlu0 %v1006_v63, %s3130_s17 }
 0x308   : > { %1131 = vrot.lane.b32.xlu1 %v1008_v62, %s3130_s17 }
 0x309   : > { %v1018_v5 = vpop.permute.xlu0 %1017 }
 0x30a   : > { %v1020_v4 = vpop.permute.xlu1 %1019 }
 0x30b   : > { %1133 = vrot.lane.b32.xlu0 %v1010_v1, %s3130_s17 }
 0x30c   : > { %1135 = vrot.lane.b32.xlu1 %v1012_v0, %s3130_s17 }
 0x30d   : > { %v1022_v7 = vpop.permute.xlu0 %1021 }
 0x30e   : > { %v1024_v6 = vpop.permute.xlu1 %1023 }
 0x30f   : > { %1137 = vrot.lane.b32.xlu0 %v1014_v3, %s3130_s17 }
 0x310   : > { %1139 = vrot.lane.b32.xlu1 %v1016_v2, %s3130_s17 }
 0x311   : > { %v1026_v9 = vpop.permute.xlu0 %1025 }
 0x312   : > { %v1028_v8 = vpop.permute.xlu1 %1027 }
 0x313   : > { %1141 = vrot.lane.b32.xlu0 %v1018_v5, %s3130_s17 }
 0x314   : > { %1143 = vrot.lane.b32.xlu1 %v1020_v4, %s3130_s17 }
 0x315   : > { %v1030_v15 = vpop.permute.xlu0 %1029 }
 0x316   : > { %v1032_v14 = vpop.permute.xlu1 %1031  ;;  %1216 = vst.msk [vmem:[#allocation3] sm:$0xff] %vm1215_vm5, %v1030_v15 }
 0x317   : > { %1217 = vst.msk [vmem:[#allocation3 + $0x10] sm:$0xff] %vm1215_vm5, %v1032_v14  ;;  %1145 = vrot.lane.b32.xlu0 %v1022_v7, %s3130_s17 }
 0x318   : > { %1147 = vrot.lane.b32.xlu1 %v1024_v6, %s3130_s17 }
 0x319   : > { %v1034_v17 = vpop.permute.xlu0 %1033 }
 0x31a   : > { %v1036_v16 = vpop.permute.xlu1 %1035  ;;  %1218 = vst.msk [vmem:[#allocation3 + $0x20] sm:$0xff] %vm1215_vm5, %v1034_v17 }
 0x31b   : > { %1219 = vst.msk [vmem:[#allocation3 + $0x30] sm:$0xff] %vm1215_vm5, %v1036_v16  ;;  %1149 = vrot.lane.b32.xlu0 %v1026_v9, %s3130_s17 }
 0x31c   : > { %1151 = vrot.lane.b32.xlu1 %v1028_v8, %s3130_s17 }
 0x31d   : > { %v1038_v20 = vpop.permute.xlu0 %1037 }
 0x31e   : > { %v1040_v18 = vpop.permute.xlu1 %1039  ;;  %1220 = vst.msk [vmem:[#allocation3 + $0x40] sm:$0xff] %vm1215_vm5, %v1038_v20 }
 0x31f   : > { %1221 = vst.msk [vmem:[#allocation3 + $0x50] sm:$0xff] %vm1215_vm5, %v1040_v18  ;;  %1282 = vrot.lane.b32.xlu0 %v3612_v19, %s3113_s25 }
 0x320   : > { %1284 = vrot.lane.b32.xlu1 %v3179_v11, %s3113_s25 }
 0x321   : > { %v1042_v10 = vpop.permute.xlu0 %1041 }
 0x322   : > { %v1044_v21 = vpop.permute.xlu1 %1043  ;;  %1222 = vst.msk [vmem:[#allocation3 + $0x60] sm:$0xff] %vm1215_vm5, %v1042_v10 }
 0x323   : > { %1223 = vst.msk [vmem:[#allocation3 + $0x70] sm:$0xff] %vm1215_vm5, %v1044_v21  ;;  %1286 = vrot.lane.b32.xlu0 %v3612_v19, %s3114_s26 }
 0x324   : > { %1288 = vrot.lane.b32.xlu1 %v3179_v11, %s3114_s26 }
 0x325   : > { %v1046_v23 = vpop.permute.xlu0 %1045 }
 0x326   : > { %v1048_v22 = vpop.permute.xlu1 %1047  ;;  %1224 = vst.msk [vmem:[#allocation3 + $0x80] sm:$0xff] %vm1215_vm5, %v1046_v23 }
 0x327   : > { %1225 = vst.msk [vmem:[#allocation3 + $0x90] sm:$0xff] %vm1215_vm5, %v1048_v22  ;;  %1290 = vrot.lane.b32.xlu0 %v3612_v19, %s3115_s27 }
 0x328   : > { %1292 = vrot.lane.b32.xlu1 %v3179_v11, %s3115_s27 }
 0x329   : > { %v1050_v25 = vpop.permute.xlu0 %1049 }
 0x32a   : > { %v1052_v24 = vpop.permute.xlu1 %1051  ;;  %1226 = vst.msk [vmem:[#allocation3 + $0xa0] sm:$0xff] %vm1215_vm5, %v1050_v25 }
 0x32b   : > { %1227 = vst.msk [vmem:[#allocation3 + $0xb0] sm:$0xff] %vm1215_vm5, %v1052_v24  ;;  %1294 = vrot.lane.b32.xlu0 %v3612_v19, %s3116_s28 }
 0x32c   : > { %1296 = vrot.lane.b32.xlu1 %v3179_v11, %s3116_s28 }
 0x32d   : > { %v1054_v27 = vpop.permute.xlu0 %1053 }
 0x32e   : > { %v1056_v26 = vpop.permute.xlu1 %1055  ;;  %1228 = vst.msk [vmem:[#allocation3 + $0xc0] sm:$0xff] %vm1215_vm5, %v1054_v27 }
 0x32f   : > { %1229 = vst.msk [vmem:[#allocation3 + $0xd0] sm:$0xff] %vm1215_vm5, %v1056_v26  ;;  %1298 = vrot.lane.b32.xlu0 %v3612_v19, %s3117_s29 }
 0x330   : > { %1300 = vrot.lane.b32.xlu1 %v3179_v11, %s3117_s29 }
 0x331   : > { %v1058_v29 = vpop.permute.xlu0 %1057 }
 0x332   : > { %v1060_v28 = vpop.permute.xlu1 %1059  ;;  %1230 = vst.msk [vmem:[#allocation3 + $0xe0] sm:$0xff] %vm1215_vm5, %v1058_v29 }
 0x333   : > { %1231 = vst.msk [vmem:[#allocation3 + $0xf0] sm:$0xff] %vm1215_vm5, %v1060_v28  ;;  %1302 = vrot.lane.b32.xlu0 %v3612_v19, %s3118_s30 }
 0x334   : > { %1304 = vrot.lane.b32.xlu1 %v3179_v11, %s3118_s30 }
 0x335   : > { %v1062_v31 = vpop.permute.xlu0 %1061 }
 0x336   : > { %v1064_v30 = vpop.permute.xlu1 %1063  ;;  %1232 = vst.msk [vmem:[#allocation3 + $0x100] sm:$0xff] %vm1215_vm5, %v1062_v31 }
 0x337   : > { %1233 = vst.msk [vmem:[#allocation3 + $0x110] sm:$0xff] %vm1215_vm5, %v1064_v30  ;;  %1306 = vrot.lane.b32.xlu0 %v3612_v19, %s3119_s6 }
 0x338   : > { %1308 = vrot.lane.b32.xlu1 %v3179_v11, %s3119_s6 }
 0x339   : > { %v1066_v33 = vpop.permute.xlu0 %1065 }
 0x33a   : > { %v1068_v32 = vpop.permute.xlu1 %1067  ;;  %1234 = vst.msk [vmem:[#allocation3 + $0x120] sm:$0xff] %vm1215_vm5, %v1066_v33 }
 0x33b   : > { %1235 = vst.msk [vmem:[#allocation3 + $0x130] sm:$0xff] %vm1215_vm5, %v1068_v32  ;;  %1310 = vrot.lane.b32.xlu0 %v3612_v19, %s3120_s7 }
 0x33c   : > { %1312 = vrot.lane.b32.xlu1 %v3179_v11, %s3120_s7 }
 0x33d   : > { %v1070_v35 = vpop.permute.xlu0 %1069 }
 0x33e   : > { %v1072_v34 = vpop.permute.xlu1 %1071  ;;  %1236 = vst.msk [vmem:[#allocation3 + $0x140] sm:$0xff] %vm1215_vm5, %v1070_v35 }
 0x33f   : > { %1237 = vst.msk [vmem:[#allocation3 + $0x150] sm:$0xff] %vm1215_vm5, %v1072_v34  ;;  %1314 = vrot.lane.b32.xlu0 %v3612_v19, %s3121_s8 }
 0x340   : > { %1316 = vrot.lane.b32.xlu1 %v3179_v11, %s3121_s8 }
 0x341   : > { %v1074_v37 = vpop.permute.xlu0 %1073 }
 0x342   : > { %v1076_v36 = vpop.permute.xlu1 %1075  ;;  %1238 = vst.msk [vmem:[#allocation3 + $0x160] sm:$0xff] %vm1215_vm5, %v1074_v37 }
 0x343   : > { %1239 = vst.msk [vmem:[#allocation3 + $0x170] sm:$0xff] %vm1215_vm5, %v1076_v36  ;;  %1318 = vrot.lane.b32.xlu0 %v3612_v19, %s3122_s9 }
 0x344   : > { %1320 = vrot.lane.b32.xlu1 %v3179_v11, %s3122_s9 }
 0x345   : > { %v1078_v39 = vpop.permute.xlu0 %1077 }
 0x346   : > { %v1080_v38 = vpop.permute.xlu1 %1079  ;;  %1240 = vst.msk [vmem:[#allocation3 + $0x180] sm:$0xff] %vm1215_vm5, %v1078_v39 }
 0x347   : > { %1241 = vst.msk [vmem:[#allocation3 + $0x190] sm:$0xff] %vm1215_vm5, %v1080_v38  ;;  %1322 = vrot.lane.b32.xlu0 %v3612_v19, %s3123_s10 }
 0x348   : > { %1324 = vrot.lane.b32.xlu1 %v3179_v11, %s3123_s10 }
 0x349   : > { %v1082_v41 = vpop.permute.xlu0 %1081 }
 0x34a   : > { %v1084_v40 = vpop.permute.xlu1 %1083  ;;  %1242 = vst.msk [vmem:[#allocation3 + $0x1a0] sm:$0xff] %vm1215_vm5, %v1082_v41 }
 0x34b   : > { %1243 = vst.msk [vmem:[#allocation3 + $0x1b0] sm:$0xff] %vm1215_vm5, %v1084_v40  ;;  %1326 = vrot.lane.b32.xlu0 %v3612_v19, %s3124_s11 }
 0x34c   : > { %1328 = vrot.lane.b32.xlu1 %v3179_v11, %s3124_s11 }
 0x34d   : > { %v1086_v43 = vpop.permute.xlu0 %1085 }
 0x34e   : > { %v1088_v42 = vpop.permute.xlu1 %1087  ;;  %1244 = vst.msk [vmem:[#allocation3 + $0x1c0] sm:$0xff] %vm1215_vm5, %v1086_v43 }
 0x34f   : > { %1245 = vst.msk [vmem:[#allocation3 + $0x1d0] sm:$0xff] %vm1215_vm5, %v1088_v42  ;;  %1330 = vrot.lane.b32.xlu0 %v3612_v19, %s3125_s12  ;;  %v3102_v42 = vld [vmem:[#allocation2 + $0x18] sm:$0xff] }
 0x350   : > { %1332 = vrot.lane.b32.xlu1 %v3179_v11, %s3125_s12 }
 0x351   : > { %v1090_v45 = vpop.permute.xlu0 %1089 }
 0x352   : > { %v1092_v44 = vpop.permute.xlu1 %1091  ;;  %1246 = vst.msk [vmem:[#allocation3 + $0x1e0] sm:$0xff] %vm1215_vm5, %v1090_v45 }
 0x353   : > { %1247 = vst.msk [vmem:[#allocation3 + $0x1f0] sm:$0xff] %vm1215_vm5, %v1092_v44  ;;  %1334 = vrot.lane.b32.xlu0 %v3612_v19, %s3126_s13 }
 0x354   : > { %1336 = vrot.lane.b32.xlu1 %v3179_v11, %s3126_s13 }
 0x355   : > { %v1094_v47 = vpop.permute.xlu0 %1093 }
 0x356   : > { %v1096_v46 = vpop.permute.xlu1 %1095  ;;  %1248 = vst.msk [vmem:[#allocation3 + $0x200] sm:$0xff] %vm1215_vm5, %v1094_v47 }
 0x357   : > { %1249 = vst.msk [vmem:[#allocation3 + $0x210] sm:$0xff] %vm1215_vm5, %v1096_v46  ;;  %1338 = vrot.lane.b32.xlu0 %v3612_v19, %s3127_s14 }
 0x358   : > { %1340 = vrot.lane.b32.xlu1 %v3179_v11, %s3127_s14 }
 0x359   : > { %v1098_v49 = vpop.permute.xlu0 %1097 }
 0x35a   : > { %v1100_v48 = vpop.permute.xlu1 %1099  ;;  %1250 = vst.msk [vmem:[#allocation3 + $0x220] sm:$0xff] %vm1215_vm5, %v1098_v49 }
 0x35b   : > { %1251 = vst.msk [vmem:[#allocation3 + $0x230] sm:$0xff] %vm1215_vm5, %v1100_v48  ;;  %1342 = vrot.lane.b32.xlu0 %v3612_v19, %s3128_s15 }
 0x35c   : > { %1344 = vrot.lane.b32.xlu1 %v3179_v11, %s3128_s15 }
 0x35d   : > { %v1102_v51 = vpop.permute.xlu0 %1101 }
 0x35e   : > { %v1104_v50 = vpop.permute.xlu1 %1103  ;;  %1252 = vst.msk [vmem:[#allocation3 + $0x240] sm:$0xff] %vm1215_vm5, %v1102_v51 }
 0x35f   : > { %1253 = vst.msk [vmem:[#allocation3 + $0x250] sm:$0xff] %vm1215_vm5, %v1104_v50 }
 0x361   : > { %v1106_v53 = vpop.permute.xlu0 %1105 }
 0x362   : > { %v1108_v52 = vpop.permute.xlu1 %1107  ;;  %1254 = vst.msk [vmem:[#allocation3 + $0x260] sm:$0xff] %vm1215_vm5, %v1106_v53 }
 0x363   : > { %1255 = vst.msk [vmem:[#allocation3 + $0x270] sm:$0xff] %vm1215_vm5, %v1108_v52 }
 0x365   : > { %v1110_v55 = vpop.permute.xlu0 %1109 }
 0x366   : > { %v1112_v54 = vpop.permute.xlu1 %1111  ;;  %1256 = vst.msk [vmem:[#allocation3 + $0x280] sm:$0xff] %vm1215_vm5, %v1110_v55 }
 0x367   : > { %1257 = vst.msk [vmem:[#allocation3 + $0x290] sm:$0xff] %vm1215_vm5, %v1112_v54 }
 0x369   : > { %v1114_v19 = vpop.permute.xlu0 %1113 }
 0x36a   : > { %v1116_v13 = vpop.permute.xlu1 %1115  ;;  %1258 = vst.msk [vmem:[#allocation3 + $0x2a0] sm:$0xff] %vm1215_vm5, %v1114_v19 }
 0x36b   : > { %1259 = vst.msk [vmem:[#allocation3 + $0x2b0] sm:$0xff] %vm1215_vm5, %v1116_v13 }
 0x36d   : > { %v1118_v57 = vpop.permute.xlu0 %1117 }
 0x36e   : > { %v1120_v56 = vpop.permute.xlu1 %1119  ;;  %1260 = vst.msk [vmem:[#allocation3 + $0x2c0] sm:$0xff] %vm1215_vm5, %v1118_v57 }
 0x36f   : > { %1261 = vst.msk [vmem:[#allocation3 + $0x2d0] sm:$0xff] %vm1215_vm5, %v1120_v56 }
 0x371   : > { %v1122_v59 = vpop.permute.xlu0 %1121 }
 0x372   : > { %v1124_v58 = vpop.permute.xlu1 %1123  ;;  %1262 = vst.msk [vmem:[#allocation3 + $0x2e0] sm:$0xff] %vm1215_vm5, %v1122_v59 }
 0x373   : > { %1263 = vst.msk [vmem:[#allocation3 + $0x2f0] sm:$0xff] %vm1215_vm5, %v1124_v58 }
 0x375   : > { %v1126_v61 = vpop.permute.xlu0 %1125 }
 0x376   : > { %v1128_v60 = vpop.permute.xlu1 %1127  ;;  %1264 = vst.msk [vmem:[#allocation3 + $0x300] sm:$0xff] %vm1215_vm5, %v1126_v61 }
 0x377   : > { %1265 = vst.msk [vmem:[#allocation3 + $0x310] sm:$0xff] %vm1215_vm5, %v1128_v60 }
 0x379   : > { %v1130_v63 = vpop.permute.xlu0 %1129 }
 0x37a   : > { %v1132_v62 = vpop.permute.xlu1 %1131  ;;  %1266 = vst.msk [vmem:[#allocation3 + $0x320] sm:$0xff] %vm1215_vm5, %v1130_v63 }
 0x37b   : > { %1267 = vst.msk [vmem:[#allocation3 + $0x330] sm:$0xff] %vm1215_vm5, %v1132_v62 }
 0x37d   : > { %v1134_v1 = vpop.permute.xlu0 %1133 }
 0x37e   : > { %v1136_v0 = vpop.permute.xlu1 %1135  ;;  %1268 = vst.msk [vmem:[#allocation3 + $0x340] sm:$0xff] %vm1215_vm5, %v1134_v1 }
 0x37f   : > { %1269 = vst.msk [vmem:[#allocation3 + $0x350] sm:$0xff] %vm1215_vm5, %v1136_v0 }
 0x381   : > { %v1138_v3 = vpop.permute.xlu0 %1137 }
 0x382   : > { %v1140_v2 = vpop.permute.xlu1 %1139  ;;  %1270 = vst.msk [vmem:[#allocation3 + $0x360] sm:$0xff] %vm1215_vm5, %v1138_v3 }
 0x383   : > { %1271 = vst.msk [vmem:[#allocation3 + $0x370] sm:$0xff] %vm1215_vm5, %v1140_v2 }
 0x385   : > { %v1142_v5 = vpop.permute.xlu0 %1141 }
 0x386   : > { %v1144_v4 = vpop.permute.xlu1 %1143  ;;  %1272 = vst.msk [vmem:[#allocation3 + $0x380] sm:$0xff] %vm1215_vm5, %v1142_v5 }
 0x387   : > { %1273 = vst.msk [vmem:[#allocation3 + $0x390] sm:$0xff] %vm1215_vm5, %v1144_v4 }
 0x389   : > { %v1146_v7 = vpop.permute.xlu0 %1145 }
 0x38a   : > { %v1148_v6 = vpop.permute.xlu1 %1147  ;;  %1274 = vst.msk [vmem:[#allocation3 + $0x3a0] sm:$0xff] %vm1215_vm5, %v1146_v7 }
 0x38b   : > { %1275 = vst.msk [vmem:[#allocation3 + $0x3b0] sm:$0xff] %vm1215_vm5, %v1148_v6 }
 0x38d   : > { %v1150_v9 = vpop.permute.xlu0 %1149 }
 0x38e   : > { %v1152_v8 = vpop.permute.xlu1 %1151  ;;  %1276 = vst.msk [vmem:[#allocation3 + $0x3c0] sm:$0xff] %vm1215_vm5, %v1150_v9 }
 0x38f   : > { %1277 = vst.msk [vmem:[#allocation3 + $0x3d0] sm:$0xff] %vm1215_vm5, %v1152_v8 }
 0x391   : > { %v1283_v15 = vpop.permute.xlu0 %1282 }
 0x392   : > { %v1285_v14 = vpop.permute.xlu1 %1284  ;;  %1346 = vrot.lane.b32.xlu0 %v1283_v15, %s3128_s15 }
 0x393   : > { %1348 = vrot.lane.b32.xlu1 %v1285_v14, %s3128_s15 }
 0x395   : > { %v1287_v17 = vpop.permute.xlu0 %1286 }
 0x396   : > { %v1289_v16 = vpop.permute.xlu1 %1288  ;;  %1350 = vrot.lane.b32.xlu0 %v1287_v17, %s3128_s15 }
 0x397   : > { %1352 = vrot.lane.b32.xlu1 %v1289_v16, %s3128_s15 }
 0x399   : > { %v1291_v20 = vpop.permute.xlu0 %1290 }
 0x39a   : > { %v1293_v18 = vpop.permute.xlu1 %1292  ;;  %1354 = vrot.lane.b32.xlu0 %v1291_v20, %s3128_s15 }
 0x39b   : > { %1356 = vrot.lane.b32.xlu1 %v1293_v18, %s3128_s15 }
 0x39d   : > { %v1295_v10 = vpop.permute.xlu0 %1294 }
 0x39e   : > { %v1297_v21 = vpop.permute.xlu1 %1296  ;;  %1358 = vrot.lane.b32.xlu0 %v1295_v10, %s3128_s15 }
 0x39f   : > { %1360 = vrot.lane.b32.xlu1 %v1297_v21, %s3128_s15 }
 0x3a1   : > { %v1299_v23 = vpop.permute.xlu0 %1298 }
 0x3a2   : > { %v1301_v22 = vpop.permute.xlu1 %1300  ;;  %1362 = vrot.lane.b32.xlu0 %v1299_v23, %s3128_s15 }
 0x3a3   : > { %1364 = vrot.lane.b32.xlu1 %v1301_v22, %s3128_s15 }
 0x3a5   : > { %v1303_v25 = vpop.permute.xlu0 %1302 }
 0x3a6   : > { %v1305_v24 = vpop.permute.xlu1 %1304  ;;  %1366 = vrot.lane.b32.xlu0 %v1303_v25, %s3128_s15 }
 0x3a7   : > { %1368 = vrot.lane.b32.xlu1 %v1305_v24, %s3128_s15 }
 0x3a9   : > { %v1307_v27 = vpop.permute.xlu0 %1306 }
 0x3aa   : > { %v1309_v26 = vpop.permute.xlu1 %1308  ;;  %1370 = vrot.lane.b32.xlu0 %v1307_v27, %s3128_s15 }
 0x3ab   : > { %1372 = vrot.lane.b32.xlu1 %v1309_v26, %s3128_s15 }
 0x3ad   : > { %v1311_v29 = vpop.permute.xlu0 %1310 }
 0x3ae   : > { %v1313_v28 = vpop.permute.xlu1 %1312  ;;  %1374 = vrot.lane.b32.xlu0 %v1311_v29, %s3128_s15 }
 0x3af   : > { %1376 = vrot.lane.b32.xlu1 %v1313_v28, %s3128_s15 }
 0x3b1   : > { %v1315_v31 = vpop.permute.xlu0 %1314 }
 0x3b2   : > { %v1317_v30 = vpop.permute.xlu1 %1316  ;;  %1378 = vrot.lane.b32.xlu0 %v1315_v31, %s3128_s15 }
 0x3b3   : > { %1380 = vrot.lane.b32.xlu1 %v1317_v30, %s3128_s15 }
 0x3b5   : > { %v1319_v33 = vpop.permute.xlu0 %1318 }
 0x3b6   : > { %v1321_v32 = vpop.permute.xlu1 %1320  ;;  %1382 = vrot.lane.b32.xlu0 %v1319_v33, %s3128_s15 }
 0x3b7   : > { %1384 = vrot.lane.b32.xlu1 %v1321_v32, %s3128_s15 }
 0x3b9   : > { %v1323_v35 = vpop.permute.xlu0 %1322 }
 0x3ba   : > { %v1325_v34 = vpop.permute.xlu1 %1324  ;;  %1386 = vrot.lane.b32.xlu0 %v1323_v35, %s3128_s15 }
 0x3bb   : > { %1388 = vrot.lane.b32.xlu1 %v1325_v34, %s3128_s15 }
 0x3bd   : > { %v1327_v37 = vpop.permute.xlu0 %1326 }
 0x3be   : > { %v1329_v36 = vpop.permute.xlu1 %1328  ;;  %1390 = vrot.lane.b32.xlu0 %v1327_v37, %s3128_s15 }
 0x3bf   : > { %1392 = vrot.lane.b32.xlu1 %v1329_v36, %s3128_s15 }
 0x3c1   : > { %v1331_v39 = vpop.permute.xlu0 %1330 }
 0x3c2   : > { %v1333_v38 = vpop.permute.xlu1 %1332  ;;  %1394 = vrot.lane.b32.xlu0 %v1331_v39, %s3128_s15 }
 0x3c3   : > { %1396 = vrot.lane.b32.xlu1 %v1333_v38, %s3128_s15 }
 0x3c5   : > { %v1335_v41 = vpop.permute.xlu0 %1334 }
 0x3c6   : > { %v1337_v40 = vpop.permute.xlu1 %1336  ;;  %1398 = vrot.lane.b32.xlu0 %v1335_v41, %s3128_s15 }
 0x3c7   : > { %1400 = vrot.lane.b32.xlu1 %v1337_v40, %s3128_s15 }
 0x3c9   : > { %v1339_v44 = vpop.permute.xlu0 %1338 }
 0x3ca   : > { %1402 = vrot.lane.b32.xlu0 %v3102_v42, %s3131_s20  ;;  %v1341_v43 = vpop.permute.xlu1 %1340 }
 0x3cb   : > { %1404 = vrot.lane.b32.xlu1 %v3179_v11, %s3131_s20 }
 0x3cd   : > { %v1343_v46 = vpop.permute.xlu0 %1342 }
 0x3ce   : > { %1406 = vrot.lane.b32.xlu0 %v1283_v15, %s3131_s20  ;;  %v1345_v45 = vpop.permute.xlu1 %1344 }
 0x3cf   : > { %1408 = vrot.lane.b32.xlu1 %v1285_v14, %s3131_s20 }
 0x3d2   : > { %1410 = vrot.lane.b32.xlu0 %v1287_v17, %s3131_s20 }
 0x3d3   : > { %1412 = vrot.lane.b32.xlu1 %v1289_v16, %s3131_s20 }
 0x3d6   : > { %1414 = vrot.lane.b32.xlu0 %v1291_v20, %s3131_s20 }
 0x3d7   : > { %1416 = vrot.lane.b32.xlu1 %v1293_v18, %s3131_s20 }
 0x3da   : > { %1418 = vrot.lane.b32.xlu0 %v1295_v10, %s3131_s20 }
 0x3db   : > { %1420 = vrot.lane.b32.xlu1 %v1297_v21, %s3131_s20 }
 0x3de   : > { %1422 = vrot.lane.b32.xlu0 %v1299_v23, %s3131_s20 }
 0x3df   : > { %1424 = vrot.lane.b32.xlu1 %v1301_v22, %s3131_s20 }
 0x3e2   : > { %1426 = vrot.lane.b32.xlu0 %v1303_v25, %s3131_s20 }
 0x3e3   : > { %1428 = vrot.lane.b32.xlu1 %v1305_v24, %s3131_s20 }
 0x3e6   : > { %1430 = vrot.lane.b32.xlu0 %v1307_v27, %s3131_s20 }
 0x3e7   : > { %1432 = vrot.lane.b32.xlu1 %v1309_v26, %s3131_s20 }
 0x3ea   : > { %1434 = vrot.lane.b32.xlu0 %v1311_v29, %s3131_s20 }
 0x3eb   : > { %1436 = vrot.lane.b32.xlu1 %v1313_v28, %s3131_s20 }
 0x3ee   : > { %1438 = vrot.lane.b32.xlu0 %v1315_v31, %s3131_s20 }
 0x3ef   : > { %1440 = vrot.lane.b32.xlu1 %v1317_v30, %s3131_s20 }
 0x3f2   : > { %1442 = vrot.lane.b32.xlu0 %v1319_v33, %s3131_s20 }
 0x3f3   : > { %1444 = vrot.lane.b32.xlu1 %v1321_v32, %s3131_s20 }
 0x3f6   : > { %1446 = vrot.lane.b32.xlu0 %v1323_v35, %s3131_s20 }
 0x3f7   : > { %1448 = vrot.lane.b32.xlu1 %v1325_v34, %s3131_s20 }
 0x3fa   : > { %1450 = vrot.lane.b32.xlu0 %v1327_v37, %s3131_s20 }
 0x3fb   : > { %1452 = vrot.lane.b32.xlu1 %v1329_v36, %s3131_s20 }
 0x3fe   : > { %1454 = vrot.lane.b32.xlu0 %v1331_v39, %s3131_s20 }
 0x3ff   : > { %1456 = vrot.lane.b32.xlu1 %v1333_v38, %s3131_s20 }
 0x402   : > { %1458 = vrot.lane.b32.xlu0 %v1335_v41, %s3131_s20 }
 0x403   : > { %1460 = vrot.lane.b32.xlu1 %v1337_v40, %s3131_s20 }
 0x404   : > { %v1347_v48 = vpop.permute.xlu0 %1346 }
 0x405   : > { %v1349_v47 = vpop.permute.xlu1 %1348 }
 0x406   : > { %1462 = vrot.lane.b32.xlu0 %v1339_v44, %s3131_s20 }
 0x407   : > { %1464 = vrot.lane.b32.xlu1 %v1341_v43, %s3131_s20 }
 0x408   : > { %v1351_v50 = vpop.permute.xlu0 %1350 }
 0x409   : > { %v1353_v49 = vpop.permute.xlu1 %1352 }
 0x40a   : > { %1466 = vrot.lane.b32.xlu0 %v1343_v46, %s3131_s20 }
 0x40b   : > { %1468 = vrot.lane.b32.xlu1 %v1345_v45, %s3131_s20 }
 0x40c   : > { %v1355_v52 = vpop.permute.xlu0 %1354 }
 0x40d   : > { %v1357_v51 = vpop.permute.xlu1 %1356 }
 0x40e   : > { %1470 = vrot.lane.b32.xlu0 %v1347_v48, %s3131_s20 }
 0x40f   : > { %1472 = vrot.lane.b32.xlu1 %v1349_v47, %s3131_s20 }
 0x410   : > { %v1359_v54 = vpop.permute.xlu0 %1358 }
 0x411   : > { %v1361_v53 = vpop.permute.xlu1 %1360 }
 0x412   : > { %1474 = vrot.lane.b32.xlu0 %v1351_v50, %s3131_s20 }
 0x413   : > { %1476 = vrot.lane.b32.xlu1 %v1353_v49, %s3131_s20 }
 0x414   : > { %v1363_v13 = vpop.permute.xlu0 %1362 }
 0x415   : > { %v1365_v55 = vpop.permute.xlu1 %1364 }
 0x416   : > { %1478 = vrot.lane.b32.xlu0 %v1355_v52, %s3131_s20 }
 0x417   : > { %1480 = vrot.lane.b32.xlu1 %v1357_v51, %s3131_s20 }
 0x418   : > { %v1367_v56 = vpop.permute.xlu0 %1366 }
 0x419   : > { %v1369_v19 = vpop.permute.xlu1 %1368 }
 0x41a   : > { %1482 = vrot.lane.b32.xlu0 %v1359_v54, %s3131_s20 }
 0x41b   : > { %1484 = vrot.lane.b32.xlu1 %v1361_v53, %s3131_s20 }
 0x41c   : > { %v1371_v58 = vpop.permute.xlu0 %1370 }
 0x41d   : > { %v1373_v57 = vpop.permute.xlu1 %1372 }
 0x41e   : > { %1486 = vrot.lane.b32.xlu0 %v1363_v13, %s3131_s20 }
 0x41f   : > { %1488 = vrot.lane.b32.xlu1 %v1365_v55, %s3131_s20 }
 0x420   : > { %v1375_v60 = vpop.permute.xlu0 %1374 }
 0x421   : > { %v1377_v59 = vpop.permute.xlu1 %1376 }
 0x422   : > { %1490 = vrot.lane.b32.xlu0 %v1367_v56, %s3131_s20 }
 0x423   : > { %1492 = vrot.lane.b32.xlu1 %v1369_v19, %s3131_s20 }
 0x424   : > { %v1379_v62 = vpop.permute.xlu0 %1378 }
 0x425   : > { %v1381_v61 = vpop.permute.xlu1 %1380 }
 0x426   : > { %1494 = vrot.lane.b32.xlu0 %v1371_v58, %s3131_s20 }
 0x427   : > { %1496 = vrot.lane.b32.xlu1 %v1373_v57, %s3131_s20 }
 0x428   : > { %v1383_v0 = vpop.permute.xlu0 %1382 }
 0x429   : > { %v1385_v63 = vpop.permute.xlu1 %1384 }
 0x42a   : > { %1498 = vrot.lane.b32.xlu0 %v1375_v60, %s3131_s20 }
 0x42b   : > { %1500 = vrot.lane.b32.xlu1 %v1377_v59, %s3131_s20 }
 0x42c   : > { %v1387_v2 = vpop.permute.xlu0 %1386 }
 0x42d   : > { %v1389_v1 = vpop.permute.xlu1 %1388 }
 0x42e   : > { %1502 = vrot.lane.b32.xlu0 %v1379_v62, %s3131_s20 }
 0x42f   : > { %1504 = vrot.lane.b32.xlu1 %v1381_v61, %s3131_s20 }
 0x430   : > { %v1391_v4 = vpop.permute.xlu0 %1390 }
 0x431   : > { %v1393_v3 = vpop.permute.xlu1 %1392 }
 0x432   : > { %1506 = vrot.lane.b32.xlu0 %v1383_v0, %s3131_s20 }
 0x433   : > { %1508 = vrot.lane.b32.xlu1 %v1385_v63, %s3131_s20 }
 0x434   : > { %v1395_v6 = vpop.permute.xlu0 %1394 }
 0x435   : > { %v1397_v5 = vpop.permute.xlu1 %1396 }
 0x436   : > { %1510 = vrot.lane.b32.xlu0 %v1387_v2, %s3131_s20 }
 0x437   : > { %1512 = vrot.lane.b32.xlu1 %v1389_v1, %s3131_s20 }
 0x438   : > { %v1399_v8 = vpop.permute.xlu0 %1398 }
 0x439   : > { %v1401_v7 = vpop.permute.xlu1 %1400 }
 0x43a   : > { %1514 = vrot.lane.b32.xlu0 %v1391_v4, %s3131_s20 }
 0x43b   : > { %1516 = vrot.lane.b32.xlu1 %v1393_v3, %s3131_s20 }
 0x43c   : > { %v1403_v14 = vpop.permute.xlu0 %1402 }
 0x43d   : > { %v1405_v9 = vpop.permute.xlu1 %1404  ;;  %1589 = vst.msk [vmem:[#allocation3] sm:$0xff] %vm1588_vm6, %v1403_v14 }
 0x43e   : > { %1590 = vst.msk [vmem:[#allocation3 + $0x10] sm:$0xff] %vm1588_vm6, %v1405_v9  ;;  %1518 = vrot.lane.b32.xlu0 %v1395_v6, %s3131_s20 }
 0x43f   : > { %1520 = vrot.lane.b32.xlu1 %v1397_v5, %s3131_s20 }
 0x440   : > { %v1407_v16 = vpop.permute.xlu0 %1406 }
 0x441   : > { %v1409_v15 = vpop.permute.xlu1 %1408  ;;  %1591 = vst.msk [vmem:[#allocation3 + $0x20] sm:$0xff] %vm1588_vm6, %v1407_v16 }
 0x442   : > { %1592 = vst.msk [vmem:[#allocation3 + $0x30] sm:$0xff] %vm1588_vm6, %v1409_v15  ;;  %1522 = vrot.lane.b32.xlu0 %v1399_v8, %s3131_s20 }
 0x443   : > { %1524 = vrot.lane.b32.xlu1 %v1401_v7, %s3131_s20 }
 0x444   : > { %v1411_v18 = vpop.permute.xlu0 %1410 }
 0x445   : > { %v1413_v17 = vpop.permute.xlu1 %1412  ;;  %1593 = vst.msk [vmem:[#allocation3 + $0x40] sm:$0xff] %vm1588_vm6, %v1411_v18 }
 0x446   : > { %1594 = vst.msk [vmem:[#allocation3 + $0x50] sm:$0xff] %vm1588_vm6, %v1413_v17  ;;  %1655 = vrot.lane.b32.xlu0 %v3179_v11, %s3113_s25 }
 0x447   : > { %1657 = vrot.lane.b32.xlu1 %v3184_v12, %s3113_s25 }
 0x448   : > { %v1415_v21 = vpop.permute.xlu0 %1414 }
 0x449   : > { %v1417_v20 = vpop.permute.xlu1 %1416  ;;  %1595 = vst.msk [vmem:[#allocation3 + $0x60] sm:$0xff] %vm1588_vm6, %v1415_v21 }
 0x44a   : > { %1596 = vst.msk [vmem:[#allocation3 + $0x70] sm:$0xff] %vm1588_vm6, %v1417_v20  ;;  %1661 = vrot.lane.b32.xlu0 %v3179_v11, %s3114_s26 }
 0x44b   : > { %1663 = vrot.lane.b32.xlu1 %v3184_v12, %s3114_s26 }
 0x44c   : > { %v1419_v22 = vpop.permute.xlu0 %1418 }
 0x44d   : > { %v1421_v10 = vpop.permute.xlu1 %1420  ;;  %1597 = vst.msk [vmem:[#allocation3 + $0x80] sm:$0xff] %vm1588_vm6, %v1419_v22 }
 0x44e   : > { %1598 = vst.msk [vmem:[#allocation3 + $0x90] sm:$0xff] %vm1588_vm6, %v1421_v10  ;;  %1667 = vrot.lane.b32.xlu0 %v3179_v11, %s3115_s27 }
 0x44f   : > { %1669 = vrot.lane.b32.xlu1 %v3184_v12, %s3115_s27 }
 0x450   : > { %v1423_v24 = vpop.permute.xlu0 %1422 }
 0x451   : > { %v1425_v23 = vpop.permute.xlu1 %1424  ;;  %1599 = vst.msk [vmem:[#allocation3 + $0xa0] sm:$0xff] %vm1588_vm6, %v1423_v24 }
 0x452   : > { %1600 = vst.msk [vmem:[#allocation3 + $0xb0] sm:$0xff] %vm1588_vm6, %v1425_v23  ;;  %1673 = vrot.lane.b32.xlu0 %v3179_v11, %s3116_s28 }
 0x453   : > { %1675 = vrot.lane.b32.xlu1 %v3184_v12, %s3116_s28 }
 0x454   : > { %v1427_v26 = vpop.permute.xlu0 %1426 }
 0x455   : > { %v1429_v25 = vpop.permute.xlu1 %1428  ;;  %1601 = vst.msk [vmem:[#allocation3 + $0xc0] sm:$0xff] %vm1588_vm6, %v1427_v26 }
 0x456   : > { %1602 = vst.msk [vmem:[#allocation3 + $0xd0] sm:$0xff] %vm1588_vm6, %v1429_v25  ;;  %1679 = vrot.lane.b32.xlu0 %v3179_v11, %s3117_s29 }
 0x457   : > { %1681 = vrot.lane.b32.xlu1 %v3184_v12, %s3117_s29 }
 0x458   : > { %v1431_v28 = vpop.permute.xlu0 %1430 }
 0x459   : > { %v1433_v27 = vpop.permute.xlu1 %1432  ;;  %1603 = vst.msk [vmem:[#allocation3 + $0xe0] sm:$0xff] %vm1588_vm6, %v1431_v28 }
 0x45a   : > { %1604 = vst.msk [vmem:[#allocation3 + $0xf0] sm:$0xff] %vm1588_vm6, %v1433_v27  ;;  %1685 = vrot.lane.b32.xlu0 %v3179_v11, %s3118_s30 }
 0x45b   : > { %1687 = vrot.lane.b32.xlu1 %v3184_v12, %s3118_s30 }
 0x45c   : > { %v1435_v30 = vpop.permute.xlu0 %1434 }
 0x45d   : > { %v1437_v29 = vpop.permute.xlu1 %1436  ;;  %1605 = vst.msk [vmem:[#allocation3 + $0x100] sm:$0xff] %vm1588_vm6, %v1435_v30 }
 0x45e   : > { %1606 = vst.msk [vmem:[#allocation3 + $0x110] sm:$0xff] %vm1588_vm6, %v1437_v29  ;;  %1691 = vrot.lane.b32.xlu0 %v3179_v11, %s3119_s6 }
 0x45f   : > { %1693 = vrot.lane.b32.xlu1 %v3184_v12, %s3119_s6 }
 0x460   : > { %v1439_v32 = vpop.permute.xlu0 %1438 }
 0x461   : > { %v1441_v31 = vpop.permute.xlu1 %1440  ;;  %1607 = vst.msk [vmem:[#allocation3 + $0x120] sm:$0xff] %vm1588_vm6, %v1439_v32 }
 0x462   : > { %1608 = vst.msk [vmem:[#allocation3 + $0x130] sm:$0xff] %vm1588_vm6, %v1441_v31  ;;  %1697 = vrot.lane.b32.xlu0 %v3179_v11, %s3120_s7 }
 0x463   : > { %1699 = vrot.lane.b32.xlu1 %v3184_v12, %s3120_s7 }
 0x464   : > { %v1443_v34 = vpop.permute.xlu0 %1442 }
 0x465   : > { %v1445_v33 = vpop.permute.xlu1 %1444  ;;  %1609 = vst.msk [vmem:[#allocation3 + $0x140] sm:$0xff] %vm1588_vm6, %v1443_v34 }
 0x466   : > { %1610 = vst.msk [vmem:[#allocation3 + $0x150] sm:$0xff] %vm1588_vm6, %v1445_v33  ;;  %1703 = vrot.lane.b32.xlu0 %v3179_v11, %s3121_s8 }
 0x467   : > { %1705 = vrot.lane.b32.xlu1 %v3184_v12, %s3121_s8 }
 0x468   : > { %v1447_v36 = vpop.permute.xlu0 %1446 }
 0x469   : > { %v1449_v35 = vpop.permute.xlu1 %1448  ;;  %1611 = vst.msk [vmem:[#allocation3 + $0x160] sm:$0xff] %vm1588_vm6, %v1447_v36 }
 0x46a   : > { %1612 = vst.msk [vmem:[#allocation3 + $0x170] sm:$0xff] %vm1588_vm6, %v1449_v35  ;;  %1709 = vrot.lane.b32.xlu0 %v3179_v11, %s3122_s9 }
 0x46b   : > { %1711 = vrot.lane.b32.xlu1 %v3184_v12, %s3122_s9 }
 0x46c   : > { %v1451_v38 = vpop.permute.xlu0 %1450 }
 0x46d   : > { %v1453_v37 = vpop.permute.xlu1 %1452  ;;  %1613 = vst.msk [vmem:[#allocation3 + $0x180] sm:$0xff] %vm1588_vm6, %v1451_v38  ;;  %v4222_v38 = vld [vmem:[#allocation2 + $0x30] sm:$0xff] }
 0x46e   : > { %1614 = vst.msk [vmem:[#allocation3 + $0x190] sm:$0xff] %vm1588_vm6, %v1453_v37  ;;  %1715 = vrot.lane.b32.xlu0 %v3179_v11, %s3123_s10 }
 0x46f   : > { %1717 = vrot.lane.b32.xlu1 %v3184_v12, %s3123_s10 }
 0x470   : > { %v1455_v40 = vpop.permute.xlu0 %1454 }
 0x471   : > { %v1457_v39 = vpop.permute.xlu1 %1456  ;;  %1615 = vst.msk [vmem:[#allocation3 + $0x1a0] sm:$0xff] %vm1588_vm6, %v1455_v40 }
 0x472   : > { %1616 = vst.msk [vmem:[#allocation3 + $0x1b0] sm:$0xff] %vm1588_vm6, %v1457_v39  ;;  %1721 = vrot.lane.b32.xlu0 %v3179_v11, %s3124_s11  ;;  %v4224_v39 = vld [vmem:[#allocation2 + $0x38] sm:$0xff] }
 0x473   : > { %1723 = vrot.lane.b32.xlu1 %v3184_v12, %s3124_s11 }
 0x474   : > { %v1459_v42 = vpop.permute.xlu0 %1458 }
 0x475   : > { %v1461_v41 = vpop.permute.xlu1 %1460  ;;  %1617 = vst.msk [vmem:[#allocation3 + $0x1c0] sm:$0xff] %vm1588_vm6, %v1459_v42 }
 0x476   : > { %1618 = vst.msk [vmem:[#allocation3 + $0x1d0] sm:$0xff] %vm1588_vm6, %v1461_v41  ;;  %1727 = vrot.lane.b32.xlu0 %v3179_v11, %s3125_s12 }
 0x477   : > { %1729 = vrot.lane.b32.xlu1 %v3184_v12, %s3125_s12 }
 0x478   : > { %v1463_v44 = vpop.permute.xlu0 %1462 }
 0x479   : > { %v1465_v43 = vpop.permute.xlu1 %1464  ;;  %1619 = vst.msk [vmem:[#allocation3 + $0x1e0] sm:$0xff] %vm1588_vm6, %v1463_v44 }
 0x47a   : > { %1620 = vst.msk [vmem:[#allocation3 + $0x1f0] sm:$0xff] %vm1588_vm6, %v1465_v43  ;;  %1733 = vrot.lane.b32.xlu0 %v3179_v11, %s3126_s13 }
 0x47b   : > { %1735 = vrot.lane.b32.xlu1 %v3184_v12, %s3126_s13 }
 0x47c   : > { %v1467_v46 = vpop.permute.xlu0 %1466 }
 0x47d   : > { %v1469_v45 = vpop.permute.xlu1 %1468  ;;  %1621 = vst.msk [vmem:[#allocation3 + $0x200] sm:$0xff] %vm1588_vm6, %v1467_v46 }
 0x47e   : > { %1622 = vst.msk [vmem:[#allocation3 + $0x210] sm:$0xff] %vm1588_vm6, %v1469_v45  ;;  %1739 = vrot.lane.b32.xlu0 %v3179_v11, %s3127_s14 }
 0x47f   : > { %1741 = vrot.lane.b32.xlu1 %v3184_v12, %s3127_s14 }
 0x480   : > { %v1471_v48 = vpop.permute.xlu0 %1470 }
 0x481   : > { %v1473_v47 = vpop.permute.xlu1 %1472  ;;  %1623 = vst.msk [vmem:[#allocation3 + $0x220] sm:$0xff] %vm1588_vm6, %v1471_v48 }
 0x482   : > { %1624 = vst.msk [vmem:[#allocation3 + $0x230] sm:$0xff] %vm1588_vm6, %v1473_v47  ;;  %1745 = vrot.lane.b32.xlu0 %v3179_v11, %s3128_s15 }
 0x483   : > { %1747 = vrot.lane.b32.xlu1 %v3184_v12, %s3128_s15 }
 0x484   : > { %v1475_v50 = vpop.permute.xlu0 %1474 }
 0x485   : > { %v1477_v49 = vpop.permute.xlu1 %1476  ;;  %1625 = vst.msk [vmem:[#allocation3 + $0x240] sm:$0xff] %vm1588_vm6, %v1475_v50 }
 0x486   : > { %1626 = vst.msk [vmem:[#allocation3 + $0x250] sm:$0xff] %vm1588_vm6, %v1477_v49 }
 0x488   : > { %v1479_v52 = vpop.permute.xlu0 %1478 }
 0x489   : > { %v1481_v51 = vpop.permute.xlu1 %1480  ;;  %1627 = vst.msk [vmem:[#allocation3 + $0x260] sm:$0xff] %vm1588_vm6, %v1479_v52 }
 0x48a   : > { %1628 = vst.msk [vmem:[#allocation3 + $0x270] sm:$0xff] %vm1588_vm6, %v1481_v51 }
 0x48c   : > { %v1483_v54 = vpop.permute.xlu0 %1482 }
 0x48d   : > { %v1485_v53 = vpop.permute.xlu1 %1484  ;;  %1629 = vst.msk [vmem:[#allocation3 + $0x280] sm:$0xff] %vm1588_vm6, %v1483_v54 }
 0x48e   : > { %1630 = vst.msk [vmem:[#allocation3 + $0x290] sm:$0xff] %vm1588_vm6, %v1485_v53 }
 0x490   : > { %v1487_v11 = vpop.permute.xlu0 %1486 }
 0x491   : > { %v1489_v55 = vpop.permute.xlu1 %1488  ;;  %1631 = vst.msk [vmem:[#allocation3 + $0x2a0] sm:$0xff] %vm1588_vm6, %v1487_v11 }
 0x492   : > { %1632 = vst.msk [vmem:[#allocation3 + $0x2b0] sm:$0xff] %vm1588_vm6, %v1489_v55 }
 0x494   : > { %v1491_v19 = vpop.permute.xlu0 %1490 }
 0x495   : > { %v1493_v13 = vpop.permute.xlu1 %1492  ;;  %1633 = vst.msk [vmem:[#allocation3 + $0x2c0] sm:$0xff] %vm1588_vm6, %v1491_v19 }
 0x496   : > { %1634 = vst.msk [vmem:[#allocation3 + $0x2d0] sm:$0xff] %vm1588_vm6, %v1493_v13 }
 0x498   : > { %v1495_v57 = vpop.permute.xlu0 %1494 }
 0x499   : > { %v1497_v56 = vpop.permute.xlu1 %1496  ;;  %1635 = vst.msk [vmem:[#allocation3 + $0x2e0] sm:$0xff] %vm1588_vm6, %v1495_v57 }
 0x49a   : > { %1636 = vst.msk [vmem:[#allocation3 + $0x2f0] sm:$0xff] %vm1588_vm6, %v1497_v56 }
 0x49c   : > { %v1499_v59 = vpop.permute.xlu0 %1498 }
 0x49d   : > { %v1501_v58 = vpop.permute.xlu1 %1500  ;;  %1637 = vst.msk [vmem:[#allocation3 + $0x300] sm:$0xff] %vm1588_vm6, %v1499_v59 }
 0x49e   : > { %1638 = vst.msk [vmem:[#allocation3 + $0x310] sm:$0xff] %vm1588_vm6, %v1501_v58 }
 0x4a0   : > { %v1503_v61 = vpop.permute.xlu0 %1502 }
 0x4a1   : > { %v1505_v60 = vpop.permute.xlu1 %1504  ;;  %1639 = vst.msk [vmem:[#allocation3 + $0x320] sm:$0xff] %vm1588_vm6, %v1503_v61 }
 0x4a2   : > { %1640 = vst.msk [vmem:[#allocation3 + $0x330] sm:$0xff] %vm1588_vm6, %v1505_v60 }
 0x4a4   : > { %v1507_v63 = vpop.permute.xlu0 %1506 }
 0x4a5   : > { %v1509_v62 = vpop.permute.xlu1 %1508  ;;  %1641 = vst.msk [vmem:[#allocation3 + $0x340] sm:$0xff] %vm1588_vm6, %v1507_v63 }
 0x4a6   : > { %1642 = vst.msk [vmem:[#allocation3 + $0x350] sm:$0xff] %vm1588_vm6, %v1509_v62 }
 0x4a8   : > { %v1511_v1 = vpop.permute.xlu0 %1510 }
 0x4a9   : > { %v1513_v0 = vpop.permute.xlu1 %1512  ;;  %1643 = vst.msk [vmem:[#allocation3 + $0x360] sm:$0xff] %vm1588_vm6, %v1511_v1 }
 0x4aa   : > { %1644 = vst.msk [vmem:[#allocation3 + $0x370] sm:$0xff] %vm1588_vm6, %v1513_v0 }
 0x4ac   : > { %v1515_v3 = vpop.permute.xlu0 %1514 }
 0x4ad   : > { %v1517_v2 = vpop.permute.xlu1 %1516  ;;  %1645 = vst.msk [vmem:[#allocation3 + $0x380] sm:$0xff] %vm1588_vm6, %v1515_v3 }
 0x4ae   : > { %1646 = vst.msk [vmem:[#allocation3 + $0x390] sm:$0xff] %vm1588_vm6, %v1517_v2 }
 0x4b0   : > { %v1519_v5 = vpop.permute.xlu0 %1518 }
 0x4b1   : > { %v1521_v4 = vpop.permute.xlu1 %1520  ;;  %1647 = vst.msk [vmem:[#allocation3 + $0x3a0] sm:$0xff] %vm1588_vm6, %v1519_v5 }
 0x4b2   : > { %1648 = vst.msk [vmem:[#allocation3 + $0x3b0] sm:$0xff] %vm1588_vm6, %v1521_v4 }
 0x4b4   : > { %v1523_v7 = vpop.permute.xlu0 %1522 }
 0x4b5   : > { %v1525_v6 = vpop.permute.xlu1 %1524  ;;  %1649 = vst.msk [vmem:[#allocation3 + $0x3c0] sm:$0xff] %vm1588_vm6, %v1523_v7 }
 0x4b6   : > { %1650 = vst.msk [vmem:[#allocation3 + $0x3d0] sm:$0xff] %vm1588_vm6, %v1525_v6 }
 0x4b8   : > { %v1656_v9 = vpop.permute.xlu0 %1655 }
 0x4b9   : > { %v1658_v8 = vpop.permute.xlu1 %1657  ;;  %1837 = vst.msk [vmem:[#allocation3 + $0x28] sm:$0xff] %vm469_vm3, %v1656_v9  ;;  %1749 = vrot.lane.b32.xlu0 %v1656_v9, %s3128_s15 }
 0x4ba   : > { %1838 = vst.msk [vmem:[#allocation3 + $0x38] sm:$0xff] %vm469_vm3, %v1658_v8  ;;  %1751 = vrot.lane.b32.xlu1 %v1658_v8, %s3128_s15 }
 0x4bc   : > { %v1662_v15 = vpop.permute.xlu0 %1661 }
 0x4bd   : > { %v1664_v14 = vpop.permute.xlu1 %1663  ;;  %1839 = vst.msk [vmem:[#allocation3 + $0x48] sm:$0xff] %vm469_vm3, %v1662_v15  ;;  %1753 = vrot.lane.b32.xlu0 %v1662_v15, %s3128_s15 }
 0x4be   : > { %1840 = vst.msk [vmem:[#allocation3 + $0x58] sm:$0xff] %vm469_vm3, %v1664_v14  ;;  %1755 = vrot.lane.b32.xlu1 %v1664_v14, %s3128_s15 }
 0x4c0   : > { %v1668_v17 = vpop.permute.xlu0 %1667 }
 0x4c1   : > { %v1670_v16 = vpop.permute.xlu1 %1669  ;;  %1841 = vst.msk [vmem:[#allocation3 + $0x68] sm:$0xff] %vm469_vm3, %v1668_v17  ;;  %1757 = vrot.lane.b32.xlu0 %v1668_v17, %s3128_s15 }
 0x4c2   : > { %1842 = vst.msk [vmem:[#allocation3 + $0x78] sm:$0xff] %vm469_vm3, %v1670_v16  ;;  %1759 = vrot.lane.b32.xlu1 %v1670_v16, %s3128_s15 }
 0x4c4   : > { %v1674_v20 = vpop.permute.xlu0 %1673 }
 0x4c5   : > { %v1676_v18 = vpop.permute.xlu1 %1675  ;;  %1843 = vst.msk [vmem:[#allocation3 + $0x88] sm:$0xff] %vm469_vm3, %v1674_v20  ;;  %1761 = vrot.lane.b32.xlu0 %v1674_v20, %s3128_s15 }
 0x4c6   : > { %1844 = vst.msk [vmem:[#allocation3 + $0x98] sm:$0xff] %vm469_vm3, %v1676_v18  ;;  %1763 = vrot.lane.b32.xlu1 %v1676_v18, %s3128_s15 }
 0x4c8   : > { %v1680_v10 = vpop.permute.xlu0 %1679 }
 0x4c9   : > { %v1682_v21 = vpop.permute.xlu1 %1681  ;;  %1845 = vst.msk [vmem:[#allocation3 + $0xa8] sm:$0xff] %vm469_vm3, %v1680_v10  ;;  %1765 = vrot.lane.b32.xlu0 %v1680_v10, %s3128_s15 }
 0x4ca   : > { %1846 = vst.msk [vmem:[#allocation3 + $0xb8] sm:$0xff] %vm469_vm3, %v1682_v21  ;;  %1767 = vrot.lane.b32.xlu1 %v1682_v21, %s3128_s15 }
 0x4cc   : > { %v1686_v23 = vpop.permute.xlu0 %1685 }
 0x4cd   : > { %v1688_v22 = vpop.permute.xlu1 %1687  ;;  %1847 = vst.msk [vmem:[#allocation3 + $0xc8] sm:$0xff] %vm469_vm3, %v1686_v23  ;;  %1769 = vrot.lane.b32.xlu0 %v1686_v23, %s3128_s15 }
 0x4ce   : > { %1848 = vst.msk [vmem:[#allocation3 + $0xd8] sm:$0xff] %vm469_vm3, %v1688_v22  ;;  %1771 = vrot.lane.b32.xlu1 %v1688_v22, %s3128_s15 }
 0x4d0   : > { %v1692_v25 = vpop.permute.xlu0 %1691 }
 0x4d1   : > { %v1694_v24 = vpop.permute.xlu1 %1693  ;;  %1849 = vst.msk [vmem:[#allocation3 + $0xe8] sm:$0xff] %vm469_vm3, %v1692_v25  ;;  %1773 = vrot.lane.b32.xlu0 %v1692_v25, %s3128_s15 }
 0x4d2   : > { %1850 = vst.msk [vmem:[#allocation3 + $0xf8] sm:$0xff] %vm469_vm3, %v1694_v24  ;;  %1775 = vrot.lane.b32.xlu1 %v1694_v24, %s3128_s15 }
 0x4d4   : > { %v1698_v27 = vpop.permute.xlu0 %1697 }
 0x4d5   : > { %v1700_v26 = vpop.permute.xlu1 %1699  ;;  %1851 = vst.msk [vmem:[#allocation3 + $0x108] sm:$0xff] %vm469_vm3, %v1698_v27  ;;  %1777 = vrot.lane.b32.xlu0 %v1698_v27, %s3128_s15 }
 0x4d6   : > { %1852 = vst.msk [vmem:[#allocation3 + $0x118] sm:$0xff] %vm469_vm3, %v1700_v26  ;;  %1779 = vrot.lane.b32.xlu1 %v1700_v26, %s3128_s15 }
 0x4d8   : > { %v1704_v29 = vpop.permute.xlu0 %1703 }
 0x4d9   : > { %v1706_v28 = vpop.permute.xlu1 %1705  ;;  %1853 = vst.msk [vmem:[#allocation3 + $0x128] sm:$0xff] %vm469_vm3, %v1704_v29  ;;  %1781 = vrot.lane.b32.xlu0 %v1704_v29, %s3128_s15 }
 0x4da   : > { %1854 = vst.msk [vmem:[#allocation3 + $0x138] sm:$0xff] %vm469_vm3, %v1706_v28  ;;  %1783 = vrot.lane.b32.xlu1 %v1706_v28, %s3128_s15 }
 0x4dc   : > { %v1710_v31 = vpop.permute.xlu0 %1709 }
 0x4dd   : > { %v1712_v30 = vpop.permute.xlu1 %1711  ;;  %1855 = vst.msk [vmem:[#allocation3 + $0x148] sm:$0xff] %vm469_vm3, %v1710_v31  ;;  %1785 = vrot.lane.b32.xlu0 %v1710_v31, %s3128_s15 }
 0x4de   : > { %1856 = vst.msk [vmem:[#allocation3 + $0x158] sm:$0xff] %vm469_vm3, %v1712_v30  ;;  %1787 = vrot.lane.b32.xlu1 %v1712_v30, %s3128_s15 }
 0x4e0   : > { %v1716_v33 = vpop.permute.xlu0 %1715 }
 0x4e1   : > { %v1718_v32 = vpop.permute.xlu1 %1717  ;;  %1857 = vst.msk [vmem:[#allocation3 + $0x168] sm:$0xff] %vm469_vm3, %v1716_v33  ;;  %1789 = vrot.lane.b32.xlu0 %v1716_v33, %s3128_s15 }
 0x4e2   : > { %1858 = vst.msk [vmem:[#allocation3 + $0x178] sm:$0xff] %vm469_vm3, %v1718_v32  ;;  %1791 = vrot.lane.b32.xlu1 %v1718_v32, %s3128_s15 }
 0x4e4   : > { %v1722_v35 = vpop.permute.xlu0 %1721 }
 0x4e5   : > { %v1724_v34 = vpop.permute.xlu1 %1723  ;;  %1859 = vst.msk [vmem:[#allocation3 + $0x188] sm:$0xff] %vm469_vm3, %v1722_v35  ;;  %1793 = vrot.lane.b32.xlu0 %v1722_v35, %s3128_s15 }
 0x4e6   : > { %1860 = vst.msk [vmem:[#allocation3 + $0x198] sm:$0xff] %vm469_vm3, %v1724_v34  ;;  %1795 = vrot.lane.b32.xlu1 %v1724_v34, %s3128_s15 }
 0x4e8   : > { %v1728_v37 = vpop.permute.xlu0 %1727 }
 0x4e9   : > { %v1730_v36 = vpop.permute.xlu1 %1729  ;;  %1861 = vst.msk [vmem:[#allocation3 + $0x1a8] sm:$0xff] %vm469_vm3, %v1728_v37  ;;  %1797 = vrot.lane.b32.xlu0 %v1728_v37, %s3128_s15 }
 0x4ea   : > { %1862 = vst.msk [vmem:[#allocation3 + $0x1b8] sm:$0xff] %vm469_vm3, %v1730_v36  ;;  %1799 = vrot.lane.b32.xlu1 %v1730_v36, %s3128_s15 }
 0x4ec   : > { %v4228_v41 = vpop.permute.xlu0 %1733 }
 0x4ed   : > { %v4226_v40 = vpop.permute.xlu1 %1735  ;;  %1863 = vst.msk [vmem:[#allocation3 + $0x1c8] sm:$0xff] %vm469_vm3, %v4228_v41  ;;  %1927 = vrot.lane.b32.xlu0 %v4222_v38, %s3119_s6 }
 0x4ee   : > { %1864 = vst.msk [vmem:[#allocation3 + $0x1d8] sm:$0xff] %vm469_vm3, %v4226_v40  ;;  %2299 = vrot.lane.b32.xlu1 %v4224_v39, %s3119_s6 }
 0x4f0   : > { %v1740_v43 = vpop.permute.xlu0 %1739 }
 0x4f1   : > { %v1742_v42 = vpop.permute.xlu1 %1741  ;;  %1865 = vst.msk [vmem:[#allocation3 + $0x1e8] sm:$0xff] %vm469_vm3, %v1740_v43  ;;  %1925 = vrot.lane.b32.xlu0 %v3184_v12, %s3119_s6 }
 0x4f2   : > { %1866 = vst.msk [vmem:[#allocation3 + $0x1f8] sm:$0xff] %vm469_vm3, %v1742_v42  ;;  %2297 = vrot.lane.b32.xlu1 %v4222_v38, %s3119_s6  ;;  %s3069_s6 = sshll.u32 %s5134_s19, 4 }
 0x4f4   : > { %v1746_v45 = vpop.permute.xlu0 %1745 }
 0x4f5   : > { %v1748_v44 = vpop.permute.xlu1 %1747  ;;  %1867 = vst.msk [vmem:[#allocation3 + $0x208] sm:$0xff] %vm469_vm3, %v1746_v45  ;;  %1923 = vrot.lane.b32.xlu0 %v4222_v38, %s3118_s30 }
 0x4f6   : > { %1868 = vst.msk [vmem:[#allocation3 + $0x218] sm:$0xff] %vm469_vm3, %v1748_v44  ;;  %2295 = vrot.lane.b32.xlu1 %v4224_v39, %s3118_s30 }
 0x4f9   : > { %1921 = vrot.lane.b32.xlu0 %v3184_v12, %s3118_s30 }
 0x4fa   : > { %2293 = vrot.lane.b32.xlu1 %v4222_v38, %s3118_s30 }
 0x4fd   : > { %1919 = vrot.lane.b32.xlu0 %v4222_v38, %s3117_s29 }
 0x4fe   : > { %2291 = vrot.lane.b32.xlu1 %v4224_v39, %s3117_s29 }
 0x501   : > { %1917 = vrot.lane.b32.xlu0 %v3184_v12, %s3117_s29 }
 0x502   : > { %2289 = vrot.lane.b32.xlu1 %v4222_v38, %s3117_s29 }
 0x505   : > { %1915 = vrot.lane.b32.xlu0 %v4222_v38, %s3116_s28 }
 0x506   : > { %2287 = vrot.lane.b32.xlu1 %v4224_v39, %s3116_s28 }
 0x509   : > { %1913 = vrot.lane.b32.xlu0 %v3184_v12, %s3116_s28 }
 0x50a   : > { %2285 = vrot.lane.b32.xlu1 %v4222_v38, %s3116_s28 }
 0x50d   : > { %1911 = vrot.lane.b32.xlu0 %v4222_v38, %s3115_s27 }
 0x50e   : > { %2283 = vrot.lane.b32.xlu1 %v4224_v39, %s3115_s27 }
 0x511   : > { %1909 = vrot.lane.b32.xlu0 %v3184_v12, %s3115_s27 }
 0x512   : > { %2281 = vrot.lane.b32.xlu1 %v4222_v38, %s3115_s27 }
 0x515   : > { %1907 = vrot.lane.b32.xlu0 %v4222_v38, %s3114_s26 }
 0x516   : > { %2279 = vrot.lane.b32.xlu1 %v4224_v39, %s3114_s26 }
 0x519   : > { %1905 = vrot.lane.b32.xlu0 %v3184_v12, %s3114_s26 }
 0x51a   : > { %2277 = vrot.lane.b32.xlu1 %v4222_v38, %s3114_s26 }
 0x51d   : > { %1903 = vrot.lane.b32.xlu0 %v4222_v38, %s3113_s25 }
 0x51e   : > { %2275 = vrot.lane.b32.xlu1 %v4224_v39, %s3113_s25 }
 0x521   : > { %1901 = vrot.lane.b32.xlu0 %v3184_v12, %s3113_s25 }
 0x522   : > { %2273 = vrot.lane.b32.xlu1 %v4222_v38, %s3113_s25 }
 0x525   : > { %1955 = vrot.lane.b32.xlu0 %v4222_v38, %s3126_s13 }
 0x526   : > { %2327 = vrot.lane.b32.xlu1 %v4224_v39, %s3126_s13 }
 0x529   : > { %1953 = vrot.lane.b32.xlu0 %v3184_v12, %s3126_s13 }
 0x52a   : > { %2325 = vrot.lane.b32.xlu1 %v4222_v38, %s3126_s13 }
 0x52b   : > { %v1750_v47 = vpop.permute.xlu0 %1749 }
 0x52c   : > { %v1752_v46 = vpop.permute.xlu1 %1751  ;;  %1869 = vst.msk [vmem:[#allocation3 + $0x228] sm:$0xff] %vm469_vm3, %v1750_v47 }
 0x52d   : > { %1870 = vst.msk [vmem:[#allocation3 + $0x238] sm:$0xff] %vm469_vm3, %v1752_v46  ;;  %1951 = vrot.lane.b32.xlu0 %v4222_v38, %s3125_s12 }
 0x52e   : > { %2323 = vrot.lane.b32.xlu1 %v4224_v39, %s3125_s12 }
 0x52f   : > { %v1754_v49 = vpop.permute.xlu0 %1753 }
 0x530   : > { %v1756_v48 = vpop.permute.xlu1 %1755  ;;  %1871 = vst.msk [vmem:[#allocation3 + $0x248] sm:$0xff] %vm469_vm3, %v1754_v49 }
 0x531   : > { %1872 = vst.msk [vmem:[#allocation3 + $0x258] sm:$0xff] %vm469_vm3, %v1756_v48  ;;  %1949 = vrot.lane.b32.xlu0 %v3184_v12, %s3125_s12 }
 0x532   : > { %2321 = vrot.lane.b32.xlu1 %v4222_v38, %s3125_s12 }
 0x533   : > { %v1758_v51 = vpop.permute.xlu0 %1757 }
 0x534   : > { %v1760_v50 = vpop.permute.xlu1 %1759  ;;  %1873 = vst.msk [vmem:[#allocation3 + $0x268] sm:$0xff] %vm469_vm3, %v1758_v51 }
 0x535   : > { %1874 = vst.msk [vmem:[#allocation3 + $0x278] sm:$0xff] %vm469_vm3, %v1760_v50  ;;  %1947 = vrot.lane.b32.xlu0 %v4222_v38, %s3124_s11 }
 0x536   : > { %2319 = vrot.lane.b32.xlu1 %v4224_v39, %s3124_s11 }
 0x537   : > { %v1762_v53 = vpop.permute.xlu0 %1761 }
 0x538   : > { %v1764_v52 = vpop.permute.xlu1 %1763  ;;  %1875 = vst.msk [vmem:[#allocation3 + $0x288] sm:$0xff] %vm469_vm3, %v1762_v53 }
 0x539   : > { %1876 = vst.msk [vmem:[#allocation3 + $0x298] sm:$0xff] %vm469_vm3, %v1764_v52  ;;  %1945 = vrot.lane.b32.xlu0 %v3184_v12, %s3124_s11 }
 0x53a   : > { %2317 = vrot.lane.b32.xlu1 %v4222_v38, %s3124_s11 }
 0x53b   : > { %v1766_v55 = vpop.permute.xlu0 %1765 }
 0x53c   : > { %v1768_v54 = vpop.permute.xlu1 %1767  ;;  %1877 = vst.msk [vmem:[#allocation3 + $0x2a8] sm:$0xff] %vm469_vm3, %v1766_v55 }
 0x53d   : > { %1878 = vst.msk [vmem:[#allocation3 + $0x2b8] sm:$0xff] %vm469_vm3, %v1768_v54  ;;  %1943 = vrot.lane.b32.xlu0 %v4222_v38, %s3123_s10 }
 0x53e   : > { %2315 = vrot.lane.b32.xlu1 %v4224_v39, %s3123_s10 }
 0x53f   : > { %v1770_v13 = vpop.permute.xlu0 %1769 }
 0x540   : > { %v1772_v11 = vpop.permute.xlu1 %1771  ;;  %1879 = vst.msk [vmem:[#allocation3 + $0x2c8] sm:$0xff] %vm469_vm3, %v1770_v13 }
 0x541   : > { %1880 = vst.msk [vmem:[#allocation3 + $0x2d8] sm:$0xff] %vm469_vm3, %v1772_v11  ;;  %1941 = vrot.lane.b32.xlu0 %v3184_v12, %s3123_s10 }
 0x542   : > { %2313 = vrot.lane.b32.xlu1 %v4222_v38, %s3123_s10  ;;  %s3063_s10 = sshll.u32 %s5134_s19, 3 }
 0x543   : > { %v1774_v56 = vpop.permute.xlu0 %1773  ;;  %s241_s13 = scalar_lea.vmem %s5101_s4, %s3063_s10 }
 0x544   : > { %v1776_v19 = vpop.permute.xlu1 %1775  ;;  %1881 = vst.msk [vmem:[#allocation3 + $0x2e8] sm:$0xff] %vm469_vm3, %v1774_v56 }
 0x545   : > { %1882 = vst.msk [vmem:[#allocation3 + $0x2f8] sm:$0xff] %vm469_vm3, %v1776_v19  ;;  %1939 = vrot.lane.b32.xlu0 %v4222_v38, %s3122_s9 }
 0x546   : > { %2311 = vrot.lane.b32.xlu1 %v4224_v39, %s3122_s9 }
 0x547   : > { %v1778_v58 = vpop.permute.xlu0 %1777 }
 0x548   : > { %v1780_v57 = vpop.permute.xlu1 %1779  ;;  %1883 = vst.msk [vmem:[#allocation3 + $0x308] sm:$0xff] %vm469_vm3, %v1778_v58 }
 0x549   : > { %1884 = vst.msk [vmem:[#allocation3 + $0x318] sm:$0xff] %vm469_vm3, %v1780_v57  ;;  %1937 = vrot.lane.b32.xlu0 %v3184_v12, %s3122_s9 }
 0x54a   : > { %2309 = vrot.lane.b32.xlu1 %v4222_v38, %s3122_s9  ;;  %s237_s9 = scalar_lea.vmem %s5100_s3, %s3069_s6 }
 0x54b   : > { %v1782_v60 = vpop.permute.xlu0 %1781 }
 0x54c   : > { %v1784_v59 = vpop.permute.xlu1 %1783  ;;  %1885 = vst.msk [vmem:[#allocation3 + $0x328] sm:$0xff] %vm469_vm3, %v1782_v60 }
 0x54d   : > { %1886 = vst.msk [vmem:[#allocation3 + $0x338] sm:$0xff] %vm469_vm3, %v1784_v59  ;;  %1935 = vrot.lane.b32.xlu0 %v4222_v38, %s3121_s8 }
 0x54e   : > { %2307 = vrot.lane.b32.xlu1 %v4224_v39, %s3121_s8 }
 0x54f   : > { %v1786_v62 = vpop.permute.xlu0 %1785 }
 0x550   : > { %v1788_v61 = vpop.permute.xlu1 %1787  ;;  %1887 = vst.msk [vmem:[#allocation3 + $0x348] sm:$0xff] %vm469_vm3, %v1786_v62 }
 0x551   : > { %1888 = vst.msk [vmem:[#allocation3 + $0x358] sm:$0xff] %vm469_vm3, %v1788_v61  ;;  %1933 = vrot.lane.b32.xlu0 %v3184_v12, %s3121_s8 }
 0x552   : > { %2305 = vrot.lane.b32.xlu1 %v4222_v38, %s3121_s8 }
 0x553   : > { %v1790_v0 = vpop.permute.xlu0 %1789 }
 0x554   : > { %v1792_v63 = vpop.permute.xlu1 %1791  ;;  %1889 = vst.msk [vmem:[#allocation3 + $0x368] sm:$0xff] %vm469_vm3, %v1790_v0 }
 0x555   : > { %1890 = vst.msk [vmem:[#allocation3 + $0x378] sm:$0xff] %vm469_vm3, %v1792_v63  ;;  %1931 = vrot.lane.b32.xlu0 %v4222_v38, %s3120_s7 }
 0x556   : > { %2303 = vrot.lane.b32.xlu1 %v4224_v39, %s3120_s7 }
 0x557   : > { %v1794_v2 = vpop.permute.xlu0 %1793 }
 0x558   : > { %v1796_v1 = vpop.permute.xlu1 %1795  ;;  %1891 = vst.msk [vmem:[#allocation3 + $0x388] sm:$0xff] %vm469_vm3, %v1794_v2 }
 0x559   : > { %1892 = vst.msk [vmem:[#allocation3 + $0x398] sm:$0xff] %vm469_vm3, %v1796_v1  ;;  %1929 = vrot.lane.b32.xlu0 %v3184_v12, %s3120_s7 }
 0x55b   : > { %v1798_v4 = vpop.permute.xlu0 %1797 }
 0x55c   : > { %v1800_v3 = vpop.permute.xlu1 %1799  ;;  %1893 = vst.msk [vmem:[#allocation3 + $0x3a8] sm:$0xff] %vm469_vm3, %v1798_v4 }
 0x55d   : > { %1894 = vst.msk [vmem:[#allocation3 + $0x3b8] sm:$0xff] %vm469_vm3, %v1800_v3  ;;  %2301 = vrot.lane.b32.xlu0 %v4222_v38, %s3120_s7 }
 0x55f   : > { %v4378_v6 = vpop.permute.xlu0 %1927 }
 0x560   : > { %v4376_v5 = vpop.permute.xlu1 %2299  ;;  %1991 = vrot.lane.b32.xlu1 %v4378_v6, %s3128_s15 }
 0x563   : > { %v4384_v8 = vpop.permute.xlu0 %1925 }
 0x564   : > { %v4382_v7 = vpop.permute.xlu1 %2297  ;;  %2363 = vrot.lane.b32.xlu1 %v4376_v5, %s3128_s15  ;;  %1989 = vrot.lane.b32.xlu0 %v4384_v8, %s3128_s15 }
 0x567   : > { %v4392_v14 = vpop.permute.xlu0 %1923 }
 0x568   : > { %v4390_v9 = vpop.permute.xlu1 %2295  ;;  %2361 = vrot.lane.b32.xlu1 %v4382_v7, %s3128_s15  ;;  %1987 = vrot.lane.b32.xlu0 %v4392_v14, %s3128_s15 }
 0x56b   : > { %v4400_v16 = vpop.permute.xlu0 %1921 }
 0x56c   : > { %v4398_v15 = vpop.permute.xlu1 %2293  ;;  %2359 = vrot.lane.b32.xlu1 %v4390_v9, %s3128_s15  ;;  %1985 = vrot.lane.b32.xlu0 %v4400_v16, %s3128_s15 }
 0x56f   : > { %v4408_v18 = vpop.permute.xlu0 %1919 }
 0x570   : > { %v4406_v17 = vpop.permute.xlu1 %2291  ;;  %2357 = vrot.lane.b32.xlu1 %v4398_v15, %s3128_s15  ;;  %1983 = vrot.lane.b32.xlu0 %v4408_v18, %s3128_s15 }
 0x573   : > { %v4416_v21 = vpop.permute.xlu0 %1917 }
 0x574   : > { %v4414_v20 = vpop.permute.xlu1 %2289  ;;  %2355 = vrot.lane.b32.xlu1 %v4406_v17, %s3128_s15  ;;  %1981 = vrot.lane.b32.xlu0 %v4416_v21, %s3128_s15 }
 0x577   : > { %v4424_v22 = vpop.permute.xlu0 %1915 }
 0x578   : > { %v4422_v10 = vpop.permute.xlu1 %2287  ;;  %2353 = vrot.lane.b32.xlu1 %v4414_v20, %s3128_s15  ;;  %1979 = vrot.lane.b32.xlu0 %v4424_v22, %s3128_s15 }
 0x57b   : > { %v4432_v24 = vpop.permute.xlu0 %1913 }
 0x57c   : > { %v4430_v23 = vpop.permute.xlu1 %2285  ;;  %2351 = vrot.lane.b32.xlu1 %v4422_v10, %s3128_s15  ;;  %1977 = vrot.lane.b32.xlu0 %v4432_v24, %s3128_s15 }
 0x57f   : > { %v4440_v26 = vpop.permute.xlu0 %1911 }
 0x580   : > { %v4438_v25 = vpop.permute.xlu1 %2283  ;;  %2349 = vrot.lane.b32.xlu1 %v4430_v23, %s3128_s15  ;;  %1975 = vrot.lane.b32.xlu0 %v4440_v26, %s3128_s15 }
 0x583   : > { %v4448_v28 = vpop.permute.xlu0 %1909 }
 0x584   : > { %v4446_v27 = vpop.permute.xlu1 %2281  ;;  %2347 = vrot.lane.b32.xlu1 %v4438_v25, %s3128_s15  ;;  %1973 = vrot.lane.b32.xlu0 %v4448_v28, %s3128_s15 }
 0x587   : > { %v4456_v30 = vpop.permute.xlu0 %1907 }
 0x588   : > { %v4454_v29 = vpop.permute.xlu1 %2279  ;;  %2345 = vrot.lane.b32.xlu1 %v4446_v27, %s3128_s15  ;;  %1971 = vrot.lane.b32.xlu0 %v4456_v30, %s3128_s15 }
 0x58b   : > { %v4464_v32 = vpop.permute.xlu0 %1905 }
 0x58c   : > { %v4462_v31 = vpop.permute.xlu1 %2277  ;;  %2343 = vrot.lane.b32.xlu1 %v4454_v29, %s3128_s15  ;;  %1969 = vrot.lane.b32.xlu0 %v4464_v32, %s3128_s15 }
 0x58f   : > { %v4472_v34 = vpop.permute.xlu0 %1903 }
 0x590   : > { %v4470_v33 = vpop.permute.xlu1 %2275  ;;  %2341 = vrot.lane.b32.xlu1 %v4462_v31, %s3128_s15  ;;  %1967 = vrot.lane.b32.xlu0 %v4472_v34, %s3128_s15 }
 0x593   : > { %v4480_v36 = vpop.permute.xlu0 %1901 }
 0x594   : > { %v4478_v35 = vpop.permute.xlu1 %2273  ;;  %2339 = vrot.lane.b32.xlu1 %v4470_v33, %s3128_s15  ;;  %1959 = vrot.lane.b32.xlu0 %v4222_v38, %s3127_s14 }
 0x597   : > { %v4488_v42 = vpop.permute.xlu0 %1955 }
 0x598   : > { %v4486_v37 = vpop.permute.xlu1 %2327  ;;  %2331 = vrot.lane.b32.xlu0 %v4224_v39, %s3127_s14  ;;  %1965 = vrot.lane.b32.xlu1 %v4480_v36, %s3128_s15 }
 0x59b   : > { %v4496_v44 = vpop.permute.xlu0 %1953 }
 0x59c   : > { %v4494_v43 = vpop.permute.xlu1 %2325  ;;  %1957 = vrot.lane.b32.xlu0 %v3184_v12, %s3127_s14  ;;  %2337 = vrot.lane.b32.xlu1 %v4478_v35, %s3128_s15 }
 0x59f   : > { %v4504_v46 = vpop.permute.xlu0 %1951 }
 0x5a0   : > { %v4502_v45 = vpop.permute.xlu1 %2323  ;;  %2329 = vrot.lane.b32.xlu0 %v4222_v38, %s3127_s14  ;;  %1963 = vrot.lane.b32.xlu1 %v4222_v38, %s3128_s15 }
 0x5a3   : > { %v4512_v48 = vpop.permute.xlu0 %1949 }
 0x5a4   : > { %v4510_v47 = vpop.permute.xlu1 %2321  ;;  %1961 = vrot.lane.b32.xlu0 %v3184_v12, %s3128_s15  ;;  %2335 = vrot.lane.b32.xlu1 %v4224_v39, %s3128_s15 }
 0x5a7   : > { %v4520_v50 = vpop.permute.xlu0 %1947 }
 0x5a8   : > { %v4518_v49 = vpop.permute.xlu1 %2319  ;;  %2333 = vrot.lane.b32.xlu1 %v4222_v38, %s3128_s15  ;;  %2019 = vrot.lane.b32.xlu0 %v4488_v42, %s3128_s15 }
 0x5ab   : > { %v4528_v52 = vpop.permute.xlu0 %1945 }
 0x5ac   : > { %v4526_v51 = vpop.permute.xlu1 %2317  ;;  %2391 = vrot.lane.b32.xlu1 %v4486_v37, %s3128_s15  ;;  %2017 = vrot.lane.b32.xlu0 %v4496_v44, %s3128_s15 }
 0x5af   : > { %v4536_v54 = vpop.permute.xlu0 %1943 }
 0x5b0   : > { %v4534_v53 = vpop.permute.xlu1 %2315  ;;  %2389 = vrot.lane.b32.xlu1 %v4494_v43, %s3128_s15  ;;  %2015 = vrot.lane.b32.xlu0 %v4504_v46, %s3128_s15 }
 0x5b3   : > { %v4544_v11 = vpop.permute.xlu0 %1941 }
 0x5b4   : > { %v4542_v55 = vpop.permute.xlu1 %2313  ;;  %2387 = vrot.lane.b32.xlu1 %v4502_v45, %s3128_s15  ;;  %2013 = vrot.lane.b32.xlu0 %v4512_v48, %s3128_s15 }
 0x5b7   : > { %v4552_v19 = vpop.permute.xlu0 %1939 }
 0x5b8   : > { %v4550_v13 = vpop.permute.xlu1 %2311  ;;  %2385 = vrot.lane.b32.xlu1 %v4510_v47, %s3128_s15  ;;  %2011 = vrot.lane.b32.xlu0 %v4520_v50, %s3128_s15 }
 0x5b9   : > { %5113 = vst [vmem:[#allocation4_spill] sm:$0xff] %v4550_v13 }
 0x5bb   : > { %v4558_v56 = vpop.permute.xlu0 %1937 }
 0x5bc   : > { %5114 = vst [vmem:[#allocation5_spill] sm:$0xff] %v4558_v56  ;;  %v4560_v57 = vpop.permute.xlu1 %2309  ;;  %2383 = vrot.lane.b32.xlu1 %v4518_v49, %s3128_s15  ;;  %2009 = vrot.lane.b32.xlu0 %v4528_v52, %s3128_s15 }
 0x5bd   : > { %5115 = vst [vmem:[#allocation6_spill] sm:$0xff] %v4560_v57 }
 0x5bf   : > { %v4566_v58 = vpop.permute.xlu0 %1935 }
 0x5c0   : > { %5116 = vst [vmem:[#allocation7_spill] sm:$0xff] %v4566_v58  ;;  %2381 = vrot.lane.b32.xlu1 %v4526_v51, %s3128_s15  ;;  %2007 = vrot.lane.b32.xlu0 %v4536_v54, %s3128_s15  ;;  %v4572_v59 = vpop.permute.xlu1 %2307 }
 0x5c1   : > { %5117 = vst [vmem:[#allocation8_spill] sm:$0xff] %v4572_v59 }
 0x5c3   : > { %v4574_v60 = vpop.permute.xlu0 %1933 }
 0x5c4   : > { %5118 = vst [vmem:[#allocation9_spill] sm:$0xff] %v4574_v60  ;;  %2379 = vrot.lane.b32.xlu1 %v4534_v53, %s3128_s15  ;;  %2005 = vrot.lane.b32.xlu0 %v4544_v11, %s3128_s15  ;;  %v4582_v62 = vpop.permute.xlu1 %2305 }
 0x5c5   : > { %5120 = vst [vmem:[#allocation11_spill] sm:$0xff] %v4582_v62 }
 0x5c7   : > { %v4580_v61 = vpop.permute.xlu0 %1931 }
 0x5c8   : > { %5119 = vst [vmem:[#allocation10_spill] sm:$0xff] %v4580_v61  ;;  %2377 = vrot.lane.b32.xlu1 %v4542_v55, %s3128_s15  ;;  %2003 = vrot.lane.b32.xlu0 %v4552_v19, %s3128_s15  ;;  %v4594_v0 = vpop.permute.xlu1 %2303 }
 0x5c9   : > { %5122 = vst [vmem:[#allocation13_spill] sm:$0xff] %v4594_v0 }
 0x5cb   : > { %v4588_v63 = vpop.permute.xlu0 %1929 }
 0x5cc   : > { %5121 = vst [vmem:[#allocation12_spill] sm:$0xff] %v4588_v63  ;;  %2375 = vrot.lane.b32.xlu1 %v4550_v13, %s3128_s15  ;;  %2001 = vrot.lane.b32.xlu0 %v4558_v56, %s3128_s15 }
 0x5cf   : > { %v4600_v1 = vpop.permute.xlu0 %2301 }
 0x5d0   : > { %2373 = vrot.lane.b32.xlu1 %v4560_v57, %s3128_s15  ;;  %1999 = vrot.lane.b32.xlu0 %v4566_v58, %s3128_s15 }
 0x5d2   : > { %v1992_v2 = vpop.permute.xlu1 %1991 }
 0x5d4   : > { %2051 = vrot.lane.b32.xlu1 %v4378_v6, %s3129_s16  ;;  %2371 = vrot.lane.b32.xlu0 %v4572_v59, %s3128_s15 }
 0x5d6   : > { %v2364_v3 = vpop.permute.xlu1 %2363  ;;  %v1990_v4 = vpop.permute.xlu0 %1989 }
 0x5d8   : > { %2423 = vrot.lane.b32.xlu1 %v4376_v5, %s3130_s17  ;;  %1997 = vrot.lane.b32.xlu0 %v4574_v60, %s3128_s15 }
 0x5da   : > { %v2362_v57 = vpop.permute.xlu1 %2361  ;;  %v1988_v56 = vpop.permute.xlu0 %1987 }
 0x5dc   : > { %2049 = vrot.lane.b32.xlu1 %v4384_v8, %s3129_s16  ;;  %2369 = vrot.lane.b32.xlu0 %v4582_v62, %s3128_s15 }
 0x5de   : > { %v2360_v6 = vpop.permute.xlu1 %2359  ;;  %v1986_v58 = vpop.permute.xlu0 %1985 }
 0x5e0   : > { %2421 = vrot.lane.b32.xlu1 %v4382_v7, %s3130_s17  ;;  %1995 = vrot.lane.b32.xlu0 %v4580_v61, %s3128_s15 }
 0x5e2   : > { %v2358_v5 = vpop.permute.xlu1 %2357  ;;  %v1984_v59 = vpop.permute.xlu0 %1983 }
 0x5e4   : > { %2047 = vrot.lane.b32.xlu1 %v4392_v14, %s3129_s16  ;;  %2367 = vrot.lane.b32.xlu0 %v4594_v0, %s3128_s15 }
 0x5e6   : > { %v2356_v8 = vpop.permute.xlu1 %2355  ;;  %v1982_v60 = vpop.permute.xlu0 %1981 }
 0x5e8   : > { %2419 = vrot.lane.b32.xlu1 %v4390_v9, %s3130_s17  ;;  %1993 = vrot.lane.b32.xlu0 %v4588_v63, %s3128_s15 }
 0x5ea   : > { %v2354_v7 = vpop.permute.xlu1 %2353  ;;  %v1980_v62 = vpop.permute.xlu0 %1979 }
 0x5ec   : > { %2045 = vrot.lane.b32.xlu1 %v4400_v16, %s3129_s16  ;;  %2115 = vrot.lane.b32.xlu0 %v1992_v2, %s3129_s16 }
 0x5ee   : > { %v2352_v61 = vpop.permute.xlu1 %2351  ;;  %v1978_v14 = vpop.permute.xlu0 %1977 }
 0x5f0   : > { %2417 = vrot.lane.b32.xlu0 %v4398_v15, %s3130_s17  ;;  %2365 = vrot.lane.b32.xlu1 %v4600_v1, %s3128_s15 }
 0x5f2   : > { %v2350_v0 = vpop.permute.xlu1 %2349  ;;  %v1976_v9 = vpop.permute.xlu0 %1975 }
 0x5f4   : > { %2043 = vrot.lane.b32.xlu0 %v4408_v18, %s3129_s16  ;;  %2487 = vrot.lane.b32.xlu1 %v2364_v3, %s3130_s17 }
 0x5f6   : > { %v2348_v63 = vpop.permute.xlu1 %2347  ;;  %v4636_v13 = vpop.permute.xlu0 %1973 }
 0x5f8   : > { %2415 = vrot.lane.b32.xlu0 %v4406_v17, %s3130_s17  ;;  %2113 = vrot.lane.b32.xlu1 %v1990_v4, %s3129_s16 }
 0x5fa   : > { %v4641_v16 = vpop.permute.xlu1 %2345  ;;  %v4643_v15 = vpop.permute.xlu0 %1971 }
 0x5fc   : > { %2041 = vrot.lane.b32.xlu0 %v4416_v21, %s3129_s16  ;;  %2485 = vrot.lane.b32.xlu1 %v2362_v57, %s3130_s17 }
 0x5fe   : > { %v4648_v18 = vpop.permute.xlu1 %2343  ;;  %v4650_v2 = vpop.permute.xlu0 %1969 }
 0x600   : > { %2413 = vrot.lane.b32.xlu0 %v4414_v20, %s3130_s17  ;;  %2111 = vrot.lane.b32.xlu1 %v1988_v56, %s3129_s16 }
 0x602   : > { %v4655_v17 = vpop.permute.xlu1 %2341  ;;  %v4657_v3 = vpop.permute.xlu0 %1967 }
 0x604   : > { %2039 = vrot.lane.b32.xlu0 %v4424_v22, %s3129_s16  ;;  %2483 = vrot.lane.b32.xlu1 %v2360_v6, %s3130_s17 }
 0x606   : > { %v4662_v21 = vpop.permute.xlu1 %2339  ;;  %v4664_v57 = vpop.permute.xlu0 %1959 }
 0x608   : > { %2411 = vrot.lane.b32.xlu0 %v4422_v10, %s3130_s17  ;;  %2109 = vrot.lane.b32.xlu1 %v1986_v58, %s3129_s16 }
 0x60a   : > { %v4669_v20 = vpop.permute.xlu1 %1965  ;;  %v4671_v56 = vpop.permute.xlu0 %2331 }
 0x60c   : > { %2037 = vrot.lane.b32.xlu0 %v4432_v24, %s3129_s16  ;;  %2481 = vrot.lane.b32.xlu1 %v2358_v5, %s3130_s17 }
 0x60e   : > { %v4676_v22 = vpop.permute.xlu1 %2337  ;;  %v4678_v4 = vpop.permute.xlu0 %1957 }
 0x610   : > { %2409 = vrot.lane.b32.xlu0 %v4430_v23, %s3130_s17  ;;  %2107 = vrot.lane.b32.xlu1 %v1984_v59, %s3129_s16 }
 0x612   : > { %v4683_v10 = vpop.permute.xlu1 %1963  ;;  %v4685_v58 = vpop.permute.xlu0 %2329 }
 0x614   : > { %2035 = vrot.lane.b32.xlu0 %v4440_v26, %s3129_s16  ;;  %2479 = vrot.lane.b32.xlu1 %v2356_v8, %s3130_s17 }
 0x616   : > { %v4690_v24 = vpop.permute.xlu1 %2335  ;;  %v4692_v6 = vpop.permute.xlu0 %1961 }
 0x618   : > { %2407 = vrot.lane.b32.xlu0 %v4438_v25, %s3130_s17  ;;  %2105 = vrot.lane.b32.xlu1 %v1982_v60, %s3129_s16 }
 0x61a   : > { %v4697_v23 = vpop.permute.xlu1 %2333  ;;  %v4699_v59 = vpop.permute.xlu0 %2019 }
 0x61c   : > { %2033 = vrot.lane.b32.xlu0 %v4448_v28, %s3129_s16  ;;  %2477 = vrot.lane.b32.xlu1 %v2354_v7, %s3130_s17 }
 0x61e   : > { %v4704_v26 = vpop.permute.xlu1 %2391  ;;  %v4706_v5 = vpop.permute.xlu0 %2017 }
 0x620   : > { %2405 = vrot.lane.b32.xlu0 %v4446_v27, %s3130_s17  ;;  %2103 = vrot.lane.b32.xlu1 %v1980_v62, %s3129_s16 }
 0x622   : > { %v4711_v25 = vpop.permute.xlu1 %2389  ;;  %v4713_v60 = vpop.permute.xlu0 %2015 }
 0x624   : > { %2031 = vrot.lane.b32.xlu0 %v4456_v30, %s3129_s16  ;;  %2475 = vrot.lane.b32.xlu1 %v2352_v61, %s3130_s17 }
 0x626   : > { %v4718_v28 = vpop.permute.xlu1 %2387  ;;  %v4720_v8 = vpop.permute.xlu0 %2013 }
 0x628   : > { %2403 = vrot.lane.b32.xlu0 %v4454_v29, %s3130_s17  ;;  %2101 = vrot.lane.b32.xlu1 %v1978_v14, %s3129_s16 }
 0x62a   : > { %v4725_v27 = vpop.permute.xlu1 %2385  ;;  %v4727_v62 = vpop.permute.xlu0 %2011 }
 0x62c   : > { %2029 = vrot.lane.b32.xlu0 %v4464_v32, %s3129_s16  ;;  %2473 = vrot.lane.b32.xlu1 %v2350_v0, %s3130_s17 }
 0x62e   : > { %v4732_v30 = vpop.permute.xlu1 %2383  ;;  %v4734_v61 = vpop.permute.xlu0 %2009 }
 0x630   : > { %2401 = vrot.lane.b32.xlu0 %v4462_v31, %s3130_s17  ;;  %2099 = vrot.lane.b32.xlu1 %v1976_v9, %s3129_s16 }
 0x632   : > { %v4739_v29 = vpop.permute.xlu1 %2381  ;;  %v4741_v7 = vpop.permute.xlu0 %2007 }
 0x634   : > { %2027 = vrot.lane.b32.xlu0 %v4472_v34, %s3129_s16  ;;  %2471 = vrot.lane.b32.xlu1 %v2348_v63, %s3130_s17 }
 0x636   : > { %v4746_v32 = vpop.permute.xlu1 %2379  ;;  %v4748_v0 = vpop.permute.xlu0 %2005 }
 0x638   : > { %2399 = vrot.lane.b32.xlu0 %v4470_v33, %s3130_s17  ;;  %2097 = vrot.lane.b32.xlu1 %v4636_v13, %s3129_s16 }
 0x63a   : > { %v4754_v31 = vpop.permute.xlu1 %2377  ;;  %v4756_v14 = vpop.permute.xlu0 %2003 }
 0x63c   : > { %2025 = vrot.lane.b32.xlu0 %v4480_v36, %s3129_s16  ;;  %2469 = vrot.lane.b32.xlu1 %v4641_v16, %s3130_s17 }
 0x63e   : > { %v4762_v34 = vpop.permute.xlu1 %2375  ;;  %v4764_v63 = vpop.permute.xlu0 %2001 }
 0x640   : > { %2397 = vrot.lane.b32.xlu0 %v4478_v35, %s3130_s17  ;;  %2095 = vrot.lane.b32.xlu1 %v4643_v15, %s3129_s16 }
 0x642   : > { %v4770_v33 = vpop.permute.xlu1 %2373  ;;  %v4772_v13 = vpop.permute.xlu0 %1999 }
 0x644   : > { %2023 = vrot.lane.b32.xlu0 %v4222_v38, %s3129_s16  ;;  %2467 = vrot.lane.b32.xlu1 %v4648_v18, %s3130_s17 }
 0x646   : > { %v2052_v36 = vpop.permute.xlu1 %2051  ;;  %v4778_v9 = vpop.permute.xlu0 %2371 }
 0x647   : > { %2222 = vst.msk [vmem:[#allocation3 + $0xf8] sm:$0xff] %vm842_vm4, %v2052_v36 }
 0x648   : > { %2395 = vrot.lane.b32.xlu0 %v4224_v39, %s3130_s17  ;;  %2093 = vrot.lane.b32.xlu1 %v4650_v2, %s3129_s16 }
 0x64a   : > { %v2424_v35 = vpop.permute.xlu1 %2423  ;;  %v4785_v16 = vpop.permute.xlu0 %1997 }
 0x64b   : > { %2594 = vst.msk [vmem:[#allocation3 + $0xf8] sm:$0xff] %vm1215_vm5, %v2424_v35 }
 0x64c   : > { %2021 = vrot.lane.b32.xlu0 %v3184_v12, %s3129_s16  ;;  %2465 = vrot.lane.b32.xlu1 %v4655_v17, %s3130_s17  ;;  %v2675_v12 = vld [vmem:[#allocation3 + $0xf0] sm:$0xff] }
 0x64e   : > { %v2050_v15 = vpop.permute.xlu1 %2049  ;;  %v4792_v18 = vpop.permute.xlu0 %2369 }
 0x64f   : > { %2221 = vst.msk [vmem:[#allocation3 + $0xe8] sm:$0xff] %vm842_vm4, %v2050_v15 }
 0x650   : > { %2393 = vrot.lane.b32.xlu0 %v4222_v38, %s3130_s17  ;;  %2091 = vrot.lane.b32.xlu1 %v4657_v3, %s3129_s16 }
 0x652   : > { %v2422_v39 = vpop.permute.xlu1 %2421  ;;  %v4799_v2 = vpop.permute.xlu0 %1995  ;;  %v2676_v36 = vld [vmem:[#allocation3 + $0xf8] sm:$0xff] }
 0x653   : > { %2593 = vst.msk [vmem:[#allocation3 + $0xe8] sm:$0xff] %vm1215_vm5, %v2422_v39  ;;  %2779 = vmatprep.subr.mxu0 %v2676_v36 }
 0x654   : > { %2780 = vmatpush1.msra.mxu0 %v2675_v12  ;;  %2463 = vrot.lane.b32.xlu1 %v4662_v21, %s3130_s17  ;;  %v2673_v21 = vld [vmem:[#allocation3 + $0xe0] sm:$0xff] }
 0x655   : > { %2083 = vrot.lane.b32.xlu0 %v4664_v57, %s3129_s16 }
 0x656   : > { %v2048_v17 = vpop.permute.xlu1 %2047  ;;  %v4806_v38 = vpop.permute.xlu0 %2367 }
 0x657   : > { %2220 = vst.msk [vmem:[#allocation3 + $0xd8] sm:$0xff] %vm842_vm4, %v2048_v17 }
 0x658   : > { %2089 = vrot.lane.b32.xlu1 %v4669_v20, %s3129_s16 }
 0x659   : > { %2455 = vrot.lane.b32.xlu0 %v4671_v56, %s3130_s17 }
 0x65a   : > { %v2420_v3 = vpop.permute.xlu1 %2419  ;;  %v4813_v35 = vpop.permute.xlu0 %1993  ;;  %v2674_v15 = vld [vmem:[#allocation3 + $0xe8] sm:$0xff] }
 0x65b   : > { %2592 = vst.msk [vmem:[#allocation3 + $0xd8] sm:$0xff] %vm1215_vm5, %v2420_v3  ;;  %2781 = vmatprep.subr.mxu0 %v2674_v15 }
 0x65c   : > { %2782 = vmatpush1.msra.mxu0 %v2673_v21  ;;  %2461 = vrot.lane.b32.xlu1 %v4676_v22, %s3130_s17  ;;  %v2671_v22 = vld [vmem:[#allocation3 + $0xd0] sm:$0xff] }
 0x65d   : > { %2081 = vrot.lane.b32.xlu0 %v4678_v4, %s3129_s16 }
 0x65e   : > { %v2046_v57 = vpop.permute.xlu1 %2045  ;;  %v2116_v20 = vpop.permute.xlu0 %2115 }
 0x65f   : > { %2219 = vst.msk [vmem:[#allocation3 + $0xc8] sm:$0xff] %vm842_vm4, %v2046_v57  ;;  %2254 = vst.msk [vmem:[#allocation3 + $0x2f8] sm:$0xff] %vm842_vm4, %v2116_v20 }
 0x660   : > { %2087 = vrot.lane.b32.xlu1 %v4683_v10, %s3129_s16 }
 0x661   : > { %2453 = vrot.lane.b32.xlu0 %v4685_v58, %s3130_s17 }
 0x662   : > { %v4826_v56 = vpop.permute.xlu1 %2365  ;;  %v2418_v39 = vpop.permute.xlu0 %2417  ;;  %v2672_v36 = vld [vmem:[#allocation3 + $0xd8] sm:$0xff] }
 0x663   : > { %2591 = vst.msk [vmem:[#allocation3 + $0xc8] sm:$0xff] %vm1215_vm5, %v2418_v39  ;;  %2783 = vmatprep.subr.mxu0 %v2672_v36 }
 0x664   : > { %2784 = vmatpush1.msra.mxu0 %v2671_v22  ;;  %2459 = vrot.lane.b32.xlu1 %v4690_v24, %s3130_s17 }
 0x665   : > { %2079 = vrot.lane.b32.xlu0 %v4488_v42, %s3129_s16  ;;  %v2669_v42 = vld [vmem:[#allocation3 + $0xc0] sm:$0xff] }
 0x666   : > { %v2488_v4 = vpop.permute.xlu1 %2487  ;;  %v2044_v10 = vpop.permute.xlu0 %2043 }
 0x667   : > { %2626 = vst.msk [vmem:[#allocation3 + $0x2f8] sm:$0xff] %vm1215_vm5, %v2488_v4 }
 0x668   : > { %2218 = vst.msk [vmem:[#allocation3 + $0xb8] sm:$0xff] %vm842_vm4, %v2044_v10  ;;  %2085 = vrot.lane.b32.xlu1 %v4692_v6, %s3129_s16 }
 0x669   : > { %1803 = vrot.lane.b32.xlu0 %v4226_v40, %s3128_s15  ;;  %v2739_v40 = vld [vmem:[#allocation3 + $0x2f0] sm:$0xff] }
 0x66a   : > { %v2114_v58 = vpop.permute.xlu1 %2113  ;;  %v2416_v12 = vpop.permute.xlu0 %2415  ;;  %v2670_v17 = vld [vmem:[#allocation3 + $0xc8] sm:$0xff] }
 0x66b   : > { %2253 = vst.msk [vmem:[#allocation3 + $0x2e8] sm:$0xff] %vm842_vm4, %v2114_v58  ;;  %2785 = vmatprep.subr.mxu0 %v2670_v17 }
 0x66c   : > { %2590 = vst.msk [vmem:[#allocation3 + $0xb8] sm:$0xff] %vm1215_vm5, %v2416_v12  ;;  %2451 = vrot.lane.b32.xlu1 %v4486_v37, %s3130_s17  ;;  %2786 = vmatpush1.msra.mxu0 %v2669_v42 }
 0x66d   : > { %2457 = vrot.lane.b32.xlu0 %v4697_v23, %s3130_s17  ;;  %v2667_v23 = vld [vmem:[#allocation3 + $0xb0] sm:$0xff] }
 0x66e   : > { %v2486_v24 = vpop.permute.xlu1 %2485  ;;  %v2042_v6 = vpop.permute.xlu0 %2041  ;;  %v2740_v3 = vld [vmem:[#allocation3 + $0x2f8] sm:$0xff] }
 0x66f   : > { %2625 = vst.msk [vmem:[#allocation3 + $0x2e8] sm:$0xff] %vm1215_vm5, %v2486_v24  ;;  %2850 = vmatprep.subr.mxu1 %v2740_v3 }
 0x670   : > { %2217 = vst.msk [vmem:[#allocation3 + $0xa8] sm:$0xff] %vm842_vm4, %v2042_v6  ;;  %2077 = vrot.lane.b32.xlu1 %v4496_v44, %s3129_s16  ;;  %2851 = vmatpush1.msra.mxu1 %v2739_v40 }
 0x671   : > { %2143 = vrot.lane.b32.xlu0 %v4699_v59, %s3129_s16  ;;  %v2737_v59 = vld [vmem:[#allocation3 + $0x2e0] sm:$0xff] }
 0x672   : > { %v2112_v37 = vpop.permute.xlu1 %2111  ;;  %v2414_v15 = vpop.permute.xlu0 %2413 }
 0x673   : > { %v2668_v21 = vld [vmem:[#allocation3 + $0xb8] sm:$0xff]  ;;  %2252 = vst.msk [vmem:[#allocation3 + $0x2d8] sm:$0xff] %vm842_vm4, %v2112_v37 }
 0x674   : > { %2589 = vst.msk [vmem:[#allocation3 + $0xa8] sm:$0xff] %vm1215_vm5, %v2414_v15  ;;  %2787 = vmatprep.subr.mxu0 %v2668_v21  ;;  %1801 = vrot.lane.b32.xlu1 %v4228_v41, %s3128_s15 }
 0x675   : > { %2788 = vmatpush1.msra.mxu0 %v2667_v23  ;;  %2449 = vrot.lane.b32.xlu0 %v4494_v43, %s3130_s17  ;;  %v2665_v43 = vld [vmem:[#allocation3 + $0xa0] sm:$0xff] }
 0x676   : > { %v2484_v44 = vpop.permute.xlu1 %2483  ;;  %v2040_v57 = vpop.permute.xlu0 %2039  ;;  %v2738_v20 = vld [vmem:[#allocation3 + $0x2e8] sm:$0xff] }
 0x677   : > { %2624 = vst.msk [vmem:[#allocation3 + $0x2d8] sm:$0xff] %vm1215_vm5, %v2484_v44  ;;  %2852 = vmatprep.subr.mxu1 %v2738_v20 }
 0x678   : > { %2216 = vst.msk [vmem:[#allocation3 + $0x98] sm:$0xff] %vm842_vm4, %v2040_v57  ;;  %2515 = vrot.lane.b32.xlu1 %v4704_v26, %s3130_s17  ;;  %2853 = vmatpush1.msra.mxu1 %v2737_v59 }
 0x679   : > { %2075 = vrot.lane.b32.xlu0 %v4504_v46, %s3129_s16  ;;  %v2735_v46 = vld [vmem:[#allocation3 + $0x2d0] sm:$0xff] }
 0x67a   : > { %v2110_v41 = vpop.permute.xlu1 %2109  ;;  %v2412_v39 = vpop.permute.xlu0 %2411 }
 0x67b   : > { %v2666_v36 = vld [vmem:[#allocation3 + $0xa8] sm:$0xff]  ;;  %2251 = vst.msk [vmem:[#allocation3 + $0x2c8] sm:$0xff] %vm842_vm4, %v2110_v41 }
 0x67c   : > { %2588 = vst.msk [vmem:[#allocation3 + $0x98] sm:$0xff] %vm1215_vm5, %v2412_v39  ;;  %2789 = vmatprep.subr.mxu0 %v2666_v36  ;;  %2141 = vrot.lane.b32.xlu1 %v4706_v5, %s3129_s16 }
 0x67d   : > { %2790 = vmatpush1.msra.mxu0 %v2665_v43  ;;  %2447 = vrot.lane.b32.xlu0 %v4502_v45, %s3130_s17  ;;  %v2663_v45 = vld [vmem:[#allocation3 + $0x90] sm:$0xff] }
 0x67e   : > { %v2482_v26 = vpop.permute.xlu1 %2481  ;;  %v2038_v22 = vpop.permute.xlu0 %2037  ;;  %v2736_v4 = vld [vmem:[#allocation3 + $0x2d8] sm:$0xff] }
 0x67f   : > { %2623 = vst.msk [vmem:[#allocation3 + $0x2c8] sm:$0xff] %vm1215_vm5, %v2482_v26  ;;  %2854 = vmatprep.subr.mxu1 %v2736_v4 }
 0x680   : > { %2215 = vst.msk [vmem:[#allocation3 + $0x88] sm:$0xff] %vm842_vm4, %v2038_v22  ;;  %2513 = vrot.lane.b32.xlu1 %v4711_v25, %s3130_s17  ;;  %2855 = vmatpush1.msra.mxu1 %v2735_v46  ;;  %v5123_v22 = vld [vmem:[#allocation4_spill] sm:$0xff] }
 0x681   : > { %2073 = vrot.lane.b32.xlu0 %v4512_v48, %s3129_s16  ;;  %v2733_v48 = vld [vmem:[#allocation3 + $0x2c0] sm:$0xff] }
 0x682   : > { %v2108_v5 = vpop.permute.xlu1 %2107  ;;  %v2410_v10 = vpop.permute.xlu0 %2409 }
 0x683   : > { %v2664_v58 = vld [vmem:[#allocation3 + $0x98] sm:$0xff]  ;;  %2250 = vst.msk [vmem:[#allocation3 + $0x2b8] sm:$0xff] %vm842_vm4, %v2108_v5  ;;  %v5124_v5 = vld [vmem:[#allocation5_spill] sm:$0xff] }
 0x684   : > { %2587 = vst.msk [vmem:[#allocation3 + $0x88] sm:$0xff] %vm1215_vm5, %v2410_v10  ;;  %2791 = vmatprep.subr.mxu0 %v2664_v58  ;;  %2139 = vrot.lane.b32.xlu1 %v4713_v60, %s3129_s16 }
 0x685   : > { %2792 = vmatpush1.msra.mxu0 %v2663_v45  ;;  %2445 = vrot.lane.b32.xlu0 %v4510_v47, %s3130_s17  ;;  %v2661_v47 = vld [vmem:[#allocation3 + $0x80] sm:$0xff]  ;;  %v2651_v45 = vld [vmem:[#allocation3 + $0x30] sm:$0xff] }
 0x686   : > { %v2480_v25 = vpop.permute.xlu1 %2479  ;;  %v2036_v12 = vpop.permute.xlu0 %2035  ;;  %v2734_v17 = vld [vmem:[#allocation3 + $0x2c8] sm:$0xff] }
 0x687   : > { %2622 = vst.msk [vmem:[#allocation3 + $0x2b8] sm:$0xff] %vm1215_vm5, %v2480_v25  ;;  %2856 = vmatprep.subr.mxu1 %v2734_v17  ;;  %v5125_v25 = vld [vmem:[#allocation6_spill] sm:$0xff] }
 0x688   : > { %2214 = vst.msk [vmem:[#allocation3 + $0x78] sm:$0xff] %vm842_vm4, %v2036_v12  ;;  %2511 = vrot.lane.b32.xlu1 %v4718_v28, %s3130_s17  ;;  %2857 = vmatpush1.msra.mxu1 %v2733_v48  ;;  %v2721_v48 = vld [vmem:[#allocation3 + $0x260] sm:$0xff] }
 0x689   : > { %2071 = vrot.lane.b32.xlu0 %v4520_v50, %s3129_s16  ;;  %v2731_v50 = vld [vmem:[#allocation3 + $0x2b0] sm:$0xff] }
 0x68a   : > { %v2106_v60 = vpop.permute.xlu1 %2105  ;;  %v2408_v42 = vpop.permute.xlu0 %2407 }
 0x68b   : > { %v2662_v24 = vld [vmem:[#allocation3 + $0x88] sm:$0xff]  ;;  %2249 = vst.msk [vmem:[#allocation3 + $0x2a8] sm:$0xff] %vm842_vm4, %v2106_v60  ;;  %v5126_v60 = vld [vmem:[#allocation7_spill] sm:$0xff] }
 0x68c   : > { %2586 = vst.msk [vmem:[#allocation3 + $0x78] sm:$0xff] %vm1215_vm5, %v2408_v42  ;;  %2793 = vmatprep.subr.mxu0 %v2662_v24  ;;  %2137 = vrot.lane.b32.xlu1 %v4720_v8, %s3129_s16 }
 0x68d   : > { %2794 = vmatpush1.msra.mxu0 %v2661_v47  ;;  %2443 = vrot.lane.b32.xlu0 %v4518_v49, %s3130_s17  ;;  %v2659_v49 = vld [vmem:[#allocation3 + $0x70] sm:$0xff]  ;;  %v2649_v47 = vld [vmem:[#allocation3 + $0x20] sm:$0xff] }
 0x68e   : > { %v2478_v28 = vpop.permute.xlu1 %2477  ;;  %v2034_v6 = vpop.permute.xlu0 %2033  ;;  %v2732_v3 = vld [vmem:[#allocation3 + $0x2b8] sm:$0xff] }
 0x68f   : > { %2621 = vst.msk [vmem:[#allocation3 + $0x2a8] sm:$0xff] %vm1215_vm5, %v2478_v28  ;;  %2858 = vmatprep.subr.mxu1 %v2732_v3  ;;  %v5127_v28 = vld [vmem:[#allocation8_spill] sm:$0xff] }
 0x690   : > { %2213 = vst.msk [vmem:[#allocation3 + $0x68] sm:$0xff] %vm842_vm4, %v2034_v6  ;;  %2509 = vrot.lane.b32.xlu1 %v4725_v27, %s3130_s17  ;;  %2859 = vmatpush1.msra.mxu1 %v2731_v50  ;;  %v2719_v50 = vld [vmem:[#allocation3 + $0x250] sm:$0xff] }
 0x691   : > { %2069 = vrot.lane.b32.xlu0 %v4528_v52, %s3129_s16  ;;  %v2729_v52 = vld [vmem:[#allocation3 + $0x2a0] sm:$0xff] }
 0x692   : > { %v2104_v8 = vpop.permute.xlu1 %2103  ;;  %v2406_v40 = vpop.permute.xlu0 %2405 }
 0x693   : > { %v2660_v37 = vld [vmem:[#allocation3 + $0x78] sm:$0xff]  ;;  %2248 = vst.msk [vmem:[#allocation3 + $0x298] sm:$0xff] %vm842_vm4, %v2104_v8  ;;  %v5128_v8 = vld [vmem:[#allocation9_spill] sm:$0xff] }
 0x694   : > { %2585 = vst.msk [vmem:[#allocation3 + $0x68] sm:$0xff] %vm1215_vm5, %v2406_v40  ;;  %2795 = vmatprep.subr.mxu0 %v2660_v37  ;;  %2135 = vrot.lane.b32.xlu1 %v4727_v62, %s3129_s16 }
 0x695   : > { %2796 = vmatpush1.msra.mxu0 %v2659_v49  ;;  %2441 = vrot.lane.b32.xlu0 %v4526_v51, %s3130_s17  ;;  %v2657_v51 = vld [vmem:[#allocation3 + $0x60] sm:$0xff]  ;;  %v2647_v49 = vld [vmem:[#allocation3 + $0x10] sm:$0xff] }
 0x696   : > { %v2476_v27 = vpop.permute.xlu1 %2475  ;;  %v2032_v15 = vpop.permute.xlu0 %2031  ;;  %v2730_v21 = vld [vmem:[#allocation3 + $0x2a8] sm:$0xff] }
 0x697   : > { %2620 = vst.msk [vmem:[#allocation3 + $0x298] sm:$0xff] %vm1215_vm5, %v2476_v27  ;;  %2860 = vmatprep.subr.mxu1 %v2730_v21  ;;  %v5129_v27 = vld [vmem:[#allocation11_spill] sm:$0xff] }
 0x698   : > { %2212 = vst.msk [vmem:[#allocation3 + $0x58] sm:$0xff] %vm842_vm4, %v2032_v15  ;;  %2507 = vrot.lane.b32.xlu1 %v4732_v30, %s3130_s17  ;;  %2861 = vmatpush1.msra.mxu1 %v2729_v52  ;;  %v2717_v52 = vld [vmem:[#allocation3 + $0x240] sm:$0xff] }
 0x699   : > { %2067 = vrot.lane.b32.xlu0 %v4536_v54, %s3129_s16  ;;  %v2727_v54 = vld [vmem:[#allocation3 + $0x290] sm:$0xff] }
 0x69a   : > { %v2102_v62 = vpop.permute.xlu1 %2101  ;;  %v2404_v23 = vpop.permute.xlu0 %2403 }
 0x69b   : > { %v2658_v44 = vld [vmem:[#allocation3 + $0x68] sm:$0xff]  ;;  %2247 = vst.msk [vmem:[#allocation3 + $0x288] sm:$0xff] %vm842_vm4, %v2102_v62  ;;  %v5130_v62 = vld [vmem:[#allocation10_spill] sm:$0xff] }
 0x69c   : > { %2584 = vst.msk [vmem:[#allocation3 + $0x58] sm:$0xff] %vm1215_vm5, %v2404_v23  ;;  %2797 = vmatprep.subr.mxu0 %v2658_v44  ;;  %2133 = vrot.lane.b32.xlu1 %v4734_v61, %s3129_s16 }
 0x69d   : > { %2798 = vmatpush1.msra.mxu0 %v2657_v51  ;;  %2439 = vrot.lane.b32.xlu0 %v4534_v53, %s3130_s17  ;;  %v2655_v53 = vld [vmem:[#allocation3 + $0x50] sm:$0xff]  ;;  %v2645_v51 = vld [vmem:[#allocation3] sm:$0xff] }
 0x69e   : > { %v2474_v30 = vpop.permute.xlu1 %2473  ;;  %v2030_v57 = vpop.permute.xlu0 %2029  ;;  %v2728_v20 = vld [vmem:[#allocation3 + $0x298] sm:$0xff] }
 0x69f   : > { %2619 = vst.msk [vmem:[#allocation3 + $0x288] sm:$0xff] %vm1215_vm5, %v2474_v30  ;;  %2862 = vmatprep.subr.mxu1 %v2728_v20  ;;  %v5131_v30 = vld [vmem:[#allocation13_spill] sm:$0xff] }
 0x6a0   : > { %2211 = vst.msk [vmem:[#allocation3 + $0x48] sm:$0xff] %vm842_vm4, %v2030_v57  ;;  %2505 = vrot.lane.b32.xlu1 %v4739_v29, %s3130_s17  ;;  %2863 = vmatpush1.msra.mxu1 %v2727_v54  ;;  %v2715_v54 = vld [vmem:[#allocation3 + $0x230] sm:$0xff] }
 0x6a1   : > { %2065 = vrot.lane.b32.xlu0 %v4544_v11, %s3129_s16  ;;  %v2725_v11 = vld [vmem:[#allocation3 + $0x280] sm:$0xff] }
 0x6a2   : > { %v2100_v61 = vpop.permute.xlu1 %2099  ;;  %v2402_v59 = vpop.permute.xlu0 %2401 }
 0x6a3   : > { %v2656_v41 = vld [vmem:[#allocation3 + $0x58] sm:$0xff]  ;;  %2246 = vst.msk [vmem:[#allocation3 + $0x278] sm:$0xff] %vm842_vm4, %v2100_v61  ;;  %v5132_v61 = vld [vmem:[#allocation12_spill] sm:$0xff] }
 0x6a4   : > { %2583 = vst.msk [vmem:[#allocation3 + $0x48] sm:$0xff] %vm1215_vm5, %v2402_v59  ;;  %2799 = vmatprep.subr.mxu0 %v2656_v41  ;;  %2131 = vrot.lane.b32.xlu1 %v4741_v7, %s3129_s16 }
 0x6a5   : > { %2800 = vmatpush1.msra.mxu0 %v2655_v53  ;;  %2437 = vrot.lane.b32.xlu0 %v4542_v55, %s3130_s17  ;;  %v2653_v55 = vld [vmem:[#allocation3 + $0x40] sm:$0xff]  ;;  %v2642_v53 = vld [vmem:[%s5098_s1 + $0x8] sm:$0xff] }
 0x6a6   : > { %v2472_v29 = vpop.permute.xlu1 %2471  ;;  %v2028_v39 = vpop.permute.xlu0 %2027  ;;  %v2726_v36 = vld [vmem:[#allocation3 + $0x288] sm:$0xff]  ;;  %2843 = vmatprep.mubr.f32.mxu0 %v2642_v53 }
 0x6a7   : > { %2618 = vst.msk [vmem:[#allocation3 + $0x278] sm:$0xff] %vm1215_vm5, %v2472_v29  ;;  %2864 = vmatprep.subr.mxu1 %v2726_v36 }
 0x6a8   : > { %2210 = vst.msk [vmem:[#allocation3 + $0x38] sm:$0xff] %vm842_vm4, %v2028_v39  ;;  %2503 = vrot.lane.b32.xlu1 %v4746_v32, %s3130_s17  ;;  %2865 = vmatpush1.msra.mxu1 %v2725_v11  ;;  %v2713_v11 = vld [vmem:[#allocation3 + $0x220] sm:$0xff] }
 0x6a9   : > { %2063 = vrot.lane.b32.xlu0 %v4552_v19, %s3129_s16  ;;  %v2723_v19 = vld [vmem:[#allocation3 + $0x270] sm:$0xff] }
 0x6aa   : > { %v2098_v7 = vpop.permute.xlu1 %2097  ;;  %v2400_v43 = vpop.permute.xlu0 %2399 }
 0x6ab   : > { %v2654_v26 = vld [vmem:[#allocation3 + $0x48] sm:$0xff]  ;;  %2245 = vst.msk [vmem:[#allocation3 + $0x268] sm:$0xff] %vm842_vm4, %v2098_v7  ;;  %v3132_v7 = vmov 0  }
 0x6ac   : > { %2582 = vst.msk [vmem:[#allocation3 + $0x38] sm:$0xff] %vm1215_vm5, %v2400_v43  ;;  %2801 = vmatprep.subr.mxu0 %v2654_v26  ;;  %2129 = vrot.lane.b32.xlu1 %v4748_v0, %s3129_s16  ;;  %v2769_v43 = vld [vmem:[%s5099_s2] sm:$0xff] }
 0x6ad   : > { %2802 = vmatpush1.msra.mxu0 %v2653_v55  ;;  %2435 = vrot.lane.b32.xlu0 %v5123_v22, %s3130_s17  ;;  %v2705_v55 = vld [vmem:[#allocation3 + $0x1e0] sm:$0xff] }
 0x6ae   : > { %v2470_v32 = vpop.permute.xlu1 %2469  ;;  %v2026_v4 = vpop.permute.xlu0 %2025  ;;  %v2724_v46 = vld [vmem:[#allocation3 + $0x278] sm:$0xff]  ;;  %3100 = vset.pattern.permute.xlu0 %v3132_v7 }
 0x6af   : > { %2617 = vst.msk [vmem:[#allocation3 + $0x268] sm:$0xff] %vm1215_vm5, %v2470_v32  ;;  %2866 = vmatprep.subr.mxu1 %v2724_v46 }
 0x6b0   : > { %2209 = vst.msk [vmem:[#allocation3 + $0x28] sm:$0xff] %vm842_vm4, %v2026_v4  ;;  %2501 = vrot.lane.b32.xlu1 %v4754_v31, %s3130_s17  ;;  %2867 = vmatpush1.msra.mxu1 %v2723_v19  ;;  %v2711_v4 = vld [vmem:[#allocation3 + $0x210] sm:$0xff] }
 0x6b1   : > { %2061 = vrot.lane.b32.xlu0 %v5124_v5, %s3129_s16 }
 0x6b2   : > { %v2096_v0 = vpop.permute.xlu1 %2095  ;;  %v2398_v10 = vpop.permute.xlu0 %2397 }
 0x6b3   : > { %v2652_v58 = vld [vmem:[#allocation3 + $0x38] sm:$0xff]  ;;  %2244 = vst.msk [vmem:[#allocation3 + $0x258] sm:$0xff] %vm842_vm4, %v2096_v0 }
 0x6b4   : > { %2581 = vst.msk [vmem:[#allocation3 + $0x28] sm:$0xff] %vm1215_vm5, %v2398_v10  ;;  %2803 = vmatprep.subr.mxu0 %v2652_v58  ;;  %2127 = vrot.lane.b32.xlu1 %v4756_v14, %s3129_s16  ;;  %v2703_v58 = vld [vmem:[#allocation3 + $0x1d0] sm:$0xff] }
 0x6b5   : > { %2804 = vmatpush1.msra.mxu0 %v2651_v45  ;;  %2433 = vrot.lane.b32.xlu0 %v5125_v25, %s3130_s17  ;;  %v2709_v45 = vld [vmem:[#allocation3 + $0x200] sm:$0xff] }
 0x6b6   : > { %v2468_v31 = vpop.permute.xlu1 %2467  ;;  %v2024_v12 = vpop.permute.xlu0 %2023  ;;  %v2722_v17 = vld [vmem:[#allocation3 + $0x268] sm:$0xff] }
 0x6b7   : > { %2616 = vst.msk [vmem:[#allocation3 + $0x258] sm:$0xff] %vm1215_vm5, %v2468_v31  ;;  %2868 = vmatprep.subr.mxu1 %v2722_v17 }
 0x6b8   : > { %2208 = vst.msk [vmem:[#allocation3 + $0x18] sm:$0xff] %vm842_vm4, %v2024_v12  ;;  %2499 = vrot.lane.b32.xlu1 %v4762_v34, %s3130_s17  ;;  %2869 = vmatpush1.msra.mxu1 %v2721_v48 }
 0x6b9   : > { %2059 = vrot.lane.b32.xlu0 %v5126_v60, %s3129_s16  ;;  %v2701_v60 = vld [vmem:[#allocation3 + $0x1c0] sm:$0xff] }
 0x6ba   : > { %v2094_v14 = vpop.permute.xlu1 %2093  ;;  %v2396_v42 = vpop.permute.xlu0 %2395 }
 0x6bb   : > { %v2650_v24 = vld [vmem:[#allocation3 + $0x28] sm:$0xff]  ;;  %2243 = vst.msk [vmem:[#allocation3 + $0x248] sm:$0xff] %vm842_vm4, %v2094_v14 }
 0x6bc   : > { %2580 = vst.msk [vmem:[#allocation3 + $0x18] sm:$0xff] %vm1215_vm5, %v2396_v42  ;;  %2805 = vmatprep.subr.mxu0 %v2650_v24  ;;  %2125 = vrot.lane.b32.xlu1 %v4764_v63, %s3129_s16 }
 0x6bd   : > { %2806 = vmatpush1.msra.mxu0 %v2649_v47  ;;  %2431 = vrot.lane.b32.xlu0 %v5127_v28, %s3130_s17  ;;  %v2767_v47 = vld [vmem:[#allocation3 + $0x3d0] sm:$0xff] }
 0x6be   : > { %v2466_v34 = vpop.permute.xlu1 %2465  ;;  %v2022_v6 = vpop.permute.xlu0 %2021  ;;  %v2720_v3 = vld [vmem:[#allocation3 + $0x258] sm:$0xff] }
 0x6bf   : > { %2615 = vst.msk [vmem:[#allocation3 + $0x248] sm:$0xff] %vm1215_vm5, %v2466_v34  ;;  %2870 = vmatprep.subr.mxu1 %v2720_v3  ;;  %v2699_v3 = vld [vmem:[#allocation3 + $0x1b0] sm:$0xff] }
 0x6c0   : > { %2207 = vst.msk [vmem:[#allocation3 + $0x8] sm:$0xff] %vm842_vm4, %v2022_v6  ;;  %2497 = vrot.lane.b32.xlu1 %v4770_v33, %s3130_s17  ;;  %2871 = vmatpush1.msra.mxu1 %v2719_v50 }
 0x6c1   : > { %2057 = vrot.lane.b32.xlu0 %v5128_v8, %s3129_s16 }
 0x6c2   : > { %v2092_v63 = vpop.permute.xlu1 %2091  ;;  %v2394_v40 = vpop.permute.xlu0 %2393 }
 0x6c3   : > { %v2648_v37 = vld [vmem:[#allocation3 + $0x18] sm:$0xff]  ;;  %2242 = vst.msk [vmem:[#allocation3 + $0x238] sm:$0xff] %vm842_vm4, %v2092_v63 }
 0x6c4   : > { %2579 = vst.msk [vmem:[#allocation3 + $0x8] sm:$0xff] %vm1215_vm5, %v2394_v40  ;;  %2807 = vmatprep.subr.mxu0 %v2648_v37  ;;  %2123 = vrot.lane.b32.xlu1 %v4772_v13, %s3129_s16  ;;  %v2765_v40 = vld [vmem:[#allocation3 + $0x3c0] sm:$0xff] }
 0x6c5   : > { %2808 = vmatpush1.msra.mxu0 %v2647_v49  ;;  %2429 = vrot.lane.b32.xlu0 %v5129_v27, %s3130_s17 }
 0x6c6   : > { %v2464_v33 = vpop.permute.xlu1 %2463  ;;  %v2718_v15 = vld [vmem:[#allocation3 + $0x248] sm:$0xff] }
 0x6c7   : > { %2614 = vst.msk [vmem:[#allocation3 + $0x238] sm:$0xff] %vm1215_vm5, %v2464_v33  ;;  %v2084_v21 = vpop.permute.xlu0 %2083  ;;  %2872 = vmatprep.subr.mxu1 %v2718_v15  ;;  %v2697_v33 = vld [vmem:[#allocation3 + $0x1a0] sm:$0xff] }
 0x6c8   : > { %2238 = vst.msk [vmem:[#allocation3 + $0x1f8] sm:$0xff] %vm842_vm4, %v2084_v21  ;;  %2495 = vrot.lane.b32.xlu1 %v4778_v9, %s3130_s17  ;;  %2873 = vmatpush1.msra.mxu1 %v2717_v52 }
 0x6c9   : > { %2055 = vrot.lane.b32.xlu0 %v5130_v62, %s3129_s16  ;;  %v2763_v62 = vld [vmem:[#allocation3 + $0x3b0] sm:$0xff] }
 0x6ca   : > { %v2090_v13 = vpop.permute.xlu1 %2089 }
 0x6cb   : > { %v2646_v23 = vld [vmem:[#allocation3 + $0x8] sm:$0xff]  ;;  %2241 = vst.msk [vmem:[#allocation3 + $0x228] sm:$0xff] %vm842_vm4, %v2090_v13  ;;  %v2456_v44 = vpop.permute.xlu0 %2455 }
 0x6cc   : > { %2809 = vmatprep.subr.mxu0 %v2646_v23  ;;  %2610 = vst.msk [vmem:[#allocation3 + $0x1f8] sm:$0xff] %vm1215_vm5, %v2456_v44  ;;  %2121 = vrot.lane.b32.xlu1 %v4785_v16, %s3129_s16 }
 0x6cd   : > { %2810 = vmatpush1.msra.mxu0 %v2645_v51  ;;  %2427 = vrot.lane.b32.xlu0 %v5131_v30, %s3130_s17  ;;  %v2695_v51 = vld [vmem:[#allocation3 + $0x190] sm:$0xff] }
 0x6ce   : > { %v2462_v9 = vpop.permute.xlu1 %2461  ;;  %v2716_v57 = vld [vmem:[#allocation3 + $0x238] sm:$0xff] }
 0x6cf   : > { %2613 = vst.msk [vmem:[#allocation3 + $0x228] sm:$0xff] %vm1215_vm5, %v2462_v9  ;;  %v2082_v20 = vpop.permute.xlu0 %2081  ;;  %2874 = vmatprep.subr.mxu1 %v2716_v57 }
 0x6d0   : > { %2237 = vst.msk [vmem:[#allocation3 + $0x1e8] sm:$0xff] %vm842_vm4, %v2082_v20  ;;  %2493 = vrot.lane.b32.xlu1 %v4792_v18, %s3130_s17  ;;  %2875 = vmatpush1.msra.mxu1 %v2715_v54  ;;  %v2707_v18 = vld [vmem:[#allocation3 + $0x1f0] sm:$0xff]  ;;  %v2761_v20 = vld [vmem:[#allocation3 + $0x3a0] sm:$0xff] }
 0x6d1   : > { %2053 = vrot.lane.b32.xlu0 %v5132_v61, %s3129_s16 }
 0x6d2   : > { %v2088_v16 = vpop.permute.xlu1 %2087 }
 0x6d3   : > { %2240 = vst.msk [vmem:[#allocation3 + $0x218] sm:$0xff] %vm842_vm4, %v2088_v16  ;;  %v2454_v59 = vpop.permute.xlu0 %2453  ;;  %v2708_v41 = vld [vmem:[#allocation3 + $0x1f8] sm:$0xff] }
 0x6d4   : > { %2609 = vst.msk [vmem:[#allocation3 + $0x1e8] sm:$0xff] %vm1215_vm5, %v2454_v59  ;;  %2811 = vmatprep.subr.mxu0 %v2708_v41  ;;  %2119 = vrot.lane.b32.xlu1 %v4799_v2, %s3129_s16  ;;  %v2644_v2 = vld [vmem:[%s5098_s1 + $0x18] sm:$0xff]  ;;  %v2693_v59 = vld [vmem:[#allocation3 + $0x180] sm:$0xff] }
 0x6d5   : > { %2425 = vrot.lane.b32.xlu0 %v4600_v1, %s3130_s17  ;;  %2812 = vmatpush2.msra.mxu0 %v2707_v18 }
 0x6d6   : > { %v2460_v29 = vpop.permute.xlu1 %2459  ;;  %v2714_v39 = vld [vmem:[#allocation3 + $0x228] sm:$0xff]  ;;  %3065 = vmatprep.mubr.msk.f32.mxu1 %vm2775_vm7, %v2644_v2  ;;  %v2691_v2 = vld [vmem:[#allocation3 + $0x170] sm:$0xff] }
 0x6d7   : > { %2612 = vst.msk [vmem:[#allocation3 + $0x218] sm:$0xff] %vm1215_vm5, %v2460_v29  ;;  %v2080_v36 = vpop.permute.xlu0 %2079  ;;  %2876 = vmatprep.subr.mxu1 %v2714_v39  ;;  %v2759_v29 = vld [vmem:[#allocation3 + $0x390] sm:$0xff] }
 0x6d8   : > { %2236 = vst.msk [vmem:[#allocation3 + $0x1d8] sm:$0xff] %vm842_vm4, %v2080_v36  ;;  %2491 = vrot.lane.b32.xlu1 %v4806_v38, %s3130_s17  ;;  %2877 = vmatpush1.msra.mxu1 %v2713_v11 }
 0x6d9   : > { %2117 = vrot.lane.b32.xlu0 %v4813_v35, %s3129_s16  ;;  %s245_s16 = scalar_lea.vmem %s5102_s5, %s3063_s10 }
 0x6da   : > { %v2086_v1 = vpop.permute.xlu1 %2085 }
 0x6db   : > { %2239 = vst.msk [vmem:[#allocation3 + $0x208] sm:$0xff] %vm842_vm4, %v2086_v1  ;;  %v1804_v38 = vpop.permute.xlu0 %1803  ;;  %v2706_v26 = vld [vmem:[#allocation3 + $0x1e8] sm:$0xff] }
 0x6dc   : > { %1896 = vst.msk [vmem:[#allocation3 + $0x3d8] sm:$0xff] %vm469_vm3, %v1804_v38  ;;  %2813 = vmatprep.subr.mxu0 %v2706_v26  ;;  %2489 = vrot.lane.b32.xlu1 %v4826_v56, %s3130_s17  ;;  %v2757_v38 = vld [vmem:[#allocation3 + $0x380] sm:$0xff] }
 0x6dd   : > { %2814 = vmatpush2.msra.mxu0 %v2705_v55  ;;  %2772 = vperm.xlu0 %3100, %v2769_v43  }
 0x6de   : > { %v2452_v35 = vpop.permute.xlu1 %2451  ;;  %v2712_v22 = vld [vmem:[#allocation3 + $0x218] sm:$0xff] }
 0x6df   : > { %2608 = vst.msk [vmem:[#allocation3 + $0x1d8] sm:$0xff] %vm1215_vm5, %v2452_v35  ;;  %v2458_v32 = vpop.permute.xlu0 %2457  ;;  %2878 = vmatprep.subr.mxu1 %v2712_v22  ;;  %v2689_v22 = vld [vmem:[#allocation3 + $0x160] sm:$0xff] }
 0x6e0   : > { %2611 = vst.msk [vmem:[#allocation3 + $0x208] sm:$0xff] %vm1215_vm5, %v2458_v32  ;;  %2879 = vmatpush1.msra.mxu1 %v2711_v4 }
 0x6e2   : > { %v2078_v46 = vpop.permute.xlu1 %2077 }
 0x6e3   : > { %2235 = vst.msk [vmem:[#allocation3 + $0x1c8] sm:$0xff] %vm842_vm4, %v2078_v46  ;;  %v2144_v19 = vpop.permute.xlu0 %2143 }
 0x6e4   : > { %2268 = vst.msk [vmem:[#allocation3 + $0x3d8] sm:$0xff] %vm842_vm4, %v2144_v19  ;;  %v2755_v19 = vld [vmem:[#allocation3 + $0x370] sm:$0xff] }
 0x6e6   : > { %v1802_v56 = vpop.permute.xlu1 %1801  ;;  %v2704_v5 = vld [vmem:[#allocation3 + $0x1d8] sm:$0xff] }
 0x6e7   : > { %1895 = vst.msk [vmem:[#allocation3 + $0x3c8] sm:$0xff] %vm469_vm3, %v1802_v56  ;;  %v2450_v0 = vpop.permute.xlu0 %2449  ;;  %2815 = vmatprep.subr.mxu0 %v2704_v5  ;;  %v2710_v10 = vld [vmem:[#allocation3 + $0x208] sm:$0xff] }
 0x6e8   : > { %2607 = vst.msk [vmem:[#allocation3 + $0x1c8] sm:$0xff] %vm1215_vm5, %v2450_v0  ;;  %2880 = vmatprep.subr.mxu1 %v2710_v10  ;;  %2816 = vmatpush2.msra.mxu0 %v2703_v58  ;;  %v2687_v10 = vld [vmem:[#allocation3 + $0x150] sm:$0xff] }
 0x6e9   : > { %2881 = vmatpush1.msra.mxu1 %v2709_v45 }
 0x6ea   : > { %v2516_v25 = vpop.permute.xlu1 %2515 }
 0x6eb   : > { %2640 = vst.msk [vmem:[#allocation3 + $0x3d8] sm:$0xff] %vm1215_vm5, %v2516_v25  ;;  %v2076_v31 = vpop.permute.xlu0 %2075 }
 0x6ec   : > { %2234 = vst.msk [vmem:[#allocation3 + $0x1b8] sm:$0xff] %vm842_vm4, %v2076_v31  ;;  %v2753_v31 = vld [vmem:[#allocation3 + $0x360] sm:$0xff] }
 0x6ee   : > { %v2142_v12 = vpop.permute.xlu1 %2141 }
 0x6ef   : > { %2267 = vst.msk [vmem:[#allocation3 + $0x3c8] sm:$0xff] %vm842_vm4, %v2142_v12  ;;  %v2448_v17 = vpop.permute.xlu0 %2447  ;;  %v2702_v48 = vld [vmem:[#allocation3 + $0x1c8] sm:$0xff] }
 0x6f0   : > { %2606 = vst.msk [vmem:[#allocation3 + $0x1b8] sm:$0xff] %vm1215_vm5, %v2448_v17  ;;  %2817 = vmatprep.subr.mxu0 %v2702_v48 }
 0x6f1   : > { %2818 = vmatpush2.msra.mxu0 %v2701_v60  ;;  %v2685_v60 = vld [vmem:[#allocation3 + $0x140] sm:$0xff] }
 0x6f2   : > { %v2514_v14 = vpop.permute.xlu1 %2513  ;;  %v2768_v42 = vld [vmem:[#allocation3 + $0x3d8] sm:$0xff] }
 0x6f3   : > { %2639 = vst.msk [vmem:[#allocation3 + $0x3c8] sm:$0xff] %vm1215_vm5, %v2514_v14  ;;  %v2074_v24 = vpop.permute.xlu0 %2073  ;;  %2886 = vmatprep.subr.mxu1 %v2768_v42 }
 0x6f4   : > { %2233 = vst.msk [vmem:[#allocation3 + $0x1a8] sm:$0xff] %vm842_vm4, %v2074_v24  ;;  %2887 = vmatpush2.msra.mxu1 %v2767_v47  ;;  %v2751_v47 = vld [vmem:[#allocation3 + $0x350] sm:$0xff] }
 0x6f6   : > { %v2140_v28 = vpop.permute.xlu1 %2139 }
 0x6f7   : > { %2266 = vst.msk [vmem:[#allocation3 + $0x3b8] sm:$0xff] %vm842_vm4, %v2140_v28  ;;  %v2446_v34 = vpop.permute.xlu0 %2445  ;;  %v2700_v6 = vld [vmem:[#allocation3 + $0x1b8] sm:$0xff] }
 0x6f8   : > { %2605 = vst.msk [vmem:[#allocation3 + $0x1a8] sm:$0xff] %vm1215_vm5, %v2446_v34  ;;  %2819 = vmatprep.subr.mxu0 %v2700_v6 }
 0x6f9   : > { %2820 = vmatpush2.msra.mxu0 %v2699_v3  ;;  %v2683_v3 = vld [vmem:[#allocation3 + $0x130] sm:$0xff] }
 0x6fa   : > { %v2512_v50 = vpop.permute.xlu1 %2511  ;;  %v2766_v8 = vld [vmem:[#allocation3 + $0x3c8] sm:$0xff] }
 0x6fb   : > { %2638 = vst.msk [vmem:[#allocation3 + $0x3b8] sm:$0xff] %vm1215_vm5, %v2512_v50  ;;  %v2072_v63 = vpop.permute.xlu0 %2071  ;;  %2888 = vmatprep.subr.mxu1 %v2766_v8 }
 0x6fc   : > { %2232 = vst.msk [vmem:[#allocation3 + $0x198] sm:$0xff] %vm842_vm4, %v2072_v63  ;;  %2889 = vmatpush2.msra.mxu1 %v2765_v40  ;;  %v2749_v40 = vld [vmem:[#allocation3 + $0x340] sm:$0xff] }
 0x6fe   : > { %v2138_v37 = vpop.permute.xlu1 %2137 }
 0x6ff   : > { %2265 = vst.msk [vmem:[#allocation3 + $0x3a8] sm:$0xff] %vm842_vm4, %v2138_v37  ;;  %v2444_v49 = vpop.permute.xlu0 %2443  ;;  %v2698_v27 = vld [vmem:[#allocation3 + $0x1a8] sm:$0xff] }
 0x700   : > { %2604 = vst.msk [vmem:[#allocation3 + $0x198] sm:$0xff] %vm1215_vm5, %v2444_v49  ;;  %2821 = vmatprep.subr.mxu0 %v2698_v27 }
 0x701   : > { %2822 = vmatpush2.msra.mxu0 %v2697_v33  ;;  %v2681_v33 = vld [vmem:[#allocation3 + $0x120] sm:$0xff] }
 0x702   : > { %v2510_v15 = vpop.permute.xlu1 %2509  ;;  %v2764_v21 = vld [vmem:[#allocation3 + $0x3b8] sm:$0xff] }
 0x703   : > { %2637 = vst.msk [vmem:[#allocation3 + $0x3a8] sm:$0xff] %vm1215_vm5, %v2510_v15  ;;  %v2070_v52 = vpop.permute.xlu0 %2069  ;;  %2890 = vmatprep.subr.mxu1 %v2764_v21 }
 0x704   : > { %2231 = vst.msk [vmem:[#allocation3 + $0x188] sm:$0xff] %vm842_vm4, %v2070_v52  ;;  %2891 = vmatpush2.msra.mxu1 %v2763_v62  ;;  %v2747_v62 = vld [vmem:[#allocation3 + $0x330] sm:$0xff] }
 0x706   : > { %v2136_v13 = vpop.permute.xlu1 %2135 }
 0x707   : > { %2264 = vst.msk [vmem:[#allocation3 + $0x398] sm:$0xff] %vm842_vm4, %v2136_v13  ;;  %v2442_v23 = vpop.permute.xlu0 %2441  ;;  %v2696_v44 = vld [vmem:[#allocation3 + $0x198] sm:$0xff] }
 0x708   : > { %2603 = vst.msk [vmem:[#allocation3 + $0x188] sm:$0xff] %vm1215_vm5, %v2442_v23  ;;  %2823 = vmatprep.subr.mxu0 %v2696_v44 }
 0x709   : > { %2824 = vmatpush2.msra.mxu0 %v2695_v51  ;;  %v2679_v51 = vld [vmem:[#allocation3 + $0x110] sm:$0xff] }
 0x70a   : > { %v2508_v30 = vpop.permute.xlu1 %2507  ;;  %v2762_v9 = vld [vmem:[#allocation3 + $0x3a8] sm:$0xff] }
 0x70b   : > { %2636 = vst.msk [vmem:[#allocation3 + $0x398] sm:$0xff] %vm1215_vm5, %v2508_v30  ;;  %v2068_v57 = vpop.permute.xlu0 %2067  ;;  %2892 = vmatprep.subr.mxu1 %v2762_v9 }
 0x70c   : > { %2230 = vst.msk [vmem:[#allocation3 + $0x178] sm:$0xff] %vm842_vm4, %v2068_v57  ;;  %2893 = vmatpush2.msra.mxu1 %v2761_v20  ;;  %v2745_v20 = vld [vmem:[#allocation3 + $0x320] sm:$0xff] }
 0x70e   : > { %v2134_v54 = vpop.permute.xlu1 %2133 }
 0x70f   : > { %2263 = vst.msk [vmem:[#allocation3 + $0x388] sm:$0xff] %vm842_vm4, %v2134_v54  ;;  %v2440_v61 = vpop.permute.xlu0 %2439  ;;  %v2694_v16 = vld [vmem:[#allocation3 + $0x188] sm:$0xff] }
 0x710   : > { %2602 = vst.msk [vmem:[#allocation3 + $0x178] sm:$0xff] %vm1215_vm5, %v2440_v61  ;;  %2825 = vmatprep.subr.mxu0 %v2694_v16  ;;  %v2641_v16 = vld [vmem:[%s5098_s1] sm:$0xff] }
 0x711   : > { %2826 = vmatpush2.msra.mxu0 %v2693_v59  ;;  %v2677_v59 = vld [vmem:[#allocation3 + $0x100] sm:$0xff] }
 0x712   : > { %v2506_v41 = vpop.permute.xlu1 %2505  ;;  %v2760_v53 = vld [vmem:[#allocation3 + $0x398] sm:$0xff] }
 0x713   : > { %2635 = vst.msk [vmem:[#allocation3 + $0x388] sm:$0xff] %vm1215_vm5, %v2506_v41  ;;  %v2066_v18 = vpop.permute.xlu0 %2065  ;;  %2894 = vmatprep.subr.mxu1 %v2760_v53  ;;  %v2743_v53 = vld [vmem:[#allocation3 + $0x310] sm:$0xff] }
 0x714   : > { %2229 = vst.msk [vmem:[#allocation3 + $0x168] sm:$0xff] %vm842_vm4, %v2066_v18  ;;  %2895 = vmatpush2.msra.mxu1 %v2759_v29  ;;  %v2643_v29 = vld [vmem:[%s5098_s1 + $0x10] sm:$0xff] }
 0x716   : > { %v2132_v39 = vpop.permute.xlu1 %2131 }
 0x717   : > { %2262 = vst.msk [vmem:[#allocation3 + $0x378] sm:$0xff] %vm842_vm4, %v2132_v39  ;;  %v2438_v36 = vpop.permute.xlu0 %2437  ;;  %v2692_v11 = vld [vmem:[#allocation3 + $0x178] sm:$0xff]  ;;  %v2741_v39 = vld [vmem:[#allocation3 + $0x300] sm:$0xff] }
 0x718   : > { %2601 = vst.msk [vmem:[#allocation3 + $0x168] sm:$0xff] %vm1215_vm5, %v2438_v36  ;;  %2827 = vmatprep.subr.mxu0 %v2692_v11 }
 0x719   : > { %2828 = vmatpush2.msra.mxu0 %v2691_v2 }
 0x71a   : > { %v2504_v1 = vpop.permute.xlu1 %2503  ;;  %v2758_v7 = vld [vmem:[#allocation3 + $0x388] sm:$0xff] }
 0x71b   : > { %2634 = vst.msk [vmem:[#allocation3 + $0x378] sm:$0xff] %vm1215_vm5, %v2504_v1  ;;  %v2064_v43 = vpop.permute.xlu0 %2063  ;;  %2896 = vmatprep.subr.mxu1 %v2758_v7 }
 0x71c   : > { %2228 = vst.msk [vmem:[#allocation3 + $0x158] sm:$0xff] %vm842_vm4, %v2064_v43  ;;  %2897 = vmatpush2.msra.mxu1 %v2757_v38 }
 0x71e   : > { %v2130_v26 = vpop.permute.xlu1 %2129 }
 0x71f   : > { %2261 = vst.msk [vmem:[#allocation3 + $0x368] sm:$0xff] %vm842_vm4, %v2130_v26  ;;  %v2436_v55 = vpop.permute.xlu0 %2435  ;;  %v2690_v35 = vld [vmem:[#allocation3 + $0x168] sm:$0xff] }
 0x720   : > { %2600 = vst.msk [vmem:[#allocation3 + $0x158] sm:$0xff] %vm1215_vm5, %v2436_v55  ;;  %2829 = vmatprep.subr.mxu0 %v2690_v35 }
 0x721   : > { %2830 = vmatpush2.msra.mxu0 %v2689_v22 }
 0x722   : > { %v2502_v32 = vpop.permute.xlu1 %2501  ;;  %v2756_v4 = vld [vmem:[#allocation3 + $0x378] sm:$0xff] }
 0x723   : > { %2633 = vst.msk [vmem:[#allocation3 + $0x368] sm:$0xff] %vm1215_vm5, %v2502_v32  ;;  %v2062_v46 = vpop.permute.xlu0 %2061  ;;  %2898 = vmatprep.subr.mxu1 %v2756_v4 }
 0x724   : > { %2227 = vst.msk [vmem:[#allocation3 + $0x148] sm:$0xff] %vm842_vm4, %v2062_v46  ;;  %2899 = vmatpush2.msra.mxu1 %v2755_v19 }
 0x726   : > { %v2128_v56 = vpop.permute.xlu1 %2127 }
 0x727   : > { %2260 = vst.msk [vmem:[#allocation3 + $0x358] sm:$0xff] %vm842_vm4, %v2128_v56  ;;  %v2434_v5 = vpop.permute.xlu0 %2433  ;;  %v2688_v0 = vld [vmem:[#allocation3 + $0x158] sm:$0xff] }
 0x728   : > { %2599 = vst.msk [vmem:[#allocation3 + $0x148] sm:$0xff] %vm1215_vm5, %v2434_v5  ;;  %2831 = vmatprep.subr.mxu0 %v2688_v0 }
 0x729   : > { %2832 = vmatpush2.msra.mxu0 %v2687_v10 }
 0x72a   : > { %v2500_v58 = vpop.permute.xlu1 %2499  ;;  %v2754_v45 = vld [vmem:[#allocation3 + $0x368] sm:$0xff] }
 0x72b   : > { %2632 = vst.msk [vmem:[#allocation3 + $0x358] sm:$0xff] %vm1215_vm5, %v2500_v58  ;;  %v2060_v25 = vpop.permute.xlu0 %2059  ;;  %2900 = vmatprep.subr.mxu1 %v2754_v45 }
 0x72c   : > { %2226 = vst.msk [vmem:[#allocation3 + $0x138] sm:$0xff] %vm842_vm4, %v2060_v25  ;;  %2901 = vmatpush2.msra.mxu1 %v2753_v31 }
 0x72e   : > { %v2126_v12 = vpop.permute.xlu1 %2125 }
 0x72f   : > { %2259 = vst.msk [vmem:[#allocation3 + $0x348] sm:$0xff] %vm842_vm4, %v2126_v12  ;;  %v2432_v17 = vpop.permute.xlu0 %2431  ;;  %v2686_v48 = vld [vmem:[#allocation3 + $0x148] sm:$0xff] }
 0x730   : > { %2598 = vst.msk [vmem:[#allocation3 + $0x138] sm:$0xff] %vm1215_vm5, %v2432_v17  ;;  %2833 = vmatprep.subr.mxu0 %v2686_v48 }
 0x731   : > { %2834 = vmatpush2.msra.mxu0 %v2685_v60 }
 0x732   : > { %v2498_v14 = vpop.permute.xlu1 %2497  ;;  %v2752_v42 = vld [vmem:[#allocation3 + $0x358] sm:$0xff] }
 0x733   : > { %2631 = vst.msk [vmem:[#allocation3 + $0x348] sm:$0xff] %vm1215_vm5, %v2498_v14  ;;  %v2058_v24 = vpop.permute.xlu0 %2057  ;;  %2902 = vmatprep.subr.mxu1 %v2752_v42 }
 0x734   : > { %2225 = vst.msk [vmem:[#allocation3 + $0x128] sm:$0xff] %vm842_vm4, %v2058_v24  ;;  %2903 = vmatpush2.msra.mxu1 %v2751_v47 }
 0x736   : > { %v2124_v28 = vpop.permute.xlu1 %2123 }
 0x737   : > { %2258 = vst.msk [vmem:[#allocation3 + $0x338] sm:$0xff] %vm842_vm4, %v2124_v28  ;;  %v2430_v34 = vpop.permute.xlu0 %2429  ;;  %v2684_v6 = vld [vmem:[#allocation3 + $0x138] sm:$0xff] }
 0x738   : > { %2597 = vst.msk [vmem:[#allocation3 + $0x128] sm:$0xff] %vm1215_vm5, %v2430_v34  ;;  %2835 = vmatprep.subr.mxu0 %v2684_v6 }
 0x739   : > { %2836 = vmatpush2.msra.mxu0 %v2683_v3 }
 0x73a   : > { %v2496_v50 = vpop.permute.xlu1 %2495  ;;  %v2750_v8 = vld [vmem:[#allocation3 + $0x348] sm:$0xff] }
 0x73b   : > { %2630 = vst.msk [vmem:[#allocation3 + $0x338] sm:$0xff] %vm1215_vm5, %v2496_v50  ;;  %v2056_v63 = vpop.permute.xlu0 %2055  ;;  %2904 = vmatprep.subr.mxu1 %v2750_v8 }
 0x73c   : > { %2224 = vst.msk [vmem:[#allocation3 + $0x118] sm:$0xff] %vm842_vm4, %v2056_v63  ;;  %2905 = vmatpush2.msra.mxu1 %v2749_v40 }
 0x73e   : > { %v2122_v37 = vpop.permute.xlu1 %2121 }
 0x73f   : > { %2257 = vst.msk [vmem:[#allocation3 + $0x328] sm:$0xff] %vm842_vm4, %v2122_v37  ;;  %v2428_v49 = vpop.permute.xlu0 %2427  ;;  %v2682_v27 = vld [vmem:[#allocation3 + $0x128] sm:$0xff] }
 0x740   : > { %2596 = vst.msk [vmem:[#allocation3 + $0x118] sm:$0xff] %vm1215_vm5, %v2428_v49  ;;  %2837 = vmatprep.subr.mxu0 %v2682_v27 }
 0x741   : > { %2838 = vmatpush2.msra.mxu0 %v2681_v33 }
 0x742   : > { %v2494_v15 = vpop.permute.xlu1 %2493  ;;  %v2748_v21 = vld [vmem:[#allocation3 + $0x338] sm:$0xff] }
 0x743   : > { %2629 = vst.msk [vmem:[#allocation3 + $0x328] sm:$0xff] %vm1215_vm5, %v2494_v15  ;;  %v2054_v52 = vpop.permute.xlu0 %2053  ;;  %2906 = vmatprep.subr.mxu1 %v2748_v21 }
 0x744   : > { %2223 = vst.msk [vmem:[#allocation3 + $0x108] sm:$0xff] %vm842_vm4, %v2054_v52  ;;  %2907 = vmatpush2.msra.mxu1 %v2747_v62 }
 0x746   : > { %v2120_v13 = vpop.permute.xlu1 %2119 }
 0x747   : > { %2256 = vst.msk [vmem:[#allocation3 + $0x318] sm:$0xff] %vm842_vm4, %v2120_v13  ;;  %v2426_v23 = vpop.permute.xlu0 %2425  ;;  %v2680_v44 = vld [vmem:[#allocation3 + $0x118] sm:$0xff] }
 0x748   : > { %2595 = vst.msk [vmem:[#allocation3 + $0x108] sm:$0xff] %vm1215_vm5, %v2426_v23  ;;  %2839 = vmatprep.subr.mxu0 %v2680_v44 }
 0x749   : > { %2840 = vmatpush2.msra.mxu0 %v2679_v51 }
 0x74a   : > { %v2492_v30 = vpop.permute.xlu1 %2491  ;;  %v2746_v9 = vld [vmem:[#allocation3 + $0x328] sm:$0xff] }
 0x74b   : > { %2628 = vst.msk [vmem:[#allocation3 + $0x318] sm:$0xff] %vm1215_vm5, %v2492_v30  ;;  %v2118_v57 = vpop.permute.xlu0 %2117  ;;  %2908 = vmatprep.subr.mxu1 %v2746_v9 }
 0x74c   : > { %2255 = vst.msk [vmem:[#allocation3 + $0x308] sm:$0xff] %vm842_vm4, %v2118_v57  ;;  %2909 = vmatpush2.msra.mxu1 %v2745_v20 }
 0x74e   : > { %v2490_v54 = vpop.permute.xlu1 %2489 }
 0x74f   : > { %2627 = vst.msk [vmem:[#allocation3 + $0x308] sm:$0xff] %vm1215_vm5, %v2490_v54  ;;  %v2678_v61 = vld [vmem:[#allocation3 + $0x108] sm:$0xff] }
 0x750   : > { %2841 = vmatprep.subr.mxu0 %v2678_v61 }
 0x751   : > { %2842 = vmatpush2.msra.mxu0 %v2677_v59 }
 0x752   : > { %v2744_v41 = vld [vmem:[#allocation3 + $0x318] sm:$0xff]  ;;  %2844 = vmatmul.mubr.f32.vlgmr.msra.gmra.mxu0 %v2641_v16 }
 0x753   : > { %2910 = vmatprep.subr.mxu1 %v2744_v41 }
 0x754   : > { %2911 = vmatpush2.msra.mxu1 %v2743_v53 }
 0x756   : > { %v2742_v18 = vld [vmem:[#allocation3 + $0x308] sm:$0xff] }
 0x757   : > { %2912 = vmatprep.subr.mxu1 %v2742_v18 }
 0x758   : > { %2913 = vmatpush2.msra.mxu1 %v2741_v39  ;;  %v2773_v11 = vpop.permute.xlu0 %2772 }
 0x759   : > { %2915 = vmatmul.mubr.f32.vlgmr.msra.gmra.mxu1 %v2643_v29 }
 0x812   : > { %v2845_v36 = vpop.f32.mrf.mxu0 }
 0x813   : > { %v2846_v2 = vadd.f32 %v2845_v36, %v2773_v11 }
 0x814   : > { %v2847_v1 = vpop.f32.mrf.mxu0 }
 0x815   : > { %v2848_v43 = vadd.f32 %v2847_v1, %v2773_v11 }
 0x819   : > { %v2916_v7 = vpop.f32.mrf.mxu1 }
 0x81a   : > { %v2917_v38 = vadd.f32 %v2916_v7, %v2846_v2 }
 0x81b   : > { %v2918_v26 = vpop.f32.mrf.mxu1 }
 0x81c   : > { %2921 = vst [vmem:[%s237_s9] sm:$0xff] %v2917_v38  ;;  %v2919_v55 = vadd.f32 %v2918_v26, %v2848_v43  ;;  %v2930_v32 = vmul.f32 %v2917_v38, %v2917_v38 }
 0x81e   : > { %2923 = vst.msk [vmem:[%s237_s9 + $0x8] sm:$0xff] %vm2922_vm8, %v2919_v55  ;;  %v2931_v35 = vmul.f32 %v2919_v55, %v2919_v55  ;;  %v2924_v22 = vsel %vm2922_vm8, %v2919_v55, 0.0 }
 0x81f   : > { %v2925_v4 = vadd.f32 %v2924_v22, %v2917_v38 }
 0x820   : > { %v2932_v46 = vsel %vm2922_vm8, %v2931_v35, 0.0 }
 0x821   : > { %2926 = vadd.xlane.f32.xlu1 %v2925_v4  ;;  %v2933_v19 = vadd.f32 %v2932_v46, %v2930_v32 }
 0x823   : > { %2934 = vadd.xlane.f32.xlu0 %v2933_v19 }
 0x8aa   : > { %v2927_v56 = vpop.xlane.xlu1 %2926 }
 0x8ab   : > { %2929 = vst.msk [vmem:[%s241_s13] sm:$0xff] %vm2928_vm9, %v2927_v56 }
 0x8ac   : > { %v2935_v5 = vpop.xlane.xlu0 %2934 }
 0x8ad   : > { %2936 = vst.msk [vmem:[%s245_s16] sm:$0xff] %vm2928_vm9, %v2935_v5 }
 0x8ae PF: > { %s16_s18 = sadd.s32 1, %s3109_s18  }
 0x8af   : > { %p13_p4 = scmp.ge.s32.totalorder %s16_s18, 4  }
 0x8b1   :  { %15 = sbr.rel (!%p13_p4) target bundleno = 1 (0x1), region = 86 }

</bundles_post_ra>
